<compile_context>
chip_gen: v7x
topology: tpu7x:2x2x1
jax: 0.10.0
libtpu: 0.0.40
codegen_flags: <defaults>
</compile_context>

<pallas_src>
import jax
import jax.numpy as jnp
from jax.experimental import pallas as pl
from jax.experimental.pallas import tpu as pltpu

LAST_CONV_SIZE = (23, 46)
IN_FEATURES = LAST_CONV_SIZE[0] * LAST_CONV_SIZE[1]      # 1058
OUT_IMG = (120, 215)
OUT_FEATURES = OUT_IMG[0] * OUT_IMG[1]                   # 25800
HIDDEN_DIMS = [IN_FEATURES, 256, 512, 1024, 1024]
BN_EPS = 1e-5

TN = 1664                                                # 13 * 128 lanes per output tile
N_PAD = 26624                                            # 16 * TN  (>= 25800, multiple of 128)
NUM_TILES = N_PAD // TN                                  # 16


# ----------------------------- Pallas kernel ------------------------------- #

def _fc_decoder_kernel(x_ref, w1_ref, b1_ref, w2_ref, b2_ref, w3_ref, b3_ref,
                       w4_ref, b4_ref, w5_ref, b5_ref, o_ref):
    """Fused MLP: 4x (Linear+foldedBN+ReLU) trunk + one output-column tile of
    the final Linear+Tanh. Grid axis = final-layer output tiles."""

    def dense_relu(h_bf16, w_ref, b_ref):
        y = jnp.dot(h_bf16, w_ref[...], preferred_element_type=jnp.float32)
        y = y + b_ref[...]                                # f32 epilogue (VPU)
        return jnp.maximum(y, 0.0).astype(jnp.bfloat16)   # back to bf16 for next MXU op

    # Trunk (recomputed per tile: a few MFLOP, negligible vs. the 53 MB W5 stream;
    # keeps the grid axis independent -> "parallel" / megacore friendly).
    h = x_ref[...].astype(jnp.bfloat16)
    h = dense_relu(h, w1_ref, b1_ref)
    h = dense_relu(h, w2_ref, b2_ref)
    h = dense_relu(h, w3_ref, b3_ref)
    h = dense_relu(h, w4_ref, b4_ref)

    # Final layer tile: (B, 1024) @ (1024, TN) + bias, tanh (EUP), f32 out.
    y = jnp.dot(h, w5_ref[...], preferred_element_type=jnp.float32)
    y = y + b5_ref[...]
    o_ref[...] = jnp.tanh(y)


# ------------------------------- parameters -------------------------------- #

def init_params(key):
    """Synthetic parameters matching the PyTorch module's shapes, with
    eval-mode BatchNorm folded into the preceding Linear and weights cast to
    bf16 (MXU-native). Final weight/bias are zero-padded to N_PAD columns."""
    keys = jax.random.split(key, 32)
    ki = iter(keys)

    trunk = []
    for cin, cout in zip(HIDDEN_DIMS[:-1], HIDDEN_DIMS[1:]):
        w = 0.05 * jax.random.normal(next(ki), (cout, cin), jnp.float32)   # torch (out, in)
        b = 0.05 * jax.random.normal(next(ki), (cout,), jnp.float32)
        gamma = 0.5 + jax.random.uniform(next(ki), (cout,), jnp.float32)
        beta = 0.1 * jax.random.normal(next(ki), (cout,), jnp.float32)
        run_mean = 0.1 * jax.random.normal(next(ki), (cout,), jnp.float32)
        run_var = 0.5 + jax.random.uniform(next(ki), (cout,), jnp.float32)
        scale = gamma / jnp.sqrt(run_var + BN_EPS)
        shift = beta - run_mean * scale
        # Fold BN into Linear: y = (x@W.T + b)*scale + shift = x@(W.T*scale) + (b*scale+shift)
        w_eff = (w.T * scale).astype(jnp.bfloat16)                          # (in, out)
        b_eff = (b * scale + shift).reshape(1, cout).astype(jnp.float32)
        trunk.append((w_eff, b_eff))

    # Final Linear(1024 -> 25800) + Tanh (no BN). Pad columns to N_PAD with zeros.
    w5 = 0.02 * jax.random.normal(next(ki), (OUT_FEATURES, 1024), jnp.float32)
    b5 = 0.02 * jax.random.normal(next(ki), (OUT_FEATURES,), jnp.float32)
    w5_pad = jnp.zeros((1024, N_PAD), jnp.bfloat16)
    w5_pad = w5_pad.at[:, :OUT_FEATURES].set(w5.T.astype(jnp.bfloat16))
    b5_pad = jnp.zeros((1, N_PAD), jnp.float32)
    b5_pad = b5_pad.at[:, :OUT_FEATURES].set(b5)

    return {"trunk": trunk, "w5": w5_pad, "b5": b5_pad}


# --------------------------------- wrapper ---------------------------------- #

@jax.jit
def fc_decoder_forward(x, params):
    """Mirrors FCDecoder.forward: main(input) -> view(-1, 1, 120, 215)."""
    b = x.shape[0]
    x2 = x.reshape(b, IN_FEATURES).astype(jnp.float32)
    (w1, b1), (w2, b2), (w3, b3), (w4, b4) = params["trunk"]
    w5, b5 = params["w5"], params["b5"]

    full = lambda j: (0, 0)       # resident across the whole grid (no re-DMA)
    tile_j = lambda j: (0, j)     # tiled along the final output-column axis

    out = pl.pallas_call(
        _fc_decoder_kernel,
        out_shape=jax.ShapeDtypeStruct((b, N_PAD), jnp.float32),
        grid=(NUM_TILES,),
        in_specs=[
            pl.BlockSpec((b, IN_FEATURES), full),
            pl.BlockSpec(w1.shape, full), pl.BlockSpec(b1.shape, full),
            pl.BlockSpec(w2.shape, full), pl.BlockSpec(b2.shape, full),
            pl.BlockSpec(w3.shape, full), pl.BlockSpec(b3.shape, full),
            pl.BlockSpec(w4.shape, full), pl.BlockSpec(b4.shape, full),
            pl.BlockSpec((1024, TN), tile_j),
            pl.BlockSpec((1, TN), tile_j),
        ],
        out_specs=pl.BlockSpec((b, TN), tile_j),
        compiler_params=pltpu.CompilerParams(
            dimension_semantics=("parallel",),
            vmem_limit_bytes=32 * 1024 * 1024,
        ),
    )(x2, w1, b1, w2, b2, w3, b3, w4, b4, w5, b5)

    out = out[:, :OUT_FEATURES]
    return out.reshape(b, 1, OUT_IMG[0], OUT_IMG[1])


def _reference_forward(x, params):
    """Pure-JAX reference using the same (BN-folded, bf16) parameters."""
    h = x.reshape(x.shape[0], IN_FEATURES).astype(jnp.float32)
    for (w, bvec) in params["trunk"]:
        h = h.astype(jnp.bfloat16).astype(jnp.float32)
        h = jnp.maximum(h @ w.astype(jnp.float32) + bvec, 0.0)
    h = h.astype(jnp.bfloat16).astype(jnp.float32)
    y = jnp.tanh(h @ params["w5"].astype(jnp.float32) + params["b5"])
    return y[:, :OUT_FEATURES].reshape(x.shape[0], 1, OUT_IMG[0], OUT_IMG[1])


# ----------------------------------- main ----------------------------------- #

if __name__ == "__main__":
    key = jax.random.PRNGKey(0)
    k_x, k_p = jax.random.split(key)

    batch = 2
    x = jax.random.normal(k_x, (batch, IN_FEATURES), jnp.float32)
    params = init_params(k_p)

    out = fc_decoder_forward(x, params)
    out = jax.block_until_ready(out)

    assert out.shape == (batch, 1, OUT_IMG[0], OUT_IMG[1]), out.shape
    assert bool(jnp.all(jnp.isfinite(out)))
    assert bool(jnp.all((out >= -1.0) & (out <= 1.0)))

    ref = _reference_forward(x, params)
    max_err = float(jnp.max(jnp.abs(out - ref)))
    assert max_err < 2e-2, f"mismatch vs reference: max_err={max_err}"

    print("KERNEL_OK")
</pallas_src>

<mosaic_0001>
module attributes {stable_mosaic.version = 11 : i64} {
  func.func @_fc_decoder_kernel(%arg0: i32, %arg1: memref<2x1058xf32, #tpu.memory_space<vmem>>, %arg2: memref<1058x256xbf16, #tpu.memory_space<vmem>>, %arg3: memref<1x256xf32, #tpu.memory_space<vmem>>, %arg4: memref<256x512xbf16, #tpu.memory_space<vmem>>, %arg5: memref<1x512xf32, #tpu.memory_space<vmem>>, %arg6: memref<512x1024xbf16, #tpu.memory_space<vmem>>, %arg7: memref<1x1024xf32, #tpu.memory_space<vmem>>, %arg8: memref<1024x1024xbf16, #tpu.memory_space<vmem>>, %arg9: memref<1x1024xf32, #tpu.memory_space<vmem>>, %arg10: memref<1024x1664xbf16, #tpu.memory_space<vmem>>, %arg11: memref<1x1664xf32, #tpu.memory_space<vmem>>, %arg12: memref<2x1664xf32, #tpu.memory_space<vmem>>) attributes {dimension_semantics = [#tpu.dimension_semantics<parallel>], iteration_bounds = array<i64: 16>, scalar_prefetch = 0 : i64, scratch_operands = 0 : i64, tpu.core_type = #tpu.core_type<tc>, window_params = [{pipeline_mode = #tpu.pipeline_mode<synchronous>, transform_indices = @transform_0, window_bounds = array<i64: 2, 1058>}, {pipeline_mode = #tpu.pipeline_mode<synchronous>, transform_indices = @transform_1, window_bounds = array<i64: 1058, 256>}, {pipeline_mode = #tpu.pipeline_mode<synchronous>, transform_indices = @transform_2, window_bounds = array<i64: 1, 256>}, {pipeline_mode = #tpu.pipeline_mode<synchronous>, transform_indices = @transform_3, window_bounds = array<i64: 256, 512>}, {pipeline_mode = #tpu.pipeline_mode<synchronous>, transform_indices = @transform_4, window_bounds = array<i64: 1, 512>}, {pipeline_mode = #tpu.pipeline_mode<synchronous>, transform_indices = @transform_5, window_bounds = array<i64: 512, 1024>}, {pipeline_mode = #tpu.pipeline_mode<synchronous>, transform_indices = @transform_6, window_bounds = array<i64: 1, 1024>}, {pipeline_mode = #tpu.pipeline_mode<synchronous>, transform_indices = @transform_7, window_bounds = array<i64: 1024, 1024>}, {pipeline_mode = #tpu.pipeline_mode<synchronous>, transform_indices = @transform_8, window_bounds = array<i64: 1, 1024>}, {transform_indices = @transform_9, window_bounds = array<i64: 1024, 1664>}, {transform_indices = @transform_10, window_bounds = array<i64: 1, 1664>}, {transform_indices = @transform_11, window_bounds = array<i64: 2, 1664>}]} {
    %c0 = arith.constant 0 : index
    %c0_0 = arith.constant 0 : index
    %0 = vector.load %arg1[%c0, %c0_0] : memref<2x1058xf32, #tpu.memory_space<vmem>>, vector<2x1058xf32>
    %1 = arith.truncf %0 : vector<2x1058xf32> to vector<2x1058xbf16>
    %c0_1 = arith.constant 0 : index
    %c0_2 = arith.constant 0 : index
    %2 = vector.load %arg2[%c0_1, %c0_2] : memref<1058x256xbf16, #tpu.memory_space<vmem>>, vector<1058x256xbf16>
    %cst = arith.constant dense<0.000000e+00> : vector<2x256xf32>
    %3 = tpu.matmul %1, %2, %cst {dimension_numbers = #tpu.dot_dimension_numbers<[1], [0], [0], [1], [0, 0, 1, 1], [], []>} : vector<2x1058xbf16>, vector<1058x256xbf16>, vector<2x256xf32> -> vector<2x256xf32>
    %c0_3 = arith.constant 0 : index
    %c0_4 = arith.constant 0 : index
    %4 = vector.load %arg3[%c0_3, %c0_4] : memref<1x256xf32, #tpu.memory_space<vmem>>, vector<1x256xf32>
    %5 = vector.broadcast %4 : vector<1x256xf32> to vector<2x256xf32>
    %6 = arith.addf %3, %5 : vector<2x256xf32>
    %cst_5 = arith.constant 0.000000e+00 : f32
    %7 = vector.broadcast %cst_5 : f32 to vector<2x256xf32>
    %8 = arith.maximumf %6, %7 : vector<2x256xf32>
    %9 = arith.truncf %8 : vector<2x256xf32> to vector<2x256xbf16>
    %c0_6 = arith.constant 0 : index
    %c0_7 = arith.constant 0 : index
    %10 = vector.load %arg4[%c0_6, %c0_7] : memref<256x512xbf16, #tpu.memory_space<vmem>>, vector<256x512xbf16>
    %cst_8 = arith.constant dense<0.000000e+00> : vector<2x512xf32>
    %11 = tpu.matmul %9, %10, %cst_8 {dimension_numbers = #tpu.dot_dimension_numbers<[1], [0], [0], [1], [0, 0, 1, 1], [], []>} : vector<2x256xbf16>, vector<256x512xbf16>, vector<2x512xf32> -> vector<2x512xf32>
    %c0_9 = arith.constant 0 : index
    %c0_10 = arith.constant 0 : index
    %12 = vector.load %arg5[%c0_9, %c0_10] : memref<1x512xf32, #tpu.memory_space<vmem>>, vector<1x512xf32>
    %13 = vector.broadcast %12 : vector<1x512xf32> to vector<2x512xf32>
    %14 = arith.addf %11, %13 : vector<2x512xf32>
    %cst_11 = arith.constant 0.000000e+00 : f32
    %15 = vector.broadcast %cst_11 : f32 to vector<2x512xf32>
    %16 = arith.maximumf %14, %15 : vector<2x512xf32>
    %17 = arith.truncf %16 : vector<2x512xf32> to vector<2x512xbf16>
    %c0_12 = arith.constant 0 : index
    %c0_13 = arith.constant 0 : index
    %18 = vector.load %arg6[%c0_12, %c0_13] : memref<512x1024xbf16, #tpu.memory_space<vmem>>, vector<512x1024xbf16>
    %cst_14 = arith.constant dense<0.000000e+00> : vector<2x1024xf32>
    %19 = tpu.matmul %17, %18, %cst_14 {dimension_numbers = #tpu.dot_dimension_numbers<[1], [0], [0], [1], [0, 0, 1, 1], [], []>} : vector<2x512xbf16>, vector<512x1024xbf16>, vector<2x1024xf32> -> vector<2x1024xf32>
    %c0_15 = arith.constant 0 : index
    %c0_16 = arith.constant 0 : index
    %20 = vector.load %arg7[%c0_15, %c0_16] : memref<1x1024xf32, #tpu.memory_space<vmem>>, vector<1x1024xf32>
    %21 = vector.broadcast %20 : vector<1x1024xf32> to vector<2x1024xf32>
    %22 = arith.addf %19, %21 : vector<2x1024xf32>
    %cst_17 = arith.constant 0.000000e+00 : f32
    %23 = vector.broadcast %cst_17 : f32 to vector<2x1024xf32>
    %24 = arith.maximumf %22, %23 : vector<2x1024xf32>
    %25 = arith.truncf %24 : vector<2x1024xf32> to vector<2x1024xbf16>
    %c0_18 = arith.constant 0 : index
    %c0_19 = arith.constant 0 : index
    %26 = vector.load %arg8[%c0_18, %c0_19] : memref<1024x1024xbf16, #tpu.memory_space<vmem>>, vector<1024x1024xbf16>
    %cst_20 = arith.constant dense<0.000000e+00> : vector<2x1024xf32>
    %27 = tpu.matmul %25, %26, %cst_20 {dimension_numbers = #tpu.dot_dimension_numbers<[1], [0], [0], [1], [0, 0, 1, 1], [], []>} : vector<2x1024xbf16>, vector<1024x1024xbf16>, vector<2x1024xf32> -> vector<2x1024xf32>
    %c0_21 = arith.constant 0 : index
    %c0_22 = arith.constant 0 : index
    %28 = vector.load %arg9[%c0_21, %c0_22] : memref<1x1024xf32, #tpu.memory_space<vmem>>, vector<1x1024xf32>
    %29 = vector.broadcast %28 : vector<1x1024xf32> to vector<2x1024xf32>
    %30 = arith.addf %27, %29 : vector<2x1024xf32>
    %cst_23 = arith.constant 0.000000e+00 : f32
    %31 = vector.broadcast %cst_23 : f32 to vector<2x1024xf32>
    %32 = arith.maximumf %30, %31 : vector<2x1024xf32>
    %33 = arith.truncf %32 : vector<2x1024xf32> to vector<2x1024xbf16>
    %c0_24 = arith.constant 0 : index
    %c0_25 = arith.constant 0 : index
    %34 = vector.load %arg10[%c0_24, %c0_25] : memref<1024x1664xbf16, #tpu.memory_space<vmem>>, vector<1024x1664xbf16>
    %cst_26 = arith.constant dense<0.000000e+00> : vector<2x1664xf32>
    %35 = tpu.matmul %33, %34, %cst_26 {dimension_numbers = #tpu.dot_dimension_numbers<[1], [0], [0], [1], [0, 0, 1, 1], [], []>} : vector<2x1024xbf16>, vector<1024x1664xbf16>, vector<2x1664xf32> -> vector<2x1664xf32>
    %c0_27 = arith.constant 0 : index
    %c0_28 = arith.constant 0 : index
    %36 = vector.load %arg11[%c0_27, %c0_28] : memref<1x1664xf32, #tpu.memory_space<vmem>>, vector<1x1664xf32>
    %37 = vector.broadcast %36 : vector<1x1664xf32> to vector<2x1664xf32>
    %38 = arith.addf %35, %37 : vector<2x1664xf32>
    %39 = math.tanh %38 : vector<2x1664xf32>
    %c0_29 = arith.constant 0 : index
    %c0_30 = arith.constant 0 : index
    %40 = vector.load %arg12[%c0_29, %c0_30] : memref<2x1664xf32, #tpu.memory_space<vmem>>, vector<2x1664xf32>
    tpu.vector_store %arg12[%c0_29, %c0_30], %39 {strides = array<i32>} : memref<2x1664xf32, #tpu.memory_space<vmem>>, vector<2x1664xf32>,
    return
  }
  func.func @transform_0(%arg0: i32) -> (i32, i32) {
    %c0_i32 = arith.constant 0 : i32
    %c0_i32_0 = arith.constant 0 : i32
    %c0_i32_1 = arith.constant 0 : i32
    return %c0_i32, %c0_i32_0 : i32, i32
  }
  func.func @transform_1(%arg0: i32) -> (i32, i32) {
    %c0_i32 = arith.constant 0 : i32
    %c0_i32_0 = arith.constant 0 : i32
    %c0_i32_1 = arith.constant 0 : i32
    return %c0_i32, %c0_i32_0 : i32, i32
  }
  func.func @transform_2(%arg0: i32) -> (i32, i32) {
    %c0_i32 = arith.constant 0 : i32
    %c0_i32_0 = arith.constant 0 : i32
    %c0_i32_1 = arith.constant 0 : i32
    return %c0_i32, %c0_i32_0 : i32, i32
  }
  func.func @transform_3(%arg0: i32) -> (i32, i32) {
    %c0_i32 = arith.constant 0 : i32
    %c0_i32_0 = arith.constant 0 : i32
    %c0_i32_1 = arith.constant 0 : i32
    return %c0_i32, %c0_i32_0 : i32, i32
  }
  func.func @transform_4(%arg0: i32) -> (i32, i32) {
    %c0_i32 = arith.constant 0 : i32
    %c0_i32_0 = arith.constant 0 : i32
    %c0_i32_1 = arith.constant 0 : i32
    return %c0_i32, %c0_i32_0 : i32, i32
  }
  func.func @transform_5(%arg0: i32) -> (i32, i32) {
    %c0_i32 = arith.constant 0 : i32
    %c0_i32_0 = arith.constant 0 : i32
    %c0_i32_1 = arith.constant 0 : i32
    return %c0_i32, %c0_i32_0 : i32, i32
  }
  func.func @transform_6(%arg0: i32) -> (i32, i32) {
    %c0_i32 = arith.constant 0 : i32
    %c0_i32_0 = arith.constant 0 : i32
    %c0_i32_1 = arith.constant 0 : i32
    return %c0_i32, %c0_i32_0 : i32, i32
  }
  func.func @transform_7(%arg0: i32) -> (i32, i32) {
    %c0_i32 = arith.constant 0 : i32
    %c0_i32_0 = arith.constant 0 : i32
    %c0_i32_1 = arith.constant 0 : i32
    return %c0_i32, %c0_i32_0 : i32, i32
  }
  func.func @transform_8(%arg0: i32) -> (i32, i32) {
    %c0_i32 = arith.constant 0 : i32
    %c0_i32_0 = arith.constant 0 : i32
    %c0_i32_1 = arith.constant 0 : i32
    return %c0_i32, %c0_i32_0 : i32, i32
  }
  func.func @transform_9(%arg0: i32) -> (i32, i32) {
    %c0_i32 = arith.constant 0 : i32
    %c0_i32_0 = arith.constant 0 : i32
    return %c0_i32, %arg0 : i32, i32
  }
  func.func @transform_10(%arg0: i32) -> (i32, i32) {
    %c0_i32 = arith.constant 0 : i32
    %c0_i32_0 = arith.constant 0 : i32
    return %c0_i32, %arg0 : i32, i32
  }
  func.func @transform_11(%arg0: i32) -> (i32, i32) {
    %c0_i32 = arith.constant 0 : i32
    %c0_i32_0 = arith.constant 0 : i32
    return %c0_i32, %arg0 : i32, i32
  }
}

</mosaic_0001>

<bundles_post_ra>
// kernel: fc_decoder_forward.1
= control target key start
LH: loop header
LB: loop body
LE: loop exit
PB: predicated region body
PF: predicated region fallthrough
CT: control target
= control target key end

     0   :  { %s20268_s0 = inlined_call_operand.hbm [shape: f32[2,1058], index: 0, kind: input, shape index: {}]   ;;  %s20269_s1 = inlined_call_operand.hbm [shape: bf16[1058,256], index: 1, kind: input, shape index: {}]   ;;  %s20270_s2 = inlined_call_operand.hbm [shape: f32[1,256], index: 2, kind: input, shape index: {}]   ;;  %s20271_s3 = inlined_call_operand.hbm [shape: bf16[256,512], index: 3, kind: input, shape index: {}]   ;;  %s20272_s4 = inlined_call_operand.hbm [shape: f32[1,512], index: 4, kind: input, shape index: {}]   ;;  %s20273_s5 = inlined_call_operand.hbm [shape: bf16[512,1024], index: 5, kind: input, shape index: {}]   ;;  %s20274_s6 = inlined_call_operand.hbm [shape: f32[1,1024], index: 6, kind: input, shape index: {}]   ;;  %s20275_s7 = inlined_call_operand.hbm [shape: bf16[1024,1024], index: 7, kind: input, shape index: {}]   ;;  %s20276_s8 = inlined_call_operand.hbm [shape: f32[1,1024], index: 8, kind: input, shape index: {}]   ;;  %s20277_s9 = inlined_call_operand.hbm [shape: bf16[1024,26624], index: 9, kind: input, shape index: {}]   ;;  %s20278_s10 = inlined_call_operand.hbm [shape: f32[1,26624], index: 10, kind: input, shape index: {}]   ;;  %s20279_s11 = inlined_call_operand.vmem [shape: f32[2,26624], index: 11, kind: output, shape index: {}]  }
   0x1   :  { %20291 = sst [smem:[#allocation26_spill]] %s20269_s1 }
   0x2   :  { %20292 = sst [smem:[#allocation27_spill]] %s20271_s3 }
   0x3   :  { %20293 = sst [smem:[#allocation28_spill]] %s20273_s5 }
   0x4   :  { %20294 = sst [smem:[#allocation29_spill]] %s20275_s7 }
   0x5   :  { %20295 = sst [smem:[#allocation30_spill]] %s20277_s9 }
   0x6   :  { %20296 = sst [smem:[#allocation31_spill]] %s20278_s10 }
   0x7   :  { %20297 = sst [smem:[#allocation32_spill]] %s20279_s11 }
   0x8   :  { %16 = vsyncpa [#allocation3], 0 }
   0x9   :  { %17 = vsyncpa [#allocation5], 0 }
   0xa   :  { %18 = vsyncpa [#allocation8], 0 }
   0xb   :  { %19 = vsyncpa [#allocation11], 0 }
   0xc   :  { %20 = vsyncpa [#allocation14], 0 }
   0xd   :  { %21 = vsyncpa [#allocation17], 0 }
   0xe   :  { %23 = vsyncpa [#allocation17 + $0x1], 0  ;;  %s18711_s17 = smov 0   ;;  %s18713_s18 = smov 0  }
   0xf   :  { %s18715_s19 = smov 0   ;;  %s18717_s20 = smov 0  }
  0x10 LB: > { %s18629_s21 = smov [#allocation4]   ;;  %s18732_s23 = sadd.s32 4294967295, %s18627_s20   ;;  %s18627_s20 = sphi %s18717_s20, %s20334_s20   ;;  %s18623_s19 = sphi %s18715_s19, %s20333_s19   ;;  %s18619_s18 = sphi %s18713_s18, %s20332_s18   ;;  %s18615_s17 = sphi %s18711_s17, %s20331_s17  }
  0x11   : > { %s324_s22 = sshll.u32 %s18629_s21, 4  ;;  %p14468_p0 = scmp.ge.s32.totalorder %s18627_s20, 1  ;;  %s18737_s22 = int_to_ptr.vmem [resolvable:$true] %s324_s22 }
  0x12   : > { %p20282_p1 = scmp.eq.s32.totalorder %s18732_s23, 0  ;;  %p301_p2 = scmp.lt.s32.totalorder %s18627_s20, 17 }
  0x13   : > { %s18630_s25 = smov [#allocation7]   ;;  %s18631_s28 = smov [#allocation10]  }
  0x14   : > { %p18739_p3 = pnand %p14468_p0, %p301_p2  ;;  %s348_s26 = sshll.u32 %s18630_s25, 4  ;;  %s18751_s26 = int_to_ptr.vmem [resolvable:$true] %s348_s26 }
  0x15   : > { %s18753_s29 = sshll.u32 %s18631_s28, 4  ;;  %s20301_s1 = sld [smem:[#allocation26_spill]]  ;;  %s373_s29 = int_to_ptr.vmem [resolvable:$true] %s18753_s29 }
  0x16   : > { %s20298_s24 = scalar_select %p18739_p3, 1, 0 }
  0x17   : > { %p16612_p4 = pneg %p18739_p3 }
  0x18   : > { %20299 = sst [smem:[#allocation25_spill]] %s20298_s24 }
  0x19   : > { %p18747_p5 = pnand %p16612_p4, %p20282_p1 }
  0x1b   : > { %s20300_s27 = scalar_select %p18747_p5, 1, 0 }
  0x1c   : > { %s18261_s13 = scalar_lea.hbm %s20301_s1, 17024  ;;  %p18763_p7 = pneg %p18747_p5 }
  0x1d   : > { %p18262_p6 = scmp.ne.s32.totalorder %s20301_s1, %s18261_s13  ;;  %p18268_p10 = scmp.lt.u32.totalorder %s18261_s13, %s20301_s1 }
  0x1f   : > { %p18264_p8 = pnand %p18763_p7, %p18262_p6 }
  0x21   : > { %p18265_p9 = pneg %p18264_p8 }
  0x23   : > { %p18270_p11 = pnand %p18268_p10, %p18265_p9 }
  0x25   : > { %18273 = shalt.err (!%p18270_p11)
}
  0x26   : > { %s18274_s28 = scalar_lea.vmem %s18737_s22, 17024  ;;  %p18282_p2 = scmp.lt.s32.totalorder %s18737_s22, %s18737_s22 }
  0x27   : > { %p18275_p12 = scmp.ne.s32.totalorder %s18737_s22, %s18274_s28  ;;  %p18283_p4 = scmp.lt.s32.totalorder %s18274_s28, %s18274_s28 }
  0x29   : > { %p18277_p13 = pnand %p18275_p12, %p18763_p7  ;;  %p18284_p6 = por %p18283_p4, %p18282_p2 }
  0x2b   : > { %p18278_p0 = pneg %p18277_p13 }
  0x2d   : > { %p18285_p8 = pnand %p18284_p6, %p18278_p0 }
  0x2f   : > { %18288 = shalt.err (!%p18285_p8)
}
  0x30   : > { %s18632_s30 = smov 128   ;;  %s18633_s12 = smov 8  }
  0x31   : > { %16618 = dma.hbm_to_vmem [thread:$0]  (!%p18747_p5), %s20301_s1, 17024, %s18737_s22, [#allocation5], %s18632_s30, %s18632_s30, %s18633_s12  }
  0x32   : > { %s20303_s3 = sld [smem:[#allocation27_spill]] }
  0x38   : > { %s18289_s25 = scalar_lea.hbm %s20303_s3, 8192 }
  0x39   : > { %p18290_p9 = scmp.ne.s32.totalorder %s20303_s3, %s18289_s25  ;;  %p18296_p12 = scmp.lt.u32.totalorder %s18289_s25, %s20303_s3 }
  0x3b   : > { %p18292_p10 = pnand %p18290_p9, %p18763_p7 }
  0x3d   : > { %p18293_p11 = pneg %p18292_p10 }
  0x3f   : > { %p18298_p13 = pnand %p18296_p12, %p18293_p11 }
  0x41   : > { %18301 = shalt.err (!%p18298_p13)
}
  0x42   : > { %s18302_s22 = scalar_lea.vmem %s18751_s26, 8192  ;;  %p18310_p6 = scmp.lt.s32.totalorder %s18751_s26, %s18751_s26 }
  0x43   : > { %p18303_p0 = scmp.ne.s32.totalorder %s18751_s26, %s18302_s22  ;;  %p18311_p8 = scmp.lt.s32.totalorder %s18302_s22, %s18302_s22 }
  0x45   : > { %p18305_p2 = pnand %p18303_p0, %p18763_p7  ;;  %p18312_p9 = por %p18311_p8, %p18310_p6 }
  0x47   : > { %p18306_p4 = pneg %p18305_p2 }
  0x49   : > { %p18313_p10 = pnand %p18312_p9, %p18306_p4 }
  0x4b   : > { %18316 = shalt.err (!%p18313_p10)
}
  0x4c   : > { %s18634_s11 = smov 256   ;;  %s18635_s10 = smov 16  }
  0x4d   : > { %16624 = dma.hbm_to_vmem [thread:$0]  (!%p18747_p5), %s20303_s3, 8192, %s18751_s26, [#allocation8], %s18634_s11, %s18634_s11, %s18635_s10  }
  0x4e   : > { %s20304_s5 = sld [smem:[#allocation28_spill]] }
  0x54   : > { %s18317_s14 = scalar_lea.hbm %s20304_s5, 32768 }
  0x55   : > { %p18318_p11 = scmp.ne.s32.totalorder %s20304_s5, %s18317_s14  ;;  %p18324_p0 = scmp.lt.u32.totalorder %s18317_s14, %s20304_s5 }
  0x57   : > { %p18320_p12 = pnand %p18318_p11, %p18763_p7 }
  0x59   : > { %p18321_p13 = pneg %p18320_p12 }
  0x5b   : > { %p18326_p2 = pnand %p18324_p0, %p18321_p13 }
  0x5d   : > { %18329 = shalt.err (!%p18326_p2)
}
  0x5e   : > { %s18330_s22 = scalar_lea.vmem %s373_s29, 32768  ;;  %p18338_p9 = scmp.lt.s32.totalorder %s373_s29, %s373_s29 }
  0x5f   : > { %p18331_p4 = scmp.ne.s32.totalorder %s373_s29, %s18330_s22  ;;  %p18339_p10 = scmp.lt.s32.totalorder %s18330_s22, %s18330_s22 }
  0x61   : > { %p18333_p6 = pnand %p18331_p4, %p18763_p7  ;;  %p18340_p1 = por %p18339_p10, %p18338_p9 }
  0x63   : > { %p18334_p8 = pneg %p18333_p6 }
  0x65   : > { %p18341_p3 = pnand %p18340_p1, %p18334_p8 }
  0x67   : > { %18344 = shalt.err (!%p18341_p3)
}
  0x68   : > { %s18636_s26 = smov 512   ;;  %s18637_s11 = smov 32  }
  0x69   : > { %16630 = dma.hbm_to_vmem [thread:$0]  (!%p18747_p5), %s20304_s5, 32768, %s373_s29, [#allocation11], %s18636_s26, %s18636_s26, %s18637_s11  }
  0x6a   : > { %s18638_s30 = smov [#allocation13]   ;;  %s20305_s7 = sld [smem:[#allocation29_spill]] }
  0x6b   : > { %s396_s12 = sshll.u32 %s18638_s30, 4  ;;  %s397_s12 = int_to_ptr.vmem [resolvable:$true] %s396_s12 }
  0x70   : > { %s18345_s15 = scalar_lea.hbm %s20305_s7, 65536 }
  0x71   : > { %p18346_p1 = scmp.ne.s32.totalorder %s20305_s7, %s18345_s15  ;;  %p18352_p12 = scmp.lt.u32.totalorder %s18345_s15, %s20305_s7 }
  0x73   : > { %p18348_p3 = pnand %p18346_p1, %p18763_p7 }
  0x75   : > { %p18349_p11 = pneg %p18348_p3 }
  0x77   : > { %p18354_p13 = pnand %p18352_p12, %p18349_p11 }
  0x79   : > { %18357 = shalt.err (!%p18354_p13)
}
  0x7a   : > { %s18358_s29 = scalar_lea.vmem %s397_s12, 65536  ;;  %p18366_p6 = scmp.lt.s32.totalorder %s397_s12, %s397_s12 }
  0x7b   : > { %p18359_p0 = scmp.ne.s32.totalorder %s397_s12, %s18358_s29  ;;  %p18367_p8 = scmp.lt.s32.totalorder %s18358_s29, %s18358_s29 }
  0x7d   : > { %p18361_p2 = pnand %p18359_p0, %p18763_p7  ;;  %p18368_p9 = por %p18367_p8, %p18366_p6 }
  0x7f   : > { %p18362_p4 = pneg %p18361_p2 }
  0x81   : > { %p18369_p10 = pnand %p18368_p9, %p18362_p4 }
  0x83   : > { %18372 = shalt.err (!%p18369_p10)
}
  0x84   : > { %16636 = dma.hbm_to_vmem [thread:$0]  (!%p18747_p5), %s20305_s7, 65536, %s397_s12, [#allocation14], %s18636_s26, %s18636_s26, %s18637_s11  }
  0x85   : > { %s18845_s30 = sadd.s32 1, %s18627_s20   ;;  %s225_s13 = sadd.s32 1, %s18623_s19 }
  0x86   : > { %s222_s14 = ssub.s32 %s18627_s20, %s18845_s30  ;;  %p232_p1 = scmp.ne.s32.totalorder %s18623_s19, %s18619_s18 }
  0x87   : > { %p223_p3 = scmp.eq.s32.totalorder %s222_s14, 0  ;;  %p233_p11 = scmp.eq.s32.totalorder %s18627_s20, 0 }
  0x88   : > { %p238_p12 = scmp.ne.s32.totalorder %s18619_s18, %s18615_s17  ;;  %p16656_p13 = scmp.lt.s32.totalorder %s18627_s20, 16 }
  0x89   : > { %s18857_s15 = scalar_select %p223_p3, %s18623_s19, %s225_s13  }
  0x8a   : > { %p234_p0 = por %p233_p11, %p232_p1  ;;  %p20306_p2 = scmp.eq.s32.totalorder %s18732_s23, 0 }
  0x8b   : > { %s421_s25 = sand.u32 1, %s18627_s20   ;;  %s20284_s26 = sand.u32 1, %s18623_s19  }
  0x8c   : > { %p18861_p4 = por %p20306_p2, %p238_p12  ;;  %s16568_s11 = smul.u32 6656, %s20284_s26 }
  0x8d   : > { %s16296_s12 = smul.u32 832, %s18627_s20  ;;  %p18870_p6 = pnand %p16656_p13, %p234_p0 }
  0x8e   : > { %s20307_s21 = scalar_select %p18861_p4, 1, 0 }
  0x8f   : > { %s20308_s28 = scalar_select %p18870_p6, 1, 0 }
  0x90   : > { %s20309_s9 = sld [smem:[#allocation30_spill]]  ;;  %s425_s10 = scalar_lea.vmem [#allocation16], %s16568_s11 }
  0x91   : > { %s432_s24 = sshll.u32 %s425_s10, 4  ;;  %s18881_s13 = scalar_lea.sflag [#allocation17], %s421_s25  ;;  %s18879_s24 = int_to_ptr.vmem [resolvable:$true] %s432_s24 }
  0x92   : > { %p20288_p9 = pneg %p18870_p6 }
  0x96   : > { %s18877_s29 = scalar_lea.hbm %s20309_s9, %s16296_s12  ;;  %s18378_s17 = scalar_lea.hbm %s20309_s9, 1703936 }
  0x97   : > { %s18373_s14 = scalar_lea.hbm %s18877_s29, 106496  ;;  %p18379_p3 = scmp.lt.u32.totalorder %s18877_s29, %s20309_s9 }
  0x98   : > { %p18374_p8 = scmp.ne.s32.totalorder %s18877_s29, %s18373_s14  ;;  %p18380_p11 = scmp.lt.u32.totalorder %s18378_s17, %s18373_s14 }
  0x99   : > { %p18382_p13 = scmp.lt.u32.totalorder %s18373_s14, %s18877_s29 }
  0x9a   : > { %p18376_p10 = pnand %p20288_p9, %p18374_p8  ;;  %p18381_p12 = por %p18380_p11, %p18379_p3 }
  0x9c   : > { %p18377_p1 = pneg %p18376_p10  ;;  %p18383_p0 = por %p18382_p13, %p18381_p12 }
  0x9e   : > { %p18384_p2 = pnand %p18383_p0, %p18377_p1 }
  0xa0   : > { %18387 = shalt.err (!%p18384_p2)
}
  0xa1   : > { %s18388_s25 = scalar_lea.vmem %s18879_s24, 106496  ;;  %s18639_s11 = smov [#allocation16]  }
  0xa2   : > { %p18389_p8 = scmp.ne.s32.totalorder %s18879_s24, %s18388_s25  ;;  %s18393_s10 = sshll.u32 %s18639_s11, 4  ;;  %s18394_s10 = int_to_ptr.vmem [resolvable:$false] %s18393_s10 }
  0xa3   : > { %s18395_s1 = scalar_lea.vmem %s18394_s10, 212992  ;;  %p18396_p5 = scmp.lt.s32.totalorder %s18879_s24, %s18394_s10 }
  0xa4   : > { %p18391_p10 = pnand %p18389_p8, %p20288_p9  ;;  %p18397_p3 = scmp.lt.s32.totalorder %s18395_s1, %s18388_s25 }
  0xa6   : > { %p18392_p4 = pneg %p18391_p10  ;;  %p18398_p11 = por %p18397_p3, %p18396_p5 }
  0xa8   : > { %p18399_p12 = pnand %p18398_p11, %p18392_p4 }
  0xaa   : > { %18402 = shalt.err (!%p18399_p12)
}
  0xab   : > { %s18640_s26 = smov 13312   ;;  %s18641_s14 = smov 832  }
  0xac   : > { %s18642_s12 = smov 52   ;;  %s18643_s22 = smov [#allocation2]  }
  0xad   : > { %16643 = dma.hbm_to_vmem [thread:$0]  (!%p18870_p6), %s18877_s29, 106496, %s18879_s24, %s18881_s13, %s18640_s26, %s18641_s14, %s18642_s12  }
  0xae   : > { %s314_s17 = sshll.u32 %s18643_s22, 4  ;;  %s18644_s11 = smov [#allocation6]   ;;  %s315_s17 = int_to_ptr.vmem [resolvable:$true] %s314_s17 }
  0xaf   : > { %s338_s3 = sshll.u32 %s18644_s11, 4  ;;  %s18403_s1 = scalar_lea.hbm %s20268_s0, 288  ;;  %s18909_s3 = int_to_ptr.vmem [resolvable:$true] %s338_s3 }
  0xb0   : > { %p18404_p5 = scmp.ne.s32.totalorder %s20268_s0, %s18403_s1  ;;  %p18410_p13 = scmp.lt.u32.totalorder %s18403_s1, %s20268_s0 }
  0xb2   : > { %p18406_p4 = pnand %p18404_p5, %p18763_p7 }
  0xb4   : > { %p18407_p1 = pneg %p18406_p4 }
  0xb6   : > { %p18412_p0 = pnand %p18410_p13, %p18407_p1 }
  0xb8   : > { %18415 = shalt.err (!%p18412_p0)
}
  0xb9   : > { %s18416_s24 = scalar_lea.vmem %s315_s17, 288  ;;  %p18424_p3 = scmp.lt.s32.totalorder %s315_s17, %s315_s17 }
  0xba   : > { %p18417_p2 = scmp.ne.s32.totalorder %s315_s17, %s18416_s24  ;;  %p18425_p11 = scmp.lt.s32.totalorder %s18416_s24, %s18416_s24 }
  0xbc   : > { %p18419_p8 = pnand %p18417_p2, %p18763_p7  ;;  %p18426_p12 = por %p18425_p11, %p18424_p3 }
  0xbe   : > { %p18420_p10 = pneg %p18419_p8 }
  0xc0   : > { %p18427_p9 = pnand %p18426_p12, %p18420_p10 }
  0xc2   : > { %18430 = shalt.err (!%p18427_p9)
}
  0xc3   : > { %p20310_p5 = scmp.ne.s32.totalorder %s20300_s27, 0  ;;  %s18431_s14 = scalar_lea.hbm %s20270_s2, 32 }
  0xc4   : > { %p18432_p4 = scmp.ne.s32.totalorder %s20270_s2, %s18431_s14  ;;  %p18438_p9 = scmp.lt.u32.totalorder %s18431_s14, %s20270_s2 }
  0xc5   : > { %16615 = dma.hbm_to_vmem [thread:$0]  (!%p20310_p5), %s20268_s0, 288, %s315_s17, [#allocation3]  }
  0xc6   : > { %p18434_p1 = pnand %p18432_p4, %p18763_p7 }
  0xc8   : > { %p18435_p13 = pneg %p18434_p1 }
  0xca   : > { %p18440_p0 = pnand %p18438_p9, %p18435_p13 }
  0xcc   : > { %18443 = shalt.err (!%p18440_p0)
}
  0xcd   : > { %s18444_s17 = scalar_lea.vmem %s18909_s3, 32  ;;  %p18452_p3 = scmp.lt.s32.totalorder %s18909_s3, %s18909_s3 }
  0xce   : > { %p18445_p2 = scmp.ne.s32.totalorder %s18909_s3, %s18444_s17  ;;  %p18453_p11 = scmp.lt.s32.totalorder %s18444_s17, %s18444_s17 }
  0xd0   : > { %p18447_p8 = pnand %p18445_p2, %p18763_p7  ;;  %p18454_p12 = por %p18453_p11, %p18452_p3 }
  0xd2   : > { %p18448_p10 = pneg %p18447_p8 }
  0xd4   : > { %p18455_p4 = pnand %p18454_p12, %p18448_p10 }
  0xd6   : > { %18458 = shalt.err (!%p18455_p4)
}
  0xd7   : > { %16621 = dma.hbm_to_vmem [thread:$0]  (!%p20310_p5), %s20270_s2, 32, %s18909_s3, [#allocation5]  }
  0xd8   : > { %s18645_s29 = smov [#allocation9]   ;;  %s18646_s5 = smov [#allocation12]  }
  0xd9   : > { %s362_s24 = sshll.u32 %s18645_s29, 4  ;;  %s386_s7 = sshll.u32 %s18646_s5, 4  ;;  %s363_s24 = int_to_ptr.vmem [resolvable:$true] %s362_s24  ;;  %s18952_s7 = int_to_ptr.vmem [resolvable:$true] %s386_s7 }
  0xda   : > { %s18459_s14 = scalar_lea.hbm %s20272_s4, 64 }
  0xdb   : > { %p18460_p1 = scmp.ne.s32.totalorder %s20272_s4, %s18459_s14  ;;  %p18466_p0 = scmp.lt.u32.totalorder %s18459_s14, %s20272_s4 }
  0xdd   : > { %p18462_p13 = pnand %p18460_p1, %p18763_p7 }
  0xdf   : > { %p18463_p9 = pneg %p18462_p13 }
  0xe1   : > { %p18468_p2 = pnand %p18466_p0, %p18463_p9 }
  0xe3   : > { %18471 = shalt.err (!%p18468_p2)
}
  0xe4   : > { %s18472_s25 = scalar_lea.vmem %s363_s24, 64  ;;  %p18480_p11 = scmp.lt.s32.totalorder %s363_s24, %s363_s24 }
  0xe5   : > { %p18473_p8 = scmp.ne.s32.totalorder %s363_s24, %s18472_s25  ;;  %p18481_p12 = scmp.lt.s32.totalorder %s18472_s25, %s18472_s25 }
  0xe7   : > { %p18475_p10 = pnand %p18473_p8, %p18763_p7  ;;  %p18482_p4 = por %p18481_p12, %p18480_p11 }
  0xe9   : > { %p18476_p3 = pneg %p18475_p10 }
  0xeb   : > { %p18483_p6 = pnand %p18482_p4, %p18476_p3 }
  0xed   : > { %18486 = shalt.err (!%p18483_p6)
}
  0xee   : > { %16627 = dma.hbm_to_vmem [thread:$0]  (!%p20310_p5), %s20272_s4, 64, %s363_s24, [#allocation8]  }
  0xef   : > { %s18487_s5 = scalar_lea.hbm %s20274_s6, 128 }
  0xf0   : > { %p18488_p1 = scmp.ne.s32.totalorder %s20274_s6, %s18487_s5  ;;  %p18494_p6 = scmp.lt.u32.totalorder %s18487_s5, %s20274_s6 }
  0xf2   : > { %p18490_p13 = pnand %p18488_p1, %p18763_p7 }
  0xf4   : > { %p18491_p9 = pneg %p18490_p13 }
  0xf6   : > { %p18496_p0 = pnand %p18494_p6, %p18491_p9 }
  0xf8   : > { %18499 = shalt.err (!%p18496_p0)
}
  0xf9   : > { %s18500_s24 = scalar_lea.vmem %s18952_s7, 128  ;;  %p18508_p3 = scmp.lt.s32.totalorder %s18952_s7, %s18952_s7 }
  0xfa   : > { %p18501_p2 = scmp.ne.s32.totalorder %s18952_s7, %s18500_s24  ;;  %p18509_p11 = scmp.lt.s32.totalorder %s18500_s24, %s18500_s24 }
  0xfc   : > { %p18503_p8 = pnand %p18501_p2, %p18763_p7  ;;  %p18510_p12 = por %p18509_p11, %p18508_p3 }
  0xfe   : > { %p18504_p10 = pneg %p18503_p8 }
 0x100   : > { %p18511_p4 = pnand %p18510_p12, %p18504_p10 }
 0x102   : > { %18514 = shalt.err (!%p18511_p4)
}
 0x103   : > { %16633 = dma.hbm_to_vmem [thread:$0]  (!%p20310_p5), %s20274_s6, 128, %s18952_s7, [#allocation11]  }
 0x104   : > { %s20311_s3 = sand.u32 1, %s18623_s19   ;;  %s18647_s17 = smov [#allocation15]  }
 0x105   : > { %s16569_s25 = smul.u32 13, %s20311_s3  ;;  %s410_s10 = sshll.u32 %s18647_s17, 4  ;;  %s411_s10 = int_to_ptr.vmem [resolvable:$true] %s410_s10 }
 0x106   : > { %s16297_s1 = smul.u32 208, %s18627_s20  ;;  %s18515_s9 = scalar_lea.hbm %s20276_s8, 128 }
 0x107   : > { %p18516_p1 = scmp.ne.s32.totalorder %s20276_s8, %s18515_s9  ;;  %p18522_p6 = scmp.lt.u32.totalorder %s18515_s9, %s20276_s8 }
 0x109   : > { %p18518_p13 = pnand %p18516_p1, %p18763_p7 }
 0x10b   : > { %p18519_p9 = pneg %p18518_p13 }
 0x10d   : > { %p18524_p0 = pnand %p18522_p6, %p18519_p9 }
 0x10f   : > { %18527 = shalt.err (!%p18524_p0)
}
 0x110   : > { %s18528_s7 = scalar_lea.vmem %s411_s10, 128  ;;  %p18536_p3 = scmp.lt.s32.totalorder %s411_s10, %s411_s10 }
 0x111   : > { %p18529_p2 = scmp.ne.s32.totalorder %s411_s10, %s18528_s7  ;;  %p18537_p11 = scmp.lt.s32.totalorder %s18528_s7, %s18528_s7 }
 0x113   : > { %p18531_p8 = pnand %p18529_p2, %p18763_p7  ;;  %p18538_p12 = por %p18537_p11, %p18536_p3 }
 0x115   : > { %p18532_p10 = pneg %p18531_p8 }
 0x117   : > { %p18539_p4 = pnand %p18538_p12, %p18532_p10 }
 0x119   : > { %18542 = shalt.err (!%p18539_p4)
}
 0x11a   : > { %16639 = dma.hbm_to_vmem [thread:$0]  (!%p20310_p5), %s20276_s8, 128, %s411_s10, [#allocation14]  }
 0x11b   : > { %s20312_s17 = sld [smem:[#allocation31_spill]]  ;;  %s446_s16 = scalar_lea.vmem [#allocation18], %s16569_s25 }
 0x11c   : > { %s454_s9 = sshll.u32 %s446_s16, 4  ;;  %p20314_p1 = scmp.ne.s32.totalorder %s20308_s28, 0  ;;  %s455_s9 = int_to_ptr.vmem [resolvable:$true] %s454_s9 }
 0x11e   : > { %p20315_p13 = pneg %p20314_p1 }
 0x121   : > { %s20313_s29 = smov %s20312_s17  ;;  %s19019_s5 = scalar_lea.hbm %s20312_s17, %s16297_s1 }
 0x122   : > { %s18543_s26 = scalar_lea.hbm %s19019_s5, 208  ;;  %s18548_s14 = scalar_lea.hbm %s20313_s29, 3328 }
 0x123   : > { %p18544_p7 = scmp.ne.s32.totalorder %s19019_s5, %s18543_s26  ;;  %p18549_p5 = scmp.lt.u32.totalorder %s19019_s5, %s20313_s29 }
 0x124   : > { %p18550_p0 = scmp.lt.u32.totalorder %s18548_s14, %s18543_s26  ;;  %p18552_p8 = scmp.lt.u32.totalorder %s18543_s26, %s19019_s5 }
 0x125   : > { %p18546_p9 = pnand %p18544_p7, %p20315_p13 }
 0x126   : > { %p18551_p2 = por %p18550_p0, %p18549_p5 }
 0x127   : > { %p18547_p6 = pneg %p18546_p9 }
 0x128   : > { %p18553_p10 = por %p18552_p8, %p18551_p2 }
 0x12a   : > { %p18554_p3 = pnand %p18553_p10, %p18547_p6 }
 0x12c   : > { %18557 = shalt.err (!%p18554_p3)
}
 0x12d   : > { %s18558_s25 = scalar_lea.vmem %s455_s9, 208  ;;  %p20316_p12 = pmov %p20315_p13 }
 0x12e   : > { %p18559_p11 = scmp.ne.s32.totalorder %s455_s9, %s18558_s25  ;;  %s18648_s24 = smov [#allocation18]  }
 0x12f   : > { %s18563_s7 = sshll.u32 %s18648_s24, 4  ;;  %s18564_s7 = int_to_ptr.vmem [resolvable:$false] %s18563_s7 }
 0x130   : > { %p18561_p4 = pnand %p18559_p11, %p20316_p12  ;;  %s18565_s20 = scalar_lea.vmem %s18564_s7, 416 }
 0x131   : > { %p18566_p13 = scmp.lt.s32.totalorder %s455_s9, %s18564_s7  ;;  %p18567_p9 = scmp.lt.s32.totalorder %s18565_s20, %s18558_s25 }
 0x132   : > { %p18562_p7 = pneg %p18561_p4 }
 0x133   : > { %p18568_p0 = por %p18567_p9, %p18566_p13 }
 0x135   : > { %p18569_p5 = pnand %p18568_p0, %p18562_p7 }
 0x137   : > { %18572 = shalt.err (!%p18569_p5)
}
 0x138   : > { %16646 = dma.hbm_to_vmem [thread:$0]  (!%p20314_p1), %s19019_s5, 208, %s455_s9, %s18881_s13  }
 0x139   : > { %s20317_s22 = sld [smem:[#allocation25_spill]] }
 0x13f   : > { %p20318_p6 = scmp.ne.s32.totalorder %s20317_s22, 0 }
 0x140   : > { %p20319_p2 = scmp.eq.s32.totalorder (!%p20318_p6), %s18732_s23, 0 }
 0x141   : > { %463 = sbr.rel (%p20318_p6) target bundleno = 3005 (0xbbd), region = 64 }
 0x148   : > { %18590 = dma.done.wait (%p20319_p2), [#allocation3], 288   ;;  %p20320_p8 = pmov %p20319_p2 }
 0x149   : > { %p20321_p10 = pmov %p20319_p2 }
 0x14a   : > { %18592 = vsyncadd (%p20320_p8), [#allocation3], 4294967008 }
 0x14b   : > { %18594 = dma.done.wait (%p20321_p10), [#allocation5], 17056   ;;  %p20322_p3 = pmov %p20319_p2 }
 0x14c   : > { %p20323_p11 = pmov %p20319_p2 }
 0x14d   : > { %18596 = vsyncadd (%p20322_p3), [#allocation5], 4294950240 }
 0x14e   : > { %18598 = dma.done.wait (%p20323_p11), [#allocation8], 8256   ;;  %p20324_p1 = pmov %p20319_p2 }
 0x150   : > { %18600 = vsyncadd (%p20324_p1), [#allocation8], 4294959040  ;;  %p20325_p12 = pmov %p20324_p1 }
 0x151   : > { %p20326_p4 = pmov %p20324_p1 }
 0x152   : > { %18602 = dma.done.wait (%p20325_p12), [#allocation11], 32896  }
 0x153   : > { %18604 = vsyncadd (%p20326_p4), [#allocation11], 4294934400  ;;  %p20327_p7 = pmov %p20324_p1 }
 0x154   : > { %p20328_p13 = pmov %p20324_p1 }
 0x155   : > { %18606 = dma.done.wait (%p20327_p7), [#allocation14], 65664  }
 0x156   : > { %18608 = vsyncadd (%p20328_p13), [#allocation14], 4294901632  ;;  %s501_s28 = sand.u32 1, %s18732_s23   ;;  %s503_s13 = sand.u32 1, %s18619_s18  }
 0x157   : > { %s16570_s11 = smul.u32 6656, %s503_s13  ;;  %s502_s3 = scalar_lea.sflag [#allocation17], %s501_s28 }
 0x158   : > { %p20329_p9 = scmp.ne.s32.totalorder %s20307_s21, 0 }
 0x159   : > { %s19067_s17 = scalar_lea.vmem [#allocation16], %s16570_s11 }
 0x15a   : > { %18610 = dma.done.wait (%p20329_p9), %s502_s3, 106704  }
 0x15b   : > { %18612 = vsyncadd (%p20329_p9), %s502_s3, 4294860592  ;;  %v16718_v0 = vld [vmem:[#allocation4 + $0x4] ss:$8 sps:$4 sm:$0xff]   ;;  %v16720_v1 = vld [vmem:[#allocation4] ss:$8 sps:$4 sm:$0xff]   ;;  %v577_v9 = vlaneseq  ;;  %vm1446_vm0 = vcmask 1040384  }
 0x15c   : > { %1453 = vmatprep.subr.bf16.mxu0 %v16718_v0  ;;  %v16721_v2 = vld [vmem:[#allocation4 + $0x14] ss:$8 sps:$4 sm:$0xff]   ;;  %v16723_v3 = vld [vmem:[#allocation4 + $0x10] ss:$8 sps:$4 sm:$0xff]   ;;  %v16724_v4 = vld [vmem:[#allocation4 + $0x24] ss:$8 sps:$4 sm:$0xff]  }
 0x15d   : > { %1454 = vmatpush1.bf16.msra.mxu0 %v16720_v1  ;;  %v16726_v5 = vld [vmem:[#allocation4 + $0x20] ss:$8 sps:$4 sm:$0xff]   ;;  %v16727_v6 = vld [vmem:[#allocation4 + $0x34] ss:$8 sps:$4 sm:$0xff]   ;;  %v18649_v7 = vmov 1983009808  }
 0x15e   : > { %1455 = vmatprep.subr.bf16.mxu0 %v16721_v2  ;;  %v575_v8 = vunpack.c.l.s4 %v18649_v7  ;;  %v16729_v10 = vld [vmem:[#allocation4 + $0x30] ss:$8 sps:$4 sm:$0xff]   ;;  %v16730_v11 = vld [vmem:[#allocation4 + $0x44] ss:$8 sps:$4 sm:$0xff]   ;;  %v19073_v13 = vshrl.u32 %v577_v9, 7  ;;  %vm1442_vm1 = vcmask 277504  }
 0x15f   : > { %v16732_v14 = vld [vmem:[#allocation4 + $0x40] ss:$8 sps:$4 sm:$0xff]   ;;  %v16733_v15 = vld [vmem:[#allocation4 + $0x54] ss:$8 sps:$4 sm:$0xff]   ;;  %v16735_v17 = vld [vmem:[#allocation4 + $0x50] ss:$8 sps:$4 sm:$0xff]  }
 0x160   : > { %v576_v12 = vunpack.c.0.s8 %v575_v8  ;;  %v16736_v18 = vld [vmem:[#allocation4 + $0x64] ss:$8 sps:$4 sm:$0xff]   ;;  %v16738_v21 = vld [vmem:[#allocation4 + $0x60] ss:$8 sps:$4 sm:$0xff]   ;;  %v16739_v22 = vld [vmem:[#allocation4 + $0x74] ss:$8 sps:$4 sm:$0xff]  }
 0x161   : > { %1456 = vmatpush1.bf16.msra.mxu0 %v16723_v3  ;;  %v567_v19 = vld [vmem:[#allocation2] sm:$0xff]  ;;  %v16744_v27 = vld [vmem:[#allocation4 + $0x80] ss:$8 sps:$4 sm:$0xff]   ;;  %s16571_s21 = smul.u32 13, %s503_s13  ;;  %s20330_s27 = sld [smem:[#allocation32_spill]] }
 0x162   : > { %1457 = vmatprep.subr.bf16.mxu0 %v16724_v4  ;;  %v19076_v16 = vsub.s32 %v576_v12, %v19073_v13  ;;  %v16741_v25 = vld [vmem:[#allocation4 + $0x70] ss:$8 sps:$4 sm:$0xff]   ;;  %v16742_v26 = vld [vmem:[#allocation4 + $0x84] ss:$8 sps:$4 sm:$0xff]   ;;  %v16745_v28 = vld [vmem:[#allocation4 + $0x94] ss:$8 sps:$4 sm:$0xff]   ;;  %v573_v38 = vcombine.high %v567_v19, %v567_v19 }
 0x163   : > { %v16747_v29 = vld [vmem:[#allocation4 + $0x90] ss:$8 sps:$4 sm:$0xff]   ;;  %v16748_v30 = vld [vmem:[#allocation4 + $0xa4] ss:$8 sps:$4 sm:$0xff]   ;;  %v16750_v31 = vld [vmem:[#allocation4 + $0xa0] ss:$8 sps:$4 sm:$0xff]  }
 0x164   : > { %v580_v20 = vrot.slane %v567_v19, %v19076_v16  ;;  %v16751_v32 = vld [vmem:[#allocation4 + $0xb4] ss:$8 sps:$4 sm:$0xff]   ;;  %v16753_v33 = vld [vmem:[#allocation4 + $0xb0] ss:$8 sps:$4 sm:$0xff]   ;;  %v16754_v34 = vld [vmem:[#allocation4 + $0xc4] ss:$8 sps:$4 sm:$0xff]   ;;  %v19080_v41 = vrot.slane %v573_v38, %v19076_v16 }
 0x165   : > { %1458 = vmatpush1.bf16.msra.mxu0 %v16726_v5  ;;  %v16756_v35 = vld [vmem:[#allocation4 + $0xc0] ss:$8 sps:$4 sm:$0xff]   ;;  %v16757_v36 = vld [vmem:[#allocation4 + $0xd4] ss:$8 sps:$4 sm:$0xff]   ;;  %v16759_v37 = vld [vmem:[#allocation4 + $0xd0] ss:$8 sps:$4 sm:$0xff]  }
 0x166   : > { %1459 = vmatprep.subr.bf16.mxu0 %v16727_v6  ;;  %v588_v23 = vcombine.high %v580_v20, %v580_v20  ;;  %v16760_v39 = vld [vmem:[#allocation4 + $0xe4] ss:$8 sps:$4 sm:$0xff]   ;;  %v16762_v40 = vld [vmem:[#allocation4 + $0xe0] ss:$8 sps:$4 sm:$0xff]   ;;  %v16763_v42 = vld [vmem:[#allocation4 + $0xf4] ss:$8 sps:$4 sm:$0xff]   ;;  %v589_v44 = vcombine.high %v19080_v41, %v19080_v41  ;;  %v623_v46 = vpack.c.bf16 %v580_v20, %v580_v20 }
 0x167   : > { %v16765_v43 = vld [vmem:[#allocation4 + $0xf0] ss:$8 sps:$4 sm:$0xff]   ;;  %v16769_v45 = vld [vmem:[#allocation4 + $0x104] ss:$8 sps:$4 sm:$0xff]   ;;  %v16767_v47 = vld [vmem:[#allocation4 + $0x100] ss:$8 sps:$4 sm:$0xff]  }
 0x168   : > { %v624_v24 = vpack.c.bf16 %v588_v23, %v588_v23  ;;  %v626_v48 = vpack.c.bf16 %v589_v44, %v589_v44  ;;  %v16772_v49 = vld [vmem:[#allocation4 + $0x114] ss:$8 sps:$4 sm:$0xff]   ;;  %v16770_v50 = vld [vmem:[#allocation4 + $0x110] ss:$8 sps:$4 sm:$0xff]   ;;  %v16775_v51 = vld [vmem:[#allocation4 + $0x124] ss:$8 sps:$4 sm:$0xff]  }
 0x169   : > { %1460 = vmatpush1.bf16.msra.mxu0 %v16729_v10  ;;  %v16773_v52 = vld [vmem:[#allocation4 + $0x120] ss:$8 sps:$4 sm:$0xff]   ;;  %v16778_v53 = vld [vmem:[#allocation4 + $0x134] ss:$8 sps:$4 sm:$0xff]   ;;  %v16776_v54 = vld [vmem:[#allocation4 + $0x130] ss:$8 sps:$4 sm:$0xff]  }
 0x16a   : > { %1461 = vmatprep.subr.bf16.mxu0 %v16730_v11  ;;  %1485 = vmatprep.mubr.bf16.mxu0 %v624_v24  ;;  %v16781_v55 = vld [vmem:[#allocation4 + $0x144] ss:$8 sps:$4 sm:$0xff]   ;;  %v16779_v56 = vld [vmem:[#allocation4 + $0x140] ss:$8 sps:$4 sm:$0xff]   ;;  %v16784_v57 = vld [vmem:[#allocation4 + $0x154] ss:$8 sps:$4 sm:$0xff]  }
 0x16b   : > { %v16782_v58 = vld [vmem:[#allocation4 + $0x150] ss:$8 sps:$4 sm:$0xff]   ;;  %v16787_v59 = vld [vmem:[#allocation4 + $0x164] ss:$8 sps:$4 sm:$0xff]   ;;  %v16785_v60 = vld [vmem:[#allocation4 + $0x160] ss:$8 sps:$4 sm:$0xff]  }
 0x16c   : > { %v16790_v61 = vld [vmem:[#allocation4 + $0x174] ss:$8 sps:$4 sm:$0xff]   ;;  %v16788_v62 = vld [vmem:[#allocation4 + $0x170] ss:$8 sps:$4 sm:$0xff]   ;;  %v16793_v63 = vld [vmem:[#allocation4 + $0x184] ss:$8 sps:$4 sm:$0xff]  }
 0x16d   : > { %1462 = vmatpush1.bf16.msra.mxu0 %v16732_v14  ;;  %v16791_v0 = vld [vmem:[#allocation4 + $0x180] ss:$8 sps:$4 sm:$0xff]   ;;  %v16796_v1 = vld [vmem:[#allocation4 + $0x194] ss:$8 sps:$4 sm:$0xff]   ;;  %v16794_v2 = vld [vmem:[#allocation4 + $0x190] ss:$8 sps:$4 sm:$0xff]  }
 0x16e   : > { %1463 = vmatprep.subr.bf16.mxu0 %v16733_v15  ;;  %v16799_v3 = vld [vmem:[#allocation4 + $0x1a4] ss:$8 sps:$4 sm:$0xff]   ;;  %v16797_v4 = vld [vmem:[#allocation4 + $0x1a0] ss:$8 sps:$4 sm:$0xff]   ;;  %v16802_v5 = vld [vmem:[#allocation4 + $0x1b4] ss:$8 sps:$4 sm:$0xff]  }
 0x16f   : > { %v16800_v6 = vld [vmem:[#allocation4 + $0x1b0] ss:$8 sps:$4 sm:$0xff]   ;;  %v16805_v7 = vld [vmem:[#allocation4 + $0x1c4] ss:$8 sps:$4 sm:$0xff]   ;;  %v16803_v8 = vld [vmem:[#allocation4 + $0x1c0] ss:$8 sps:$4 sm:$0xff]  }
 0x170   : > { %v16808_v9 = vld [vmem:[#allocation4 + $0x1d4] ss:$8 sps:$4 sm:$0xff]   ;;  %v16806_v10 = vld [vmem:[#allocation4 + $0x1d0] ss:$8 sps:$4 sm:$0xff]   ;;  %v16811_v11 = vld [vmem:[#allocation4 + $0x1e4] ss:$8 sps:$4 sm:$0xff]  }
 0x171   : > { %1464 = vmatpush1.bf16.msra.mxu0 %v16735_v17  ;;  %v19084_v12 = vld [vmem:[#allocation2 + $0x8] sm:$0xff]  ;;  %v16809_v14 = vld [vmem:[#allocation4 + $0x1e0] ss:$8 sps:$4 sm:$0xff]   ;;  %v16817_v19 = vld [vmem:[#allocation4 + $0x204] ss:$8 sps:$4 sm:$0xff]   ;;  %s19826_s5 = scalar_lea.vmem [#allocation18], %s16571_s21 }
 0x172   : > { %1465 = vmatprep.subr.bf16.mxu0 %v16736_v18  ;;  %v16814_v15 = vld [vmem:[#allocation4 + $0x1f4] ss:$8 sps:$4 sm:$0xff]   ;;  %v19088_v17 = vrot.slane %v19084_v12, %v19076_v16  ;;  %v16812_v18 = vld [vmem:[#allocation4 + $0x1f0] ss:$8 sps:$4 sm:$0xff]   ;;  %s560_s16 = smul.u32 13, %s18732_s23 }
 0x173   : > { %v16820_v24 = vld [vmem:[#allocation4 + $0x214] ss:$8 sps:$4 sm:$0xff]   ;;  %v16830_v38 = vld [vmem:[#allocation4 + $0x250] ss:$8 sps:$4 sm:$0xff]  }
 0x174   : > { %v605_v20 = vcombine.high %v19088_v17, %v19088_v17  ;;  %v16931_v44 = vld [vmem:[#allocation7 + $0x60] ss:$16 sps:$4 sm:$0xff]   ;;  %p561_p0 = scmp.lt.s32.totalorder %s560_s16, 207 }
 0x175   : > { %1466 = vmatpush1.bf16.msra.mxu0 %v16738_v21  ;;  %v16815_v21 = vld [vmem:[#allocation4 + $0x200] ss:$8 sps:$4 sm:$0xff]  }
 0x176   : > { %1467 = vmatprep.subr.bf16.mxu0 %v16739_v22  ;;  %v625_v22 = vpack.c.bf16 %v19080_v41, %v19080_v41  ;;  %v628_v23 = vpack.c.bf16 %v605_v20, %v605_v20  ;;  %v16833_v41 = vld [vmem:[#allocation4 + $0x260] ss:$8 sps:$4 sm:$0xff]   ;;  %v16860_v20 = vld [vmem:[#allocation4 + $0x2f0] ss:$8 sps:$4 sm:$0xff]   ;;  %s20336_s16 = smov (!%p561_p0, %s560_s16), 207 }
 0x177   : > { %s14491_s23 = sshll.u32 %s20336_s16, 1 }
 0x178   : > { %s19871_s10 = scalar_lea.vmem %s20330_s27, %s14491_s23 }
 0x179   : > { %1468 = vmatpush1.bf16.msra.mxu0 %v16741_v25  ;;  %v16818_v25 = vld [vmem:[#allocation4 + $0x210] ss:$8 sps:$4 sm:$0xff]  }
 0x17a   : > { %1469 = vmatprep.subr.bf16.mxu0 %v16742_v26  ;;  %v16823_v26 = vld [vmem:[#allocation4 + $0x224] ss:$8 sps:$4 sm:$0xff]  }
 0x17d   : > { %1470 = vmatpush1.bf16.msra.mxu0 %v16744_v27  ;;  %v16821_v27 = vld [vmem:[#allocation4 + $0x220] ss:$8 sps:$4 sm:$0xff]  }
 0x17e   : > { %1471 = vmatprep.subr.bf16.mxu0 %v16745_v28  ;;  %v16826_v28 = vld [vmem:[#allocation4 + $0x234] ss:$8 sps:$4 sm:$0xff]  }
 0x181   : > { %1472 = vmatpush1.bf16.msra.mxu0 %v16747_v29  ;;  %v16824_v29 = vld [vmem:[#allocation4 + $0x230] ss:$8 sps:$4 sm:$0xff]  }
 0x182   : > { %1473 = vmatprep.subr.bf16.mxu0 %v16748_v30  ;;  %v16829_v30 = vld [vmem:[#allocation4 + $0x244] ss:$8 sps:$4 sm:$0xff]  }
 0x185   : > { %1474 = vmatpush1.bf16.msra.mxu0 %v16750_v31  ;;  %v16920_v31 = vld [vmem:[#allocation7 + $0x4] ss:$16 sps:$4 sm:$0xff]  }
 0x186   : > { %1475 = vmatprep.subr.bf16.mxu0 %v16751_v32  ;;  %v16922_v32 = vld [vmem:[#allocation7] ss:$16 sps:$4 sm:$0xff]   ;;  %2068 = vmatprep.subr.bf16.mxu1 %v16920_v31 }
 0x187   : > { %2069 = vmatpush1.bf16.msra.mxu1 %v16922_v32  ;;  %v16869_v31 = vld [vmem:[#allocation4 + $0x320] ss:$8 sps:$4 sm:$0xff]   ;;  %v16874_v32 = vld [vmem:[#allocation4 + $0x334] ss:$8 sps:$4 sm:$0xff]  }
 0x189   : > { %1476 = vmatpush1.bf16.msra.mxu0 %v16753_v33  ;;  %v16923_v33 = vld [vmem:[#allocation7 + $0x24] ss:$16 sps:$4 sm:$0xff]  }
 0x18a   : > { %1477 = vmatprep.subr.bf16.mxu0 %v16754_v34  ;;  %v16827_v34 = vld [vmem:[#allocation4 + $0x240] ss:$8 sps:$4 sm:$0xff]   ;;  %2070 = vmatprep.subr.bf16.mxu1 %v16923_v33  ;;  %v16877_v33 = vld [vmem:[#allocation4 + $0x344] ss:$8 sps:$4 sm:$0xff]  }
 0x18d   : > { %1478 = vmatpush1.bf16.msra.mxu0 %v16756_v35  ;;  %v16832_v35 = vld [vmem:[#allocation4 + $0x254] ss:$8 sps:$4 sm:$0xff]  }
 0x18e   : > { %1479 = vmatprep.subr.bf16.mxu0 %v16757_v36  ;;  %v16925_v36 = vld [vmem:[#allocation7 + $0x20] ss:$16 sps:$4 sm:$0xff]  }
 0x18f   : > { %2071 = vmatpush1.bf16.msra.mxu1 %v16925_v36  ;;  %v16878_v36 = vld [vmem:[#allocation4 + $0x350] ss:$8 sps:$4 sm:$0xff]  }
 0x191   : > { %1480 = vmatpush1.bf16.msra.mxu0 %v16759_v37  ;;  %v16926_v37 = vld [vmem:[#allocation7 + $0x44] ss:$16 sps:$4 sm:$0xff]  }
 0x192   : > { %1481 = vmatprep.subr.bf16.mxu0 %v16760_v39  ;;  %v16835_v39 = vld [vmem:[#allocation4 + $0x264] ss:$8 sps:$4 sm:$0xff]   ;;  %2072 = vmatprep.subr.bf16.mxu1 %v16926_v37 }
 0x193   : > { %v16883_v37 = vld [vmem:[#allocation4 + $0x364] ss:$8 sps:$4 sm:$0xff]  }
 0x195   : > { %1482 = vmatpush1.bf16.msra.mxu0 %v16762_v40  ;;  %v16928_v40 = vld [vmem:[#allocation7 + $0x40] ss:$16 sps:$4 sm:$0xff]  }
 0x196   : > { %1483 = vmatprep.subr.bf16.mxu0 %v16763_v42  ;;  %v16929_v42 = vld [vmem:[#allocation7 + $0x64] ss:$16 sps:$4 sm:$0xff]   ;;  %2073 = vmatpush1.bf16.msra.mxu1 %v16928_v40 }
 0x197   : > { %2074 = vmatprep.subr.bf16.mxu1 %v16929_v42  ;;  %v16884_v40 = vld [vmem:[#allocation4 + $0x370] ss:$8 sps:$4 sm:$0xff]   ;;  %v16887_v42 = vld [vmem:[#allocation4 + $0x380] ss:$8 sps:$4 sm:$0xff]  }
 0x199   : > { %1484 = vmatpush1.bf16.msra.mxu0 %v16765_v43  ;;  %v16838_v43 = vld [vmem:[#allocation4 + $0x274] ss:$8 sps:$4 sm:$0xff]  }
 0x19a   : > { %1494 = vmatprep.subr.bf16.mxu0 %v16769_v45  ;;  %v16932_v45 = vld [vmem:[#allocation7 + $0x84] ss:$16 sps:$4 sm:$0xff]   ;;  %2075 = vmatpush1.bf16.msra.mxu1 %v16931_v44 }
 0x19b   : > { %2076 = vmatprep.subr.bf16.mxu1 %v16932_v45  ;;  %v16890_v44 = vld [vmem:[#allocation4 + $0x390] ss:$8 sps:$4 sm:$0xff]   ;;  %v16895_v45 = vld [vmem:[#allocation4 + $0x3a4] ss:$8 sps:$4 sm:$0xff]  }
 0x19c   : > { %1486 = vmatmul.mubr.bf16.vlgmr.msra.gmra.mrb[0].mxu0 %v623_v46  ;;  %v16836_v46 = vld [vmem:[#allocation4 + $0x270] ss:$8 sps:$4 sm:$0xff]  }
 0x19d   : > { %1495 = vmatpush1.bf16.msra.mxu0 %v16767_v47  ;;  %1526 = vmatprep.mubr.bf16.mxu0 %v626_v48  ;;  %v16841_v47 = vld [vmem:[#allocation4 + $0x284] ss:$8 sps:$4 sm:$0xff]  }
 0x19e   : > { %1496 = vmatprep.subr.bf16.mxu0 %v16772_v49  ;;  %v16934_v48 = vld [vmem:[#allocation7 + $0x80] ss:$16 sps:$4 sm:$0xff]   ;;  %v16935_v49 = vld [vmem:[#allocation7 + $0xa4] ss:$16 sps:$4 sm:$0xff]  }
 0x19f   : > { %2077 = vmatpush1.bf16.msra.mxu1 %v16934_v48  ;;  %v16896_v48 = vld [vmem:[#allocation4 + $0x3b0] ss:$8 sps:$4 sm:$0xff]  }
 0x1a0   : > { %2078 = vmatprep.subr.bf16.mxu1 %v16935_v49  ;;  %v16901_v49 = vld [vmem:[#allocation4 + $0x3c4] ss:$8 sps:$4 sm:$0xff]  }
 0x1a1   : > { %1497 = vmatpush1.bf16.msra.mxu0 %v16770_v50  ;;  %v16839_v50 = vld [vmem:[#allocation4 + $0x280] ss:$8 sps:$4 sm:$0xff]  }
 0x1a2   : > { %1498 = vmatprep.subr.bf16.mxu0 %v16775_v51  ;;  %v16844_v51 = vld [vmem:[#allocation4 + $0x294] ss:$8 sps:$4 sm:$0xff]  }
 0x1a5   : > { %1499 = vmatpush1.bf16.msra.mxu0 %v16773_v52  ;;  %v16937_v52 = vld [vmem:[#allocation7 + $0xa0] ss:$16 sps:$4 sm:$0xff]  }
 0x1a6   : > { %1500 = vmatprep.subr.bf16.mxu0 %v16778_v53  ;;  %v16938_v53 = vld [vmem:[#allocation7 + $0xc4] ss:$16 sps:$4 sm:$0xff]   ;;  %2079 = vmatpush1.bf16.msra.mxu1 %v16937_v52 }
 0x1a7   : > { %2080 = vmatprep.subr.bf16.mxu1 %v16938_v53  ;;  %v16902_v52 = vld [vmem:[#allocation4 + $0x3d0] ss:$8 sps:$4 sm:$0xff]   ;;  %v16907_v53 = vld [vmem:[#allocation4 + $0x3e4] ss:$8 sps:$4 sm:$0xff]  }
 0x1a9   : > { %1501 = vmatpush1.bf16.msra.mxu0 %v16776_v54  ;;  %v16842_v54 = vld [vmem:[#allocation4 + $0x290] ss:$8 sps:$4 sm:$0xff]  }
 0x1aa   : > { %1502 = vmatprep.subr.bf16.mxu0 %v16781_v55  ;;  %v16847_v55 = vld [vmem:[#allocation4 + $0x2a4] ss:$8 sps:$4 sm:$0xff]  }
 0x1ad   : > { %1503 = vmatpush1.bf16.msra.mxu0 %v16779_v56  ;;  %v16940_v56 = vld [vmem:[#allocation7 + $0xc0] ss:$16 sps:$4 sm:$0xff]  }
 0x1ae   : > { %1504 = vmatprep.subr.bf16.mxu0 %v16784_v57  ;;  %v16941_v57 = vld [vmem:[#allocation7 + $0xe4] ss:$16 sps:$4 sm:$0xff]   ;;  %2081 = vmatpush1.bf16.msra.mxu1 %v16940_v56 }
 0x1af   : > { %2082 = vmatprep.subr.bf16.mxu1 %v16941_v57  ;;  %v16908_v56 = vld [vmem:[#allocation4 + $0x3f0] ss:$8 sps:$4 sm:$0xff]   ;;  %v16914_v57 = vld [vmem:[#allocation4 + $0x404] ss:$8 sps:$4 sm:$0xff]  }
 0x1b1   : > { %1505 = vmatpush1.bf16.msra.mxu0 %v16782_v58  ;;  %v16845_v58 = vld [vmem:[#allocation4 + $0x2a0] ss:$8 sps:$4 sm:$0xff]  }
 0x1b2   : > { %1506 = vmatprep.subr.bf16.mxu0 %v16787_v59  ;;  %v16850_v59 = vld [vmem:[#allocation4 + $0x2b4] ss:$8 sps:$4 sm:$0xff]  }
 0x1b5   : > { %1507 = vmatpush1.bf16.msra.mxu0 %v16785_v60  ;;  %v16943_v60 = vld [vmem:[#allocation7 + $0xe0] ss:$16 sps:$4 sm:$0xff]  }
 0x1b6   : > { %1508 = vmatprep.subr.bf16.mxu0 %v16790_v61  ;;  %v16944_v61 = vld [vmem:[#allocation7 + $0x104] ss:$16 sps:$4 sm:$0xff]   ;;  %2083 = vmatpush1.bf16.msra.mxu1 %v16943_v60 }
 0x1b7   : > { %2084 = vmatprep.subr.bf16.mxu1 %v16944_v61  ;;  %v16917_v60 = vld [vmem:[#allocation4 + $0x414] ss:$8 sps:$4 sm:$0xff]   ;;  %v764_v61 = vld [vmem:[#allocation4 + $0x420] sm:$0x11] }
 0x1b9   : > { %1509 = vmatpush1.bf16.msra.mxu0 %v16788_v62  ;;  %v16848_v62 = vld [vmem:[#allocation4 + $0x2b0] ss:$8 sps:$4 sm:$0xff]  }
 0x1ba   : > { %1510 = vmatprep.subr.bf16.mxu0 %v16793_v63  ;;  %v16853_v63 = vld [vmem:[#allocation4 + $0x2c4] ss:$8 sps:$4 sm:$0xff]  }
 0x1bd   : > { %1511 = vmatpush1.bf16.msra.mxu0 %v16791_v0  ;;  %v16946_v0 = vld [vmem:[#allocation7 + $0x100] ss:$16 sps:$4 sm:$0xff]  }
 0x1be   : > { %1512 = vmatprep.subr.bf16.mxu0 %v16796_v1  ;;  %v16947_v1 = vld [vmem:[#allocation7 + $0x124] ss:$16 sps:$4 sm:$0xff]   ;;  %2085 = vmatpush1.bf16.msra.mxu1 %v16946_v0  ;;  %v14626_v0 = vcombine.high %v764_v61, %v764_v61 }
 0x1bf   : > { %2086 = vmatprep.subr.bf16.mxu1 %v16947_v1  ;;  %v14625_v1 = vcombine.low %v764_v61, %v764_v61  ;;  %v2260_v61 = vld [vmem:[#allocation10 + $0x330] sm:$0xff] }
 0x1c1   : > { %1513 = vmatpush1.bf16.msra.mxu0 %v16794_v2  ;;  %v16851_v2 = vld [vmem:[#allocation4 + $0x2c0] ss:$8 sps:$4 sm:$0xff]  }
 0x1c2   : > { %1514 = vmatprep.subr.bf16.mxu0 %v16799_v3  ;;  %v16856_v3 = vld [vmem:[#allocation4 + $0x2d4] ss:$8 sps:$4 sm:$0xff]  }
 0x1c5   : > { %1515 = vmatpush1.bf16.msra.mxu0 %v16797_v4  ;;  %v16949_v4 = vld [vmem:[#allocation7 + $0x120] ss:$16 sps:$4 sm:$0xff]  }
 0x1c6   : > { %1516 = vmatprep.subr.bf16.mxu0 %v16802_v5  ;;  %v16950_v5 = vld [vmem:[#allocation7 + $0x144] ss:$16 sps:$4 sm:$0xff]   ;;  %2087 = vmatpush1.bf16.msra.mxu1 %v16949_v4 }
 0x1c7   : > { %2088 = vmatprep.subr.bf16.mxu1 %v16950_v5  ;;  %v16962_v5 = vld [vmem:[#allocation7 + $0x1c4] ss:$16 sps:$4 sm:$0xff]  }
 0x1c9   : > { %1517 = vmatpush1.bf16.msra.mxu0 %v16800_v6  ;;  %v16854_v6 = vld [vmem:[#allocation4 + $0x2d0] ss:$8 sps:$4 sm:$0xff]  }
 0x1ca   : > { %1518 = vmatprep.subr.bf16.mxu0 %v16805_v7  ;;  %v16859_v7 = vld [vmem:[#allocation4 + $0x2e4] ss:$8 sps:$4 sm:$0xff]  }
 0x1cd   : > { %1519 = vmatpush1.bf16.msra.mxu0 %v16803_v8  ;;  %v590_v8 = vcombine.high %v19084_v12, %v19084_v12 }
 0x1ce   : > { %1520 = vmatprep.subr.bf16.mxu0 %v16808_v9  ;;  %v16952_v9 = vld [vmem:[#allocation7 + $0x140] ss:$16 sps:$4 sm:$0xff]  }
 0x1cf   : > { %2089 = vmatpush1.bf16.msra.mxu1 %v16952_v9  ;;  %v16970_v9 = vld [vmem:[#allocation7 + $0xc] ss:$16 sps:$4 sm:$0xff]  }
 0x1d1   : > { %1521 = vmatpush1.bf16.msra.mxu0 %v16806_v10  ;;  %v16953_v10 = vld [vmem:[#allocation7 + $0x164] ss:$16 sps:$4 sm:$0xff]  }
 0x1d2   : > { %1522 = vmatprep.subr.bf16.mxu0 %v16811_v11  ;;  %v16857_v11 = vld [vmem:[#allocation4 + $0x2e0] ss:$8 sps:$4 sm:$0xff]   ;;  %2090 = vmatprep.subr.bf16.mxu1 %v16953_v10 }
 0x1d3   : > { %v2160_v10 = vld [vmem:[#allocation10 + $0x10] sm:$0xff] }
 0x1d5   : > { %1523 = vmatpush1.bf16.msra.mxu0 %v16809_v14  ;;  %v16862_v14 = vld [vmem:[#allocation4 + $0x2f4] ss:$8 sps:$4 sm:$0xff]  }
 0x1d6   : > { %1524 = vmatprep.subr.bf16.mxu0 %v16814_v15  ;;  %v19097_v15 = vrot.slane %v590_v8, %v19076_v16  ;;  %v16967_v8 = vld [vmem:[#allocation7 + $0x1e0] ss:$16 sps:$4 sm:$0xff]  }
 0x1d8   : > { %v606_v12 = vcombine.high %v19097_v15, %v19097_v15 }
 0x1d9   : > { %1525 = vmatpush1.bf16.msra.mxu0 %v16812_v18  ;;  %v16955_v18 = vld [vmem:[#allocation7 + $0x160] ss:$16 sps:$4 sm:$0xff]  }
 0x1da   : > { %1535 = vmatprep.subr.bf16.mxu0 %v16817_v19  ;;  %v16956_v19 = vld [vmem:[#allocation7 + $0x184] ss:$16 sps:$4 sm:$0xff]   ;;  %2091 = vmatpush1.bf16.msra.mxu1 %v16955_v18 }
 0x1db   : > { %2092 = vmatprep.subr.bf16.mxu1 %v16956_v19  ;;  %v2168_v18 = vld [vmem:[#allocation10 + $0x50] sm:$0xff] }
 0x1dc   : > { %1527 = vmatmul.mubr.bf16.vlgmr.msra.gmra.mrb[0].mxu0 %v625_v22  ;;  %v16958_v22 = vld [vmem:[#allocation7 + $0x180] ss:$16 sps:$4 sm:$0xff]   ;;  %v2172_v19 = vld [vmem:[#allocation10 + $0x70] sm:$0xff] }
 0x1dd   : > { %1536 = vmatpush1.bf16.msra.mxu0 %v16815_v21  ;;  %1567 = vmatprep.mubr.bf16.mxu0 %v628_v23  ;;  %v16865_v21 = vld [vmem:[#allocation4 + $0x304] ss:$8 sps:$4 sm:$0xff]  }
 0x1de   : > { %1537 = vmatprep.subr.bf16.mxu0 %v16820_v24  ;;  %v16959_v23 = vld [vmem:[#allocation7 + $0x1a4] ss:$16 sps:$4 sm:$0xff]   ;;  %2093 = vmatpush1.bf16.msra.mxu1 %v16958_v22 }
 0x1df   : > { %v16863_v24 = vld [vmem:[#allocation4 + $0x300] ss:$8 sps:$4 sm:$0xff]   ;;  %2094 = vmatprep.subr.bf16.mxu1 %v16959_v23 }
 0x1e0   : > { %v2180_v22 = vld [vmem:[#allocation10 + $0xb0] sm:$0xff] }
 0x1e1   : > { %1538 = vmatpush1.bf16.msra.mxu0 %v16818_v25  ;;  %v627_v25 = vpack.c.bf16 %v19088_v17, %v19088_v17  ;;  %v16872_v17 = vld [vmem:[#allocation4 + $0x330] ss:$8 sps:$4 sm:$0xff]  }
 0x1e2   : > { %1539 = vmatprep.subr.bf16.mxu0 %v16823_v26  ;;  %v16868_v26 = vld [vmem:[#allocation4 + $0x314] ss:$8 sps:$4 sm:$0xff]  }
 0x1e5   : > { %1540 = vmatpush1.bf16.msra.mxu0 %v16821_v27  ;;  %v630_v27 = vpack.c.bf16 %v606_v12, %v606_v12  ;;  %v2176_v12 = vld [vmem:[#allocation10 + $0x90] sm:$0xff] }
 0x1e6   : > { %1541 = vmatprep.subr.bf16.mxu0 %v16826_v28  ;;  %v16961_v28 = vld [vmem:[#allocation7 + $0x1a0] ss:$16 sps:$4 sm:$0xff]   ;;  %v14714_v23 = vcombine.high %v2176_v12, %v2180_v22 }
 0x1e7   : > { %2095 = vmatpush1.bf16.msra.mxu1 %v16961_v28 }
 0x1e8   : > { %2096 = vmatprep.subr.bf16.mxu1 %v16962_v5 }
 0x1e9   : > { %1542 = vmatpush1.bf16.msra.mxu0 %v16824_v29  ;;  %v16866_v29 = vld [vmem:[#allocation4 + $0x310] ss:$8 sps:$4 sm:$0xff]  }
 0x1ea   : > { %1543 = vmatprep.subr.bf16.mxu0 %v16829_v30  ;;  %v16871_v30 = vld [vmem:[#allocation4 + $0x324] ss:$8 sps:$4 sm:$0xff]  }
 0x1ed   : > { %1544 = vmatpush1.bf16.msra.mxu0 %v16827_v34  ;;  %v16875_v34 = vld [vmem:[#allocation4 + $0x340] ss:$8 sps:$4 sm:$0xff]  }
 0x1ee   : > { %1545 = vmatprep.subr.bf16.mxu0 %v16832_v35  ;;  %v16880_v35 = vld [vmem:[#allocation4 + $0x354] ss:$8 sps:$4 sm:$0xff]  }
 0x1f1   : > { %1546 = vmatpush1.bf16.msra.mxu0 %v16830_v38  ;;  %v16881_v38 = vld [vmem:[#allocation4 + $0x360] ss:$8 sps:$4 sm:$0xff]  }
 0x1f2   : > { %1547 = vmatprep.subr.bf16.mxu0 %v16835_v39  ;;  %v16886_v39 = vld [vmem:[#allocation4 + $0x374] ss:$8 sps:$4 sm:$0xff]  }
 0x1f5   : > { %1548 = vmatpush1.bf16.msra.mxu0 %v16833_v41  ;;  %v16889_v41 = vld [vmem:[#allocation4 + $0x384] ss:$8 sps:$4 sm:$0xff]  }
 0x1f6   : > { %1549 = vmatprep.subr.bf16.mxu0 %v16838_v43  ;;  %v16892_v43 = vld [vmem:[#allocation4 + $0x394] ss:$8 sps:$4 sm:$0xff]  }
 0x1f9   : > { %1550 = vmatpush1.bf16.msra.mxu0 %v16836_v46  ;;  %v16893_v46 = vld [vmem:[#allocation4 + $0x3a0] ss:$8 sps:$4 sm:$0xff]  }
 0x1fa   : > { %1551 = vmatprep.subr.bf16.mxu0 %v16841_v47  ;;  %v16898_v47 = vld [vmem:[#allocation4 + $0x3b4] ss:$8 sps:$4 sm:$0xff]  }
 0x1fd   : > { %1552 = vmatpush1.bf16.msra.mxu0 %v16839_v50  ;;  %v16899_v50 = vld [vmem:[#allocation4 + $0x3c0] ss:$8 sps:$4 sm:$0xff]  }
 0x1fe   : > { %1553 = vmatprep.subr.bf16.mxu0 %v16844_v51  ;;  %v16904_v51 = vld [vmem:[#allocation4 + $0x3d4] ss:$8 sps:$4 sm:$0xff]  }
 0x201   : > { %1554 = vmatpush1.bf16.msra.mxu0 %v16842_v54  ;;  %v16905_v54 = vld [vmem:[#allocation4 + $0x3e0] ss:$8 sps:$4 sm:$0xff]  }
 0x202   : > { %1555 = vmatprep.subr.bf16.mxu0 %v16847_v55  ;;  %v16910_v55 = vld [vmem:[#allocation4 + $0x3f4] ss:$8 sps:$4 sm:$0xff]  }
 0x205   : > { %1556 = vmatpush1.bf16.msra.mxu0 %v16845_v58  ;;  %v16912_v58 = vld [vmem:[#allocation4 + $0x400] ss:$8 sps:$4 sm:$0xff]  }
 0x206   : > { %1557 = vmatprep.subr.bf16.mxu0 %v16850_v59  ;;  %v629_v59 = vpack.c.bf16 %v19097_v15, %v19097_v15 }
 0x209   : > { %1558 = vmatpush1.bf16.msra.mxu0 %v16848_v62  ;;  %v16915_v62 = vld [vmem:[#allocation4 + $0x410] ss:$8 sps:$4 sm:$0xff]  }
 0x20a   : > { %1559 = vmatprep.subr.bf16.mxu0 %v16853_v63  ;;  %v18650_v63 = vmov 0  }
 0x20d   : > { %1560 = vmatpush1.bf16.msra.mxu0 %v16851_v2  ;;  %v14492_v2 = vld.sshfl [vmem:[#allocation2 + $0x10] sm:$0x3 pattern:$0x76325410] }
 0x20e   : > { %1561 = vmatprep.subr.bf16.mxu0 %v16856_v3  ;;  %v1448_v3 = vsel %vm1446_vm0, %v14625_v1, 0  ;;  %v631_v4 = vpack.c.bf16 %v14492_v2, %v14492_v2  ;;  %v19109_v1 = vsub.s32 1, %v19073_v13 }
 0x211   : > { %1562 = vmatpush1.bf16.msra.mxu0 %v16854_v6  ;;  %v16964_v6 = vld [vmem:[#allocation7 + $0x1c0] ss:$16 sps:$4 sm:$0xff]  }
 0x212   : > { %1563 = vmatprep.subr.bf16.mxu0 %v16859_v7  ;;  %2097 = vmatpush1.bf16.msra.mxu1 %v16964_v6  ;;  %v16965_v7 = vld [vmem:[#allocation7 + $0x1e4] ss:$16 sps:$4 sm:$0xff]  }
 0x213   : > { %2098 = vmatprep.subr.bf16.mxu1 %v16965_v7 }
 0x215   : > { %1564 = vmatpush1.bf16.msra.mxu0 %v16857_v11  ;;  %v2164_v11 = vld [vmem:[#allocation10 + $0x30] sm:$0xff] }
 0x216   : > { %1565 = vmatprep.subr.bf16.mxu0 %v16862_v14  ;;  %2099 = vmatpush1.bf16.msra.mxu1 %v16967_v8  ;;  %v14697_v14 = vcombine.low %v2160_v10, %v2164_v11  ;;  %v14698_v15 = vcombine.high %v2160_v10, %v2164_v11 }
 0x217   : > { %2109 = vmatprep.subr.bf16.mxu1 %v16970_v9 }
 0x219   : > { %1566 = vmatpush1.bf16.msra.mxu0 %v16860_v20  ;;  %v14706_v20 = vcombine.high %v2168_v18, %v2172_v19 }
 0x21a   : > { %1576 = vmatprep.subr.bf16.mxu0 %v16865_v21  ;;  %v14705_v21 = vcombine.low %v2168_v18, %v2172_v19 }
 0x21c   : > { %1568 = vmatmul.mubr.bf16.vlgmr.msra.gmra.mrb[0].mxu0 %v627_v25  ;;  %v2184_v25 = vld [vmem:[#allocation10 + $0xd0] sm:$0xff] }
 0x21d   : > { %1577 = vmatpush1.bf16.msra.mxu0 %v16863_v24  ;;  %1608 = vmatprep.mubr.bf16.mxu0 %v630_v27  ;;  %v14713_v24 = vcombine.low %v2176_v12, %v2180_v22  ;;  %v16968_v12 = vld [vmem:[#allocation7 + $0x8] ss:$16 sps:$4 sm:$0xff]  }
 0x21e   : > { %1578 = vmatprep.subr.bf16.mxu0 %v16868_v26  ;;  %v2188_v26 = vld [vmem:[#allocation10 + $0xf0] sm:$0xff] }
 0x21f   : > { %v14722_v27 = vcombine.high %v2184_v25, %v2188_v26  ;;  %v14721_v28 = vcombine.low %v2184_v25, %v2188_v26  ;;  %v16976_v25 = vld [vmem:[#allocation7 + $0x4c] ss:$16 sps:$4 sm:$0xff]   ;;  %v16974_v26 = vld [vmem:[#allocation7 + $0x48] ss:$16 sps:$4 sm:$0xff]  }
 0x221   : > { %1579 = vmatpush1.bf16.msra.mxu0 %v16866_v29  ;;  %v2192_v29 = vld [vmem:[#allocation10 + $0x110] sm:$0xff] }
 0x222   : > { %1580 = vmatprep.subr.bf16.mxu0 %v16871_v30  ;;  %v2196_v30 = vld [vmem:[#allocation10 + $0x130] sm:$0xff] }
 0x225   : > { %1581 = vmatpush1.bf16.msra.mxu0 %v16869_v31  ;;  %v14730_v31 = vcombine.high %v2192_v29, %v2196_v30 }
 0x226   : > { %1582 = vmatprep.subr.bf16.mxu0 %v16874_v32  ;;  %v14729_v32 = vcombine.low %v2192_v29, %v2196_v30  ;;  %v16982_v29 = vld [vmem:[#allocation7 + $0x8c] ss:$16 sps:$4 sm:$0xff]   ;;  %v16980_v30 = vld [vmem:[#allocation7 + $0x88] ss:$16 sps:$4 sm:$0xff]  }
 0x229   : > { %1583 = vmatpush1.bf16.msra.mxu0 %v16872_v17  ;;  %v2200_v17 = vld [vmem:[#allocation10 + $0x150] sm:$0xff] }
 0x22a   : > { %1584 = vmatprep.subr.bf16.mxu0 %v16877_v33  ;;  %v2204_v33 = vld [vmem:[#allocation10 + $0x170] sm:$0xff] }
 0x22d   : > { %1585 = vmatpush1.bf16.msra.mxu0 %v16875_v34  ;;  %v14738_v34 = vcombine.high %v2200_v17, %v2204_v33 }
 0x22e   : > { %1586 = vmatprep.subr.bf16.mxu0 %v16880_v35  ;;  %v14737_v35 = vcombine.low %v2200_v17, %v2204_v33  ;;  %v16988_v17 = vld [vmem:[#allocation7 + $0xcc] ss:$16 sps:$4 sm:$0xff]   ;;  %v16986_v33 = vld [vmem:[#allocation7 + $0xc8] ss:$16 sps:$4 sm:$0xff]  }
 0x231   : > { %1587 = vmatpush1.bf16.msra.mxu0 %v16878_v36  ;;  %v2208_v36 = vld [vmem:[#allocation10 + $0x190] sm:$0xff] }
 0x232   : > { %1588 = vmatprep.subr.bf16.mxu0 %v16883_v37  ;;  %v2212_v37 = vld [vmem:[#allocation10 + $0x1b0] sm:$0xff] }
 0x235   : > { %1589 = vmatpush1.bf16.msra.mxu0 %v16881_v38  ;;  %v14746_v38 = vcombine.high %v2208_v36, %v2212_v37 }
 0x236   : > { %1590 = vmatprep.subr.bf16.mxu0 %v16886_v39  ;;  %v14745_v39 = vcombine.low %v2208_v36, %v2212_v37  ;;  %v16994_v36 = vld [vmem:[#allocation7 + $0x10c] ss:$16 sps:$4 sm:$0xff]   ;;  %v16992_v37 = vld [vmem:[#allocation7 + $0x108] ss:$16 sps:$4 sm:$0xff]  }
 0x239   : > { %1591 = vmatpush1.bf16.msra.mxu0 %v16884_v40  ;;  %v2216_v40 = vld [vmem:[#allocation10 + $0x1d0] sm:$0xff] }
 0x23a   : > { %1592 = vmatprep.subr.bf16.mxu0 %v16889_v41  ;;  %v2220_v41 = vld [vmem:[#allocation10 + $0x1f0] sm:$0xff] }
 0x23d   : > { %1593 = vmatpush1.bf16.msra.mxu0 %v16887_v42  ;;  %v14754_v42 = vcombine.high %v2216_v40, %v2220_v41 }
 0x23e   : > { %1594 = vmatprep.subr.bf16.mxu0 %v16892_v43  ;;  %v14753_v43 = vcombine.low %v2216_v40, %v2220_v41  ;;  %v17000_v40 = vld [vmem:[#allocation7 + $0x14c] ss:$16 sps:$4 sm:$0xff]   ;;  %v16998_v41 = vld [vmem:[#allocation7 + $0x148] ss:$16 sps:$4 sm:$0xff]  }
 0x241   : > { %1595 = vmatpush1.bf16.msra.mxu0 %v16890_v44  ;;  %v2224_v44 = vld [vmem:[#allocation10 + $0x210] sm:$0xff] }
 0x242   : > { %1596 = vmatprep.subr.bf16.mxu0 %v16895_v45  ;;  %v2228_v45 = vld [vmem:[#allocation10 + $0x230] sm:$0xff] }
 0x245   : > { %1597 = vmatpush1.bf16.msra.mxu0 %v16893_v46  ;;  %v14762_v46 = vcombine.high %v2224_v44, %v2228_v45 }
 0x246   : > { %1598 = vmatprep.subr.bf16.mxu0 %v16898_v47  ;;  %v14761_v47 = vcombine.low %v2224_v44, %v2228_v45  ;;  %v17006_v44 = vld [vmem:[#allocation7 + $0x18c] ss:$16 sps:$4 sm:$0xff]   ;;  %v17004_v45 = vld [vmem:[#allocation7 + $0x188] ss:$16 sps:$4 sm:$0xff]  }
 0x249   : > { %1599 = vmatpush1.bf16.msra.mxu0 %v16896_v48  ;;  %v2232_v48 = vld [vmem:[#allocation10 + $0x250] sm:$0xff] }
 0x24a   : > { %1600 = vmatprep.subr.bf16.mxu0 %v16901_v49  ;;  %v2236_v49 = vld [vmem:[#allocation10 + $0x270] sm:$0xff] }
 0x24d   : > { %1601 = vmatpush1.bf16.msra.mxu0 %v16899_v50  ;;  %v14770_v50 = vcombine.high %v2232_v48, %v2236_v49 }
 0x24e   : > { %1602 = vmatprep.subr.bf16.mxu0 %v16904_v51  ;;  %v14769_v51 = vcombine.low %v2232_v48, %v2236_v49  ;;  %v17012_v48 = vld [vmem:[#allocation7 + $0x1cc] ss:$16 sps:$4 sm:$0xff]   ;;  %v17010_v49 = vld [vmem:[#allocation7 + $0x1c8] ss:$16 sps:$4 sm:$0xff]  }
 0x251   : > { %1603 = vmatpush1.bf16.msra.mxu0 %v16902_v52  ;;  %v2240_v52 = vld [vmem:[#allocation10 + $0x290] sm:$0xff] }
 0x252   : > { %1604 = vmatprep.subr.bf16.mxu0 %v16907_v53  ;;  %v2244_v53 = vld [vmem:[#allocation10 + $0x2b0] sm:$0xff] }
 0x255   : > { %1605 = vmatpush1.bf16.msra.mxu0 %v16905_v54  ;;  %v14778_v54 = vcombine.high %v2240_v52, %v2244_v53 }
 0x256   : > { %1606 = vmatprep.subr.bf16.mxu0 %v16910_v55  ;;  %v14777_v55 = vcombine.low %v2240_v52, %v2244_v53  ;;  %v2162_v52 = vld [vmem:[#allocation10 + $0x20] sm:$0xff] }
 0x257   : > { %v17013_v53 = vld [vmem:[#allocation7 + $0x1e8] ss:$16 sps:$4 sm:$0xff]  }
 0x259   : > { %1607 = vmatpush1.bf16.msra.mxu0 %v16908_v56  ;;  %v2248_v56 = vld [vmem:[#allocation10 + $0x2d0] sm:$0xff] }
 0x25a   : > { %1617 = vmatprep.subr.bf16.mxu0 %v16914_v57  ;;  %v2252_v57 = vld [vmem:[#allocation10 + $0x2f0] sm:$0xff] }
 0x25c   : > { %1609 = vmatmul.mubr.bf16.vlgmr.msra.gmra.mrb[0].mxu0 %v629_v59  ;;  %v14785_v59 = vcombine.low %v2248_v56, %v2252_v57 }
 0x25d   : > { %1618 = vmatpush1.bf16.msra.mxu0 %v16912_v58  ;;  %1649 = vmatprep.mubr.bf16.mxu0 %v18650_v63  ;;  %v14786_v58 = vcombine.high %v2248_v56, %v2252_v57  ;;  %v19106_v63 = vsub.s32 0, %v19073_v13  ;;  %v2170_v56 = vld [vmem:[#allocation10 + $0x60] sm:$0xff] }
 0x25e   : > { %1619 = vmatprep.subr.bf16.mxu0 %v16917_v60  ;;  %v2256_v60 = vld [vmem:[#allocation10 + $0x310] sm:$0xff] }
 0x25f   : > { %v14793_v2 = vcombine.low %v2256_v60, %v2260_v61 }
 0x261   : > { %1620 = vmatpush1.bf16.msra.mxu0 %v16915_v62  ;;  %v14794_v62 = vcombine.high %v2256_v60, %v2260_v61  ;;  %v2178_v60 = vld [vmem:[#allocation10 + $0xa0] sm:$0xff] }
 0x262   : > { %14627 = vmatprep.subr.msk.bf16.mxu0 %vm1446_vm0, %v14626_v0  ;;  %v765_v0 = vld [vmem:[#allocation6] sm:$0x3] }
 0x263   : > { %v770_v6 = vrot.slane %v765_v0, %v19106_v63  ;;  %v774_v7 = vrot.slane %v765_v0, %v19109_v1  ;;  %v2182_v0 = vld [vmem:[#allocation10 + $0xc0] sm:$0xff] }
 0x265   : > { %1622 = vmatpush1.bf16.msra.mxu0 %v1448_v3  ;;  %v2264_v3 = vld [vmem:[#allocation10 + $0x350] sm:$0xff] }
 0x266   : > { %3900 = vmatprep.subr.bf16.mxu0 %v14698_v15 }
 0x268   : > { %14628 = vmatmul.mubr.msk.bf16.vlgmr.msra.gmra.mrb[0].mxu0 %vm1442_vm1, %v631_v4  ;;  %v2268_v4 = vld [vmem:[#allocation10 + $0x370] sm:$0xff] }
 0x269   : > { %3901 = vmatpush1.bf16.msra.mxu0 %v14697_v14  ;;  %v14802_v5 = vcombine.high %v2264_v3, %v2268_v4  ;;  %v14801_v8 = vcombine.low %v2264_v3, %v2268_v4 }
 0x26a   : > { %3902 = vmatprep.subr.bf16.mxu0 %v14706_v20 }
 0x26d   : > { %3903 = vmatpush1.bf16.msra.mxu0 %v14705_v21 }
 0x26e   : > { %3904 = vmatprep.subr.bf16.mxu0 %v14714_v23  ;;  %v16973_v23 = vld [vmem:[#allocation7 + $0x2c] ss:$16 sps:$4 sm:$0xff]  }
 0x271   : > { %3905 = vmatpush1.bf16.msra.mxu0 %v14713_v24  ;;  %v16971_v24 = vld [vmem:[#allocation7 + $0x28] ss:$16 sps:$4 sm:$0xff]  }
 0x272   : > { %3906 = vmatprep.subr.bf16.mxu0 %v14722_v27  ;;  %v16979_v27 = vld [vmem:[#allocation7 + $0x6c] ss:$16 sps:$4 sm:$0xff]  }
 0x275   : > { %3907 = vmatpush1.bf16.msra.mxu0 %v14721_v28  ;;  %v16977_v28 = vld [vmem:[#allocation7 + $0x68] ss:$16 sps:$4 sm:$0xff]  }
 0x276   : > { %3908 = vmatprep.subr.bf16.mxu0 %v14730_v31  ;;  %v16985_v31 = vld [vmem:[#allocation7 + $0xac] ss:$16 sps:$4 sm:$0xff]  }
 0x279   : > { %3909 = vmatpush1.bf16.msra.mxu0 %v14729_v32  ;;  %v16983_v32 = vld [vmem:[#allocation7 + $0xa8] ss:$16 sps:$4 sm:$0xff]  }
 0x27a   : > { %3910 = vmatprep.subr.bf16.mxu0 %v14738_v34  ;;  %v16991_v34 = vld [vmem:[#allocation7 + $0xec] ss:$16 sps:$4 sm:$0xff]  }
 0x27d   : > { %3911 = vmatpush1.bf16.msra.mxu0 %v14737_v35  ;;  %v16989_v35 = vld [vmem:[#allocation7 + $0xe8] ss:$16 sps:$4 sm:$0xff]  }
 0x27e   : > { %3912 = vmatprep.subr.bf16.mxu0 %v14746_v38  ;;  %v16997_v38 = vld [vmem:[#allocation7 + $0x12c] ss:$16 sps:$4 sm:$0xff]  }
 0x281   : > { %3913 = vmatpush1.bf16.msra.mxu0 %v14745_v39  ;;  %v16995_v39 = vld [vmem:[#allocation7 + $0x128] ss:$16 sps:$4 sm:$0xff]  }
 0x282   : > { %3914 = vmatprep.subr.bf16.mxu0 %v14754_v42  ;;  %v17003_v42 = vld [vmem:[#allocation7 + $0x16c] ss:$16 sps:$4 sm:$0xff]  }
 0x285   : > { %3915 = vmatpush1.bf16.msra.mxu0 %v14753_v43  ;;  %v17001_v43 = vld [vmem:[#allocation7 + $0x168] ss:$16 sps:$4 sm:$0xff]  }
 0x286   : > { %3916 = vmatprep.subr.bf16.mxu0 %v14762_v46  ;;  %v17009_v46 = vld [vmem:[#allocation7 + $0x1ac] ss:$16 sps:$4 sm:$0xff]  }
 0x289   : > { %3917 = vmatpush1.bf16.msra.mxu0 %v14761_v47  ;;  %v17007_v47 = vld [vmem:[#allocation7 + $0x1a8] ss:$16 sps:$4 sm:$0xff]  }
 0x28a   : > { %3918 = vmatprep.subr.bf16.mxu0 %v14770_v50  ;;  %v17015_v50 = vld [vmem:[#allocation7 + $0x1ec] ss:$16 sps:$4 sm:$0xff]  }
 0x28d   : > { %3919 = vmatpush1.bf16.msra.mxu0 %v14769_v51  ;;  %v2158_v51 = vld [vmem:[#allocation10] sm:$0xff] }
 0x28e   : > { %3920 = vmatprep.subr.bf16.mxu0 %v14778_v54  ;;  %v14694_v54 = vcombine.high %v2158_v51, %v2162_v52  ;;  %v14693_v57 = vcombine.low %v2158_v51, %v2162_v52  ;;  %v2250_v51 = vld [vmem:[#allocation10 + $0x2e0] sm:$0xff] }
 0x291   : > { %3921 = vmatpush1.bf16.msra.mxu0 %v14777_v55  ;;  %v2166_v55 = vld [vmem:[#allocation10 + $0x40] sm:$0xff] }
 0x292   : > { %3922 = vmatprep.subr.bf16.mxu0 %v14786_v58  ;;  %v14702_v58 = vcombine.high %v2166_v55, %v2170_v56  ;;  %v14701_v61 = vcombine.low %v2166_v55, %v2170_v56  ;;  %v2258_v55 = vld [vmem:[#allocation10 + $0x320] sm:$0xff] }
 0x295   : > { %3923 = vmatpush1.bf16.msra.mxu0 %v14785_v59  ;;  %v2174_v59 = vld [vmem:[#allocation10 + $0x80] sm:$0xff] }
 0x296   : > { %3924 = vmatprep.subr.bf16.mxu0 %v14794_v62  ;;  %v14710_v62 = vcombine.high %v2174_v59, %v2178_v60  ;;  %v14709_v3 = vcombine.low %v2174_v59, %v2178_v60  ;;  %v2266_v59 = vld [vmem:[#allocation10 + $0x360] sm:$0xff] }
 0x299   : > { %3925 = vmatpush1.bf16.msra.mxu0 %v14793_v2  ;;  %v2186_v2 = vld [vmem:[#allocation10 + $0xe0] sm:$0xff] }
 0x29a   : > { %3926 = vmatprep.subr.bf16.mxu0 %v14802_v5  ;;  %v14718_v4 = vcombine.high %v2182_v0, %v2186_v2  ;;  %v2190_v5 = vld [vmem:[#allocation10 + $0x100] sm:$0xff] }
 0x29d   : > { %3927 = vmatpush1.bf16.msra.mxu0 %v14801_v8 }
 0x33b   : > { %v1651_v9 = vpop.f32.mrb[0].mxu0 }
 0x33c   : > { %v16386_v10 = vadd.f32 %v1651_v9, %v770_v6  ;;  %v1653_v11 = vpop.f32.mrb[1].mxu0  ;;  %v2194_v6 = vld [vmem:[#allocation10 + $0x120] sm:$0xff] }
 0x33d   : > { %v16387_v14 = vadd.f32 %v1653_v11, %v774_v7  ;;  %v1655_v15 = vpop.f32.mrb[2].mxu0  ;;  %v14717_v7 = vcombine.low %v2182_v0, %v2186_v2  ;;  %v14726_v8 = vcombine.high %v2190_v5, %v2194_v6  ;;  %v2198_v9 = vld [vmem:[#allocation10 + $0x140] sm:$0xff]  ;;  %v14725_v11 = vcombine.low %v2190_v5, %v2194_v6 }
 0x33e   : > { %v1658_v18 = vmax.f32 %v16386_v10, 0.0  ;;  %v1656_v19 = vpop.f32.mrb[3].mxu0  ;;  %v2202_v10 = vld [vmem:[#allocation10 + $0x160] sm:$0xff] }
 0x33f   : > { %v1659_v20 = vmax.f32 %v16387_v14, 0.0  ;;  %v14734_v14 = vcombine.high %v2198_v9, %v2202_v10  ;;  %v2206_v15 = vld [vmem:[#allocation10 + $0x180] sm:$0xff]  ;;  %v14733_v19 = vcombine.low %v2198_v9, %v2202_v10  ;;  %v19133_v10 = vld [vmem:[#allocation9] sm:$0xf] }
 0x340   : > { %v19113_v22 = vpack.c.bf16 %v1658_v18, %v1658_v18  ;;  %v2210_v18 = vld [vmem:[#allocation10 + $0x1a0] sm:$0xff] }
 0x341   : > { %v1661_v21 = vpack.c.bf16 %v1659_v20, %v1659_v20  ;;  %v2272_v20 = vld [vmem:[#allocation10 + $0x390] sm:$0xff]  ;;  %v2274_v0 = vld [vmem:[#allocation10 + $0x3a0] sm:$0xff] }
 0x342   : > { %v2282_v5 = vld [vmem:[#allocation10 + $0x3e0] sm:$0xff] }
 0x343   : > { %2100 = vmatprep.mubr.bf16.mxu1 %v1661_v21 }
 0x344   : > { %2101 = vmatmul.mubr.bf16.vlgmr.msra.gmra.mrb[0].mxu1 %v19113_v22 }
 0x345   : > { %2110 = vmatpush1.bf16.msra.mxu1 %v16968_v12  ;;  %2141 = vmatprep.mubr.bf16.mxu1 %v1661_v21  ;;  %v14742_v21 = vcombine.high %v2206_v15, %v2210_v18  ;;  %v2276_v12 = vld [vmem:[#allocation10 + $0x3b0] sm:$0xff] }
 0x346   : > { %2111 = vmatprep.subr.bf16.mxu1 %v16973_v23  ;;  %v2218_v23 = vld [vmem:[#allocation10 + $0x1e0] sm:$0xff] }
 0x349   : > { %2112 = vmatpush1.bf16.msra.mxu1 %v16971_v24  ;;  %v14809_v24 = vcombine.low %v2272_v20, %v2276_v12 }
 0x34a   : > { %2113 = vmatprep.subr.bf16.mxu1 %v16976_v25  ;;  %v14810_v25 = vcombine.high %v2272_v20, %v2276_v12 }
 0x34c   : > { %3928 = vmatprep.subr.bf16.mxu0 %v14810_v25  ;;  %v2298_v25 = vld [vmem:[#allocation10 + $0x460] sm:$0xff] }
 0x34d   : > { %2114 = vmatpush1.bf16.msra.mxu1 %v16974_v26  ;;  %v14741_v26 = vcombine.low %v2206_v15, %v2210_v18  ;;  %3929 = vmatpush1.bf16.msra.mxu0 %v14809_v24 }
 0x34e   : > { %2115 = vmatprep.subr.bf16.mxu1 %v16979_v27  ;;  %v2280_v27 = vld [vmem:[#allocation10 + $0x3d0] sm:$0xff] }
 0x351   : > { %2116 = vmatpush1.bf16.msra.mxu1 %v16977_v28 }
 0x352   : > { %2117 = vmatprep.subr.bf16.mxu1 %v16982_v29  ;;  %v2284_v29 = vld [vmem:[#allocation10 + $0x3f0] sm:$0xff] }
 0x355   : > { %2118 = vmatpush1.bf16.msra.mxu1 %v16980_v30  ;;  %v2222_v30 = vld [vmem:[#allocation10 + $0x200] sm:$0xff] }
 0x356   : > { %2119 = vmatprep.subr.bf16.mxu1 %v16985_v31  ;;  %v2226_v31 = vld [vmem:[#allocation10 + $0x220] sm:$0xff] }
 0x359   : > { %2120 = vmatpush1.bf16.msra.mxu1 %v16983_v32  ;;  %v14817_v32 = vcombine.low %v2280_v27, %v2284_v29 }
 0x35a   : > { %2121 = vmatprep.subr.bf16.mxu1 %v16988_v17  ;;  %v14818_v17 = vcombine.high %v2280_v27, %v2284_v29  ;;  %v2300_v27 = vld [vmem:[#allocation10 + $0x470] sm:$0xff] }
 0x35c   : > { %3930 = vmatprep.subr.bf16.mxu0 %v14818_v17  ;;  %v2306_v17 = vld [vmem:[#allocation10 + $0x4a0] sm:$0xff] }
 0x35d   : > { %2122 = vmatpush1.bf16.msra.mxu1 %v16986_v33  ;;  %3931 = vmatpush1.bf16.msra.mxu0 %v14817_v32  ;;  %v2302_v32 = vld [vmem:[#allocation10 + $0x480] sm:$0xff] }
 0x35e   : > { %2123 = vmatprep.subr.bf16.mxu1 %v16991_v34  ;;  %v19117_v34 = vld [vmem:[#allocation10 + $0x400] sm:$0xff] }
 0x361   : > { %2124 = vmatpush1.bf16.msra.mxu1 %v16989_v35  ;;  %v19119_v35 = vld [vmem:[#allocation10 + $0x420] sm:$0xff] }
 0x362   : > { %2125 = vmatprep.subr.bf16.mxu1 %v16994_v36  ;;  %v19121_v36 = vld [vmem:[#allocation10 + $0x410] sm:$0xff]  ;;  %v14822_v9 = vcombine.high %v19117_v34, %v19119_v35 }
 0x365   : > { %2126 = vmatpush1.bf16.msra.mxu1 %v16992_v37  ;;  %v14758_v37 = vcombine.high %v2222_v30, %v2226_v31 }
 0x366   : > { %2127 = vmatprep.subr.bf16.mxu1 %v16997_v38  ;;  %v19123_v38 = vld [vmem:[#allocation10 + $0x430] sm:$0xff] }
 0x369   : > { %2128 = vmatpush1.bf16.msra.mxu1 %v16995_v39  ;;  %v2230_v39 = vld [vmem:[#allocation10 + $0x240] sm:$0xff] }
 0x36a   : > { %2129 = vmatprep.subr.bf16.mxu1 %v17000_v40  ;;  %v2234_v40 = vld [vmem:[#allocation10 + $0x260] sm:$0xff] }
 0x36d   : > { %2130 = vmatpush1.bf16.msra.mxu1 %v16998_v41  ;;  %v14821_v41 = vcombine.low %v19117_v34, %v19119_v35 }
 0x36e   : > { %2131 = vmatprep.subr.bf16.mxu1 %v17003_v42  ;;  %v14825_v42 = vcombine.low %v19121_v36, %v19123_v38 }
 0x371   : > { %2132 = vmatpush1.bf16.msra.mxu1 %v17001_v43  ;;  %v14826_v43 = vcombine.high %v19121_v36, %v19123_v38  ;;  %v2318_v36 = vld [vmem:[#allocation10 + $0x500] sm:$0xff] }
 0x372   : > { %2133 = vmatprep.subr.bf16.mxu1 %v17006_v44  ;;  %v14757_v44 = vcombine.low %v2222_v30, %v2226_v31  ;;  %v2322_v38 = vld [vmem:[#allocation10 + $0x520] sm:$0xff] }
 0x373   : > { %3941 = vmatprep.subr.bf16.mxu0 %v14826_v43  ;;  %v14838_v43 = vcombine.high %v2302_v32, %v2306_v17 }
 0x375   : > { %2134 = vmatpush1.bf16.msra.mxu1 %v17004_v45  ;;  %v14766_v45 = vcombine.high %v2230_v39, %v2234_v40 }
 0x376   : > { %2135 = vmatprep.subr.bf16.mxu1 %v17009_v46  ;;  %v2238_v46 = vld [vmem:[#allocation10 + $0x280] sm:$0xff] }
 0x379   : > { %2136 = vmatpush1.bf16.msra.mxu1 %v17007_v47  ;;  %v2242_v47 = vld [vmem:[#allocation10 + $0x2a0] sm:$0xff] }
 0x37a   : > { %2137 = vmatprep.subr.bf16.mxu1 %v17012_v48  ;;  %v14765_v48 = vcombine.low %v2230_v39, %v2234_v40  ;;  %v14773_v52 = vcombine.low %v2238_v46, %v2242_v47 }
 0x37d   : > { %2138 = vmatpush1.bf16.msra.mxu1 %v17010_v49  ;;  %v14774_v49 = vcombine.high %v2238_v46, %v2242_v47  ;;  %v2314_v46 = vld [vmem:[#allocation10 + $0x4e0] sm:$0xff]  ;;  %v2312_v47 = vld [vmem:[#allocation10 + $0x4d0] sm:$0xff] }
 0x37e   : > { %2139 = vmatprep.subr.bf16.mxu1 %v17015_v50  ;;  %v2246_v50 = vld [vmem:[#allocation10 + $0x2c0] sm:$0xff] }
 0x37f   : > { %v14781_v56 = vcombine.low %v2246_v50, %v2250_v51 }
 0x381   : > { %2140 = vmatpush1.bf16.msra.mxu1 %v17013_v53  ;;  %v14782_v53 = vcombine.high %v2246_v50, %v2250_v51 }
 0x382   : > { %3736 = vmatprep.subr.bf16.mxu1 %v14694_v54  ;;  %v2254_v54 = vld [vmem:[#allocation10 + $0x300] sm:$0xff] }
 0x383   : > { %v14789_v60 = vcombine.low %v2254_v54, %v2258_v55 }
 0x384   : > { %2142 = vmatmul.mubr.bf16.vlgmr.msra.gmra.mrb[4].mxu1 %v19113_v22  ;;  %v2214_v22 = vld [vmem:[#allocation10 + $0x1c0] sm:$0xff] }
 0x385   : > { %3737 = vmatpush1.bf16.msra.mxu1 %v14693_v57  ;;  %v14750_v28 = vcombine.high %v2214_v22, %v2218_v23  ;;  %v14749_v33 = vcombine.low %v2214_v22, %v2218_v23  ;;  %v14790_v57 = vcombine.high %v2254_v54, %v2258_v55  ;;  %v2294_v23 = vld [vmem:[#allocation10 + $0x440] sm:$0xff] }
 0x386   : > { %3738 = vmatprep.subr.bf16.mxu1 %v14702_v58  ;;  %v2262_v58 = vld [vmem:[#allocation10 + $0x340] sm:$0xff]  ;;  %v14830_v30 = vcombine.high %v2294_v23, %v2298_v25  ;;  %v14829_v39 = vcombine.low %v2294_v23, %v2298_v25  ;;  %v2352_v23 = vld [vmem:[#allocation10 + $0x610] sm:$0xff] }
 0x387   : > { %v14797_v2 = vcombine.low %v2262_v58, %v2266_v59  ;;  %v2326_v55 = vld [vmem:[#allocation10 + $0x540] sm:$0xff] }
 0x389   : > { %3739 = vmatpush1.bf16.msra.mxu1 %v14701_v61  ;;  %v14798_v61 = vcombine.high %v2262_v58, %v2266_v59  ;;  %v2332_v58 = vld [vmem:[#allocation10 + $0x570] sm:$0xff]  ;;  %v14853_v59 = vcombine.low %v2318_v36, %v2322_v38 }
 0x38a   : > { %3740 = vmatprep.subr.bf16.mxu1 %v14710_v62  ;;  %v2270_v62 = vld [vmem:[#allocation10 + $0x380] sm:$0xff] }
 0x38b   : > { %v14805_v6 = vcombine.low %v2270_v62, %v2274_v0 }
 0x38d   : > { %3741 = vmatpush1.bf16.msra.mxu1 %v14709_v3  ;;  %v14806_v3 = vcombine.high %v2270_v62, %v2274_v0  ;;  %v2334_v0 = vld [vmem:[#allocation10 + $0x580] sm:$0xff] }
 0x38e   : > { %3742 = vmatprep.subr.bf16.mxu1 %v14718_v4  ;;  %v2278_v4 = vld [vmem:[#allocation10 + $0x3c0] sm:$0xff] }
 0x391   : > { %3743 = vmatpush1.bf16.msra.mxu1 %v14717_v7  ;;  %v14814_v7 = vcombine.high %v2278_v4, %v2282_v5 }
 0x392   : > { %3744 = vmatprep.subr.bf16.mxu1 %v14726_v8  ;;  %v14813_v8 = vcombine.low %v2278_v4, %v2282_v5  ;;  %v2340_v4 = vld [vmem:[#allocation10 + $0x5b0] sm:$0xff] }
 0x395   : > { %3745 = vmatpush1.bf16.msra.mxu1 %v14725_v11  ;;  %v1731_v11 = vrot.slane %v19133_v10, %v19106_v63 }
 0x396   : > { %3746 = vmatprep.subr.bf16.mxu1 %v14734_v14  ;;  %v1735_v14 = vrot.slane %v19133_v10, %v19109_v1 }
 0x399   : > { %3747 = vmatpush1.bf16.msra.mxu1 %v14733_v19 }
 0x39a   : > { %3748 = vmatprep.subr.bf16.mxu1 %v14742_v21 }
 0x39d   : > { %3749 = vmatpush1.bf16.msra.mxu1 %v14741_v26  ;;  %v2296_v26 = vld [vmem:[#allocation10 + $0x450] sm:$0xff] }
 0x39e   : > { %3750 = vmatprep.subr.bf16.mxu1 %v14750_v28  ;;  %v14834_v31 = vcombine.high %v2296_v26, %v2300_v27  ;;  %v14833_v40 = vcombine.low %v2296_v26, %v2300_v27 }
 0x3a1   : > { %3751 = vmatpush1.bf16.msra.mxu1 %v14749_v33  ;;  %v2304_v33 = vld [vmem:[#allocation10 + $0x490] sm:$0xff] }
 0x3a2   : > { %3752 = vmatprep.subr.bf16.mxu1 %v14758_v37  ;;  %v2308_v37 = vld [vmem:[#allocation10 + $0x4b0] sm:$0xff] }
 0x3a3   : > { %v14841_v50 = vcombine.low %v2304_v33, %v2308_v37 }
 0x3a5   : > { %3753 = vmatpush1.bf16.msra.mxu1 %v14757_v44  ;;  %v14842_v44 = vcombine.high %v2304_v33, %v2308_v37  ;;  %v2364_v33 = vld [vmem:[#allocation10 + $0x670] sm:$0xff] }
 0x3a6   : > { %3754 = vmatprep.subr.bf16.mxu1 %v14766_v45  ;;  %v2310_v45 = vld [vmem:[#allocation10 + $0x4c0] sm:$0xff] }
 0x3a7   : > { %v14846_v34 = vcombine.high %v2310_v45, %v2314_v46  ;;  %v14845_v51 = vcombine.low %v2310_v45, %v2314_v46  ;;  %v2370_v45 = vld [vmem:[#allocation10 + $0x6a0] sm:$0xff]  ;;  %v2368_v46 = vld [vmem:[#allocation10 + $0x690] sm:$0xff] }
 0x3a9   : > { %3755 = vmatpush1.bf16.msra.mxu1 %v14765_v48  ;;  %v2316_v48 = vld [vmem:[#allocation10 + $0x4f0] sm:$0xff] }
 0x3aa   : > { %3756 = vmatprep.subr.bf16.mxu1 %v14774_v49  ;;  %v14837_v49 = vcombine.low %v2302_v32, %v2306_v17  ;;  %v14850_v35 = vcombine.high %v2312_v47, %v2316_v48  ;;  %v2362_v32 = vld [vmem:[#allocation10 + $0x660] sm:$0xff]  ;;  %v2360_v17 = vld [vmem:[#allocation10 + $0x650] sm:$0xff] }
 0x3ad   : > { %3757 = vmatpush1.bf16.msra.mxu1 %v14773_v52  ;;  %v14849_v52 = vcombine.low %v2312_v47, %v2316_v48  ;;  %v2372_v47 = vld [vmem:[#allocation10 + $0x6b0] sm:$0xff] }
 0x3ae   : > { %3758 = vmatprep.subr.bf16.mxu1 %v14782_v53  ;;  %v14854_v53 = vcombine.high %v2318_v36, %v2322_v38  ;;  %v2378_v36 = vld [vmem:[#allocation10 + $0x6e0] sm:$0xff]  ;;  %v2376_v38 = vld [vmem:[#allocation10 + $0x6d0] sm:$0xff] }
 0x3b1   : > { %3759 = vmatpush1.bf16.msra.mxu1 %v14781_v56  ;;  %v2330_v56 = vld [vmem:[#allocation10 + $0x560] sm:$0xff] }
 0x3b2   : > { %3760 = vmatprep.subr.bf16.mxu1 %v14790_v57  ;;  %v2328_v57 = vld [vmem:[#allocation10 + $0x550] sm:$0xff]  ;;  %v14861_v5 = vcombine.low %v2326_v55, %v2330_v56 }
 0x3b3   : > { %v14866_v62 = vcombine.high %v2328_v57, %v2332_v58 }
 0x3b5   : > { %3761 = vmatpush1.bf16.msra.mxu1 %v14789_v60 }
 0x3b6   : > { %3762 = vmatprep.subr.bf16.mxu1 %v14798_v61  ;;  %v14862_v61 = vcombine.high %v2326_v55, %v2330_v56  ;;  %v2386_v55 = vld [vmem:[#allocation10 + $0x720] sm:$0xff]  ;;  %v2384_v56 = vld [vmem:[#allocation10 + $0x710] sm:$0xff] }
 0x3b9   : > { %3763 = vmatpush1.bf16.msra.mxu1 %v14797_v2  ;;  %v2338_v2 = vld [vmem:[#allocation10 + $0x5a0] sm:$0xff] }
 0x3ba   : > { %3764 = vmatprep.subr.bf16.mxu1 %v14806_v3  ;;  %v2336_v3 = vld [vmem:[#allocation10 + $0x590] sm:$0xff] }
 0x3bd   : > { %3765 = vmatpush1.bf16.msra.mxu1 %v14805_v6  ;;  %v14865_v6 = vcombine.low %v2328_v57, %v2332_v58  ;;  %v2388_v57 = vld [vmem:[#allocation10 + $0x730] sm:$0xff] }
 0x3be   : > { %3766 = vmatprep.subr.bf16.mxu1 %v14814_v7  ;;  %v14870_v7 = vcombine.high %v2334_v0, %v2338_v2 }
 0x3c1   : > { %3767 = vmatpush1.bf16.msra.mxu1 %v14813_v8  ;;  %v14874_v8 = vcombine.high %v2336_v3, %v2340_v4 }
 0x3c2   : > { %3777 = vmatprep.subr.bf16.mxu1 %v14822_v9  ;;  %v2342_v9 = vld [vmem:[#allocation10 + $0x5c0] sm:$0xff] }
 0x417   : > { %v2102_v15 = vpop.f32.mrb[0].mxu1 }
 0x418   : > { %v2103_v18 = vadd.f32 %v2102_v15, %v1731_v11  ;;  %v2104_v19 = vpop.f32.mrb[1].mxu1  ;;  %v2346_v11 = vld [vmem:[#allocation10 + $0x5e0] sm:$0xff]  ;;  %v2348_v15 = vld [vmem:[#allocation10 + $0x5f0] sm:$0xff] }
 0x419   : > { %v2105_v20 = vadd.f32 %v2104_v19, %v1735_v14  ;;  %v2106_v21 = vpop.f32.mrb[2].mxu1  ;;  %v2344_v14 = vld [vmem:[#allocation10 + $0x5d0] sm:$0xff]  ;;  %v14873_v19 = vcombine.low %v2336_v3, %v2340_v4  ;;  %v14877_v25 = vcombine.low %v2342_v9, %v2346_v11 }
 0x41a   : > { %v2150_v12 = vmax.f32 %v2103_v18, 0.0  ;;  %v2107_v22 = vpop.f32.mrb[3].mxu1  ;;  %v14869_v18 = vcombine.low %v2334_v0, %v2338_v2  ;;  %v14882_v21 = vcombine.high %v2344_v14, %v2348_v15  ;;  %v14881_v26 = vcombine.low %v2344_v14, %v2348_v15  ;;  %v2394_v0 = vld [vmem:[#allocation10 + $0x760] sm:$0xff]  ;;  %v2392_v2 = vld [vmem:[#allocation10 + $0x750] sm:$0xff] }
 0x41b   : > { %v2151_v24 = vmax.f32 %v2105_v20, 0.0  ;;  %v14878_v20 = vcombine.high %v2342_v9, %v2346_v11  ;;  %v2354_v22 = vld [vmem:[#allocation10 + $0x620] sm:$0xff]  ;;  %v2396_v3 = vld [vmem:[#allocation10 + $0x770] sm:$0xff]  ;;  %v19154_v15 = vsub.s32 2, %v19073_v13 }
 0x41c   : > { %v19141_v29 = vpack.c.bf16 %v2150_v12, %v2150_v12  ;;  %v2350_v12 = vld [vmem:[#allocation10 + $0x600] sm:$0xff]  ;;  %v2400_v11 = vld [vmem:[#allocation10 + $0x790] sm:$0xff] }
 0x41d   : > { %v19139_v28 = vpack.c.bf16 %v2151_v24, %v2151_v24  ;;  %v2356_v24 = vld [vmem:[#allocation10 + $0x630] sm:$0xff]  ;;  %v14886_v27 = vcombine.high %v2350_v12, %v2354_v22  ;;  %v14885_v37 = vcombine.low %v2350_v12, %v2354_v22  ;;  %v2402_v9 = vld [vmem:[#allocation10 + $0x7a0] sm:$0xff] }
 0x41e   : > { %v2404_v14 = vld [vmem:[#allocation10 + $0x7b0] sm:$0xff]  ;;  %v2406_v22 = vld [vmem:[#allocation10 + $0x7c0] sm:$0xff] }
 0x41f   : > { %3768 = vmatprep.mubr.bf16.mxu1 %v19139_v28  ;;  %3932 = vmatprep.mubr.bf16.mxu0 %v19139_v28  ;;  %v14938_v12 = vcombine.high %v2400_v11, %v2404_v14 }
 0x420   : > { %3769 = vmatmul.mubr.bf16.vlgmr.msra.gmra.mrb[8].mxu1 %v19141_v29  ;;  %3933 = vmatmul.mubr.bf16.vlgmr.msra.gmra.mrb[4].mxu0 %v19141_v29 }
 0x421   : > { %3778 = vmatpush1.bf16.msra.mxu1 %v14821_v41  ;;  %3942 = vmatpush1.bf16.msra.mxu0 %v14825_v42  ;;  %v2320_v41 = vld [vmem:[#allocation10 + $0x510] sm:$0xff] }
 0x422   : > { %3779 = vmatprep.subr.bf16.mxu1 %v14830_v30  ;;  %3943 = vmatprep.subr.bf16.mxu0 %v14834_v31  ;;  %v2324_v42 = vld [vmem:[#allocation10 + $0x530] sm:$0xff]  ;;  %v14890_v30 = vcombine.high %v2352_v23, %v2356_v24  ;;  %v2358_v31 = vld [vmem:[#allocation10 + $0x640] sm:$0xff] }
 0x423   : > { %v14858_v54 = vcombine.high %v2320_v41, %v2324_v42  ;;  %v14857_v60 = vcombine.low %v2320_v41, %v2324_v42  ;;  %v14893_v48 = vcombine.low %v2358_v31, %v2362_v32  ;;  %v2380_v41 = vld [vmem:[#allocation10 + $0x6f0] sm:$0xff] }
 0x425   : > { %3780 = vmatpush1.bf16.msra.mxu1 %v14829_v39  ;;  %3944 = vmatpush1.bf16.msra.mxu0 %v14833_v40  ;;  %v14889_v39 = vcombine.low %v2352_v23, %v2356_v24  ;;  %v14894_v40 = vcombine.high %v2358_v31, %v2362_v32  ;;  %v2410_v23 = vld [vmem:[#allocation10 + $0x7e0] sm:$0xff]  ;;  %v2408_v24 = vld [vmem:[#allocation10 + $0x7d0] sm:$0xff]  ;;  %v14937_v31 = vcombine.low %v2400_v11, %v2404_v14  ;;  %v2219_v11 = vld [vmem:[#allocation10 + $0x1e8] sm:$0xff] }
 0x426   : > { %3781 = vmatprep.subr.bf16.mxu1 %v14838_v43  ;;  %3945 = vmatprep.subr.bf16.mxu0 %v14842_v44  ;;  %v14898_v43 = vcombine.high %v2360_v17, %v2364_v33  ;;  %v2366_v44 = vld [vmem:[#allocation10 + $0x680] sm:$0xff]  ;;  %v14942_v32 = vcombine.high %v2406_v22, %v2410_v23 }
 0x427   : > { %v14901_v42 = vcombine.low %v2366_v44, %v2370_v45 }
 0x429   : > { %3782 = vmatpush1.bf16.msra.mxu1 %v14837_v49  ;;  %3946 = vmatpush1.bf16.msra.mxu0 %v14841_v50  ;;  %v14897_v49 = vcombine.low %v2360_v17, %v2364_v33  ;;  %v14902_v50 = vcombine.high %v2366_v44, %v2370_v45 }
 0x42a   : > { %3783 = vmatprep.subr.bf16.mxu1 %v14846_v34  ;;  %3947 = vmatprep.subr.bf16.mxu0 %v14850_v35  ;;  %v14906_v34 = vcombine.high %v2368_v46, %v2372_v47  ;;  %v2374_v35 = vld [vmem:[#allocation10 + $0x6c0] sm:$0xff] }
 0x42b   : > { %v14909_v58 = vcombine.low %v2374_v35, %v2378_v36 }
 0x42d   : > { %3784 = vmatpush1.bf16.msra.mxu1 %v14845_v51  ;;  %3948 = vmatpush1.bf16.msra.mxu0 %v14849_v52  ;;  %v14905_v51 = vcombine.low %v2368_v46, %v2372_v47  ;;  %v14910_v52 = vcombine.high %v2374_v35, %v2378_v36  ;;  %v14941_v46 = vcombine.low %v2406_v22, %v2410_v23  ;;  %v2171_v35 = vld [vmem:[#allocation10 + $0x68] sm:$0xff] }
 0x42e   : > { %3785 = vmatprep.subr.bf16.mxu1 %v14854_v53  ;;  %3949 = vmatprep.subr.bf16.mxu0 %v14858_v54  ;;  %v14914_v53 = vcombine.high %v2376_v38, %v2380_v41  ;;  %v2382_v54 = vld [vmem:[#allocation10 + $0x700] sm:$0xff]  ;;  %v4080_v22 = vld [vmem:[#allocation13] sm:$0xff] }
 0x42f   : > { %v14917_v4 = vcombine.low %v2382_v54, %v2386_v55 }
 0x431   : > { %3786 = vmatpush1.bf16.msra.mxu1 %v14853_v59  ;;  %3950 = vmatpush1.bf16.msra.mxu0 %v14857_v60  ;;  %v14913_v59 = vcombine.low %v2376_v38, %v2380_v41  ;;  %v14918_v60 = vcombine.high %v2382_v54, %v2386_v55  ;;  %v2183_v55 = vld [vmem:[#allocation10 + $0xc8] sm:$0xff] }
 0x432   : > { %3787 = vmatprep.subr.bf16.mxu1 %v14862_v61  ;;  %3951 = vmatprep.subr.bf16.mxu0 %v14866_v62  ;;  %v14922_v61 = vcombine.high %v2384_v56, %v2388_v57  ;;  %v2390_v62 = vld [vmem:[#allocation10 + $0x740] sm:$0xff] }
 0x435   : > { %3788 = vmatpush1.bf16.msra.mxu1 %v14861_v5  ;;  %3952 = vmatpush1.bf16.msra.mxu0 %v14865_v6  ;;  %v14921_v5 = vcombine.low %v2384_v56, %v2388_v57  ;;  %v14926_v6 = vcombine.high %v2390_v62, %v2394_v0  ;;  %v2187_v56 = vld [vmem:[#allocation10 + $0xe8] sm:$0xff] }
 0x436   : > { %3789 = vmatprep.subr.bf16.mxu1 %v14870_v7  ;;  %3953 = vmatprep.subr.bf16.mxu0 %v14874_v8  ;;  %v14930_v7 = vcombine.high %v2392_v2, %v2396_v3  ;;  %v2398_v8 = vld [vmem:[#allocation10 + $0x780] sm:$0xff] }
 0x439   : > { %3790 = vmatpush1.bf16.msra.mxu1 %v14869_v18  ;;  %3954 = vmatpush1.bf16.msra.mxu0 %v14873_v19  ;;  %v14925_v18 = vcombine.low %v2390_v62, %v2394_v0  ;;  %v14929_v19 = vcombine.low %v2392_v2, %v2396_v3  ;;  %v2199_v0 = vld [vmem:[#allocation10 + $0x148] sm:$0xff] }
 0x43a   : > { %3791 = vmatprep.subr.bf16.mxu1 %v14878_v20  ;;  %3955 = vmatprep.subr.bf16.mxu0 %v14882_v21  ;;  %v19157_v20 = vsub.s32 3, %v19073_v13  ;;  %v14934_v21 = vcombine.high %v2398_v8, %v2402_v9  ;;  %v2203_v2 = vld [vmem:[#allocation10 + $0x168] sm:$0xff] }
 0x43d   : > { %3792 = vmatpush1.bf16.msra.mxu1 %v14877_v25  ;;  %3956 = vmatpush1.bf16.msra.mxu0 %v14881_v26  ;;  %v2412_v25 = vld [vmem:[#allocation10 + $0x7f0] sm:$0xff]  ;;  %v1739_v26 = vrot.slane %v19133_v10, %v19154_v15 }
 0x43e   : > { %3793 = vmatprep.subr.bf16.mxu1 %v14886_v27  ;;  %3957 = vmatprep.subr.bf16.mxu0 %v14890_v30  ;;  %v1743_v27 = vrot.slane %v19133_v10, %v19157_v20  ;;  %v14933_v30 = vcombine.low %v2398_v8, %v2402_v9  ;;  %v14946_v17 = vcombine.high %v2408_v24, %v2412_v25  ;;  %v2215_v9 = vld [vmem:[#allocation10 + $0x1c8] sm:$0xff] }
 0x43f   : > { %v14945_v47 = vcombine.low %v2408_v24, %v2412_v25  ;;  %v4084_v24 = vld [vmem:[#allocation13 + $0x20] sm:$0xff] }
 0x440   : > { %v2231_v25 = vld [vmem:[#allocation10 + $0x248] sm:$0xff] }
 0x441   : > { %3794 = vmatpush1.bf16.msra.mxu1 %v14885_v37  ;;  %3958 = vmatpush1.bf16.msra.mxu0 %v14889_v39  ;;  %v2159_v37 = vld [vmem:[#allocation10 + $0x8] sm:$0xff] }
 0x442   : > { %3795 = vmatprep.subr.bf16.mxu1 %v14894_v40  ;;  %3959 = vmatprep.subr.bf16.mxu0 %v14898_v43  ;;  %v2163_v39 = vld [vmem:[#allocation10 + $0x28] sm:$0xff] }
 0x443   : > { %v14696_v10 = vcombine.high %v2159_v37, %v2163_v39  ;;  %v14695_v38 = vcombine.low %v2159_v37, %v2163_v39  ;;  %v2239_v37 = vld [vmem:[#allocation10 + $0x288] sm:$0xff] }
 0x444   : > { %v2243_v39 = vld [vmem:[#allocation10 + $0x2a8] sm:$0xff] }
 0x445   : > { %3796 = vmatpush1.bf16.msra.mxu1 %v14893_v48  ;;  %3960 = vmatpush1.bf16.msra.mxu0 %v14897_v49 }
 0x446   : > { %3797 = vmatprep.subr.bf16.mxu1 %v14902_v50  ;;  %3961 = vmatprep.subr.bf16.mxu0 %v14906_v34  ;;  %v2167_v34 = vld [vmem:[#allocation10 + $0x48] sm:$0xff] }
 0x449   : > { %3798 = vmatpush1.bf16.msra.mxu1 %v14901_v42  ;;  %3962 = vmatpush1.bf16.msra.mxu0 %v14905_v51  ;;  %v14704_v42 = vcombine.high %v2167_v34, %v2171_v35  ;;  %v2175_v51 = vld [vmem:[#allocation10 + $0x88] sm:$0xff] }
 0x44a   : > { %3799 = vmatprep.subr.bf16.mxu1 %v14910_v52  ;;  %3963 = vmatprep.subr.bf16.mxu0 %v14914_v53  ;;  %v2179_v52 = vld [vmem:[#allocation10 + $0xa8] sm:$0xff]  ;;  %v14703_v53 = vcombine.low %v2167_v34, %v2171_v35  ;;  %v14775_v34 = vcombine.low %v2239_v37, %v2243_v39 }
 0x44b   : > { %v14712_v54 = vcombine.high %v2175_v51, %v2179_v52  ;;  %v14711_v57 = vcombine.low %v2175_v51, %v2179_v52  ;;  %v4104_v35 = vld [vmem:[#allocation13 + $0xc0] sm:$0xff] }
 0x44c   : > { %v2255_v51 = vld [vmem:[#allocation10 + $0x308] sm:$0xff] }
 0x44d   : > { %3800 = vmatpush1.bf16.msra.mxu1 %v14909_v58  ;;  %3964 = vmatpush1.bf16.msra.mxu0 %v14913_v59  ;;  %v14720_v58 = vcombine.high %v2183_v55, %v2187_v56  ;;  %v2191_v59 = vld [vmem:[#allocation10 + $0x108] sm:$0xff] }
 0x44e   : > { %3801 = vmatprep.subr.bf16.mxu1 %v14918_v60  ;;  %3965 = vmatprep.subr.bf16.mxu0 %v14922_v61  ;;  %v2195_v60 = vld [vmem:[#allocation10 + $0x128] sm:$0xff]  ;;  %v14719_v61 = vcombine.low %v2183_v55, %v2187_v56 }
 0x44f   : > { %v14728_v62 = vcombine.high %v2191_v59, %v2195_v60  ;;  %v14727_v3 = vcombine.low %v2191_v59, %v2195_v60  ;;  %v2259_v52 = vld [vmem:[#allocation10 + $0x328] sm:$0xff] }
 0x450   : > { %v4112_v56 = vld [vmem:[#allocation13 + $0x100] sm:$0xff] }
 0x451   : > { %3802 = vmatpush1.bf16.msra.mxu1 %v14917_v4  ;;  %3966 = vmatpush1.bf16.msra.mxu0 %v14921_v5  ;;  %v14736_v4 = vcombine.high %v2199_v0, %v2203_v2  ;;  %v2207_v5 = vld [vmem:[#allocation10 + $0x188] sm:$0xff] }
 0x452   : > { %3803 = vmatprep.subr.bf16.mxu1 %v14926_v6  ;;  %3967 = vmatprep.subr.bf16.mxu0 %v14930_v7  ;;  %v2211_v6 = vld [vmem:[#allocation10 + $0x1a8] sm:$0xff]  ;;  %v14735_v7 = vcombine.low %v2199_v0, %v2203_v2  ;;  %v14791_v0 = vcombine.low %v2255_v51, %v2259_v52 }
 0x453   : > { %v14744_v8 = vcombine.high %v2207_v5, %v2211_v6  ;;  %v14743_v14 = vcombine.low %v2207_v5, %v2211_v6  ;;  %v2263_v59 = vld [vmem:[#allocation10 + $0x348] sm:$0xff] }
 0x454   : > { %v2267_v60 = vld [vmem:[#allocation10 + $0x368] sm:$0xff] }
 0x455   : > { %3804 = vmatpush1.bf16.msra.mxu1 %v14925_v18  ;;  %3968 = vmatpush1.bf16.msra.mxu0 %v14929_v19  ;;  %v14752_v18 = vcombine.high %v2215_v9, %v2219_v11  ;;  %v2223_v19 = vld [vmem:[#allocation10 + $0x208] sm:$0xff] }
 0x456   : > { %3805 = vmatprep.subr.bf16.mxu1 %v14934_v21  ;;  %3969 = vmatprep.subr.bf16.mxu0 %v14938_v12  ;;  %v2227_v21 = vld [vmem:[#allocation10 + $0x228] sm:$0xff]  ;;  %v14751_v12 = vcombine.low %v2215_v9, %v2219_v11  ;;  %v14799_v9 = vcombine.low %v2263_v59, %v2267_v60 }
 0x457   : > { %v2143_v33 = vpop.f32.mrb[4].mxu1  ;;  %v14760_v23 = vcombine.high %v2223_v19, %v2227_v21  ;;  %v4120_v2 = vld [vmem:[#allocation13 + $0x140] sm:$0xff] }
 0x458   : > { %v2144_v40 = vadd.f32 %v2143_v33, %v1739_v26  ;;  %v2145_v43 = vpop.f32.mrb[5].mxu1  ;;  %v2235_v26 = vld [vmem:[#allocation10 + $0x268] sm:$0xff] }
 0x459   : > { %v2146_v44 = vadd.f32 %v2145_v43, %v1743_v27  ;;  %v2147_v45 = vpop.f32.mrb[6].mxu1  ;;  %3806 = vmatpush1.bf16.msra.mxu1 %v14933_v30  ;;  %3970 = vmatpush1.bf16.msra.mxu0 %v14937_v31  ;;  %v14949_v27 = vcombine.low %v4080_v22, %v4084_v24  ;;  %v14950_v30 = vcombine.high %v4080_v22, %v4084_v24  ;;  %v4092_v33 = vld [vmem:[#allocation13 + $0x60] sm:$0xff] }
 0x45a   : > { %v2152_v48 = vmax.f32 %v2144_v40, 0.0  ;;  %v2148_v49 = vpop.f32.mrb[7].mxu1  ;;  %3807 = vmatprep.subr.bf16.mxu1 %v14942_v32  ;;  %3971 = vmatprep.subr.bf16.mxu0 %v14946_v17  ;;  %v14759_v31 = vcombine.low %v2223_v19, %v2227_v21  ;;  %v4088_v32 = vld [vmem:[#allocation13 + $0x40] sm:$0xff]  ;;  %v14768_v17 = vcombine.high %v2231_v25, %v2235_v26 }
 0x45b   : > { %v2153_v50 = vmax.f32 %v2146_v44, 0.0  ;;  %v14957_v40 = vcombine.low %v4088_v32, %v4092_v33  ;;  %v14958_v43 = vcombine.high %v4088_v32, %v4092_v33  ;;  %v14767_v44 = vcombine.low %v2231_v25, %v2235_v26  ;;  %v4096_v45 = vld [vmem:[#allocation13 + $0x80] sm:$0xff] }
 0x45c   : > { %v19165_v41 = vpack.c.bf16 %v2152_v48, %v2152_v48  ;;  %v2247_v48 = vld [vmem:[#allocation10 + $0x2c8] sm:$0xff] }
 0x45d   : > { %v19163_v36 = vpack.c.bf16 %v2153_v50, %v2153_v50  ;;  %3808 = vmatpush1.bf16.msra.mxu1 %v14941_v46  ;;  %3972 = vmatpush1.bf16.msra.mxu0 %v14945_v47  ;;  %v14776_v46 = vcombine.high %v2239_v37, %v2243_v39  ;;  %v4100_v47 = vld [vmem:[#allocation13 + $0xa0] sm:$0xff] }
 0x45e   : > { %3818 = vmatprep.subr.bf16.mxu1 %v14696_v10  ;;  %7194 = vmatprep.subr.bf16.mxu0 %v14950_v30  ;;  %v2251_v49 = vld [vmem:[#allocation10 + $0x2e8] sm:$0xff]  ;;  %v14965_v10 = vcombine.low %v4096_v45, %v4100_v47  ;;  %v14966_v50 = vcombine.high %v4096_v45, %v4100_v47 }
 0x45f   : > { %3809 = vmatprep.mubr.bf16.mxu1 %v19163_v36  ;;  %3973 = vmatprep.mubr.bf16.mxu0 %v19163_v36  ;;  %v14783_v55 = vcombine.low %v2247_v48, %v2251_v49  ;;  %v2271_v5 = vld [vmem:[#allocation10 + $0x388] sm:$0xff] }
 0x460   : > { %3810 = vmatmul.mubr.bf16.vlgmr.msra.gmra.mrb[8].mxu1 %v19165_v41  ;;  %3974 = vmatmul.mubr.bf16.vlgmr.msra.gmra.mrb[4].mxu0 %v19165_v41  ;;  %v2275_v6 = vld [vmem:[#allocation10 + $0x3a8] sm:$0xff] }
 0x461   : > { %3819 = vmatpush1.bf16.msra.mxu1 %v14695_v38  ;;  %3850 = vmatprep.mubr.bf16.mxu1 %v19139_v28  ;;  %v14784_v38 = vcombine.high %v2247_v48, %v2251_v49  ;;  %v4128_v11 = vld [vmem:[#allocation13 + $0x180] sm:$0xff] }
 0x462   : > { %3820 = vmatprep.subr.bf16.mxu1 %v14704_v42  ;;  %7195 = vmatpush1.bf16.msra.mxu0 %v14949_v27  ;;  %v4108_v42 = vld [vmem:[#allocation13 + $0xe0] sm:$0xff] }
 0x463   : > { %7196 = vmatprep.subr.bf16.mxu0 %v14958_v43  ;;  %v2279_v19 = vld [vmem:[#allocation10 + $0x3c8] sm:$0xff] }
 0x464   : > { %v2283_v21 = vld [vmem:[#allocation10 + $0x3e8] sm:$0xff] }
 0x465   : > { %3821 = vmatpush1.bf16.msra.mxu1 %v14703_v53  ;;  %v14973_v53 = vcombine.low %v4104_v35, %v4108_v42  ;;  %v4136_v24 = vld [vmem:[#allocation13 + $0x1c0] sm:$0xff]  ;;  %v14816_v25 = vcombine.high %v2279_v19, %v2283_v21 }
 0x466   : > { %3822 = vmatprep.subr.bf16.mxu1 %v14712_v54  ;;  %7197 = vmatpush1.bf16.msra.mxu0 %v14957_v40  ;;  %v14974_v54 = vcombine.high %v4104_v35, %v4108_v42  ;;  %v4140_v26 = vld [vmem:[#allocation13 + $0x1e0] sm:$0xff] }
 0x467   : > { %7198 = vmatprep.subr.bf16.mxu0 %v14966_v50  ;;  %v2287_v27 = vld [vmem:[#allocation10 + $0x408] sm:$0xff]  ;;  %v15006_v32 = vcombine.high %v4136_v24, %v4140_v26 }
 0x468   : > { %v2291_v30 = vld [vmem:[#allocation10 + $0x428] sm:$0xff] }
 0x469   : > { %3823 = vmatpush1.bf16.msra.mxu1 %v14711_v57  ;;  %v14792_v57 = vcombine.high %v2255_v51, %v2259_v52  ;;  %v4144_v33 = vld [vmem:[#allocation13 + $0x200] sm:$0xff]  ;;  %v14824_v37 = vcombine.high %v2287_v27, %v2291_v30 }
 0x46a   : > { %3824 = vmatprep.subr.bf16.mxu1 %v14720_v58  ;;  %7199 = vmatpush1.bf16.msra.mxu0 %v14965_v10  ;;  %v4116_v58 = vld [vmem:[#allocation13 + $0x120] sm:$0xff] }
 0x46b   : > { %7200 = vmatprep.subr.bf16.mxu0 %v14974_v54  ;;  %v4148_v39 = vld [vmem:[#allocation13 + $0x220] sm:$0xff] }
 0x46c   : > { %v2295_v40 = vld [vmem:[#allocation10 + $0x448] sm:$0xff]  ;;  %v15014_v45 = vcombine.high %v4144_v33, %v4148_v39 }
 0x46d   : > { %3825 = vmatpush1.bf16.msra.mxu1 %v14719_v61  ;;  %v14981_v61 = vcombine.low %v4112_v56, %v4116_v58  ;;  %v2299_v43 = vld [vmem:[#allocation10 + $0x468] sm:$0xff] }
 0x46e   : > { %3826 = vmatprep.subr.bf16.mxu1 %v14728_v62  ;;  %7201 = vmatpush1.bf16.msra.mxu0 %v14973_v53  ;;  %v14982_v62 = vcombine.high %v4112_v56, %v4116_v58  ;;  %v4152_v47 = vld [vmem:[#allocation13 + $0x240] sm:$0xff]  ;;  %v14832_v48 = vcombine.high %v2295_v40, %v2299_v43 }
 0x46f   : > { %v4156_v49 = vld [vmem:[#allocation13 + $0x260] sm:$0xff] }
 0x470   : > { %7202 = vmatprep.subr.bf16.mxu0 %v14982_v62  ;;  %v2303_v10 = vld [vmem:[#allocation10 + $0x488] sm:$0xff]  ;;  %v15022_v35 = vcombine.high %v4152_v47, %v4156_v49 }
 0x471   : > { %3827 = vmatpush1.bf16.msra.mxu1 %v14727_v3  ;;  %v14800_v3 = vcombine.high %v2263_v59, %v2267_v60  ;;  %v2307_v50 = vld [vmem:[#allocation10 + $0x4a8] sm:$0xff] }
 0x472   : > { %3828 = vmatprep.subr.bf16.mxu1 %v14736_v4  ;;  %7203 = vmatpush1.bf16.msra.mxu0 %v14981_v61  ;;  %v4124_v4 = vld [vmem:[#allocation13 + $0x160] sm:$0xff]  ;;  %v14840_v51 = vcombine.high %v2303_v10, %v2307_v50 }
 0x473   : > { %v4160_v42 = vld [vmem:[#allocation13 + $0x280] sm:$0xff] }
 0x474   : > { %v4164_v52 = vld [vmem:[#allocation13 + $0x2a0] sm:$0xff] }
 0x475   : > { %3829 = vmatpush1.bf16.msra.mxu1 %v14735_v7  ;;  %v14989_v7 = vcombine.low %v4120_v2, %v4124_v4  ;;  %v2311_v53 = vld [vmem:[#allocation10 + $0x4c8] sm:$0xff]  ;;  %v15030_v56 = vcombine.high %v4160_v42, %v4164_v52 }
 0x476   : > { %3830 = vmatprep.subr.bf16.mxu1 %v14744_v8  ;;  %v14990_v8 = vcombine.high %v4120_v2, %v4124_v4  ;;  %v2315_v54 = vld [vmem:[#allocation10 + $0x4e8] sm:$0xff] }
 0x477   : > { %v4168_v58 = vld [vmem:[#allocation13 + $0x2c0] sm:$0xff]  ;;  %v14848_v59 = vcombine.high %v2311_v53, %v2315_v54 }
 0x478   : > { %7204 = vmatprep.subr.bf16.mxu0 %v14990_v8  ;;  %v4172_v60 = vld [vmem:[#allocation13 + $0x2e0] sm:$0xff] }
 0x479   : > { %3831 = vmatpush1.bf16.msra.mxu1 %v14743_v14  ;;  %v14808_v14 = vcombine.high %v2271_v5, %v2275_v6  ;;  %7205 = vmatpush1.bf16.msra.mxu0 %v14989_v7  ;;  %v2319_v61 = vld [vmem:[#allocation10 + $0x508] sm:$0xff]  ;;  %v15038_v2 = vcombine.high %v4168_v58, %v4172_v60 }
 0x47a   : > { %3832 = vmatprep.subr.bf16.mxu1 %v14752_v18  ;;  %v4132_v18 = vld [vmem:[#allocation13 + $0x1a0] sm:$0xff] }
 0x47b   : > { %v14998_v22 = vcombine.high %v4128_v11, %v4132_v18  ;;  %v2323_v62 = vld [vmem:[#allocation10 + $0x528] sm:$0xff] }
 0x47c   : > { %v4176_v4 = vld [vmem:[#allocation13 + $0x300] sm:$0xff] }
 0x47d   : > { %3833 = vmatpush1.bf16.msra.mxu1 %v14751_v12  ;;  %v14997_v12 = vcombine.low %v4128_v11, %v4132_v18  ;;  %7206 = vmatprep.subr.bf16.mxu0 %v14998_v22  ;;  %v2327_v7 = vld [vmem:[#allocation10 + $0x548] sm:$0xff] }
 0x47e   : > { %3834 = vmatprep.subr.bf16.mxu1 %v14760_v23  ;;  %v14807_v23 = vcombine.low %v2271_v5, %v2275_v6  ;;  %v14856_v5 = vcombine.high %v2319_v61, %v2323_v62  ;;  %v4180_v6 = vld [vmem:[#allocation13 + $0x320] sm:$0xff] }
 0x47f   : > { %7207 = vmatpush1.bf16.msra.mxu0 %v14997_v12  ;;  %v2331_v8 = vld [vmem:[#allocation10 + $0x568] sm:$0xff]  ;;  %v15046_v11 = vcombine.high %v4176_v4, %v4180_v6 }
 0x480   : > { %7208 = vmatprep.subr.bf16.mxu0 %v15006_v32  ;;  %v4184_v18 = vld [vmem:[#allocation13 + $0x340] sm:$0xff] }
 0x481   : > { %3835 = vmatpush1.bf16.msra.mxu1 %v14759_v31  ;;  %v15005_v31 = vcombine.low %v4136_v24, %v4140_v26  ;;  %v2335_v12 = vld [vmem:[#allocation10 + $0x588] sm:$0xff] }
 0x482   : > { %3836 = vmatprep.subr.bf16.mxu1 %v14768_v17  ;;  %v14815_v17 = vcombine.low %v2279_v19, %v2283_v21  ;;  %v14864_v19 = vcombine.high %v2327_v7, %v2331_v8  ;;  %v4188_v21 = vld [vmem:[#allocation13 + $0x360] sm:$0xff] }
 0x483   : > { %7209 = vmatpush1.bf16.msra.mxu0 %v15005_v31  ;;  %v2339_v22 = vld [vmem:[#allocation10 + $0x5a8] sm:$0xff]  ;;  %v15054_v24 = vcombine.high %v4184_v18, %v4188_v21 }
 0x484   : > { %7210 = vmatprep.subr.bf16.mxu0 %v15014_v45  ;;  %v14872_v26 = vcombine.high %v2335_v12, %v2339_v22  ;;  %v2343_v31 = vld [vmem:[#allocation10 + $0x5c8] sm:$0xff] }
 0x485   : > { %3837 = vmatpush1.bf16.msra.mxu1 %v14767_v44  ;;  %v15013_v44 = vcombine.low %v4144_v33, %v4148_v39  ;;  %v2347_v32 = vld [vmem:[#allocation10 + $0x5e8] sm:$0xff] }
 0x486   : > { %3838 = vmatprep.subr.bf16.mxu1 %v14776_v46  ;;  %v14823_v46 = vcombine.low %v2287_v27, %v2291_v30  ;;  %v4192_v27 = vld [vmem:[#allocation13 + $0x380] sm:$0xff] }
 0x487   : > { %7211 = vmatpush1.bf16.msra.mxu0 %v15013_v44  ;;  %v4196_v30 = vld [vmem:[#allocation13 + $0x3a0] sm:$0xff] }
 0x488   : > { %7212 = vmatprep.subr.bf16.mxu0 %v15022_v35  ;;  %v15062_v33 = vcombine.high %v4192_v27, %v4196_v30  ;;  %v4200_v39 = vld [vmem:[#allocation13 + $0x3c0] sm:$0xff] }
 0x489   : > { %3839 = vmatpush1.bf16.msra.mxu1 %v14775_v34  ;;  %v15021_v34 = vcombine.low %v4152_v47, %v4156_v49  ;;  %v2351_v44 = vld [vmem:[#allocation10 + $0x608] sm:$0xff] }
 0x48a   : > { %3840 = vmatprep.subr.bf16.mxu1 %v14784_v38  ;;  %v14831_v38 = vcombine.low %v2295_v40, %v2299_v43  ;;  %v14880_v40 = vcombine.high %v2343_v31, %v2347_v32  ;;  %v4204_v43 = vld [vmem:[#allocation13 + $0x3e0] sm:$0xff] }
 0x48b   : > { %7213 = vmatpush1.bf16.msra.mxu0 %v15021_v34  ;;  %v2355_v45 = vld [vmem:[#allocation10 + $0x628] sm:$0xff]  ;;  %v15070_v47 = vcombine.high %v4200_v39, %v4204_v43 }
 0x48c   : > { %7214 = vmatprep.subr.bf16.mxu0 %v15030_v56  ;;  %v14888_v49 = vcombine.high %v2351_v44, %v2355_v45  ;;  %v14887_v34 = vcombine.low %v2351_v44, %v2355_v45  ;;  %v2201_v44 = vld [vmem:[#allocation10 + $0x158] sm:$0xff] }
 0x48d   : > { %3841 = vmatpush1.bf16.msra.mxu1 %v14783_v55  ;;  %v15029_v55 = vcombine.low %v4160_v42, %v4164_v52  ;;  %v2371_v42 = vld [vmem:[#allocation10 + $0x6a8] sm:$0xff]  ;;  %v2205_v45 = vld [vmem:[#allocation10 + $0x178] sm:$0xff] }
 0x48e   : > { %3842 = vmatprep.subr.bf16.mxu1 %v14792_v57  ;;  %v14839_v57 = vcombine.low %v2303_v10, %v2307_v50  ;;  %v2359_v10 = vld [vmem:[#allocation10 + $0x648] sm:$0xff] }
 0x48f   : > { %7215 = vmatpush1.bf16.msra.mxu0 %v15029_v55  ;;  %v2363_v50 = vld [vmem:[#allocation10 + $0x668] sm:$0xff] }
 0x490   : > { %7216 = vmatprep.subr.bf16.mxu0 %v15038_v2  ;;  %v14896_v35 = vcombine.high %v2359_v10, %v2363_v50 }
 0x491   : > { %3843 = vmatpush1.bf16.msra.mxu1 %v14791_v0  ;;  %v15037_v0 = vcombine.low %v4168_v58, %v4172_v60  ;;  %v2387_v58 = vld [vmem:[#allocation10 + $0x728] sm:$0xff] }
 0x492   : > { %3844 = vmatprep.subr.bf16.mxu1 %v14800_v3  ;;  %v14847_v3 = vcombine.low %v2311_v53, %v2315_v54  ;;  %v2375_v53 = vld [vmem:[#allocation10 + $0x6c8] sm:$0xff] }
 0x493   : > { %7217 = vmatpush1.bf16.msra.mxu0 %v15037_v0  ;;  %v2379_v54 = vld [vmem:[#allocation10 + $0x6e8] sm:$0xff] }
 0x494   : > { %7218 = vmatprep.subr.bf16.mxu0 %v15046_v11  ;;  %v14912_v56 = vcombine.high %v2375_v53, %v2379_v54 }
 0x495   : > { %3845 = vmatpush1.bf16.msra.mxu1 %v14799_v9  ;;  %v15045_v9 = vcombine.low %v4176_v4, %v4180_v6  ;;  %v2403_v4 = vld [vmem:[#allocation10 + $0x7a8] sm:$0xff] }
 0x496   : > { %3846 = vmatprep.subr.bf16.mxu1 %v14808_v14  ;;  %v14855_v14 = vcombine.low %v2319_v61, %v2323_v62  ;;  %v2391_v61 = vld [vmem:[#allocation10 + $0x748] sm:$0xff] }
 0x497   : > { %7219 = vmatpush1.bf16.msra.mxu0 %v15045_v9  ;;  %v2395_v62 = vld [vmem:[#allocation10 + $0x768] sm:$0xff] }
 0x498   : > { %7220 = vmatprep.subr.bf16.mxu0 %v15054_v24  ;;  %v14928_v2 = vcombine.high %v2391_v61, %v2395_v62 }
 0x499   : > { %3847 = vmatpush1.bf16.msra.mxu1 %v14807_v23  ;;  %v15053_v23 = vcombine.low %v4184_v18, %v4188_v21  ;;  %v2165_v18 = vld [vmem:[#allocation10 + $0x38] sm:$0xff] }
 0x49a   : > { %3848 = vmatprep.subr.bf16.mxu1 %v14816_v25  ;;  %v14863_v25 = vcombine.low %v2327_v7, %v2331_v8  ;;  %v2407_v7 = vld [vmem:[#allocation10 + $0x7c8] sm:$0xff] }
 0x49b   : > { %7221 = vmatpush1.bf16.msra.mxu0 %v15053_v23  ;;  %v2411_v8 = vld [vmem:[#allocation10 + $0x7e8] sm:$0xff] }
 0x49c   : > { %7222 = vmatprep.subr.bf16.mxu0 %v15062_v33  ;;  %v14944_v11 = vcombine.high %v2407_v7, %v2411_v8 }
 0x49d   : > { %3849 = vmatpush1.bf16.msra.mxu1 %v14815_v17  ;;  %v15061_v17 = vcombine.low %v4192_v27, %v4196_v30 }
 0x49e   : > { %3859 = vmatprep.subr.bf16.mxu1 %v14824_v37  ;;  %v14871_v37 = vcombine.low %v2335_v12, %v2339_v22  ;;  %v2169_v12 = vld [vmem:[#allocation10 + $0x58] sm:$0xff] }
 0x49f   : > { %7223 = vmatpush1.bf16.msra.mxu0 %v15061_v17  ;;  %v2173_v22 = vld [vmem:[#allocation10 + $0x78] sm:$0xff] }
 0x4a0   : > { %3851 = vmatmul.mubr.bf16.vlgmr.msra.gmra.mrb[12].mxu1 %v19141_v29  ;;  %7224 = vmatprep.subr.bf16.mxu0 %v15070_v47  ;;  %v14708_v24 = vcombine.high %v2169_v12, %v2173_v22  ;;  %v14707_v27 = vcombine.low %v2169_v12, %v2173_v22  ;;  %v2209_v47 = vld [vmem:[#allocation10 + $0x198] sm:$0xff] }
 0x4a1   : > { %3860 = vmatpush1.bf16.msra.mxu1 %v14823_v46  ;;  %3891 = vmatprep.mubr.bf16.mxu1 %v19163_v36  ;;  %v15069_v46 = vcombine.low %v4200_v39, %v4204_v43  ;;  %v2197_v39 = vld [vmem:[#allocation10 + $0x138] sm:$0xff] }
 0x4a2   : > { %3861 = vmatprep.subr.bf16.mxu1 %v14832_v48  ;;  %v14879_v48 = vcombine.low %v2343_v31, %v2347_v32  ;;  %v2185_v31 = vld [vmem:[#allocation10 + $0xd8] sm:$0xff] }
 0x4a3   : > { %7225 = vmatpush1.bf16.msra.mxu0 %v15069_v46  ;;  %v2189_v32 = vld [vmem:[#allocation10 + $0xf8] sm:$0xff] }
 0x4a4   : > { %v14724_v33 = vcombine.high %v2185_v31, %v2189_v32  ;;  %v2273_v22 = vld [vmem:[#allocation10 + $0x398] sm:$0xff] }
 0x4a5   : > { %3862 = vmatpush1.bf16.msra.mxu1 %v14831_v38  ;;  %v2367_v38 = vld [vmem:[#allocation10 + $0x688] sm:$0xff] }
 0x4a6   : > { %3863 = vmatprep.subr.bf16.mxu1 %v14840_v51  ;;  %v14895_v51 = vcombine.low %v2359_v10, %v2363_v50  ;;  %v14904_v52 = vcombine.high %v2367_v38, %v2371_v42  ;;  %v14903_v55 = vcombine.low %v2367_v38, %v2371_v42  ;;  %v2217_v50 = vld [vmem:[#allocation10 + $0x1d8] sm:$0xff] }
 0x4a7   : > { %v2225_v42 = vld [vmem:[#allocation10 + $0x218] sm:$0xff] }
 0x4a9   : > { %3864 = vmatpush1.bf16.msra.mxu1 %v14839_v57  ;;  %v2383_v57 = vld [vmem:[#allocation10 + $0x708] sm:$0xff] }
 0x4aa   : > { %3865 = vmatprep.subr.bf16.mxu1 %v14848_v59  ;;  %v14911_v59 = vcombine.low %v2375_v53, %v2379_v54  ;;  %v14920_v60 = vcombine.high %v2383_v57, %v2387_v58  ;;  %v14919_v0 = vcombine.low %v2383_v57, %v2387_v58  ;;  %v19178_v53 = vld [vmem:[#allocation13 + $0x420] sm:$0xff]  ;;  %v2233_v58 = vld [vmem:[#allocation10 + $0x258] sm:$0xff] }
 0x4ad   : > { %3866 = vmatpush1.bf16.msra.mxu1 %v14847_v3  ;;  %v2399_v3 = vld [vmem:[#allocation10 + $0x788] sm:$0xff] }
 0x4ae   : > { %3867 = vmatprep.subr.bf16.mxu1 %v14856_v5  ;;  %v14927_v5 = vcombine.low %v2391_v61, %v2395_v62  ;;  %v14936_v6 = vcombine.high %v2399_v3, %v2403_v4  ;;  %v14935_v9 = vcombine.low %v2399_v3, %v2403_v4  ;;  %v2241_v62 = vld [vmem:[#allocation10 + $0x298] sm:$0xff] }
 0x4af   : > { %v2249_v4 = vld [vmem:[#allocation10 + $0x2d8] sm:$0xff] }
 0x4b1   : > { %3868 = vmatpush1.bf16.msra.mxu1 %v14855_v14  ;;  %v2161_v14 = vld [vmem:[#allocation10 + $0x18] sm:$0xff] }
 0x4b2   : > { %3869 = vmatprep.subr.bf16.mxu1 %v14864_v19  ;;  %v14943_v19 = vcombine.low %v2407_v7, %v2411_v8  ;;  %v14700_v21 = vcombine.high %v2161_v14, %v2165_v18  ;;  %v14699_v23 = vcombine.low %v2161_v14, %v2165_v18  ;;  %v2257_v8 = vld [vmem:[#allocation10 + $0x318] sm:$0xff] }
 0x4b3   : > { %v2265_v18 = vld [vmem:[#allocation10 + $0x358] sm:$0xff] }
 0x4b5   : > { %3870 = vmatpush1.bf16.msra.mxu1 %v14863_v25  ;;  %v2177_v25 = vld [vmem:[#allocation10 + $0x98] sm:$0xff] }
 0x4b6   : > { %3871 = vmatprep.subr.bf16.mxu1 %v14872_v26  ;;  %v2181_v26 = vld [vmem:[#allocation10 + $0xb8] sm:$0xff] }
 0x4b7   : > { %v14716_v30 = vcombine.high %v2177_v25, %v2181_v26  ;;  %v14715_v17 = vcombine.low %v2177_v25, %v2181_v26  ;;  %v2281_v26 = vld [vmem:[#allocation10 + $0x3d8] sm:$0xff] }
 0x4b9   : > { %3872 = vmatpush1.bf16.msra.mxu1 %v14871_v37  ;;  %v2193_v37 = vld [vmem:[#allocation10 + $0x118] sm:$0xff] }
 0x4ba   : > { %3873 = vmatprep.subr.bf16.mxu1 %v14880_v40  ;;  %v14723_v40 = vcombine.low %v2185_v31, %v2189_v32  ;;  %v14732_v43 = vcombine.high %v2193_v37, %v2197_v39  ;;  %v14731_v46 = vcombine.low %v2193_v37, %v2197_v39  ;;  %v2289_v32 = vld [vmem:[#allocation10 + $0x418] sm:$0xff] }
 0x4bb   : > { %v2297_v39 = vld [vmem:[#allocation10 + $0x458] sm:$0xff] }
 0x4bd   : > { %3874 = vmatpush1.bf16.msra.mxu1 %v14879_v48  ;;  %v2213_v48 = vld [vmem:[#allocation10 + $0x1b8] sm:$0xff] }
 0x4be   : > { %3875 = vmatprep.subr.bf16.mxu1 %v14888_v49  ;;  %v14739_v49 = vcombine.low %v2201_v44, %v2205_v45  ;;  %v14748_v10 = vcombine.high %v2209_v47, %v2213_v48 }
 0x4c1   : > { %3876 = vmatpush1.bf16.msra.mxu1 %v14887_v34  ;;  %v2221_v34 = vld [vmem:[#allocation10 + $0x1f8] sm:$0xff] }
 0x4c2   : > { %3877 = vmatprep.subr.bf16.mxu1 %v14896_v35  ;;  %v14747_v35 = vcombine.low %v2209_v47, %v2213_v48  ;;  %v14756_v38 = vcombine.high %v2217_v50, %v2221_v34  ;;  %v14755_v54 = vcombine.low %v2217_v50, %v2221_v34  ;;  %v2313_v48 = vld [vmem:[#allocation10 + $0x4d8] sm:$0xff] }
 0x4c3   : > { %v2321_v34 = vld [vmem:[#allocation10 + $0x518] sm:$0xff] }
 0x4c5   : > { %3878 = vmatpush1.bf16.msra.mxu1 %v14895_v51  ;;  %v2229_v51 = vld [vmem:[#allocation10 + $0x238] sm:$0xff] }
 0x4c6   : > { %3879 = vmatprep.subr.bf16.mxu1 %v14904_v52  ;;  %v19176_v52 = vld [vmem:[#allocation13 + $0x400] sm:$0xff]  ;;  %v14764_v57 = vcombine.high %v2225_v42, %v2229_v51 }
 0x4c9   : > { %3880 = vmatpush1.bf16.msra.mxu1 %v14903_v55  ;;  %v15077_v55 = vcombine.low %v19176_v52, %v19178_v53 }
 0x4ca   : > { %3881 = vmatprep.subr.bf16.mxu1 %v14912_v56  ;;  %v15078_v56 = vcombine.high %v19176_v52, %v19178_v53  ;;  %v2381_v52 = vld [vmem:[#allocation10 + $0x6f8] sm:$0xff]  ;;  %v4240_v53 = vld [vmem:[#allocation13 + $0x500] sm:$0xff] }
 0x4cc   : > { %7235 = vmatprep.subr.bf16.mxu0 %v15078_v56 }
 0x4cd   : > { %3882 = vmatpush1.bf16.msra.mxu1 %v14911_v59  ;;  %v2237_v59 = vld [vmem:[#allocation10 + $0x278] sm:$0xff] }
 0x4ce   : > { %3883 = vmatprep.subr.bf16.mxu1 %v14920_v60  ;;  %v14763_v60 = vcombine.low %v2225_v42, %v2229_v51  ;;  %v14772_v61 = vcombine.high %v2233_v58, %v2237_v59  ;;  %v2329_v51 = vld [vmem:[#allocation10 + $0x558] sm:$0xff] }
 0x4d1   : > { %3884 = vmatpush1.bf16.msra.mxu1 %v14919_v0  ;;  %v2245_v0 = vld [vmem:[#allocation10 + $0x2b8] sm:$0xff] }
 0x4d2   : > { %3885 = vmatprep.subr.bf16.mxu1 %v14928_v2  ;;  %v14771_v2 = vcombine.low %v2233_v58, %v2237_v59  ;;  %v14780_v3 = vcombine.high %v2241_v62, %v2245_v0  ;;  %v2341_v58 = vld [vmem:[#allocation10 + $0x5b8] sm:$0xff] }
 0x4d5   : > { %3886 = vmatpush1.bf16.msra.mxu1 %v14927_v5  ;;  %v2253_v5 = vld [vmem:[#allocation10 + $0x2f8] sm:$0xff] }
 0x4d6   : > { %3887 = vmatprep.subr.bf16.mxu1 %v14936_v6  ;;  %v14779_v6 = vcombine.low %v2241_v62, %v2245_v0  ;;  %v14788_v7 = vcombine.high %v2249_v4, %v2253_v5 }
 0x4d9   : > { %3888 = vmatpush1.bf16.msra.mxu1 %v14935_v9  ;;  %v2261_v9 = vld [vmem:[#allocation10 + $0x338] sm:$0xff] }
 0x4da   : > { %3889 = vmatprep.subr.bf16.mxu1 %v14944_v11  ;;  %v14787_v11 = vcombine.low %v2249_v4, %v2253_v5  ;;  %v14796_v14 = vcombine.high %v2257_v8, %v2261_v9  ;;  %v2349_v4 = vld [vmem:[#allocation10 + $0x5f8] sm:$0xff] }
 0x4dd   : > { %3890 = vmatpush1.bf16.msra.mxu1 %v14943_v19  ;;  %v2269_v19 = vld [vmem:[#allocation10 + $0x378] sm:$0xff] }
 0x4de   : > { %3982 = vmatprep.subr.bf16.mxu1 %v14700_v21  ;;  %v14795_v21 = vcombine.low %v2257_v8, %v2261_v9  ;;  %v14804_v12 = vcombine.high %v2265_v18, %v2269_v19 }
 0x4e0   : > { %3892 = vmatmul.mubr.bf16.vlgmr.msra.gmra.mrb[12].mxu1 %v19165_v41 }
 0x4e1   : > { %3983 = vmatpush1.bf16.msra.mxu1 %v14699_v23  ;;  %4014 = vmatprep.mubr.bf16.mxu1 %v19139_v28  ;;  %v14740_v28 = vcombine.high %v2201_v44, %v2205_v45  ;;  %v2277_v23 = vld [vmem:[#allocation10 + $0x3b8] sm:$0xff] }
 0x4e2   : > { %3984 = vmatprep.subr.bf16.mxu1 %v14708_v24  ;;  %v14803_v24 = vcombine.low %v2265_v18, %v2269_v19  ;;  %v14812_v25 = vcombine.high %v2273_v22, %v2277_v23  ;;  %v2305_v45 = vld [vmem:[#allocation10 + $0x498] sm:$0xff] }
 0x4e5   : > { %3985 = vmatpush1.bf16.msra.mxu1 %v14707_v27  ;;  %v2285_v27 = vld [vmem:[#allocation10 + $0x3f8] sm:$0xff] }
 0x4e6   : > { %3986 = vmatprep.subr.bf16.mxu1 %v14716_v30  ;;  %v14811_v30 = vcombine.low %v2273_v22, %v2277_v23  ;;  %v14820_v31 = vcombine.high %v2281_v26, %v2285_v27  ;;  %v2353_v22 = vld [vmem:[#allocation10 + $0x618] sm:$0xff] }
 0x4e9   : > { %3987 = vmatpush1.bf16.msra.mxu1 %v14715_v17  ;;  %v2293_v17 = vld [vmem:[#allocation10 + $0x438] sm:$0xff] }
 0x4ea   : > { %3988 = vmatprep.subr.bf16.mxu1 %v14724_v33  ;;  %v14819_v33 = vcombine.low %v2281_v26, %v2285_v27  ;;  %v14828_v37 = vcombine.high %v2289_v32, %v2293_v17  ;;  %v4220_v26 = vld [vmem:[#allocation13 + $0x460] sm:$0xff] }
 0x4eb   : > { %v19196_v27 = vld [vmem:[#allocation13 + $0x800] sm:$0xff] }
 0x4ed   : > { %3989 = vmatpush1.bf16.msra.mxu1 %v14723_v40  ;;  %v2301_v40 = vld [vmem:[#allocation10 + $0x478] sm:$0xff] }
 0x4ee   : > { %3990 = vmatprep.subr.bf16.mxu1 %v14732_v43  ;;  %v14827_v43 = vcombine.low %v2289_v32, %v2293_v17  ;;  %v14836_v44 = vcombine.high %v2297_v39, %v2301_v40 }
 0x4f1   : > { %3991 = vmatpush1.bf16.msra.mxu1 %v14731_v46  ;;  %v2309_v46 = vld [vmem:[#allocation10 + $0x4b8] sm:$0xff] }
 0x4f2   : > { %3992 = vmatprep.subr.bf16.mxu1 %v14740_v28  ;;  %v14835_v28 = vcombine.low %v2297_v39, %v2301_v40  ;;  %v14844_v47 = vcombine.high %v2305_v45, %v2309_v46 }
 0x4f5   : > { %3993 = vmatpush1.bf16.msra.mxu1 %v14739_v49  ;;  %v2317_v49 = vld [vmem:[#allocation10 + $0x4f8] sm:$0xff] }
 0x4f6   : > { %3994 = vmatprep.subr.bf16.mxu1 %v14748_v10  ;;  %v14843_v10 = vcombine.low %v2305_v45, %v2309_v46  ;;  %v14852_v50 = vcombine.high %v2313_v48, %v2317_v49  ;;  %v4228_v45 = vld [vmem:[#allocation13 + $0x4a0] sm:$0xff] }
 0x4f9   : > { %3995 = vmatpush1.bf16.msra.mxu1 %v14747_v35  ;;  %v2325_v35 = vld [vmem:[#allocation10 + $0x538] sm:$0xff] }
 0x4fa   : > { %3996 = vmatprep.subr.bf16.mxu1 %v14756_v38  ;;  %v14851_v38 = vcombine.low %v2313_v48, %v2317_v49  ;;  %v14860_v42 = vcombine.high %v2321_v34, %v2325_v35  ;;  %v2369_v48 = vld [vmem:[#allocation10 + $0x698] sm:$0xff] }
 0x4fd   : > { %3997 = vmatpush1.bf16.msra.mxu1 %v14755_v54  ;;  %v14859_v54 = vcombine.low %v2321_v34, %v2325_v35  ;;  %v4236_v34 = vld [vmem:[#allocation13 + $0x4e0] sm:$0xff] }
 0x4fe   : > { %3998 = vmatprep.subr.bf16.mxu1 %v14764_v57  ;;  %v2337_v57 = vld [vmem:[#allocation10 + $0x598] sm:$0xff] }
 0x4ff   : > { %v14876_v62 = vcombine.high %v2337_v57, %v2341_v58 }
 0x501   : > { %3999 = vmatpush1.bf16.msra.mxu1 %v14763_v60 }
 0x502   : > { %4000 = vmatprep.subr.bf16.mxu1 %v14772_v61 }
 0x505   : > { %4001 = vmatpush1.bf16.msra.mxu1 %v14771_v2 }
 0x506   : > { %4002 = vmatprep.subr.bf16.mxu1 %v14780_v3  ;;  %v2345_v3 = vld [vmem:[#allocation10 + $0x5d8] sm:$0xff] }
 0x507   : > { %v14883_v32 = vcombine.low %v2345_v3, %v2349_v4 }
 0x509   : > { %4003 = vmatpush1.bf16.msra.mxu1 %v14779_v6 }
 0x50a   : > { %4004 = vmatprep.subr.bf16.mxu1 %v14788_v7 }
 0x50d   : > { %4005 = vmatpush1.bf16.msra.mxu1 %v14787_v11 }
 0x50e   : > { %4006 = vmatprep.subr.bf16.mxu1 %v14796_v14  ;;  %v14875_v14 = vcombine.low %v2337_v57, %v2341_v58  ;;  %v2385_v58 = vld [vmem:[#allocation10 + $0x718] sm:$0xff] }
 0x511   : > { %4007 = vmatpush1.bf16.msra.mxu1 %v14795_v21 }
 0x512   : > { %4008 = vmatprep.subr.bf16.mxu1 %v14804_v12  ;;  %v14884_v12 = vcombine.high %v2345_v3, %v2349_v4 }
 0x515   : > { %4009 = vmatpush1.bf16.msra.mxu1 %v14803_v24  ;;  %v2357_v24 = vld [vmem:[#allocation10 + $0x638] sm:$0xff] }
 0x516   : > { %4010 = vmatprep.subr.bf16.mxu1 %v14812_v25  ;;  %v4216_v25 = vld [vmem:[#allocation13 + $0x440] sm:$0xff]  ;;  %v14891_v46 = vcombine.low %v2353_v22, %v2357_v24 }
 0x517   : > { %v15086_v39 = vcombine.high %v4216_v25, %v4220_v26 }
 0x519   : > { %4011 = vmatpush1.bf16.msra.mxu1 %v14811_v30  ;;  %v19198_v30 = vld [vmem:[#allocation13 + $0x820] sm:$0xff] }
 0x51a   : > { %4012 = vmatprep.subr.bf16.mxu1 %v14820_v31  ;;  %v15205_v40 = vcombine.low %v19196_v27, %v19198_v30 }
 0x51d   : > { %4013 = vmatpush1.bf16.msra.mxu1 %v14819_v33  ;;  %v14892_v33 = vcombine.high %v2353_v22, %v2357_v24  ;;  %v2405_v22 = vld [vmem:[#allocation10 + $0x7b8] sm:$0xff]  ;;  %v4268_v24 = vld [vmem:[#allocation13 + $0x5e0] sm:$0xff] }
 0x51e   : > { %4023 = vmatprep.subr.bf16.mxu1 %v14828_v37  ;;  %v2361_v37 = vld [vmem:[#allocation10 + $0x658] sm:$0xff] }
 0x520   : > { %4015 = vmatmul.mubr.bf16.vlgmr.msra.gmra.mrb[16].mxu1 %v19141_v29  ;;  %v2333_v29 = vld [vmem:[#allocation10 + $0x578] sm:$0xff] }
 0x521   : > { %4024 = vmatpush1.bf16.msra.mxu1 %v14827_v43  ;;  %4055 = vmatprep.mubr.bf16.mxu1 %v19163_v36  ;;  %v19186_v36 = vld [vmem:[#allocation12] sm:$0xff]  ;;  %v14868_v56 = vcombine.high %v2329_v51, %v2333_v29  ;;  %v14867_v61 = vcombine.low %v2329_v51, %v2333_v29  ;;  %v2365_v43 = vld [vmem:[#allocation10 + $0x678] sm:$0xff] }
 0x522   : > { %4025 = vmatprep.subr.bf16.mxu1 %v14836_v44  ;;  %v2419_v59 = vrot.slane %v19186_v36, %v19106_v63  ;;  %v2423_v60 = vrot.slane %v19186_v36, %v19109_v1  ;;  %v4224_v44 = vld [vmem:[#allocation13 + $0x480] sm:$0xff]  ;;  %v14899_v35 = vcombine.low %v2361_v37, %v2365_v43  ;;  %v2377_v51 = vld [vmem:[#allocation10 + $0x6d8] sm:$0xff] }
 0x523   : > { %v15094_v49 = vcombine.high %v4224_v44, %v4228_v45  ;;  %v14916_v57 = vcombine.high %v2377_v51, %v2381_v52 }
 0x525   : > { %4026 = vmatpush1.bf16.msra.mxu1 %v14835_v28  ;;  %v15085_v28 = vcombine.low %v4216_v25, %v4220_v26 }
 0x526   : > { %4027 = vmatprep.subr.bf16.mxu1 %v14844_v47  ;;  %v14900_v47 = vcombine.high %v2361_v37, %v2365_v43  ;;  %v4272_v43 = vld [vmem:[#allocation13 + $0x600] sm:$0xff] }
 0x529   : > { %4028 = vmatpush1.bf16.msra.mxu1 %v14843_v10  ;;  %v2373_v10 = vld [vmem:[#allocation10 + $0x6b8] sm:$0xff] }
 0x52a   : > { %4029 = vmatprep.subr.bf16.mxu1 %v14852_v50  ;;  %v4232_v50 = vld [vmem:[#allocation13 + $0x4c0] sm:$0xff] }
 0x52b   : > { %v15102_v29 = vcombine.high %v4232_v50, %v4236_v34 }
 0x52d   : > { %4030 = vmatpush1.bf16.msra.mxu1 %v14851_v38  ;;  %v15093_v38 = vcombine.low %v4224_v44, %v4228_v45  ;;  %v4276_v44 = vld [vmem:[#allocation13 + $0x620] sm:$0xff] }
 0x52e   : > { %4031 = vmatprep.subr.bf16.mxu1 %v14860_v42  ;;  %v14908_v42 = vcombine.high %v2369_v48, %v2373_v10 }
 0x531   : > { %4032 = vmatpush1.bf16.msra.mxu1 %v14859_v54  ;;  %v14907_v54 = vcombine.low %v2369_v48, %v2373_v10  ;;  %v15142_v48 = vcombine.high %v4272_v43, %v4276_v44  ;;  %v4280_v10 = vld [vmem:[#allocation13 + $0x640] sm:$0xff] }
 0x532   : > { %4033 = vmatprep.subr.bf16.mxu1 %v14868_v56  ;;  %v15101_v56 = vcombine.low %v4232_v50, %v4236_v34  ;;  %v4284_v50 = vld [vmem:[#allocation13 + $0x660] sm:$0xff] }
 0x533   : > { %v3811_v0 = vpop.f32.mrb[8].mxu1  ;;  %v19192_v2 = vpop.f32.mrb[4].mxu0 }
 0x534   : > { %v16388_v5 = vadd.f32 %v3811_v0, %v2419_v59  ;;  %v3813_v6 = vpop.f32.mrb[9].mxu1  ;;  %v19194_v7 = vpop.f32.mrb[5].mxu0  ;;  %v14915_v0 = vcombine.low %v2377_v51, %v2381_v52  ;;  %v4089_v51 = vld [vmem:[#allocation13 + $0x48] sm:$0xff]  ;;  %v4288_v52 = vld [vmem:[#allocation13 + $0x680] sm:$0xff] }
 0x535   : > { %v16389_v8 = vadd.f32 %v3813_v6, %v2423_v60  ;;  %v3815_v9 = vpop.f32.mrb[10].mxu1  ;;  %v3979_v11 = vpop.f32.mrb[6].mxu0  ;;  %4034 = vmatpush1.bf16.msra.mxu1 %v14867_v61  ;;  %v2389_v60 = vld [vmem:[#allocation10 + $0x738] sm:$0xff]  ;;  %v4248_v61 = vld [vmem:[#allocation13 + $0x540] sm:$0xff] }
 0x536   : > { %v4064_v18 = vmax.f32 %v16388_v5, 0.0  ;;  %v3816_v19 = vpop.f32.mrb[11].mxu1  ;;  %v3980_v21 = vpop.f32.mrb[7].mxu0  ;;  %4035 = vmatprep.subr.bf16.mxu1 %v14876_v62  ;;  %v4252_v62 = vld [vmem:[#allocation13 + $0x560] sm:$0xff]  ;;  %v14924_v4 = vcombine.high %v2385_v58, %v2389_v60  ;;  %v2393_v5 = vld [vmem:[#allocation10 + $0x758] sm:$0xff] }
 0x537   : > { %v4065_v23 = vmax.f32 %v16389_v8, 0.0  ;;  %v15118_v6 = vcombine.high %v4248_v61, %v4252_v62  ;;  %v2397_v8 = vld [vmem:[#allocation10 + $0x778] sm:$0xff]  ;;  %v4256_v9 = vld [vmem:[#allocation13 + $0x580] sm:$0xff] }
 0x538   : > { %v19202_v17 = vpack.c.bf16 %v4064_v18, %v4064_v18  ;;  %v4260_v11 = vld [vmem:[#allocation13 + $0x5a0] sm:$0xff]  ;;  %v15117_v18 = vcombine.low %v4248_v61, %v4252_v62  ;;  %v14932_v19 = vcombine.high %v2393_v5, %v2397_v8  ;;  %v2401_v21 = vld [vmem:[#allocation10 + $0x798] sm:$0xff]  ;;  %v14931_v25 = vcombine.low %v2393_v5, %v2397_v8  ;;  %v4109_v5 = vld [vmem:[#allocation13 + $0xe8] sm:$0xff] }
 0x539   : > { %v19200_v31 = vpack.c.bf16 %v4065_v23, %v4065_v23  ;;  %4036 = vmatpush1.bf16.msra.mxu1 %v14875_v14  ;;  %v14923_v14 = vcombine.low %v2385_v58, %v2389_v60  ;;  %v4264_v23 = vld [vmem:[#allocation13 + $0x5c0] sm:$0xff]  ;;  %v15125_v26 = vcombine.low %v4256_v9, %v4260_v11  ;;  %v14939_v45 = vcombine.low %v2401_v21, %v2405_v22  ;;  %v4101_v58 = vld [vmem:[#allocation13 + $0xa8] sm:$0xff] }
 0x53a   : > { %4037 = vmatprep.subr.bf16.mxu1 %v14884_v12  ;;  %v15126_v12 = vcombine.high %v4256_v9, %v4260_v11  ;;  %v15134_v37 = vcombine.high %v4264_v23, %v4268_v24  ;;  %v4296_v60 = vld [vmem:[#allocation13 + $0x6c0] sm:$0xff] }
 0x53b   : > { %7226 = vmatprep.mubr.bf16.mxu0 %v19200_v31  ;;  %v4300_v61 = vld [vmem:[#allocation13 + $0x6e0] sm:$0xff] }
 0x53c   : > { %7227 = vmatmul.mubr.bf16.vlgmr.msra.gmra.mrb[8].mxu0 %v19202_v17  ;;  %v4304_v8 = vld [vmem:[#allocation13 + $0x700] sm:$0xff] }
 0x53d   : > { %4038 = vmatpush1.bf16.msra.mxu1 %v14883_v32  ;;  %7236 = vmatpush1.bf16.msra.mxu0 %v15077_v55  ;;  %v4244_v55 = vld [vmem:[#allocation13 + $0x520] sm:$0xff]  ;;  %v14940_v32 = vcombine.high %v2401_v21, %v2405_v22 }
 0x53e   : > { %4039 = vmatprep.subr.bf16.mxu1 %v14892_v33  ;;  %7237 = vmatprep.subr.bf16.mxu0 %v15086_v39  ;;  %v15110_v59 = vcombine.high %v4240_v53, %v4244_v55  ;;  %v15109_v3 = vcombine.low %v4240_v53, %v4244_v55  ;;  %v2409_v33 = vld [vmem:[#allocation10 + $0x7d8] sm:$0xff]  ;;  %v4292_v53 = vld [vmem:[#allocation13 + $0x6a0] sm:$0xff] }
 0x53f   : > { %v2413_v39 = vld [vmem:[#allocation10 + $0x7f8] sm:$0xff]  ;;  %v4308_v9 = vld [vmem:[#allocation13 + $0x720] sm:$0xff] }
 0x540   : > { %v14947_v34 = vcombine.low %v2409_v33, %v2413_v39  ;;  %v15174_v21 = vcombine.high %v4304_v8, %v4308_v9  ;;  %v4316_v22 = vld [vmem:[#allocation13 + $0x760] sm:$0xff] }
 0x541   : > { %4040 = vmatpush1.bf16.msra.mxu1 %v14891_v46  ;;  %7238 = vmatpush1.bf16.msra.mxu0 %v15085_v28  ;;  %v15133_v46 = vcombine.low %v4264_v23, %v4268_v24  ;;  %v14948_v28 = vcombine.high %v2409_v33, %v2413_v39  ;;  %v4324_v39 = vld [vmem:[#allocation13 + $0x7a0] sm:$0xff] }
 0x542   : > { %4041 = vmatprep.subr.bf16.mxu1 %v14900_v47  ;;  %7239 = vmatprep.subr.bf16.mxu0 %v15094_v49  ;;  %v4081_v47 = vld [vmem:[#allocation13 + $0x8] sm:$0xff] }
 0x543   : > { %v4085_v49 = vld [vmem:[#allocation13 + $0x28] sm:$0xff] }
 0x544   : > { %v14951_v55 = vcombine.low %v4081_v47, %v4085_v49 }
 0x545   : > { %4042 = vmatpush1.bf16.msra.mxu1 %v14899_v35  ;;  %7240 = vmatpush1.bf16.msra.mxu0 %v15093_v38  ;;  %v15141_v35 = vcombine.low %v4272_v43, %v4276_v44  ;;  %v14952_v38 = vcombine.high %v4081_v47, %v4085_v49  ;;  %v4332_v49 = vld [vmem:[#allocation13 + $0x7e0] sm:$0xff] }
 0x546   : > { %4043 = vmatprep.subr.bf16.mxu1 %v14908_v42  ;;  %7241 = vmatprep.subr.bf16.mxu0 %v15102_v29  ;;  %v15150_v42 = vcombine.high %v4280_v10, %v4284_v50  ;;  %v4093_v29 = vld [vmem:[#allocation13 + $0x68] sm:$0xff] }
 0x547   : > { %v14959_v62 = vcombine.low %v4089_v51, %v4093_v29 }
 0x549   : > { %4044 = vmatpush1.bf16.msra.mxu1 %v14907_v54  ;;  %7242 = vmatpush1.bf16.msra.mxu0 %v15101_v56  ;;  %v14960_v54 = vcombine.high %v4089_v51, %v4093_v29  ;;  %v15149_v56 = vcombine.low %v4280_v10, %v4284_v50 }
 0x54a   : > { %4045 = vmatprep.subr.bf16.mxu1 %v14916_v57  ;;  %7243 = vmatprep.subr.bf16.mxu0 %v15110_v59  ;;  %v4097_v57 = vld [vmem:[#allocation13 + $0x88] sm:$0xff]  ;;  %v15158_v59 = vcombine.high %v4288_v52, %v4292_v53 }
 0x54b   : > { %v14967_v11 = vcombine.low %v4097_v57, %v4101_v58 }
 0x54d   : > { %4046 = vmatpush1.bf16.msra.mxu1 %v14915_v0  ;;  %7244 = vmatpush1.bf16.msra.mxu0 %v15109_v3  ;;  %v14968_v0 = vcombine.high %v4097_v57, %v4101_v58  ;;  %v15157_v3 = vcombine.low %v4288_v52, %v4292_v53  ;;  %v4145_v53 = vld [vmem:[#allocation13 + $0x208] sm:$0xff] }
 0x54e   : > { %4047 = vmatprep.subr.bf16.mxu1 %v14924_v4  ;;  %7245 = vmatprep.subr.bf16.mxu0 %v15118_v6  ;;  %v4105_v4 = vld [vmem:[#allocation13 + $0xc8] sm:$0xff]  ;;  %v15166_v6 = vcombine.high %v4296_v60, %v4300_v61 }
 0x54f   : > { %v14975_v23 = vcombine.low %v4105_v4, %v4109_v5  ;;  %v4153_v58 = vld [vmem:[#allocation13 + $0x248] sm:$0xff] }
 0x551   : > { %4048 = vmatpush1.bf16.msra.mxu1 %v14923_v14  ;;  %7246 = vmatpush1.bf16.msra.mxu0 %v15117_v18  ;;  %v15165_v14 = vcombine.low %v4296_v60, %v4300_v61  ;;  %v4113_v18 = vld [vmem:[#allocation13 + $0x108] sm:$0xff] }
 0x552   : > { %4049 = vmatprep.subr.bf16.mxu1 %v14932_v19  ;;  %7247 = vmatprep.subr.bf16.mxu0 %v15126_v12  ;;  %v4117_v19 = vld [vmem:[#allocation13 + $0x128] sm:$0xff]  ;;  %v4312_v12 = vld [vmem:[#allocation13 + $0x740] sm:$0xff] }
 0x553   : > { %v14984_v24 = vcombine.high %v4113_v18, %v4117_v19  ;;  %v15182_v33 = vcombine.high %v4312_v12, %v4316_v22  ;;  %v14983_v43 = vcombine.low %v4113_v18, %v4117_v19  ;;  %v4185_v19 = vld [vmem:[#allocation13 + $0x348] sm:$0xff] }
 0x555   : > { %4050 = vmatpush1.bf16.msra.mxu1 %v14931_v25  ;;  %7248 = vmatpush1.bf16.msra.mxu0 %v15125_v26  ;;  %v15173_v25 = vcombine.low %v4304_v8, %v4308_v9  ;;  %v4121_v26 = vld [vmem:[#allocation13 + $0x148] sm:$0xff] }
 0x556   : > { %4051 = vmatprep.subr.bf16.mxu1 %v14940_v32  ;;  %7249 = vmatprep.subr.bf16.mxu0 %v15134_v37  ;;  %v4125_v32 = vld [vmem:[#allocation13 + $0x168] sm:$0xff]  ;;  %v4320_v37 = vld [vmem:[#allocation13 + $0x780] sm:$0xff] }
 0x557   : > { %v14992_v44 = vcombine.high %v4121_v26, %v4125_v32  ;;  %v15190_v47 = vcombine.high %v4320_v37, %v4324_v39  ;;  %v14991_v10 = vcombine.low %v4121_v26, %v4125_v32  ;;  %v4201_v32 = vld [vmem:[#allocation13 + $0x3c8] sm:$0xff] }
 0x559   : > { %4052 = vmatpush1.bf16.msra.mxu1 %v14939_v45  ;;  %7250 = vmatpush1.bf16.msra.mxu0 %v15133_v46  ;;  %v15181_v45 = vcombine.low %v4312_v12, %v4316_v22  ;;  %v4129_v46 = vld [vmem:[#allocation13 + $0x188] sm:$0xff] }
 0x55a   : > { %4053 = vmatprep.subr.bf16.mxu1 %v14948_v28  ;;  %7251 = vmatprep.subr.bf16.mxu0 %v15142_v48  ;;  %v4133_v28 = vld [vmem:[#allocation13 + $0x1a8] sm:$0xff]  ;;  %v4328_v48 = vld [vmem:[#allocation13 + $0x7c0] sm:$0xff] }
 0x55b   : > { %v15000_v50 = vcombine.high %v4129_v46, %v4133_v28  ;;  %v14999_v51 = vcombine.low %v4129_v46, %v4133_v28  ;;  %v15197_v52 = vcombine.low %v4328_v48, %v4332_v49  ;;  %v4217_v28 = vld [vmem:[#allocation13 + $0x448] sm:$0xff] }
 0x55d   : > { %4054 = vmatpush1.bf16.msra.mxu1 %v14947_v34  ;;  %7252 = vmatpush1.bf16.msra.mxu0 %v15141_v35  ;;  %v15189_v34 = vcombine.low %v4320_v37, %v4324_v39  ;;  %v4137_v35 = vld [vmem:[#allocation13 + $0x1c8] sm:$0xff] }
 0x55e   : > { %7358 = vmatprep.subr.bf16.mxu1 %v14952_v38  ;;  %7253 = vmatprep.subr.bf16.mxu0 %v15150_v42  ;;  %v4141_v38 = vld [vmem:[#allocation13 + $0x1e8] sm:$0xff]  ;;  %v15198_v42 = vcombine.high %v4328_v48, %v4332_v49 }
 0x55f   : > { %v15008_v29 = vcombine.high %v4137_v35, %v4141_v38 }
 0x560   : > { %4056 = vmatmul.mubr.bf16.vlgmr.msra.gmra.mrb[16].mxu1 %v19165_v41  ;;  %v14976_v41 = vcombine.high %v4105_v4, %v4109_v5  ;;  %v4169_v5 = vld [vmem:[#allocation13 + $0x2c8] sm:$0xff] }
 0x561   : > { %7359 = vmatpush1.bf16.msra.mxu1 %v14951_v55  ;;  %7390 = vmatprep.mubr.bf16.mxu1 %v19200_v31  ;;  %v4149_v55 = vld [vmem:[#allocation13 + $0x228] sm:$0xff] }
 0x562   : > { %7360 = vmatprep.subr.bf16.mxu1 %v14960_v54  ;;  %7254 = vmatpush1.bf16.msra.mxu0 %v15149_v56  ;;  %v15206_v54 = vcombine.high %v19196_v27, %v19198_v30  ;;  %v15007_v56 = vcombine.low %v4137_v35, %v4141_v38  ;;  %v15016_v57 = vcombine.high %v4145_v53, %v4149_v55  ;;  %v4233_v38 = vld [vmem:[#allocation13 + $0x4c8] sm:$0xff] }
 0x563   : > { %7255 = vmatprep.subr.bf16.mxu0 %v15158_v59  ;;  %v4157_v59 = vld [vmem:[#allocation13 + $0x268] sm:$0xff]  ;;  %v15015_v60 = vcombine.low %v4145_v53, %v4149_v55 }
 0x564   : > { %v15024_v61 = vcombine.high %v4153_v58, %v4157_v59  ;;  %v4245_v53 = vld [vmem:[#allocation13 + $0x528] sm:$0xff] }
 0x565   : > { %7361 = vmatpush1.bf16.msra.mxu1 %v14959_v62  ;;  %v4161_v62 = vld [vmem:[#allocation13 + $0x288] sm:$0xff] }
 0x566   : > { %7362 = vmatprep.subr.bf16.mxu1 %v14968_v0  ;;  %7256 = vmatpush1.bf16.msra.mxu0 %v15157_v3  ;;  %v4165_v0 = vld [vmem:[#allocation13 + $0x2a8] sm:$0xff]  ;;  %v15023_v3 = vcombine.low %v4153_v58, %v4157_v59 }
 0x567   : > { %7257 = vmatprep.subr.bf16.mxu0 %v15166_v6  ;;  %v15032_v4 = vcombine.high %v4161_v62, %v4165_v0  ;;  %v4173_v6 = vld [vmem:[#allocation13 + $0x2e8] sm:$0xff]  ;;  %v15031_v8 = vcombine.low %v4161_v62, %v4165_v0 }
 0x568   : > { %v15040_v9 = vcombine.high %v4169_v5, %v4173_v6  ;;  %v4253_v58 = vld [vmem:[#allocation13 + $0x568] sm:$0xff] }
 0x569   : > { %7363 = vmatpush1.bf16.msra.mxu1 %v14967_v11  ;;  %v4177_v11 = vld [vmem:[#allocation13 + $0x308] sm:$0xff] }
 0x56a   : > { %7364 = vmatprep.subr.bf16.mxu1 %v14976_v41  ;;  %7258 = vmatpush1.bf16.msra.mxu0 %v15165_v14  ;;  %v4181_v41 = vld [vmem:[#allocation13 + $0x328] sm:$0xff]  ;;  %v15039_v14 = vcombine.low %v4169_v5, %v4173_v6 }
 0x56b   : > { %7259 = vmatprep.subr.bf16.mxu0 %v15174_v21  ;;  %v15048_v18 = vcombine.high %v4177_v11, %v4181_v41  ;;  %v4189_v21 = vld [vmem:[#allocation13 + $0x368] sm:$0xff]  ;;  %v15047_v12 = vcombine.low %v4177_v11, %v4181_v41 }
 0x56c   : > { %v15056_v22 = vcombine.high %v4185_v19, %v4189_v21  ;;  %v4257_v62 = vld [vmem:[#allocation13 + $0x588] sm:$0xff] }
 0x56d   : > { %7365 = vmatpush1.bf16.msra.mxu1 %v14975_v23  ;;  %v4193_v23 = vld [vmem:[#allocation13 + $0x388] sm:$0xff] }
 0x56e   : > { %7366 = vmatprep.subr.bf16.mxu1 %v14984_v24  ;;  %7260 = vmatpush1.bf16.msra.mxu0 %v15173_v25  ;;  %v4197_v24 = vld [vmem:[#allocation13 + $0x3a8] sm:$0xff]  ;;  %v15055_v25 = vcombine.low %v4185_v19, %v4189_v21 }
 0x56f   : > { %7261 = vmatprep.subr.bf16.mxu0 %v15182_v33  ;;  %v15064_v26 = vcombine.high %v4193_v23, %v4197_v24  ;;  %v4205_v33 = vld [vmem:[#allocation13 + $0x3e8] sm:$0xff]  ;;  %v15063_v37 = vcombine.low %v4193_v23, %v4197_v24 }
 0x570   : > { %v15072_v39 = vcombine.high %v4201_v32, %v4205_v33  ;;  %v4261_v0 = vld [vmem:[#allocation13 + $0x5a8] sm:$0xff] }
 0x571   : > { %7367 = vmatpush1.bf16.msra.mxu1 %v14983_v43  ;;  %v4209_v43 = vld [vmem:[#allocation13 + $0x408] sm:$0xff]  ;;  %v15128_v6 = vcombine.high %v4257_v62, %v4261_v0 }
 0x572   : > { %7368 = vmatprep.subr.bf16.mxu1 %v14992_v44  ;;  %7262 = vmatpush1.bf16.msra.mxu0 %v15181_v45  ;;  %v4213_v44 = vld [vmem:[#allocation13 + $0x428] sm:$0xff]  ;;  %v15071_v45 = vcombine.low %v4201_v32, %v4205_v33  ;;  %v4344_v32 = vld [vmem:[#allocation13 + $0x840] sm:$0xff] }
 0x573   : > { %7263 = vmatprep.subr.bf16.mxu0 %v15190_v47  ;;  %v15080_v46 = vcombine.high %v4209_v43, %v4213_v44  ;;  %v4221_v47 = vld [vmem:[#allocation13 + $0x468] sm:$0xff]  ;;  %v15079_v48 = vcombine.low %v4209_v43, %v4213_v44  ;;  %v4348_v33 = vld [vmem:[#allocation13 + $0x860] sm:$0xff] }
 0x574   : > { %v15088_v49 = vcombine.high %v4217_v28, %v4221_v47  ;;  %v4265_v11 = vld [vmem:[#allocation13 + $0x5c8] sm:$0xff] }
 0x575   : > { %7369 = vmatpush1.bf16.msra.mxu1 %v14991_v10  ;;  %v4225_v10 = vld [vmem:[#allocation13 + $0x488] sm:$0xff] }
 0x576   : > { %7370 = vmatprep.subr.bf16.mxu1 %v15000_v50  ;;  %7264 = vmatpush1.bf16.msra.mxu0 %v15189_v34  ;;  %v4229_v50 = vld [vmem:[#allocation13 + $0x4a8] sm:$0xff]  ;;  %v15087_v34 = vcombine.low %v4217_v28, %v4221_v47  ;;  %v4352_v47 = vld [vmem:[#allocation13 + $0x880] sm:$0xff] }
 0x577   : > { %7265 = vmatprep.subr.bf16.mxu0 %v15198_v42  ;;  %v15096_v35 = vcombine.high %v4225_v10, %v4229_v50  ;;  %v4237_v42 = vld [vmem:[#allocation13 + $0x4e8] sm:$0xff] }
 0x578   : > { %v15103_v55 = vcombine.low %v4233_v38, %v4237_v42  ;;  %v4269_v41 = vld [vmem:[#allocation13 + $0x5e8] sm:$0xff] }
 0x579   : > { %7371 = vmatpush1.bf16.msra.mxu1 %v14999_v51  ;;  %v15095_v51 = vcombine.low %v4225_v10, %v4229_v50  ;;  %v15136_v24 = vcombine.high %v4265_v11, %v4269_v41  ;;  %v15135_v44 = vcombine.low %v4265_v11, %v4269_v41  ;;  %v4285_v10 = vld [vmem:[#allocation13 + $0x668] sm:$0xff]  ;;  %v15213_v50 = vcombine.low %v4344_v32, %v4348_v33  ;;  %v4384_v41 = vld [vmem:[#allocation13 + $0x980] sm:$0xff] }
 0x57a   : > { %7372 = vmatprep.subr.bf16.mxu1 %v15008_v29  ;;  %7266 = vmatpush1.bf16.msra.mxu0 %v15197_v52  ;;  %v15104_v29 = vcombine.high %v4233_v38, %v4237_v42  ;;  %v4241_v52 = vld [vmem:[#allocation13 + $0x508] sm:$0xff]  ;;  %v4360_v42 = vld [vmem:[#allocation13 + $0x8c0] sm:$0xff] }
 0x57b   : > { %7276 = vmatprep.subr.bf16.mxu0 %v15206_v54  ;;  %v15112_v54 = vcombine.high %v4241_v52, %v4245_v53  ;;  %v15111_v59 = vcombine.low %v4241_v52, %v4245_v53  ;;  %v4293_v52 = vld [vmem:[#allocation13 + $0x6a8] sm:$0xff] }
 0x57d   : > { %7373 = vmatpush1.bf16.msra.mxu1 %v15007_v56  ;;  %v19217_v56 = vsub.s32 5, %v19073_v13 }
 0x57e   : > { %7374 = vmatprep.subr.bf16.mxu1 %v15016_v57  ;;  %v4249_v57 = vld [vmem:[#allocation13 + $0x548] sm:$0xff] }
 0x57f   : > { %v15119_v5 = vcombine.low %v4249_v57, %v4253_v58 }
 0x581   : > { %7375 = vmatpush1.bf16.msra.mxu1 %v15015_v60  ;;  %v15120_v60 = vcombine.high %v4249_v57, %v4253_v58  ;;  %v4297_v57 = vld [vmem:[#allocation13 + $0x6c8] sm:$0xff] }
 0x582   : > { %7376 = vmatprep.subr.bf16.mxu1 %v15024_v61  ;;  %v2439_v61 = vrot.slane %v19186_v36, %v19217_v56  ;;  %v4301_v58 = vld [vmem:[#allocation13 + $0x6e8] sm:$0xff] }
 0x585   : > { %7377 = vmatpush1.bf16.msra.mxu1 %v15023_v3  ;;  %v2427_v3 = vrot.slane %v19186_v36, %v19154_v15 }
 0x586   : > { %7378 = vmatprep.subr.bf16.mxu1 %v15032_v4  ;;  %v2431_v4 = vrot.slane %v19186_v36, %v19157_v20 }
 0x589   : > { %7379 = vmatpush1.bf16.msra.mxu1 %v15031_v8  ;;  %v16393_v8 = vadd.f32 %v19194_v7, %v2439_v61 }
 0x58a   : > { %7380 = vmatprep.subr.bf16.mxu1 %v15040_v9 }
 0x58d   : > { %7381 = vmatpush1.bf16.msra.mxu1 %v15039_v14 }
 0x58e   : > { %7382 = vmatprep.subr.bf16.mxu1 %v15048_v18 }
 0x591   : > { %7383 = vmatpush1.bf16.msra.mxu1 %v15047_v12  ;;  %v15127_v12 = vcombine.low %v4257_v62, %v4261_v0  ;;  %v15168_v62 = vcombine.high %v4297_v57, %v4301_v58  ;;  %v4376_v0 = vld [vmem:[#allocation13 + $0x940] sm:$0xff] }
 0x592   : > { %7384 = vmatprep.subr.bf16.mxu1 %v15056_v22 }
 0x595   : > { %7385 = vmatpush1.bf16.msra.mxu1 %v15055_v25  ;;  %v4069_v25 = vmax.f32 %v16393_v8, 0.0  ;;  %v15167_v8 = vcombine.low %v4297_v57, %v4301_v58 }
 0x596   : > { %7386 = vmatprep.subr.bf16.mxu1 %v15064_v26 }
 0x599   : > { %7387 = vmatpush1.bf16.msra.mxu1 %v15063_v37  ;;  %v4273_v37 = vld [vmem:[#allocation13 + $0x608] sm:$0xff] }
 0x59a   : > { %7388 = vmatprep.subr.bf16.mxu1 %v15072_v39  ;;  %v4277_v39 = vld [vmem:[#allocation13 + $0x628] sm:$0xff] }
 0x59b   : > { %v15144_v28 = vcombine.high %v4273_v37, %v4277_v39 }
 0x59d   : > { %7389 = vmatpush1.bf16.msra.mxu1 %v15071_v45  ;;  %v15214_v45 = vcombine.high %v4344_v32, %v4348_v33  ;;  %v4325_v32 = vld [vmem:[#allocation13 + $0x7a8] sm:$0xff] }
 0x59e   : > { %7399 = vmatprep.subr.bf16.mxu1 %v15080_v46  ;;  %v19230_v46 = vpack.c.bf16 %v4069_v25, %v4069_v25  ;;  %v4396_v25 = vld [vmem:[#allocation13 + $0x9e0] sm:$0xff] }
 0x5a0   : > { %7391 = vmatmul.mubr.bf16.vlgmr.msra.gmra.mrb[20].mxu1 %v19202_v17 }
 0x5a1   : > { %7400 = vmatpush1.bf16.msra.mxu1 %v15079_v48  ;;  %v4356_v48 = vld [vmem:[#allocation13 + $0x8a0] sm:$0xff] }
 0x5a2   : > { %7401 = vmatprep.subr.bf16.mxu1 %v15088_v49  ;;  %v4281_v49 = vld [vmem:[#allocation13 + $0x648] sm:$0xff]  ;;  %v15221_v53 = vcombine.low %v4352_v47, %v4356_v48 }
 0x5a3   : > { %v15152_v38 = vcombine.high %v4281_v49, %v4285_v10 }
 0x5a5   : > { %7402 = vmatpush1.bf16.msra.mxu1 %v15087_v34  ;;  %v15143_v34 = vcombine.low %v4273_v37, %v4277_v39 }
 0x5a6   : > { %7403 = vmatprep.subr.bf16.mxu1 %v15096_v35  ;;  %v15222_v35 = vcombine.high %v4352_v47, %v4356_v48  ;;  %v4329_v47 = vld [vmem:[#allocation13 + $0x7c8] sm:$0xff] }
 0x5a7   : > { %v4333_v48 = vld [vmem:[#allocation13 + $0x7e8] sm:$0xff] }
 0x5a9   : > { %7404 = vmatpush1.bf16.msra.mxu1 %v15095_v51  ;;  %v4364_v51 = vld [vmem:[#allocation13 + $0x8e0] sm:$0xff] }
 0x5aa   : > { %7405 = vmatprep.subr.bf16.mxu1 %v15104_v29  ;;  %v4289_v29 = vld [vmem:[#allocation13 + $0x688] sm:$0xff]  ;;  %v15230_v27 = vcombine.high %v4360_v42, %v4364_v51 }
 0x5ab   : > { %v15160_v30 = vcombine.high %v4289_v29, %v4293_v52 }
 0x5ad   : > { %7406 = vmatpush1.bf16.msra.mxu1 %v15103_v55  ;;  %v15151_v55 = vcombine.low %v4281_v49, %v4285_v10 }
 0x5ae   : > { %7407 = vmatprep.subr.bf16.mxu1 %v15112_v54  ;;  %v4372_v54 = vld [vmem:[#allocation13 + $0x920] sm:$0xff] }
 0x5b1   : > { %7408 = vmatpush1.bf16.msra.mxu1 %v15111_v59  ;;  %v15229_v59 = vcombine.low %v4360_v42, %v4364_v51  ;;  %v4337_v42 = vld [vmem:[#allocation13 + $0x808] sm:$0xff] }
 0x5b2   : > { %7409 = vmatprep.subr.bf16.mxu1 %v15120_v60  ;;  %v15159_v60 = vcombine.low %v4289_v29, %v4293_v52  ;;  %v4341_v51 = vld [vmem:[#allocation13 + $0x828] sm:$0xff]  ;;  %v15199_v52 = vcombine.low %v4329_v47, %v4333_v48 }
 0x5b3   : > { %v3893_v9 = vpop.f32.mrb[12].mxu1  ;;  %v15207_v58 = vcombine.low %v4337_v42, %v4341_v51 }
 0x5b4   : > { %v16390_v14 = vadd.f32 %v3893_v9, %v2427_v3  ;;  %v3895_v18 = vpop.f32.mrb[13].mxu1  ;;  %v4380_v3 = vld [vmem:[#allocation13 + $0x960] sm:$0xff] }
 0x5b5   : > { %v16391_v19 = vadd.f32 %v3895_v18, %v2431_v4  ;;  %v3897_v21 = vpop.f32.mrb[14].mxu1  ;;  %7410 = vmatpush1.bf16.msra.mxu1 %v15119_v5  ;;  %v4305_v4 = vld [vmem:[#allocation13 + $0x708] sm:$0xff]  ;;  %v15246_v9 = vcombine.high %v4376_v0, %v4380_v3 }
 0x5b6   : > { %v4066_v22 = vmax.f32 %v16390_v14, 0.0  ;;  %v3898_v23 = vpop.f32.mrb[15].mxu1  ;;  %7411 = vmatprep.subr.bf16.mxu1 %v15128_v6  ;;  %v4309_v5 = vld [vmem:[#allocation13 + $0x728] sm:$0xff]  ;;  %v4388_v14 = vld [vmem:[#allocation13 + $0x9a0] sm:$0xff]  ;;  %v15245_v21 = vcombine.low %v4376_v0, %v4380_v3 }
 0x5b7   : > { %v4067_v26 = vmax.f32 %v16391_v19, 0.0  ;;  %v15176_v11 = vcombine.high %v4305_v4, %v4309_v5  ;;  %v4313_v18 = vld [vmem:[#allocation13 + $0x748] sm:$0xff]  ;;  %v15253_v33 = vcombine.low %v4384_v41, %v4388_v14 }
 0x5b8   : > { %v19228_v43 = vpack.c.bf16 %v4066_v22, %v4066_v22  ;;  %v4317_v19 = vld [vmem:[#allocation13 + $0x768] sm:$0xff]  ;;  %v15254_v22 = vcombine.high %v4384_v41, %v4388_v14 }
 0x5b9   : > { %v19226_v7 = vpack.c.bf16 %v4067_v26, %v4067_v26  ;;  %7412 = vmatpush1.bf16.msra.mxu1 %v15127_v12  ;;  %v15175_v12 = vcombine.low %v4305_v4, %v4309_v5  ;;  %v15184_v23 = vcombine.high %v4313_v18, %v4317_v19  ;;  %v4321_v26 = vld [vmem:[#allocation13 + $0x788] sm:$0xff]  ;;  %v15183_v37 = vcombine.low %v4313_v18, %v4317_v19 }
 0x5ba   : > { %7413 = vmatprep.subr.bf16.mxu1 %v15136_v24  ;;  %v4392_v24 = vld [vmem:[#allocation13 + $0x9c0] sm:$0xff]  ;;  %v15191_v10 = vcombine.low %v4321_v26, %v4325_v32  ;;  %v4353_v0 = vld [vmem:[#allocation13 + $0x888] sm:$0xff] }
 0x5bb   : > { %7267 = vmatprep.mubr.bf16.mxu0 %v19226_v7  ;;  %7431 = vmatprep.mubr.bf16.mxu1 %v19226_v7  ;;  %v15262_v39 = vcombine.high %v4392_v24, %v4396_v25  ;;  %v15261_v49 = vcombine.low %v4392_v24, %v4396_v25  ;;  %v4357_v3 = vld [vmem:[#allocation13 + $0x8a8] sm:$0xff] }
 0x5bc   : > { %7268 = vmatmul.mubr.bf16.vlgmr.msra.gmra.mrb[8].mxu0 %v19228_v43  ;;  %v4361_v41 = vld [vmem:[#allocation13 + $0x8c8] sm:$0xff]  ;;  %v15223_v19 = vcombine.low %v4353_v0, %v4357_v3 }
 0x5bd   : > { %7277 = vmatpush1.bf16.msra.mxu0 %v15205_v40  ;;  %7308 = vmatprep.mubr.bf16.mxu0 %v19230_v46  ;;  %v4368_v40 = vld [vmem:[#allocation13 + $0x900] sm:$0xff]  ;;  %v4365_v14 = vld [vmem:[#allocation13 + $0x8e8] sm:$0xff] }
 0x5be   : > { %7414 = vmatpush1.bf16.msra.mxu1 %v15135_v44  ;;  %7278 = vmatprep.subr.bf16.mxu0 %v15214_v45  ;;  %v15238_v61 = vcombine.high %v4368_v40, %v4372_v54  ;;  %v15237_v6 = vcombine.low %v4368_v40, %v4372_v54  ;;  %v15192_v44 = vcombine.high %v4321_v26, %v4325_v32  ;;  %v4400_v45 = vld [vmem:[#allocation13 + $0xa00] sm:$0xff]  ;;  %v4345_v40 = vld [vmem:[#allocation13 + $0x848] sm:$0xff]  ;;  %v19242_v32 = vsub.s32 4, %v19073_v13 }
 0x5bf   : > { %7415 = vmatprep.subr.bf16.mxu1 %v15144_v28  ;;  %v4404_v28 = vld [vmem:[#allocation13 + $0xa20] sm:$0xff]  ;;  %v4349_v54 = vld [vmem:[#allocation13 + $0x868] sm:$0xff] }
 0x5c0   : > { %v15269_v29 = vcombine.low %v4400_v45, %v4404_v28  ;;  %v15215_v5 = vcombine.low %v4345_v40, %v4349_v54  ;;  %v4369_v24 = vld [vmem:[#allocation13 + $0x908] sm:$0xff] }
 0x5c1   : > { %7279 = vmatpush1.bf16.msra.mxu0 %v15213_v50  ;;  %v15270_v50 = vcombine.high %v4400_v45, %v4404_v28  ;;  %v4373_v25 = vld [vmem:[#allocation13 + $0x928] sm:$0xff]  ;;  %v4452_v45 = vld [vmem:[#allocation13 + $0xba0] sm:$0xff] }
 0x5c2   : > { %7416 = vmatpush1.bf16.msra.mxu1 %v15143_v34  ;;  %7280 = vmatprep.subr.bf16.mxu0 %v15222_v35  ;;  %v15200_v34 = vcombine.high %v4329_v47, %v4333_v48  ;;  %v4408_v35 = vld [vmem:[#allocation13 + $0xa40] sm:$0xff]  ;;  %v4377_v28 = vld [vmem:[#allocation13 + $0x948] sm:$0xff] }
 0x5c3   : > { %7417 = vmatprep.subr.bf16.mxu1 %v15152_v38  ;;  %v4412_v38 = vld [vmem:[#allocation13 + $0xa60] sm:$0xff]  ;;  %v4381_v47 = vld [vmem:[#allocation13 + $0x968] sm:$0xff] }
 0x5c4   : > { %v15277_v57 = vcombine.low %v4408_v35, %v4412_v38 }
 0x5c5   : > { %7281 = vmatpush1.bf16.msra.mxu0 %v15221_v53  ;;  %v15278_v53 = vcombine.high %v4408_v35, %v4412_v38  ;;  %v4456_v35 = vld [vmem:[#allocation13 + $0xbc0] sm:$0xff] }
 0x5c6   : > { %7418 = vmatpush1.bf16.msra.mxu1 %v15151_v55  ;;  %7282 = vmatprep.subr.bf16.mxu0 %v15230_v27  ;;  %v15208_v55 = vcombine.high %v4337_v42, %v4341_v51  ;;  %v4416_v27 = vld [vmem:[#allocation13 + $0xa80] sm:$0xff]  ;;  %v4385_v42 = vld [vmem:[#allocation13 + $0x988] sm:$0xff] }
 0x5c7   : > { %7419 = vmatprep.subr.bf16.mxu1 %v15160_v30  ;;  %v4420_v30 = vld [vmem:[#allocation13 + $0xaa0] sm:$0xff]  ;;  %v4389_v51 = vld [vmem:[#allocation13 + $0x9a8] sm:$0xff] }
 0x5c8   : > { %v15285_v4 = vcombine.low %v4416_v27, %v4420_v30  ;;  %v4460_v38 = vld [vmem:[#allocation13 + $0xbe0] sm:$0xff] }
 0x5c9   : > { %7283 = vmatpush1.bf16.msra.mxu0 %v15229_v59  ;;  %v15286_v59 = vcombine.high %v4416_v27, %v4420_v30  ;;  %v4464_v27 = vld [vmem:[#allocation13 + $0xc00] sm:$0xff] }
 0x5ca   : > { %7420 = vmatpush1.bf16.msra.mxu1 %v15159_v60  ;;  %7284 = vmatprep.subr.bf16.mxu0 %v15238_v61  ;;  %v15216_v60 = vcombine.high %v4345_v40, %v4349_v54  ;;  %v4424_v61 = vld [vmem:[#allocation13 + $0xac0] sm:$0xff]  ;;  %v4393_v40 = vld [vmem:[#allocation13 + $0x9c8] sm:$0xff] }
 0x5cb   : > { %7421 = vmatprep.subr.bf16.mxu1 %v15168_v62  ;;  %v4428_v62 = vld [vmem:[#allocation13 + $0xae0] sm:$0xff]  ;;  %v4397_v54 = vld [vmem:[#allocation13 + $0x9e8] sm:$0xff] }
 0x5cc   : > { %v15293_v18 = vcombine.low %v4424_v61, %v4428_v62  ;;  %v4468_v30 = vld [vmem:[#allocation13 + $0xc20] sm:$0xff] }
 0x5cd   : > { %7285 = vmatpush1.bf16.msra.mxu0 %v15237_v6  ;;  %v15294_v6 = vcombine.high %v4424_v61, %v4428_v62  ;;  %v15264_v61 = vcombine.high %v4393_v40, %v4397_v54  ;;  %v4476_v62 = vld [vmem:[#allocation13 + $0xc60] sm:$0xff] }
 0x5ce   : > { %7422 = vmatpush1.bf16.msra.mxu1 %v15167_v8  ;;  %7286 = vmatprep.subr.bf16.mxu0 %v15246_v9  ;;  %v15224_v8 = vcombine.high %v4353_v0, %v4357_v3  ;;  %v4432_v9 = vld [vmem:[#allocation13 + $0xb00] sm:$0xff]  ;;  %v4401_v0 = vld [vmem:[#allocation13 + $0xa08] sm:$0xff] }
 0x5cf   : > { %7423 = vmatprep.subr.bf16.mxu1 %v15176_v11  ;;  %v4436_v11 = vld [vmem:[#allocation13 + $0xb20] sm:$0xff]  ;;  %v4405_v3 = vld [vmem:[#allocation13 + $0xa28] sm:$0xff] }
 0x5d0   : > { %v15301_v26 = vcombine.low %v4432_v9, %v4436_v11 }
 0x5d1   : > { %7287 = vmatpush1.bf16.msra.mxu0 %v15245_v21  ;;  %v15302_v21 = vcombine.high %v4432_v9, %v4436_v11  ;;  %v15272_v9 = vcombine.high %v4401_v0, %v4405_v3  ;;  %v4480_v11 = vld [vmem:[#allocation13 + $0xc80] sm:$0xff] }
 0x5d2   : > { %7424 = vmatpush1.bf16.msra.mxu1 %v15175_v12  ;;  %7288 = vmatprep.subr.bf16.mxu0 %v15254_v22  ;;  %v15232_v12 = vcombine.high %v4361_v41, %v4365_v14  ;;  %v4440_v22 = vld [vmem:[#allocation13 + $0xb40] sm:$0xff] }
 0x5d3   : > { %7425 = vmatprep.subr.bf16.mxu1 %v15184_v23  ;;  %v4444_v23 = vld [vmem:[#allocation13 + $0xb60] sm:$0xff] }
 0x5d4   : > { %v15309_v48 = vcombine.low %v4440_v22, %v4444_v23 }
 0x5d5   : > { %7289 = vmatpush1.bf16.msra.mxu0 %v15253_v33  ;;  %v15231_v33 = vcombine.low %v4361_v41, %v4365_v14  ;;  %v4484_v41 = vld [vmem:[#allocation13 + $0xca0] sm:$0xff]  ;;  %v4409_v14 = vld [vmem:[#allocation13 + $0xa48] sm:$0xff] }
 0x5d6   : > { %7426 = vmatpush1.bf16.msra.mxu1 %v15183_v37  ;;  %7290 = vmatprep.subr.bf16.mxu0 %v15262_v39  ;;  %v15310_v37 = vcombine.high %v4440_v22, %v4444_v23  ;;  %v15240_v39 = vcombine.high %v4369_v24, %v4373_v25  ;;  %v4488_v23 = vld [vmem:[#allocation13 + $0xcc0] sm:$0xff] }
 0x5d7   : > { %7427 = vmatprep.subr.bf16.mxu1 %v15192_v44  ;;  %v4448_v44 = vld [vmem:[#allocation13 + $0xb80] sm:$0xff] }
 0x5d9   : > { %7291 = vmatpush1.bf16.msra.mxu0 %v15261_v49  ;;  %v2435_v49 = vrot.slane %v19186_v36, %v19242_v32  ;;  %v15256_v36 = vcombine.high %v4385_v42, %v4389_v51 }
 0x5da   : > { %7428 = vmatpush1.bf16.msra.mxu1 %v15191_v10  ;;  %7292 = vmatprep.subr.bf16.mxu0 %v15270_v50  ;;  %v15239_v10 = vcombine.low %v4369_v24, %v4373_v25  ;;  %v15318_v50 = vcombine.high %v4448_v44, %v4452_v45  ;;  %v4492_v24 = vld [vmem:[#allocation13 + $0xce0] sm:$0xff]  ;;  %v4417_v25 = vld [vmem:[#allocation13 + $0xa88] sm:$0xff] }
 0x5db   : > { %7429 = vmatprep.subr.bf16.mxu1 %v15200_v34  ;;  %v15248_v34 = vcombine.high %v4377_v28, %v4381_v47 }
 0x5dd   : > { %7293 = vmatpush1.bf16.msra.mxu0 %v15269_v29  ;;  %v15317_v29 = vcombine.low %v4448_v44, %v4452_v45  ;;  %v4496_v45 = vld [vmem:[#allocation13 + $0xd00] sm:$0xff] }
 0x5de   : > { %7430 = vmatpush1.bf16.msra.mxu1 %v15199_v52  ;;  %7294 = vmatprep.subr.bf16.mxu0 %v15278_v53  ;;  %v16392_v52 = vadd.f32 %v19192_v2, %v2435_v49  ;;  %v15247_v53 = vcombine.low %v4377_v28, %v4381_v47  ;;  %v4472_v2 = vld [vmem:[#allocation13 + $0xc40] sm:$0xff]  ;;  %v4425_v47 = vld [vmem:[#allocation13 + $0xac8] sm:$0xff]  ;;  %v15357_v49 = vcombine.low %v4488_v23, %v4492_v24 }
 0x5df   : > { %7440 = vmatprep.subr.bf16.mxu1 %v15208_v55  ;;  %v15326_v55 = vcombine.high %v4456_v35, %v4460_v38  ;;  %v4500_v28 = vld [vmem:[#allocation13 + $0xd20] sm:$0xff] }
 0x5e1   : > { %7295 = vmatpush1.bf16.msra.mxu0 %v15277_v57  ;;  %7432 = vmatmul.mubr.bf16.vlgmr.msra.gmra.mrb[20].mxu1 %v19228_v43  ;;  %v15325_v57 = vcombine.low %v4456_v35, %v4460_v38  ;;  %v4504_v35 = vld [vmem:[#allocation13 + $0xd40] sm:$0xff] }
 0x5e2   : > { %7441 = vmatpush1.bf16.msra.mxu1 %v15207_v58  ;;  %7472 = vmatprep.mubr.bf16.mxu1 %v19230_v46  ;;  %v4068_v58 = vmax.f32 %v16392_v52, 0.0  ;;  %v4508_v38 = vld [vmem:[#allocation13 + $0xd60] sm:$0xff] }
 0x5e3   : > { %7296 = vmatprep.subr.bf16.mxu0 %v15286_v59  ;;  %7442 = vmatprep.subr.bf16.mxu1 %v15216_v60  ;;  %v15255_v59 = vcombine.low %v4385_v42, %v4389_v51  ;;  %v15334_v60 = vcombine.high %v4464_v27, %v4468_v30  ;;  %v4433_v42 = vld [vmem:[#allocation13 + $0xb08] sm:$0xff] }
 0x5e4   : > { %v4437_v51 = vld [vmem:[#allocation13 + $0xb28] sm:$0xff] }
 0x5e5   : > { %7297 = vmatpush1.bf16.msra.mxu0 %v15285_v4  ;;  %v15333_v4 = vcombine.low %v4464_v27, %v4468_v30  ;;  %v4516_v27 = vld [vmem:[#allocation13 + $0xda0] sm:$0xff]  ;;  %v4441_v30 = vld [vmem:[#allocation13 + $0xb48] sm:$0xff] }
 0x5e6   : > { %7443 = vmatpush1.bf16.msra.mxu1 %v15215_v5  ;;  %7298 = vmatprep.subr.bf16.mxu0 %v15294_v6  ;;  %v19247_v5 = vpack.c.bf16 %v4068_v58, %v4068_v58  ;;  %v15263_v6 = vcombine.low %v4393_v40, %v4397_v54  ;;  %v4445_v40 = vld [vmem:[#allocation13 + $0xb68] sm:$0xff]  ;;  %v15373_v54 = vcombine.low %v4504_v35, %v4508_v38 }
 0x5e7   : > { %7444 = vmatprep.subr.bf16.mxu1 %v15224_v8  ;;  %v15342_v8 = vcombine.high %v4472_v2, %v4476_v62 }
 0x5e9   : > { %7299 = vmatpush1.bf16.msra.mxu0 %v15293_v18  ;;  %v4413_v18 = vld [vmem:[#allocation13 + $0xa68] sm:$0xff] }
 0x5ea   : > { %7445 = vmatpush1.bf16.msra.mxu1 %v15223_v19  ;;  %7300 = vmatprep.subr.bf16.mxu0 %v15302_v21  ;;  %v15341_v19 = vcombine.low %v4472_v2, %v4476_v62  ;;  %v15271_v21 = vcombine.low %v4401_v0, %v4405_v3  ;;  %v15280_v22 = vcombine.high %v4409_v14, %v4413_v18  ;;  %v4449_v2 = vld [vmem:[#allocation13 + $0xb88] sm:$0xff] }
 0x5eb   : > { %7446 = vmatprep.subr.bf16.mxu1 %v15232_v12  ;;  %v15350_v12 = vcombine.high %v4480_v11, %v4484_v41  ;;  %v4453_v62 = vld [vmem:[#allocation13 + $0xba8] sm:$0xff]  ;;  %v15311_v3 = vcombine.low %v4441_v30, %v4445_v40 }
 0x5ed   : > { %7301 = vmatpush1.bf16.msra.mxu0 %v15301_v26  ;;  %v4421_v26 = vld [vmem:[#allocation13 + $0xaa8] sm:$0xff] }
 0x5ee   : > { %7447 = vmatpush1.bf16.msra.mxu1 %v15231_v33  ;;  %7302 = vmatprep.subr.bf16.mxu0 %v15310_v37  ;;  %v15349_v33 = vcombine.low %v4480_v11, %v4484_v41  ;;  %v15279_v37 = vcombine.low %v4409_v14, %v4413_v18  ;;  %v15288_v44 = vcombine.high %v4417_v25, %v4421_v26  ;;  %v4457_v11 = vld [vmem:[#allocation13 + $0xbc8] sm:$0xff] }
 0x5ef   : > { %7448 = vmatprep.subr.bf16.mxu1 %v15240_v39  ;;  %v15358_v39 = vcombine.high %v4488_v23, %v4492_v24  ;;  %v4461_v41 = vld [vmem:[#allocation13 + $0xbe8] sm:$0xff]  ;;  %v15319_v18 = vcombine.low %v4449_v2, %v4453_v62 }
 0x5f0   : > { %v4465_v23 = vld [vmem:[#allocation13 + $0xc08] sm:$0xff] }
 0x5f1   : > { %7303 = vmatpush1.bf16.msra.mxu0 %v15309_v48  ;;  %v4429_v48 = vld [vmem:[#allocation13 + $0xae8] sm:$0xff] }
 0x5f2   : > { %7449 = vmatpush1.bf16.msra.mxu1 %v15239_v10  ;;  %7304 = vmatprep.subr.bf16.mxu0 %v15318_v50  ;;  %v15287_v10 = vcombine.low %v4417_v25, %v4421_v26  ;;  %v15366_v50 = vcombine.high %v4496_v45, %v4500_v28  ;;  %v15295_v52 = vcombine.low %v4425_v47, %v4429_v48  ;;  %v4469_v24 = vld [vmem:[#allocation13 + $0xc28] sm:$0xff] }
 0x5f3   : > { %7450 = vmatprep.subr.bf16.mxu1 %v15248_v34  ;;  %v15296_v34 = vcombine.high %v4425_v47, %v4429_v48  ;;  %v15327_v26 = vcombine.low %v4457_v11, %v4461_v41  ;;  %v15335_v48 = vcombine.low %v4465_v23, %v4469_v24 }
 0x5f5   : > { %7305 = vmatpush1.bf16.msra.mxu0 %v15317_v29  ;;  %v15365_v29 = vcombine.low %v4496_v45, %v4500_v28  ;;  %v4473_v45 = vld [vmem:[#allocation13 + $0xc48] sm:$0xff] }
 0x5f6   : > { %7451 = vmatpush1.bf16.msra.mxu1 %v15247_v53  ;;  %7306 = vmatprep.subr.bf16.mxu0 %v15326_v55  ;;  %v15374_v53 = vcombine.high %v4504_v35, %v4508_v38  ;;  %v15304_v55 = vcombine.high %v4433_v42, %v4437_v51  ;;  %v4477_v28 = vld [vmem:[#allocation13 + $0xc68] sm:$0xff] }
 0x5f7   : > { %7452 = vmatprep.subr.bf16.mxu1 %v15256_v36  ;;  %v4512_v36 = vld [vmem:[#allocation13 + $0xd80] sm:$0xff]  ;;  %v4481_v35 = vld [vmem:[#allocation13 + $0xc88] sm:$0xff] }
 0x5f8   : > { %v15382_v58 = vcombine.high %v4512_v36, %v4516_v27  ;;  %v15381_v0 = vcombine.low %v4512_v36, %v4516_v27  ;;  %v4485_v38 = vld [vmem:[#allocation13 + $0xca8] sm:$0xff] }
 0x5f9   : > { %7307 = vmatpush1.bf16.msra.mxu0 %v15325_v57  ;;  %v15303_v57 = vcombine.low %v4433_v42, %v4437_v51  ;;  %v15343_v51 = vcombine.low %v4473_v45, %v4477_v28  ;;  %v4489_v36 = vld [vmem:[#allocation13 + $0xcc8] sm:$0xff] }
 0x5fa   : > { %7453 = vmatpush1.bf16.msra.mxu1 %v15255_v59  ;;  %7317 = vmatprep.subr.bf16.mxu0 %v15334_v60  ;;  %v15312_v59 = vcombine.high %v4441_v30, %v4445_v40  ;;  %v4520_v60 = vld [vmem:[#allocation13 + $0xdc0] sm:$0xff]  ;;  %v4493_v27 = vld [vmem:[#allocation13 + $0xce8] sm:$0xff]  ;;  %v15351_v40 = vcombine.low %v4481_v35, %v4485_v38 }
 0x5fb   : > { %7454 = vmatprep.subr.bf16.mxu1 %v15264_v61  ;;  %v4524_v61 = vld [vmem:[#allocation13 + $0xde0] sm:$0xff] }
 0x5fc   : > { %7309 = vmatmul.mubr.bf16.vlgmr.msra.gmra.mrb[8].mxu0 %v19247_v5  ;;  %v15389_v14 = vcombine.low %v4520_v60, %v4524_v61 }
 0x5fd   : > { %7318 = vmatpush1.bf16.msra.mxu0 %v15333_v4  ;;  %v15390_v4 = vcombine.high %v4520_v60, %v4524_v61  ;;  %v4497_v60 = vld [vmem:[#allocation13 + $0xd08] sm:$0xff] }
 0x5fe   : > { %7455 = vmatpush1.bf16.msra.mxu1 %v15263_v6  ;;  %7319 = vmatprep.subr.bf16.mxu0 %v15342_v8  ;;  %v15320_v6 = vcombine.high %v4449_v2, %v4453_v62  ;;  %v4528_v8 = vld [vmem:[#allocation13 + $0xe00] sm:$0xff]  ;;  %v4501_v61 = vld [vmem:[#allocation13 + $0xd28] sm:$0xff]  ;;  %v15359_v62 = vcombine.low %v4489_v36, %v4493_v27 }
 0x5ff   : > { %7456 = vmatprep.subr.bf16.mxu1 %v15272_v9  ;;  %v4532_v9 = vld [vmem:[#allocation13 + $0xe20] sm:$0xff] }
 0x600   : > { %v15397_v25 = vcombine.low %v4528_v8, %v4532_v9 }
 0x601   : > { %7320 = vmatpush1.bf16.msra.mxu0 %v15341_v19  ;;  %v15398_v19 = vcombine.high %v4528_v8, %v4532_v9  ;;  %v19252_v8 = vsub.s32 6, %v19073_v13  ;;  %v4505_v9 = vld [vmem:[#allocation13 + $0xd48] sm:$0xff] }
 0x602   : > { %7457 = vmatpush1.bf16.msra.mxu1 %v15271_v21  ;;  %7321 = vmatprep.subr.bf16.mxu0 %v15350_v12  ;;  %v15328_v21 = vcombine.high %v4457_v11, %v4461_v41  ;;  %v4536_v12 = vld [vmem:[#allocation13 + $0xe40] sm:$0xff]  ;;  %v4509_v11 = vld [vmem:[#allocation13 + $0xd68] sm:$0xff] }
 0x603   : > { %7458 = vmatprep.subr.bf16.mxu1 %v15280_v22  ;;  %v4540_v22 = vld [vmem:[#allocation13 + $0xe60] sm:$0xff] }
 0x604   : > { %v15405_v47 = vcombine.low %v4536_v12, %v4540_v22 }
 0x605   : > { %7322 = vmatpush1.bf16.msra.mxu0 %v15349_v33  ;;  %v15406_v33 = vcombine.high %v4536_v12, %v4540_v22  ;;  %v4584_v12 = vld [vmem:[#allocation13 + $0xfc0] sm:$0xff] }
 0x606   : > { %7459 = vmatpush1.bf16.msra.mxu1 %v15279_v37  ;;  %7323 = vmatprep.subr.bf16.mxu0 %v15358_v39  ;;  %v15336_v37 = vcombine.high %v4465_v23, %v4469_v24  ;;  %v4544_v39 = vld [vmem:[#allocation13 + $0xe80] sm:$0xff]  ;;  %v18258_v23 = vld [vmem:[#allocation12] sm:$0xff] }
 0x607   : > { %7460 = vmatprep.subr.bf16.mxu1 %v15288_v44  ;;  %v4548_v44 = vld [vmem:[#allocation13 + $0xea0] sm:$0xff]  ;;  %v2443_v24 = vrot.slane %v18258_v23, %v19252_v8 }
 0x608   : > { %v15413_v42 = vcombine.low %v4544_v39, %v4548_v44  ;;  %v4588_v22 = vld [vmem:[#allocation13 + $0xfe0] sm:$0xff] }
 0x609   : > { %7324 = vmatpush1.bf16.msra.mxu0 %v15357_v49  ;;  %v15414_v49 = vcombine.high %v4544_v39, %v4548_v44  ;;  %v15454_v39 = vcombine.high %v4584_v12, %v4588_v22 }
 0x60a   : > { %7461 = vmatpush1.bf16.msra.mxu1 %v15287_v10  ;;  %7325 = vmatprep.subr.bf16.mxu0 %v15366_v50  ;;  %v15344_v10 = vcombine.high %v4473_v45, %v4477_v28  ;;  %v4552_v50 = vld [vmem:[#allocation13 + $0xec0] sm:$0xff]  ;;  %v4082_v28 = vld [vmem:[#allocation13 + $0x10] sm:$0xff] }
 0x60b   : > { %7462 = vmatprep.subr.bf16.mxu1 %v15296_v34  ;;  %v4556_v34 = vld [vmem:[#allocation13 + $0xee0] sm:$0xff] }
 0x60c   : > { %v15421_v30 = vcombine.low %v4552_v50, %v4556_v34 }
 0x60d   : > { %7326 = vmatpush1.bf16.msra.mxu0 %v15365_v29  ;;  %v15422_v29 = vcombine.high %v4552_v50, %v4556_v34  ;;  %v15453_v34 = vcombine.low %v4584_v12, %v4588_v22 }
 0x60e   : > { %7463 = vmatpush1.bf16.msra.mxu1 %v15295_v52  ;;  %7327 = vmatprep.subr.bf16.mxu0 %v15374_v53  ;;  %v15352_v52 = vcombine.high %v4481_v35, %v4485_v38  ;;  %v4560_v53 = vld [vmem:[#allocation13 + $0xf00] sm:$0xff]  ;;  %v4521_v35 = vld [vmem:[#allocation13 + $0xdc8] sm:$0xff] }
 0x60f   : > { %7464 = vmatprep.subr.bf16.mxu1 %v15304_v55  ;;  %v4564_v55 = vld [vmem:[#allocation13 + $0xf20] sm:$0xff]  ;;  %v4525_v38 = vld [vmem:[#allocation13 + $0xde8] sm:$0xff] }
 0x610   : > { %v15429_v2 = vcombine.low %v4560_v53, %v4564_v55 }
 0x611   : > { %7328 = vmatpush1.bf16.msra.mxu0 %v15373_v54  ;;  %v15430_v54 = vcombine.high %v4560_v53, %v4564_v55  ;;  %v4090_v55 = vld [vmem:[#allocation13 + $0x50] sm:$0xff] }
 0x612   : > { %7465 = vmatpush1.bf16.msra.mxu1 %v15303_v57  ;;  %7329 = vmatprep.subr.bf16.mxu0 %v15382_v58  ;;  %v15360_v57 = vcombine.high %v4489_v36, %v4493_v27  ;;  %v4568_v58 = vld [vmem:[#allocation13 + $0xf40] sm:$0xff]  ;;  %v4094_v36 = vld [vmem:[#allocation13 + $0x70] sm:$0xff]  ;;  %v15392_v27 = vcombine.high %v4521_v35, %v4525_v38 }
 0x613   : > { %7466 = vmatprep.subr.bf16.mxu1 %v15312_v59  ;;  %v4572_v59 = vld [vmem:[#allocation13 + $0xf60] sm:$0xff] }
 0x614   : > { %v15437_v41 = vcombine.low %v4568_v58, %v4572_v59 }
 0x615   : > { %7330 = vmatpush1.bf16.msra.mxu0 %v15381_v0  ;;  %v15438_v0 = vcombine.high %v4568_v58, %v4572_v59  ;;  %v15391_v59 = vcombine.low %v4521_v35, %v4525_v38  ;;  %v4130_v38 = vld [vmem:[#allocation13 + $0x190] sm:$0xff] }
 0x616   : > { %7467 = vmatpush1.bf16.msra.mxu1 %v15311_v3  ;;  %7331 = vmatprep.subr.bf16.mxu0 %v15390_v4  ;;  %v15368_v3 = vcombine.high %v4497_v60, %v4501_v61  ;;  %v4576_v4 = vld [vmem:[#allocation13 + $0xf80] sm:$0xff] }
 0x617   : > { %7468 = vmatprep.subr.bf16.mxu1 %v15320_v6  ;;  %v4580_v6 = vld [vmem:[#allocation13 + $0xfa0] sm:$0xff] }
 0x619   : > { %7332 = vmatpush1.bf16.msra.mxu0 %v15389_v14  ;;  %v19255_v14 = vsub.s32 7, %v19073_v13  ;;  %v15375_v13 = vcombine.low %v4505_v9, %v4509_v11 }
 0x61a   : > { %7469 = vmatpush1.bf16.msra.mxu1 %v15319_v18  ;;  %7333 = vmatprep.subr.bf16.mxu0 %v15398_v19  ;;  %v15367_v18 = vcombine.low %v4497_v60, %v4501_v61  ;;  %v15446_v19 = vcombine.high %v4576_v4, %v4580_v6  ;;  %v14962_v60 = vcombine.high %v4090_v55, %v4094_v36 }
 0x61b   : > { %7470 = vmatprep.subr.bf16.mxu1 %v15328_v21  ;;  %v15376_v21 = vcombine.high %v4505_v9, %v4509_v11 }
 0x61d   : > { %7334 = vmatpush1.bf16.msra.mxu0 %v15397_v25  ;;  %v4513_v25 = vld [vmem:[#allocation13 + $0xd88] sm:$0xff] }
 0x61e   : > { %7471 = vmatpush1.bf16.msra.mxu1 %v15327_v26  ;;  %7335 = vmatprep.subr.bf16.mxu0 %v15406_v33  ;;  %v4517_v26 = vld [vmem:[#allocation13 + $0xda8] sm:$0xff]  ;;  %v15445_v33 = vcombine.low %v4576_v4, %v4580_v6  ;;  %v14961_v4 = vcombine.low %v4090_v55, %v4094_v36 }
 0x61f   : > { %7481 = vmatprep.subr.bf16.mxu1 %v15336_v37  ;;  %v2447_v37 = vrot.slane %v18258_v23, %v19255_v14  ;;  %v15384_v45 = vcombine.high %v4513_v25, %v4517_v26 }
 0x621   : > { %7336 = vmatpush1.bf16.msra.mxu0 %v15405_v47  ;;  %7473 = vmatmul.mubr.bf16.vlgmr.msra.gmra.mrb[20].mxu1 %v19247_v5  ;;  %v4086_v47 = vld [vmem:[#allocation13 + $0x30] sm:$0xff] }
 0x622   : > { %7482 = vmatpush1.bf16.msra.mxu1 %v15335_v48  ;;  %7337 = vmatprep.subr.bf16.mxu0 %v15414_v49 }
 0x623   : > { %7483 = vmatprep.subr.bf16.mxu1 %v15344_v10 }
 0x625   : > { %7338 = vmatpush1.bf16.msra.mxu0 %v15413_v42 }
 0x626   : > { %7484 = vmatpush1.bf16.msra.mxu1 %v15343_v51  ;;  %7339 = vmatprep.subr.bf16.mxu0 %v15422_v29  ;;  %v15383_v29 = vcombine.low %v4513_v25, %v4517_v26  ;;  %v4114_v25 = vld [vmem:[#allocation13 + $0x110] sm:$0xff] }
 0x627   : > { %7485 = vmatprep.subr.bf16.mxu1 %v15352_v52  ;;  %v14954_v52 = vcombine.high %v4082_v28, %v4086_v47  ;;  %v4118_v26 = vld [vmem:[#allocation13 + $0x130] sm:$0xff] }
 0x629   : > { %7340 = vmatpush1.bf16.msra.mxu0 %v15421_v30  ;;  %v4529_v30 = vld [vmem:[#allocation13 + $0xe08] sm:$0xff] }
 0x62a   : > { %7486 = vmatpush1.bf16.msra.mxu1 %v15351_v40  ;;  %7341 = vmatprep.subr.bf16.mxu0 %v15430_v54  ;;  %v4533_v40 = vld [vmem:[#allocation13 + $0xe28] sm:$0xff] }
 0x62b   : > { %7487 = vmatprep.subr.bf16.mxu1 %v15360_v57  ;;  %v14953_v57 = vcombine.low %v4082_v28, %v4086_v47  ;;  %v15400_v61 = vcombine.high %v4529_v30, %v4533_v40  ;;  %v15399_v6 = vcombine.low %v4529_v30, %v4533_v40  ;;  %v4122_v28 = vld [vmem:[#allocation13 + $0x150] sm:$0xff]  ;;  %v4577_v40 = vld [vmem:[#allocation13 + $0xf88] sm:$0xff] }
 0x62c   : > { %v4126_v47 = vld [vmem:[#allocation13 + $0x170] sm:$0xff] }
 0x62d   : > { %7342 = vmatpush1.bf16.msra.mxu0 %v15429_v2  ;;  %v4098_v2 = vld [vmem:[#allocation13 + $0x90] sm:$0xff] }
 0x62e   : > { %7488 = vmatpush1.bf16.msra.mxu1 %v15359_v62  ;;  %7343 = vmatprep.subr.bf16.mxu0 %v15438_v0  ;;  %v4102_v62 = vld [vmem:[#allocation13 + $0xb0] sm:$0xff]  ;;  %v4537_v0 = vld [vmem:[#allocation13 + $0xe48] sm:$0xff] }
 0x62f   : > { %7489 = vmatprep.subr.bf16.mxu1 %v15368_v3  ;;  %v4541_v3 = vld [vmem:[#allocation13 + $0xe68] sm:$0xff]  ;;  %v14970_v9 = vcombine.high %v4098_v2, %v4102_v62  ;;  %v14969_v12 = vcombine.low %v4098_v2, %v4102_v62  ;;  %v4142_v30 = vld [vmem:[#allocation13 + $0x1f0] sm:$0xff] }
 0x630   : > { %v15408_v11 = vcombine.high %v4537_v0, %v4541_v3  ;;  %v15407_v22 = vcombine.low %v4537_v0, %v4541_v3  ;;  %v4146_v62 = vld [vmem:[#allocation13 + $0x210] sm:$0xff]  ;;  %v4585_v3 = vld [vmem:[#allocation13 + $0xfc8] sm:$0xff] }
 0x631   : > { %7344 = vmatpush1.bf16.msra.mxu0 %v15437_v41  ;;  %v4106_v41 = vld [vmem:[#allocation13 + $0xd0] sm:$0xff] }
 0x632   : > { %7490 = vmatpush1.bf16.msra.mxu1 %v15367_v18  ;;  %7345 = vmatprep.subr.bf16.mxu0 %v15446_v19  ;;  %v4110_v18 = vld [vmem:[#allocation13 + $0xf0] sm:$0xff]  ;;  %v4545_v19 = vld [vmem:[#allocation13 + $0xe88] sm:$0xff] }
 0x633   : > { %v4057_v44 = vpop.f32.mrb[16].mxu1  ;;  %7491 = vmatprep.subr.bf16.mxu1 %v15376_v21  ;;  %v4549_v21 = vld [vmem:[#allocation13 + $0xea8] sm:$0xff]  ;;  %v14978_v23 = vcombine.high %v4106_v41, %v4110_v18  ;;  %v4150_v0 = vld [vmem:[#allocation13 + $0x230] sm:$0xff] }
 0x634   : > { %v16394_v48 = vadd.f32 %v4057_v44, %v2443_v24  ;;  %v4059_v49 = vpop.f32.mrb[17].mxu1  ;;  %v15416_v24 = vcombine.high %v4545_v19, %v4549_v21  ;;  %v14986_v44 = vcombine.high %v4114_v25, %v4118_v26 }
 0x635   : > { %v16395_v10 = vadd.f32 %v4059_v49, %v2447_v37  ;;  %7346 = vmatpush1.bf16.msra.mxu0 %v15445_v33  ;;  %v4061_v50 = vpop.f32.mrb[18].mxu1  ;;  %v4553_v33 = vld [vmem:[#allocation13 + $0xec8] sm:$0xff] }
 0x636   : > { %v4070_v42 = vmax.f32 %v16394_v48, 0.0  ;;  %7492 = vmatpush1.bf16.msra.mxu1 %v15375_v13  ;;  %v4062_v51 = vpop.f32.mrb[19].mxu1  ;;  %7347 = vmatprep.subr.bf16.mxu0 %v15454_v39  ;;  %v4557_v37 = vld [vmem:[#allocation13 + $0xee8] sm:$0xff]  ;;  %v14977_v13 = vcombine.low %v4106_v41, %v4110_v18  ;;  %v15415_v39 = vcombine.low %v4545_v19, %v4549_v21  ;;  %v4154_v18 = vld [vmem:[#allocation13 + $0x250] sm:$0xff]  ;;  %v4083_v21 = vld [vmem:[#allocation13 + $0x18] sm:$0xff] }
 0x637   : > { %v4071_v53 = vmax.f32 %v16395_v10, 0.0  ;;  %7493 = vmatprep.subr.bf16.mxu1 %v15384_v45  ;;  %v15424_v45 = vcombine.high %v4553_v33, %v4557_v37  ;;  %v4561_v48 = vld [vmem:[#allocation13 + $0xf08] sm:$0xff]  ;;  %v14985_v10 = vcombine.low %v4114_v25, %v4118_v26  ;;  %v15423_v50 = vcombine.low %v4553_v33, %v4557_v37  ;;  %v4158_v19 = vld [vmem:[#allocation13 + $0x270] sm:$0xff]  ;;  %v4091_v37 = vld [vmem:[#allocation13 + $0x58] sm:$0xff] }
 0x638   : > { %v19261_v58 = vpack.c.bf16 %v4070_v42, %v4070_v42  ;;  %v4565_v49 = vld [vmem:[#allocation13 + $0xf28] sm:$0xff]  ;;  %v4134_v42 = vld [vmem:[#allocation13 + $0x1b0] sm:$0xff] }
 0x639   : > { %v19259_v54 = vpack.c.bf16 %v4071_v53, %v4071_v53  ;;  %7348 = vmatpush1.bf16.msra.mxu0 %v15453_v34  ;;  %v14994_v34 = vcombine.high %v4122_v28, %v4126_v47  ;;  %v15432_v35 = vcombine.high %v4561_v48, %v4565_v49  ;;  %v4569_v51 = vld [vmem:[#allocation13 + $0xf48] sm:$0xff]  ;;  %v15431_v53 = vcombine.low %v4561_v48, %v4565_v49  ;;  %v4162_v26 = vld [vmem:[#allocation13 + $0x290] sm:$0xff]  ;;  %v4099_v49 = vld [vmem:[#allocation13 + $0x98] sm:$0xff] }
 0x63a   : > { %7494 = vmatpush1.bf16.msra.mxu1 %v15383_v29  ;;  %7522 = vmatprep.subr.bf16.mxu0 %v14954_v52  ;;  %v4573_v29 = vld [vmem:[#allocation13 + $0xf68] sm:$0xff]  ;;  %v14993_v52 = vcombine.low %v4122_v28, %v4126_v47  ;;  %v15002_v55 = vcombine.high %v4130_v38, %v4134_v42  ;;  %v4166_v33 = vld [vmem:[#allocation13 + $0x2b0] sm:$0xff] }
 0x63b   : > { %7349 = vmatprep.mubr.bf16.mxu0 %v19259_v54  ;;  %7513 = vmatprep.mubr.bf16.mxu1 %v19259_v54  ;;  %v15440_v36 = vcombine.high %v4569_v51, %v4573_v29  ;;  %v4170_v47 = vld [vmem:[#allocation13 + $0x2d0] sm:$0xff] }
 0x63c   : > { %7350 = vmatmul.mubr.bf16.vlgmr.msra.gmra.mrb[8].mxu0 %v19261_v58  ;;  %7495 = vmatprep.subr.bf16.mxu1 %v15392_v27  ;;  %v4138_v27 = vld [vmem:[#allocation13 + $0x1d0] sm:$0xff] }
 0x63d   : > { %7523 = vmatpush1.bf16.msra.mxu0 %v14953_v57  ;;  %7554 = vmatprep.mubr.bf16.mxu0 %v19200_v31  ;;  %v4581_v57 = vld [vmem:[#allocation13 + $0xfa8] sm:$0xff]  ;;  %v4174_v48 = vld [vmem:[#allocation13 + $0x2f0] sm:$0xff] }
 0x63e   : > { %7496 = vmatpush1.bf16.msra.mxu1 %v15391_v59  ;;  %7524 = vmatprep.subr.bf16.mxu0 %v14962_v60  ;;  %v15001_v59 = vcombine.low %v4130_v38, %v4134_v42  ;;  %v15439_v60 = vcombine.low %v4569_v51, %v4573_v29  ;;  %v15448_v2 = vcombine.high %v4577_v40, %v4581_v57  ;;  %v4178_v42 = vld [vmem:[#allocation13 + $0x310] sm:$0xff]  ;;  %v4107_v29 = vld [vmem:[#allocation13 + $0xd8] sm:$0xff] }
 0x63f   : > { %7497 = vmatprep.subr.bf16.mxu1 %v15400_v61  ;;  %v15010_v61 = vcombine.high %v4138_v27, %v4142_v30  ;;  %v4182_v51 = vld [vmem:[#allocation13 + $0x330] sm:$0xff] }
 0x641   : > { %7525 = vmatpush1.bf16.msra.mxu0 %v14961_v4  ;;  %v4589_v4 = vld [vmem:[#allocation13 + $0xfe8] sm:$0xff] }
 0x642   : > { %7498 = vmatpush1.bf16.msra.mxu1 %v15399_v6  ;;  %7526 = vmatprep.subr.bf16.mxu0 %v14970_v9  ;;  %v15009_v6 = vcombine.low %v4138_v27, %v4142_v30  ;;  %v15447_v9 = vcombine.low %v4577_v40, %v4581_v57  ;;  %v15456_v41 = vcombine.high %v4585_v3, %v4589_v4  ;;  %v4186_v30 = vld [vmem:[#allocation13 + $0x350] sm:$0xff]  ;;  %v4119_v57 = vld [vmem:[#allocation13 + $0x138] sm:$0xff] }
 0x643   : > { %7499 = vmatprep.subr.bf16.mxu1 %v15408_v11  ;;  %v15018_v11 = vcombine.high %v4146_v62, %v4150_v0  ;;  %v4190_v40 = vld [vmem:[#allocation13 + $0x370] sm:$0xff] }
 0x645   : > { %7527 = vmatpush1.bf16.msra.mxu0 %v14969_v12  ;;  %v4087_v12 = vld [vmem:[#allocation13 + $0x38] sm:$0xff] }
 0x646   : > { %7500 = vmatpush1.bf16.msra.mxu1 %v15407_v22  ;;  %7528 = vmatprep.subr.bf16.mxu0 %v14978_v23  ;;  %v15017_v22 = vcombine.low %v4146_v62, %v4150_v0  ;;  %v15455_v23 = vcombine.low %v4585_v3, %v4589_v4  ;;  %v14956_v25 = vcombine.high %v4083_v21, %v4087_v12  ;;  %v4194_v62 = vld [vmem:[#allocation13 + $0x390] sm:$0xff]  ;;  %v4123_v3 = vld [vmem:[#allocation13 + $0x158] sm:$0xff] }
 0x647   : > { %7501 = vmatprep.subr.bf16.mxu1 %v15416_v24  ;;  %v15026_v24 = vcombine.high %v4154_v18, %v4158_v19  ;;  %v4198_v0 = vld [vmem:[#allocation13 + $0x3b0] sm:$0xff]  ;;  %v4127_v4 = vld [vmem:[#allocation13 + $0x178] sm:$0xff] }
 0x649   : > { %7529 = vmatpush1.bf16.msra.mxu0 %v14977_v13  ;;  %v4095_v13 = vld [vmem:[#allocation13 + $0x78] sm:$0xff] }
 0x64a   : > { %7502 = vmatpush1.bf16.msra.mxu1 %v15415_v39  ;;  %7530 = vmatprep.subr.bf16.mxu0 %v14986_v44  ;;  %v15025_v39 = vcombine.low %v4154_v18, %v4158_v19  ;;  %v14955_v44 = vcombine.low %v4083_v21, %v4087_v12  ;;  %v14964_v28 = vcombine.high %v4091_v37, %v4095_v13  ;;  %v4202_v18 = vld [vmem:[#allocation13 + $0x3d0] sm:$0xff]  ;;  %v4131_v21 = vld [vmem:[#allocation13 + $0x198] sm:$0xff] }
 0x64b   : > { %7503 = vmatprep.subr.bf16.mxu1 %v15424_v45  ;;  %v15034_v45 = vcombine.high %v4162_v26, %v4166_v33  ;;  %v4206_v19 = vld [vmem:[#allocation13 + $0x3f0] sm:$0xff]  ;;  %v4135_v12 = vld [vmem:[#allocation13 + $0x1b8] sm:$0xff] }
 0x64d   : > { %7531 = vmatpush1.bf16.msra.mxu0 %v14985_v10  ;;  %v4103_v10 = vld [vmem:[#allocation13 + $0xb8] sm:$0xff] }
 0x64e   : > { %7504 = vmatpush1.bf16.msra.mxu1 %v15423_v50  ;;  %7532 = vmatprep.subr.bf16.mxu0 %v14994_v34  ;;  %v15033_v50 = vcombine.low %v4162_v26, %v4166_v33  ;;  %v14963_v34 = vcombine.low %v4091_v37, %v4095_v13  ;;  %v14972_v38 = vcombine.high %v4099_v49, %v4103_v10  ;;  %v4210_v26 = vld [vmem:[#allocation13 + $0x410] sm:$0xff]  ;;  %v4139_v37 = vld [vmem:[#allocation13 + $0x1d8] sm:$0xff] }
 0x64f   : > { %7505 = vmatprep.subr.bf16.mxu1 %v15432_v35  ;;  %v15042_v35 = vcombine.high %v4170_v47, %v4174_v48  ;;  %v4214_v33 = vld [vmem:[#allocation13 + $0x430] sm:$0xff]  ;;  %v4143_v13 = vld [vmem:[#allocation13 + $0x1f8] sm:$0xff] }
 0x651   : > { %7533 = vmatpush1.bf16.msra.mxu0 %v14993_v52  ;;  %v4111_v52 = vld [vmem:[#allocation13 + $0xf8] sm:$0xff] }
 0x652   : > { %7506 = vmatpush1.bf16.msra.mxu1 %v15431_v53  ;;  %7534 = vmatprep.subr.bf16.mxu0 %v15002_v55  ;;  %v15041_v53 = vcombine.low %v4170_v47, %v4174_v48  ;;  %v14971_v55 = vcombine.low %v4099_v49, %v4103_v10  ;;  %v14980_v27 = vcombine.high %v4107_v29, %v4111_v52  ;;  %v4218_v47 = vld [vmem:[#allocation13 + $0x450] sm:$0xff]  ;;  %v4147_v49 = vld [vmem:[#allocation13 + $0x218] sm:$0xff] }
 0x653   : > { %7507 = vmatprep.subr.bf16.mxu1 %v15440_v36  ;;  %v15050_v36 = vcombine.high %v4178_v42, %v4182_v51  ;;  %v4222_v48 = vld [vmem:[#allocation13 + $0x470] sm:$0xff]  ;;  %v4151_v10 = vld [vmem:[#allocation13 + $0x238] sm:$0xff] }
 0x655   : > { %7535 = vmatpush1.bf16.msra.mxu0 %v15001_v59  ;;  %v15049_v59 = vcombine.low %v4178_v42, %v4182_v51  ;;  %v4226_v42 = vld [vmem:[#allocation13 + $0x490] sm:$0xff] }
 0x656   : > { %7508 = vmatpush1.bf16.msra.mxu1 %v15439_v60  ;;  %7536 = vmatprep.subr.bf16.mxu0 %v15010_v61  ;;  %v14979_v60 = vcombine.low %v4107_v29, %v4111_v52  ;;  %v15058_v61 = vcombine.high %v4186_v30, %v4190_v40  ;;  %v4230_v51 = vld [vmem:[#allocation13 + $0x4b0] sm:$0xff]  ;;  %v4155_v29 = vld [vmem:[#allocation13 + $0x258] sm:$0xff] }
 0x657   : > { %7509 = vmatprep.subr.bf16.mxu1 %v15448_v2  ;;  %v4159_v52 = vld [vmem:[#allocation13 + $0x278] sm:$0xff] }
 0x659   : > { %7537 = vmatpush1.bf16.msra.mxu0 %v15009_v6  ;;  %v15057_v6 = vcombine.low %v4186_v30, %v4190_v40  ;;  %v4234_v30 = vld [vmem:[#allocation13 + $0x4d0] sm:$0xff] }
 0x65a   : > { %7510 = vmatpush1.bf16.msra.mxu1 %v15447_v9  ;;  %7538 = vmatprep.subr.bf16.mxu0 %v15018_v11  ;;  %v15066_v11 = vcombine.high %v4194_v62, %v4198_v0  ;;  %v4238_v40 = vld [vmem:[#allocation13 + $0x4f0] sm:$0xff] }
 0x65b   : > { %7511 = vmatprep.subr.bf16.mxu1 %v15456_v41  ;;  %v14996_v41 = vcombine.high %v4123_v3, %v4127_v4 }
 0x65d   : > { %7539 = vmatpush1.bf16.msra.mxu0 %v15017_v22  ;;  %v15065_v22 = vcombine.low %v4194_v62, %v4198_v0  ;;  %v4242_v62 = vld [vmem:[#allocation13 + $0x510] sm:$0xff] }
 0x65e   : > { %7512 = vmatpush1.bf16.msra.mxu1 %v15455_v23  ;;  %7540 = vmatprep.subr.bf16.mxu0 %v15026_v24  ;;  %v14995_v23 = vcombine.low %v4123_v3, %v4127_v4  ;;  %v15074_v24 = vcombine.high %v4202_v18, %v4206_v19  ;;  %v4246_v0 = vld [vmem:[#allocation13 + $0x530] sm:$0xff]  ;;  %v4171_v3 = vld [vmem:[#allocation13 + $0x2d8] sm:$0xff] }
 0x65f   : > { %7686 = vmatprep.subr.bf16.mxu1 %v14956_v25  ;;  %v15004_v25 = vcombine.high %v4131_v21, %v4135_v12  ;;  %v4175_v4 = vld [vmem:[#allocation13 + $0x2f8] sm:$0xff] }
 0x661   : > { %7514 = vmatmul.mubr.bf16.vlgmr.msra.gmra.mrb[20].mxu1 %v19261_v58  ;;  %7541 = vmatpush1.bf16.msra.mxu0 %v15025_v39  ;;  %v15073_v39 = vcombine.low %v4202_v18, %v4206_v19  ;;  %v4250_v18 = vld [vmem:[#allocation13 + $0x550] sm:$0xff] }
 0x662   : > { %7687 = vmatpush1.bf16.msra.mxu1 %v14955_v44  ;;  %7718 = vmatprep.mubr.bf16.mxu1 %v19200_v31  ;;  %v4115_v31 = vld [vmem:[#allocation13 + $0x118] sm:$0xff]  ;;  %v15003_v44 = vcombine.low %v4131_v21, %v4135_v12  ;;  %v4254_v19 = vld [vmem:[#allocation13 + $0x570] sm:$0xff] }
 0x663   : > { %7542 = vmatprep.subr.bf16.mxu0 %v15034_v45  ;;  %7688 = vmatprep.subr.bf16.mxu1 %v14964_v28  ;;  %v14988_v2 = vcombine.high %v4115_v31, %v4119_v57  ;;  %v14987_v9 = vcombine.low %v4115_v31, %v4119_v57  ;;  %v15082_v45 = vcombine.high %v4210_v26, %v4214_v33  ;;  %v4163_v31 = vld [vmem:[#allocation13 + $0x298] sm:$0xff] }
 0x664   : > { %v15012_v28 = vcombine.high %v4139_v37, %v4143_v13  ;;  %v4167_v57 = vld [vmem:[#allocation13 + $0x2b8] sm:$0xff] }
 0x665   : > { %7543 = vmatpush1.bf16.msra.mxu0 %v15033_v50  ;;  %v15081_v50 = vcombine.low %v4210_v26, %v4214_v33  ;;  %v4179_v21 = vld [vmem:[#allocation13 + $0x318] sm:$0xff]  ;;  %v4258_v26 = vld [vmem:[#allocation13 + $0x590] sm:$0xff] }
 0x666   : > { %7689 = vmatpush1.bf16.msra.mxu1 %v14963_v34  ;;  %7544 = vmatprep.subr.bf16.mxu0 %v15042_v35  ;;  %v15011_v34 = vcombine.low %v4139_v37, %v4143_v13  ;;  %v15090_v35 = vcombine.high %v4218_v47, %v4222_v48  ;;  %v4183_v12 = vld [vmem:[#allocation13 + $0x338] sm:$0xff]  ;;  %v4262_v33 = vld [vmem:[#allocation13 + $0x5b0] sm:$0xff] }
 0x667   : > { %7690 = vmatprep.subr.bf16.mxu1 %v14972_v38  ;;  %v15020_v38 = vcombine.high %v4147_v49, %v4151_v10  ;;  %v4187_v37 = vld [vmem:[#allocation13 + $0x358] sm:$0xff] }
 0x668   : > { %v4191_v13 = vld [vmem:[#allocation13 + $0x378] sm:$0xff] }
 0x669   : > { %7545 = vmatpush1.bf16.msra.mxu0 %v15041_v53  ;;  %v15089_v53 = vcombine.low %v4218_v47, %v4222_v48  ;;  %v4266_v47 = vld [vmem:[#allocation13 + $0x5d0] sm:$0xff] }
 0x66a   : > { %7691 = vmatpush1.bf16.msra.mxu1 %v14971_v55  ;;  %7546 = vmatprep.subr.bf16.mxu0 %v15050_v36  ;;  %v15019_v55 = vcombine.low %v4147_v49, %v4151_v10  ;;  %v15098_v36 = vcombine.high %v4226_v42, %v4230_v51  ;;  %v4270_v48 = vld [vmem:[#allocation13 + $0x5f0] sm:$0xff]  ;;  %v4195_v49 = vld [vmem:[#allocation13 + $0x398] sm:$0xff] }
 0x66b   : > { %7692 = vmatprep.subr.bf16.mxu1 %v14980_v27  ;;  %v15028_v27 = vcombine.high %v4155_v29, %v4159_v52  ;;  %v4199_v10 = vld [vmem:[#allocation13 + $0x3b8] sm:$0xff] }
 0x66d   : > { %7547 = vmatpush1.bf16.msra.mxu0 %v15049_v59  ;;  %v15097_v59 = vcombine.low %v4226_v42, %v4230_v51  ;;  %v4274_v42 = vld [vmem:[#allocation13 + $0x610] sm:$0xff] }
 0x66e   : > { %7693 = vmatpush1.bf16.msra.mxu1 %v14979_v60  ;;  %7548 = vmatprep.subr.bf16.mxu0 %v15058_v61  ;;  %v15027_v60 = vcombine.low %v4155_v29, %v4159_v52  ;;  %v15106_v61 = vcombine.high %v4234_v30, %v4238_v40  ;;  %v4278_v51 = vld [vmem:[#allocation13 + $0x630] sm:$0xff]  ;;  %v4203_v29 = vld [vmem:[#allocation13 + $0x3d8] sm:$0xff] }
 0x66f   : > { %7694 = vmatprep.subr.bf16.mxu1 %v14988_v2  ;;  %v15036_v2 = vcombine.high %v4163_v31, %v4167_v57  ;;  %v4207_v52 = vld [vmem:[#allocation13 + $0x3f8] sm:$0xff] }
 0x671   : > { %7549 = vmatpush1.bf16.msra.mxu0 %v15057_v6  ;;  %v15105_v6 = vcombine.low %v4234_v30, %v4238_v40  ;;  %v4282_v30 = vld [vmem:[#allocation13 + $0x650] sm:$0xff] }
 0x672   : > { %7695 = vmatpush1.bf16.msra.mxu1 %v14987_v9  ;;  %7550 = vmatprep.subr.bf16.mxu0 %v15066_v11  ;;  %v15035_v9 = vcombine.low %v4163_v31, %v4167_v57  ;;  %v15114_v11 = vcombine.high %v4242_v62, %v4246_v0  ;;  %v4286_v40 = vld [vmem:[#allocation13 + $0x670] sm:$0xff]  ;;  %v4211_v31 = vld [vmem:[#allocation13 + $0x418] sm:$0xff] }
 0x673   : > { %7696 = vmatprep.subr.bf16.mxu1 %v14996_v41  ;;  %v15044_v41 = vcombine.high %v4171_v3, %v4175_v4  ;;  %v4215_v57 = vld [vmem:[#allocation13 + $0x438] sm:$0xff] }
 0x675   : > { %7551 = vmatpush1.bf16.msra.mxu0 %v15065_v22  ;;  %v15113_v22 = vcombine.low %v4242_v62, %v4246_v0  ;;  %v4290_v62 = vld [vmem:[#allocation13 + $0x690] sm:$0xff] }
 0x676   : > { %7697 = vmatpush1.bf16.msra.mxu1 %v14995_v23  ;;  %7552 = vmatprep.subr.bf16.mxu0 %v15074_v24  ;;  %v15043_v23 = vcombine.low %v4171_v3, %v4175_v4  ;;  %v15122_v24 = vcombine.high %v4250_v18, %v4254_v19  ;;  %v4294_v0 = vld [vmem:[#allocation13 + $0x6b0] sm:$0xff]  ;;  %v4219_v3 = vld [vmem:[#allocation13 + $0x458] sm:$0xff] }
 0x677   : > { %7698 = vmatprep.subr.bf16.mxu1 %v15004_v25  ;;  %v15052_v25 = vcombine.high %v4179_v21, %v4183_v12  ;;  %v4223_v4 = vld [vmem:[#allocation13 + $0x478] sm:$0xff] }
 0x679   : > { %7553 = vmatpush1.bf16.msra.mxu0 %v15073_v39  ;;  %v15121_v39 = vcombine.low %v4250_v18, %v4254_v19  ;;  %v4298_v18 = vld [vmem:[#allocation13 + $0x6d0] sm:$0xff] }
 0x67a   : > { %7699 = vmatpush1.bf16.msra.mxu1 %v15003_v44  ;;  %7563 = vmatprep.subr.bf16.mxu0 %v15082_v45  ;;  %v15051_v44 = vcombine.low %v4179_v21, %v4183_v12  ;;  %v15130_v45 = vcombine.high %v4258_v26, %v4262_v33  ;;  %v4302_v19 = vld [vmem:[#allocation13 + $0x6f0] sm:$0xff]  ;;  %v4227_v21 = vld [vmem:[#allocation13 + $0x498] sm:$0xff] }
 0x67b   : > { %7700 = vmatprep.subr.bf16.mxu1 %v15012_v28  ;;  %v15060_v28 = vcombine.high %v4187_v37, %v4191_v13  ;;  %v4231_v12 = vld [vmem:[#allocation13 + $0x4b8] sm:$0xff] }
 0x67c   : > { %7555 = vmatmul.mubr.bf16.vlgmr.msra.gmra.mrb[12].mxu0 %v19202_v17 }
 0x67d   : > { %7564 = vmatpush1.bf16.msra.mxu0 %v15081_v50  ;;  %7595 = vmatprep.mubr.bf16.mxu0 %v19226_v7  ;;  %v15129_v50 = vcombine.low %v4258_v26, %v4262_v33  ;;  %v4306_v26 = vld [vmem:[#allocation13 + $0x710] sm:$0xff] }
 0x67e   : > { %7701 = vmatpush1.bf16.msra.mxu1 %v15011_v34  ;;  %7565 = vmatprep.subr.bf16.mxu0 %v15090_v35  ;;  %v15059_v34 = vcombine.low %v4187_v37, %v4191_v13  ;;  %v15138_v35 = vcombine.high %v4266_v47, %v4270_v48  ;;  %v4310_v33 = vld [vmem:[#allocation13 + $0x730] sm:$0xff]  ;;  %v4235_v37 = vld [vmem:[#allocation13 + $0x4d8] sm:$0xff] }
 0x67f   : > { %7702 = vmatprep.subr.bf16.mxu1 %v15020_v38  ;;  %v15068_v38 = vcombine.high %v4195_v49, %v4199_v10  ;;  %v4239_v13 = vld [vmem:[#allocation13 + $0x4f8] sm:$0xff] }
 0x681   : > { %7566 = vmatpush1.bf16.msra.mxu0 %v15089_v53  ;;  %v15137_v53 = vcombine.low %v4266_v47, %v4270_v48  ;;  %v4318_v47 = vld [vmem:[#allocation13 + $0x770] sm:$0xff]  ;;  %v4247_v48 = vld [vmem:[#allocation13 + $0x538] sm:$0xff] }
 0x682   : > { %7703 = vmatpush1.bf16.msra.mxu1 %v15019_v55  ;;  %7567 = vmatprep.subr.bf16.mxu0 %v15098_v36  ;;  %v15067_v55 = vcombine.low %v4195_v49, %v4199_v10  ;;  %v15146_v36 = vcombine.high %v4274_v42, %v4278_v51  ;;  %v15177_v49 = vcombine.low %v4306_v26, %v4310_v33 }
 0x683   : > { %7704 = vmatprep.subr.bf16.mxu1 %v15028_v27  ;;  %v15076_v27 = vcombine.high %v4203_v29, %v4207_v52  ;;  %v15107_v10 = vcombine.low %v4235_v37, %v4239_v13 }
 0x685   : > { %7568 = vmatpush1.bf16.msra.mxu0 %v15097_v59  ;;  %v15145_v59 = vcombine.low %v4274_v42, %v4278_v51  ;;  %v4251_v42 = vld [vmem:[#allocation13 + $0x558] sm:$0xff] }
 0x686   : > { %7705 = vmatpush1.bf16.msra.mxu1 %v15027_v60  ;;  %7569 = vmatprep.subr.bf16.mxu0 %v15106_v61  ;;  %v15075_v60 = vcombine.low %v4203_v29, %v4207_v52  ;;  %v15154_v61 = vcombine.high %v4282_v30, %v4286_v40  ;;  %v4255_v51 = vld [vmem:[#allocation13 + $0x578] sm:$0xff] }
 0x687   : > { %7706 = vmatprep.subr.bf16.mxu1 %v15036_v2  ;;  %v15084_v2 = vcombine.high %v4211_v31, %v4215_v57 }
 0x689   : > { %7570 = vmatpush1.bf16.msra.mxu0 %v15105_v6  ;;  %v15153_v6 = vcombine.low %v4282_v30, %v4286_v40  ;;  %v4259_v30 = vld [vmem:[#allocation13 + $0x598] sm:$0xff] }
 0x68a   : > { %7707 = vmatpush1.bf16.msra.mxu1 %v15035_v9  ;;  %7571 = vmatprep.subr.bf16.mxu0 %v15114_v11  ;;  %v15083_v9 = vcombine.low %v4211_v31, %v4215_v57  ;;  %v15162_v11 = vcombine.high %v4290_v62, %v4294_v0  ;;  %v4263_v40 = vld [vmem:[#allocation13 + $0x5b8] sm:$0xff]  ;;  %v15123_v57 = vcombine.low %v4251_v42, %v4255_v51 }
 0x68b   : > { %7708 = vmatprep.subr.bf16.mxu1 %v15044_v41  ;;  %v15092_v41 = vcombine.high %v4219_v3, %v4223_v4 }
 0x68d   : > { %7572 = vmatpush1.bf16.msra.mxu0 %v15113_v22  ;;  %v15161_v22 = vcombine.low %v4290_v62, %v4294_v0  ;;  %v4267_v62 = vld [vmem:[#allocation13 + $0x5d8] sm:$0xff] }
 0x68e   : > { %7709 = vmatpush1.bf16.msra.mxu1 %v15043_v23  ;;  %7573 = vmatprep.subr.bf16.mxu0 %v15122_v24  ;;  %v15091_v23 = vcombine.low %v4219_v3, %v4223_v4  ;;  %v15170_v24 = vcombine.high %v4298_v18, %v4302_v19  ;;  %v4271_v0 = vld [vmem:[#allocation13 + $0x5f8] sm:$0xff]  ;;  %v15131_v4 = vcombine.low %v4259_v30, %v4263_v40 }
 0x68f   : > { %7710 = vmatprep.subr.bf16.mxu1 %v15052_v25  ;;  %v15100_v25 = vcombine.high %v4227_v21, %v4231_v12 }
 0x691   : > { %7574 = vmatpush1.bf16.msra.mxu0 %v15121_v39  ;;  %v15169_v39 = vcombine.low %v4298_v18, %v4302_v19  ;;  %v4275_v18 = vld [vmem:[#allocation13 + $0x618] sm:$0xff] }
 0x692   : > { %7711 = vmatpush1.bf16.msra.mxu1 %v15051_v44  ;;  %7575 = vmatprep.subr.bf16.mxu0 %v15130_v45  ;;  %v15099_v44 = vcombine.low %v4227_v21, %v4231_v12  ;;  %v15178_v45 = vcombine.high %v4306_v26, %v4310_v33  ;;  %v4279_v19 = vld [vmem:[#allocation13 + $0x638] sm:$0xff]  ;;  %v15139_v12 = vcombine.low %v4267_v62, %v4271_v0 }
 0x693   : > { %7712 = vmatprep.subr.bf16.mxu1 %v15060_v28  ;;  %v4314_v28 = vld [vmem:[#allocation13 + $0x750] sm:$0xff]  ;;  %v4283_v26 = vld [vmem:[#allocation13 + $0x658] sm:$0xff] }
 0x694   : > { %v15185_v29 = vcombine.low %v4314_v28, %v4318_v47  ;;  %v4287_v33 = vld [vmem:[#allocation13 + $0x678] sm:$0xff] }
 0x695   : > { %7576 = vmatpush1.bf16.msra.mxu0 %v15129_v50  ;;  %v15186_v50 = vcombine.high %v4314_v28, %v4318_v47  ;;  %v4291_v28 = vld [vmem:[#allocation13 + $0x698] sm:$0xff] }
 0x696   : > { %7713 = vmatpush1.bf16.msra.mxu1 %v15059_v34  ;;  %7577 = vmatprep.subr.bf16.mxu0 %v15138_v35  ;;  %v4322_v35 = vld [vmem:[#allocation13 + $0x790] sm:$0xff]  ;;  %v4295_v47 = vld [vmem:[#allocation13 + $0x6b8] sm:$0xff] }
 0x697   : > { %7714 = vmatprep.subr.bf16.mxu1 %v15068_v38  ;;  %v4326_v38 = vld [vmem:[#allocation13 + $0x7b0] sm:$0xff] }
 0x698   : > { %v15193_v31 = vcombine.low %v4322_v35, %v4326_v38 }
 0x699   : > { %7578 = vmatpush1.bf16.msra.mxu0 %v15137_v53  ;;  %v15194_v53 = vcombine.high %v4322_v35, %v4326_v38  ;;  %v4299_v35 = vld [vmem:[#allocation13 + $0x6d8] sm:$0xff] }
 0x69a   : > { %7715 = vmatpush1.bf16.msra.mxu1 %v15067_v55  ;;  %7579 = vmatprep.subr.bf16.mxu0 %v15146_v36  ;;  %v15124_v55 = vcombine.high %v4251_v42, %v4255_v51  ;;  %v4330_v36 = vld [vmem:[#allocation13 + $0x7d0] sm:$0xff]  ;;  %v4303_v38 = vld [vmem:[#allocation13 + $0x6f8] sm:$0xff]  ;;  %v15163_v51 = vcombine.low %v4291_v28, %v4295_v47 }
 0x69b   : > { %7716 = vmatprep.subr.bf16.mxu1 %v15076_v27  ;;  %v4334_v27 = vld [vmem:[#allocation13 + $0x7f0] sm:$0xff] }
 0x69c   : > { %v15201_v3 = vcombine.low %v4330_v36, %v4334_v27 }
 0x69d   : > { %7580 = vmatpush1.bf16.msra.mxu0 %v15145_v59  ;;  %v15202_v59 = vcombine.high %v4330_v36, %v4334_v27  ;;  %v4307_v36 = vld [vmem:[#allocation13 + $0x718] sm:$0xff] }
 0x69e   : > { %7717 = vmatpush1.bf16.msra.mxu1 %v15075_v60  ;;  %7581 = vmatprep.subr.bf16.mxu0 %v15154_v61  ;;  %v15132_v60 = vcombine.high %v4259_v30, %v4263_v40  ;;  %v4338_v61 = vld [vmem:[#allocation13 + $0x810] sm:$0xff]  ;;  %v4311_v27 = vld [vmem:[#allocation13 + $0x738] sm:$0xff]  ;;  %v15171_v40 = vcombine.low %v4299_v35, %v4303_v38 }
 0x69f   : > { %7727 = vmatprep.subr.bf16.mxu1 %v15084_v2  ;;  %v4342_v2 = vld [vmem:[#allocation13 + $0x830] sm:$0xff] }
 0x6a0   : > { %v15209_v21 = vcombine.low %v4338_v61, %v4342_v2 }
 0x6a1   : > { %7582 = vmatpush1.bf16.msra.mxu0 %v15153_v6  ;;  %7719 = vmatmul.mubr.bf16.vlgmr.msra.gmra.mrb[24].mxu1 %v19202_v17  ;;  %v15108_v17 = vcombine.high %v4235_v37, %v4239_v13  ;;  %v15210_v6 = vcombine.high %v4338_v61, %v4342_v2  ;;  %v15147_v13 = vcombine.low %v4275_v18, %v4279_v19  ;;  %v4315_v61 = vld [vmem:[#allocation13 + $0x758] sm:$0xff] }
 0x6a2   : > { %7728 = vmatpush1.bf16.msra.mxu1 %v15083_v9  ;;  %7759 = vmatprep.mubr.bf16.mxu1 %v19226_v7  ;;  %v4243_v7 = vld [vmem:[#allocation13 + $0x518] sm:$0xff]  ;;  %v15140_v9 = vcombine.high %v4267_v62, %v4271_v0  ;;  %v15179_v0 = vcombine.low %v4307_v36, %v4311_v27 }
 0x6a3   : > { %7583 = vmatprep.subr.bf16.mxu0 %v15162_v11  ;;  %7729 = vmatprep.subr.bf16.mxu1 %v15092_v41  ;;  %v15116_v34 = vcombine.high %v4243_v7, %v4247_v48  ;;  %v15115_v52 = vcombine.low %v4243_v7, %v4247_v48  ;;  %v4346_v11 = vld [vmem:[#allocation13 + $0x850] sm:$0xff]  ;;  %v15155_v48 = vcombine.low %v4283_v26, %v4287_v33  ;;  %v4319_v2 = vld [vmem:[#allocation13 + $0x778] sm:$0xff] }
 0x6a4   : > { %v4350_v41 = vld [vmem:[#allocation13 + $0x870] sm:$0xff] }
 0x6a5   : > { %7584 = vmatpush1.bf16.msra.mxu0 %v15161_v22  ;;  %v15218_v22 = vcombine.high %v4346_v11, %v4350_v41  ;;  %v15217_v37 = vcombine.low %v4346_v11, %v4350_v41  ;;  %v4323_v11 = vld [vmem:[#allocation13 + $0x798] sm:$0xff] }
 0x6a6   : > { %7730 = vmatpush1.bf16.msra.mxu1 %v15091_v23  ;;  %7585 = vmatprep.subr.bf16.mxu0 %v15170_v24  ;;  %v15148_v23 = vcombine.high %v4275_v18, %v4279_v19  ;;  %v4354_v24 = vld [vmem:[#allocation13 + $0x890] sm:$0xff]  ;;  %v4327_v41 = vld [vmem:[#allocation13 + $0x7b8] sm:$0xff]  ;;  %v15187_v19 = vcombine.low %v4315_v61, %v4319_v2 }
 0x6a7   : > { %7731 = vmatprep.subr.bf16.mxu1 %v15100_v25  ;;  %v4358_v25 = vld [vmem:[#allocation13 + $0x8b0] sm:$0xff] }
 0x6a8   : > { %v15225_v7 = vcombine.low %v4354_v24, %v4358_v25 }
 0x6a9   : > { %7586 = vmatpush1.bf16.msra.mxu0 %v15169_v39  ;;  %v15226_v39 = vcombine.high %v4354_v24, %v4358_v25  ;;  %v4331_v24 = vld [vmem:[#allocation13 + $0x7d8] sm:$0xff] }
 0x6aa   : > { %7732 = vmatpush1.bf16.msra.mxu1 %v15099_v44  ;;  %7587 = vmatprep.subr.bf16.mxu0 %v15178_v45  ;;  %v15156_v44 = vcombine.high %v4283_v26, %v4287_v33  ;;  %v4362_v45 = vld [vmem:[#allocation13 + $0x8d0] sm:$0xff]  ;;  %v4335_v25 = vld [vmem:[#allocation13 + $0x7f8] sm:$0xff]  ;;  %v15195_v33 = vcombine.low %v4323_v11, %v4327_v41 }
 0x6ab   : > { %7733 = vmatprep.subr.bf16.mxu1 %v15108_v17  ;;  %v4366_v17 = vld [vmem:[#allocation13 + $0x8f0] sm:$0xff] }
 0x6ac   : > { %v15233_v42 = vcombine.low %v4362_v45, %v4366_v17 }
 0x6ad   : > { %7588 = vmatpush1.bf16.msra.mxu0 %v15177_v49  ;;  %v15234_v49 = vcombine.high %v4362_v45, %v4366_v17  ;;  %v4339_v45 = vld [vmem:[#allocation13 + $0x818] sm:$0xff] }
 0x6ae   : > { %7734 = vmatpush1.bf16.msra.mxu1 %v15107_v10  ;;  %7589 = vmatprep.subr.bf16.mxu0 %v15186_v50  ;;  %v15164_v10 = vcombine.high %v4291_v28, %v4295_v47  ;;  %v4370_v50 = vld [vmem:[#allocation13 + $0x910] sm:$0xff]  ;;  %v4343_v17 = vld [vmem:[#allocation13 + $0x838] sm:$0xff]  ;;  %v15203_v47 = vcombine.low %v4331_v24, %v4335_v25 }
 0x6af   : > { %7735 = vmatprep.subr.bf16.mxu1 %v15116_v34  ;;  %v4374_v34 = vld [vmem:[#allocation13 + $0x930] sm:$0xff] }
 0x6b0   : > { %v15241_v30 = vcombine.low %v4370_v50, %v4374_v34 }
 0x6b1   : > { %7590 = vmatpush1.bf16.msra.mxu0 %v15185_v29  ;;  %v15242_v29 = vcombine.high %v4370_v50, %v4374_v34  ;;  %v4347_v50 = vld [vmem:[#allocation13 + $0x858] sm:$0xff] }
 0x6b2   : > { %7736 = vmatpush1.bf16.msra.mxu1 %v15115_v52  ;;  %7591 = vmatprep.subr.bf16.mxu0 %v15194_v53  ;;  %v15172_v52 = vcombine.high %v4299_v35, %v4303_v38  ;;  %v4378_v53 = vld [vmem:[#allocation13 + $0x950] sm:$0xff]  ;;  %v4351_v34 = vld [vmem:[#allocation13 + $0x878] sm:$0xff]  ;;  %v15211_v38 = vcombine.low %v4339_v45, %v4343_v17 }
 0x6b3   : > { %7737 = vmatprep.subr.bf16.mxu1 %v15124_v55  ;;  %v4382_v55 = vld [vmem:[#allocation13 + $0x970] sm:$0xff] }
 0x6b4   : > { %v15249_v62 = vcombine.low %v4378_v53, %v4382_v55 }
 0x6b5   : > { %7592 = vmatpush1.bf16.msra.mxu0 %v15193_v31  ;;  %v15250_v31 = vcombine.high %v4378_v53, %v4382_v55  ;;  %v4355_v53 = vld [vmem:[#allocation13 + $0x898] sm:$0xff] }
 0x6b6   : > { %7738 = vmatpush1.bf16.msra.mxu1 %v15123_v57  ;;  %7593 = vmatprep.subr.bf16.mxu0 %v15202_v59  ;;  %v15180_v57 = vcombine.high %v4307_v36, %v4311_v27  ;;  %v4386_v59 = vld [vmem:[#allocation13 + $0x990] sm:$0xff]  ;;  %v4359_v55 = vld [vmem:[#allocation13 + $0x8b8] sm:$0xff]  ;;  %v15219_v27 = vcombine.low %v4347_v50, %v4351_v34 }
 0x6b7   : > { %7739 = vmatprep.subr.bf16.mxu1 %v15132_v60  ;;  %v4390_v60 = vld [vmem:[#allocation13 + $0x9b0] sm:$0xff] }
 0x6b8   : > { %v15257_v18 = vcombine.low %v4386_v59, %v4390_v60 }
 0x6b9   : > { %7594 = vmatpush1.bf16.msra.mxu0 %v15201_v3  ;;  %v15258_v3 = vcombine.high %v4386_v59, %v4390_v60  ;;  %v4363_v59 = vld [vmem:[#allocation13 + $0x8d8] sm:$0xff] }
 0x6ba   : > { %7740 = vmatpush1.bf16.msra.mxu1 %v15131_v4  ;;  %7604 = vmatprep.subr.bf16.mxu0 %v15210_v6  ;;  %v15188_v4 = vcombine.high %v4315_v61, %v4319_v2  ;;  %v4394_v6 = vld [vmem:[#allocation13 + $0x9d0] sm:$0xff]  ;;  %v4367_v60 = vld [vmem:[#allocation13 + $0x8f8] sm:$0xff]  ;;  %v15227_v2 = vcombine.low %v4355_v53, %v4359_v55 }
 0x6bb   : > { %7741 = vmatprep.subr.bf16.mxu1 %v15140_v9  ;;  %v4398_v9 = vld [vmem:[#allocation13 + $0x9f0] sm:$0xff] }
 0x6bc   : > { %7596 = vmatmul.mubr.bf16.vlgmr.msra.gmra.mrb[12].mxu0 %v19228_v43  ;;  %v15265_v26 = vcombine.low %v4394_v6, %v4398_v9 }
 0x6bd   : > { %7605 = vmatpush1.bf16.msra.mxu0 %v15209_v21  ;;  %7636 = vmatprep.mubr.bf16.mxu0 %v19230_v46  ;;  %v15266_v21 = vcombine.high %v4394_v6, %v4398_v9  ;;  %v15235_v9 = vcombine.low %v4363_v59, %v4367_v60 }
 0x6be   : > { %7742 = vmatpush1.bf16.msra.mxu1 %v15139_v12  ;;  %7606 = vmatprep.subr.bf16.mxu0 %v15218_v22  ;;  %v15196_v12 = vcombine.high %v4323_v11, %v4327_v41  ;;  %v4402_v22 = vld [vmem:[#allocation13 + $0xa10] sm:$0xff] }
 0x6bf   : > { %7743 = vmatprep.subr.bf16.mxu1 %v15148_v23  ;;  %v4406_v23 = vld [vmem:[#allocation13 + $0xa30] sm:$0xff] }
 0x6c0   : > { %v15273_v28 = vcombine.low %v4402_v22, %v4406_v23 }
 0x6c1   : > { %7607 = vmatpush1.bf16.msra.mxu0 %v15217_v37  ;;  %v15274_v37 = vcombine.high %v4402_v22, %v4406_v23 }
 0x6c2   : > { %7744 = vmatpush1.bf16.msra.mxu1 %v15147_v13  ;;  %7608 = vmatprep.subr.bf16.mxu0 %v15226_v39  ;;  %v15204_v13 = vcombine.high %v4331_v24, %v4335_v25  ;;  %v4410_v39 = vld [vmem:[#allocation13 + $0xa50] sm:$0xff] }
 0x6c3   : > { %7745 = vmatprep.subr.bf16.mxu1 %v15156_v44  ;;  %v4414_v44 = vld [vmem:[#allocation13 + $0xa70] sm:$0xff] }
 0x6c4   : > { %v15281_v35 = vcombine.low %v4410_v39, %v4414_v44 }
 0x6c5   : > { %7609 = vmatpush1.bf16.msra.mxu0 %v15225_v7  ;;  %v15282_v7 = vcombine.high %v4410_v39, %v4414_v44 }
 0x6c6   : > { %7746 = vmatpush1.bf16.msra.mxu1 %v15155_v48  ;;  %7610 = vmatprep.subr.bf16.mxu0 %v15234_v49  ;;  %v15212_v48 = vcombine.high %v4339_v45, %v4343_v17  ;;  %v4418_v49 = vld [vmem:[#allocation13 + $0xa90] sm:$0xff] }
 0x6c7   : > { %7747 = vmatprep.subr.bf16.mxu1 %v15164_v10  ;;  %v4422_v10 = vld [vmem:[#allocation13 + $0xab0] sm:$0xff] }
 0x6c8   : > { %v15289_v36 = vcombine.low %v4418_v49, %v4422_v10 }
 0x6c9   : > { %7611 = vmatpush1.bf16.msra.mxu0 %v15233_v42  ;;  %v15290_v42 = vcombine.high %v4418_v49, %v4422_v10 }
 0x6ca   : > { %7748 = vmatpush1.bf16.msra.mxu1 %v15163_v51  ;;  %7612 = vmatprep.subr.bf16.mxu0 %v15242_v29  ;;  %v15220_v51 = vcombine.high %v4347_v50, %v4351_v34  ;;  %v4426_v29 = vld [vmem:[#allocation13 + $0xad0] sm:$0xff] }
 0x6cb   : > { %7749 = vmatprep.subr.bf16.mxu1 %v15172_v52  ;;  %v4430_v52 = vld [vmem:[#allocation13 + $0xaf0] sm:$0xff] }
 0x6cc   : > { %v15297_v61 = vcombine.low %v4426_v29, %v4430_v52 }
 0x6cd   : > { %7613 = vmatpush1.bf16.msra.mxu0 %v15241_v30  ;;  %v15298_v30 = vcombine.high %v4426_v29, %v4430_v52 }
 0x6ce   : > { %7750 = vmatpush1.bf16.msra.mxu1 %v15171_v40  ;;  %7614 = vmatprep.subr.bf16.mxu0 %v15250_v31  ;;  %v15228_v40 = vcombine.high %v4355_v53, %v4359_v55  ;;  %v4434_v31 = vld [vmem:[#allocation13 + $0xb10] sm:$0xff] }
 0x6cf   : > { %7751 = vmatprep.subr.bf16.mxu1 %v15180_v57  ;;  %v4438_v57 = vld [vmem:[#allocation13 + $0xb30] sm:$0xff] }
 0x6d0   : > { %v15305_v6 = vcombine.low %v4434_v31, %v4438_v57 }
 0x6d1   : > { %7615 = vmatpush1.bf16.msra.mxu0 %v15249_v62  ;;  %v15306_v62 = vcombine.high %v4434_v31, %v4438_v57 }
 0x6d2   : > { %7752 = vmatpush1.bf16.msra.mxu1 %v15179_v0  ;;  %7616 = vmatprep.subr.bf16.mxu0 %v15258_v3  ;;  %v4442_v0 = vld [vmem:[#allocation13 + $0xb50] sm:$0xff] }
 0x6d3   : > { %7753 = vmatprep.subr.bf16.mxu1 %v15188_v4  ;;  %v4446_v3 = vld [vmem:[#allocation13 + $0xb70] sm:$0xff]  ;;  %v4375_v4 = vld [vmem:[#allocation13 + $0x938] sm:$0xff] }
 0x6d4   : > { %v15314_v11 = vcombine.high %v4442_v0, %v4446_v3  ;;  %v15313_v22 = vcombine.low %v4442_v0, %v4446_v3 }
 0x6d5   : > { %7617 = vmatpush1.bf16.msra.mxu0 %v15257_v18  ;;  %v4450_v18 = vld [vmem:[#allocation13 + $0xb90] sm:$0xff] }
 0x6d6   : > { %7754 = vmatpush1.bf16.msra.mxu1 %v15187_v19  ;;  %7618 = vmatprep.subr.bf16.mxu0 %v15266_v21  ;;  %v4454_v19 = vld [vmem:[#allocation13 + $0xbb0] sm:$0xff]  ;;  %v4379_v21 = vld [vmem:[#allocation13 + $0x958] sm:$0xff] }
 0x6d7   : > { %7755 = vmatprep.subr.bf16.mxu1 %v15196_v12  ;;  %v4383_v12 = vld [vmem:[#allocation13 + $0x978] sm:$0xff]  ;;  %v15322_v24 = vcombine.high %v4450_v18, %v4454_v19  ;;  %v15321_v39 = vcombine.low %v4450_v18, %v4454_v19 }
 0x6d8   : > { %v15252_v25 = vcombine.high %v4379_v21, %v4383_v12  ;;  %v15251_v44 = vcombine.low %v4379_v21, %v4383_v12 }
 0x6d9   : > { %7619 = vmatpush1.bf16.msra.mxu0 %v15265_v26  ;;  %v4458_v26 = vld [vmem:[#allocation13 + $0xbd0] sm:$0xff] }
 0x6da   : > { %7756 = vmatpush1.bf16.msra.mxu1 %v15195_v33  ;;  %7620 = vmatprep.subr.bf16.mxu0 %v15274_v37  ;;  %v4462_v33 = vld [vmem:[#allocation13 + $0xbf0] sm:$0xff]  ;;  %v4387_v37 = vld [vmem:[#allocation13 + $0x998] sm:$0xff] }
 0x6db   : > { %7757 = vmatprep.subr.bf16.mxu1 %v15204_v13  ;;  %v4391_v13 = vld [vmem:[#allocation13 + $0x9b8] sm:$0xff]  ;;  %v15330_v45 = vcombine.high %v4458_v26, %v4462_v33  ;;  %v15329_v49 = vcombine.low %v4458_v26, %v4462_v33 }
 0x6dc   : > { %v15260_v17 = vcombine.high %v4387_v37, %v4391_v13  ;;  %v15259_v10 = vcombine.low %v4387_v37, %v4391_v13 }
 0x6dd   : > { %7621 = vmatpush1.bf16.msra.mxu0 %v15273_v28  ;;  %v4466_v28 = vld [vmem:[#allocation13 + $0xc10] sm:$0xff] }
 0x6de   : > { %7758 = vmatpush1.bf16.msra.mxu1 %v15203_v47  ;;  %7622 = vmatprep.subr.bf16.mxu0 %v15282_v7  ;;  %v4470_v47 = vld [vmem:[#allocation13 + $0xc30] sm:$0xff]  ;;  %v4395_v7 = vld [vmem:[#allocation13 + $0x9d8] sm:$0xff] }
 0x6df   : > { %7768 = vmatprep.subr.bf16.mxu1 %v15212_v48  ;;  %v4399_v48 = vld [vmem:[#allocation13 + $0x9f8] sm:$0xff]  ;;  %v15338_v50 = vcombine.high %v4466_v28, %v4470_v47  ;;  %v15337_v29 = vcombine.low %v4466_v28, %v4470_v47 }
 0x6e0   : > { %v15268_v34 = vcombine.high %v4395_v7, %v4399_v48  ;;  %v15267_v52 = vcombine.low %v4395_v7, %v4399_v48 }
 0x6e1   : > { %7623 = vmatpush1.bf16.msra.mxu0 %v15281_v35  ;;  %7760 = vmatmul.mubr.bf16.vlgmr.msra.gmra.mrb[24].mxu1 %v19228_v43  ;;  %v15236_v43 = vcombine.high %v4363_v59, %v4367_v60  ;;  %v4474_v35 = vld [vmem:[#allocation13 + $0xc50] sm:$0xff] }
 0x6e2   : > { %7769 = vmatpush1.bf16.msra.mxu1 %v15211_v38  ;;  %7800 = vmatprep.mubr.bf16.mxu1 %v19230_v46  ;;  %v4371_v46 = vld [vmem:[#allocation13 + $0x918] sm:$0xff]  ;;  %v4478_v38 = vld [vmem:[#allocation13 + $0xc70] sm:$0xff] }
 0x6e3   : > { %7624 = vmatprep.subr.bf16.mxu0 %v15290_v42  ;;  %7770 = vmatprep.subr.bf16.mxu1 %v15220_v51  ;;  %v15244_v41 = vcombine.high %v4371_v46, %v4375_v4  ;;  %v15243_v23 = vcombine.low %v4371_v46, %v4375_v4  ;;  %v4403_v42 = vld [vmem:[#allocation13 + $0xa18] sm:$0xff]  ;;  %v15346_v53 = vcombine.high %v4474_v35, %v4478_v38 }
 0x6e4   : > { %v4407_v51 = vld [vmem:[#allocation13 + $0xa38] sm:$0xff]  ;;  %v15345_v31 = vcombine.low %v4474_v35, %v4478_v38 }
 0x6e5   : > { %7625 = vmatpush1.bf16.msra.mxu0 %v15289_v36  ;;  %v15276_v55 = vcombine.high %v4403_v42, %v4407_v51  ;;  %v4482_v36 = vld [vmem:[#allocation13 + $0xc90] sm:$0xff]  ;;  %v15275_v57 = vcombine.low %v4403_v42, %v4407_v51  ;;  %v4451_v35 = vld [vmem:[#allocation13 + $0xb98] sm:$0xff] }
 0x6e6   : > { %7771 = vmatpush1.bf16.msra.mxu1 %v15219_v27  ;;  %7626 = vmatprep.subr.bf16.mxu0 %v15298_v30  ;;  %v4486_v27 = vld [vmem:[#allocation13 + $0xcb0] sm:$0xff]  ;;  %v4411_v30 = vld [vmem:[#allocation13 + $0xa58] sm:$0xff] }
 0x6e7   : > { %7772 = vmatprep.subr.bf16.mxu1 %v15228_v40  ;;  %v4415_v40 = vld [vmem:[#allocation13 + $0xa78] sm:$0xff]  ;;  %v15354_v59 = vcombine.high %v4482_v36, %v4486_v27  ;;  %v15353_v0 = vcombine.low %v4482_v36, %v4486_v27  ;;  %v4530_v36 = vld [vmem:[#allocation13 + $0xe10] sm:$0xff] }
 0x6e8   : > { %v15284_v60 = vcombine.high %v4411_v30, %v4415_v40  ;;  %v15283_v3 = vcombine.low %v4411_v30, %v4415_v40  ;;  %v4455_v38 = vld [vmem:[#allocation13 + $0xbb8] sm:$0xff]  ;;  %v4534_v27 = vld [vmem:[#allocation13 + $0xe30] sm:$0xff] }
 0x6e9   : > { %7627 = vmatpush1.bf16.msra.mxu0 %v15297_v61  ;;  %v4490_v61 = vld [vmem:[#allocation13 + $0xcd0] sm:$0xff]  ;;  %v4459_v30 = vld [vmem:[#allocation13 + $0xbd8] sm:$0xff] }
 0x6ea   : > { %7773 = vmatpush1.bf16.msra.mxu1 %v15227_v2  ;;  %7628 = vmatprep.subr.bf16.mxu0 %v15306_v62  ;;  %v4494_v2 = vld [vmem:[#allocation13 + $0xcf0] sm:$0xff]  ;;  %v4419_v62 = vld [vmem:[#allocation13 + $0xa98] sm:$0xff] }
 0x6eb   : > { %7774 = vmatprep.subr.bf16.mxu1 %v15236_v43  ;;  %v4423_v43 = vld [vmem:[#allocation13 + $0xab8] sm:$0xff]  ;;  %v15362_v46 = vcombine.high %v4490_v61, %v4494_v2  ;;  %v15361_v18 = vcombine.low %v4490_v61, %v4494_v2  ;;  %v4538_v61 = vld [vmem:[#allocation13 + $0xe50] sm:$0xff] }
 0x6ec   : > { %v15292_v4 = vcombine.high %v4419_v62, %v4423_v43  ;;  %v15291_v19 = vcombine.low %v4419_v62, %v4423_v43  ;;  %v4463_v40 = vld [vmem:[#allocation13 + $0xbf8] sm:$0xff]  ;;  %v4542_v2 = vld [vmem:[#allocation13 + $0xe70] sm:$0xff] }
 0x6ed   : > { %7629 = vmatpush1.bf16.msra.mxu0 %v15305_v6  ;;  %v4498_v6 = vld [vmem:[#allocation13 + $0xd10] sm:$0xff]  ;;  %v4467_v62 = vld [vmem:[#allocation13 + $0xc18] sm:$0xff] }
 0x6ee   : > { %7775 = vmatpush1.bf16.msra.mxu1 %v15235_v9  ;;  %7630 = vmatprep.subr.bf16.mxu0 %v15314_v11  ;;  %v4502_v9 = vld [vmem:[#allocation13 + $0xd30] sm:$0xff]  ;;  %v4427_v11 = vld [vmem:[#allocation13 + $0xad8] sm:$0xff] }
 0x6ef   : > { %7776 = vmatprep.subr.bf16.mxu1 %v15244_v41  ;;  %v4431_v41 = vld [vmem:[#allocation13 + $0xaf8] sm:$0xff]  ;;  %v15370_v21 = vcombine.high %v4498_v6, %v4502_v9  ;;  %v15369_v26 = vcombine.low %v4498_v6, %v4502_v9  ;;  %v4546_v6 = vld [vmem:[#allocation13 + $0xe90] sm:$0xff] }
 0x6f0   : > { %v15300_v12 = vcombine.high %v4427_v11, %v4431_v41  ;;  %v15299_v33 = vcombine.low %v4427_v11, %v4431_v41  ;;  %v4471_v43 = vld [vmem:[#allocation13 + $0xc38] sm:$0xff]  ;;  %v4550_v9 = vld [vmem:[#allocation13 + $0xeb0] sm:$0xff] }
 0x6f1   : > { %7631 = vmatpush1.bf16.msra.mxu0 %v15313_v22  ;;  %v4506_v22 = vld [vmem:[#allocation13 + $0xd50] sm:$0xff]  ;;  %v4475_v11 = vld [vmem:[#allocation13 + $0xc58] sm:$0xff] }
 0x6f2   : > { %7777 = vmatpush1.bf16.msra.mxu1 %v15243_v23  ;;  %7632 = vmatprep.subr.bf16.mxu0 %v15322_v24  ;;  %v4510_v23 = vld [vmem:[#allocation13 + $0xd70] sm:$0xff]  ;;  %v4435_v24 = vld [vmem:[#allocation13 + $0xb18] sm:$0xff] }
 0x6f3   : > { %7778 = vmatprep.subr.bf16.mxu1 %v15252_v25  ;;  %v4439_v25 = vld [vmem:[#allocation13 + $0xb38] sm:$0xff]  ;;  %v15378_v37 = vcombine.high %v4506_v22, %v4510_v23  ;;  %v15377_v28 = vcombine.low %v4506_v22, %v4510_v23  ;;  %v4554_v22 = vld [vmem:[#allocation13 + $0xed0] sm:$0xff] }
 0x6f4   : > { %v15308_v13 = vcombine.high %v4435_v24, %v4439_v25  ;;  %v15307_v47 = vcombine.low %v4435_v24, %v4439_v25  ;;  %v4479_v41 = vld [vmem:[#allocation13 + $0xc78] sm:$0xff]  ;;  %v4558_v23 = vld [vmem:[#allocation13 + $0xef0] sm:$0xff] }
 0x6f5   : > { %7633 = vmatpush1.bf16.msra.mxu0 %v15321_v39  ;;  %v4514_v39 = vld [vmem:[#allocation13 + $0xd90] sm:$0xff]  ;;  %v4483_v24 = vld [vmem:[#allocation13 + $0xc98] sm:$0xff] }
 0x6f6   : > { %7779 = vmatpush1.bf16.msra.mxu1 %v15251_v44  ;;  %7634 = vmatprep.subr.bf16.mxu0 %v15330_v45  ;;  %v4518_v44 = vld [vmem:[#allocation13 + $0xdb0] sm:$0xff]  ;;  %v4443_v45 = vld [vmem:[#allocation13 + $0xb58] sm:$0xff] }
 0x6f7   : > { %7780 = vmatprep.subr.bf16.mxu1 %v15260_v17  ;;  %v4447_v17 = vld [vmem:[#allocation13 + $0xb78] sm:$0xff]  ;;  %v15386_v7 = vcombine.high %v4514_v39, %v4518_v44  ;;  %v15385_v51 = vcombine.low %v4514_v39, %v4518_v44  ;;  %v4562_v39 = vld [vmem:[#allocation13 + $0xf10] sm:$0xff] }
 0x6f8   : > { %v4487_v25 = vld [vmem:[#allocation13 + $0xcb8] sm:$0xff]  ;;  %v4566_v44 = vld [vmem:[#allocation13 + $0xf30] sm:$0xff] }
 0x6f9   : > { %7635 = vmatpush1.bf16.msra.mxu0 %v15329_v49  ;;  %v15316_v49 = vcombine.high %v4443_v45, %v4447_v17 }
 0x6fa   : > { %7781 = vmatpush1.bf16.msra.mxu1 %v15259_v10  ;;  %7645 = vmatprep.subr.bf16.mxu0 %v15338_v50  ;;  %v4522_v10 = vld [vmem:[#allocation13 + $0xdd0] sm:$0xff] }
 0x6fb   : > { %7782 = vmatprep.subr.bf16.mxu1 %v15268_v34  ;;  %v4526_v50 = vld [vmem:[#allocation13 + $0xdf0] sm:$0xff] }
 0x6fc   : > { %7637 = vmatmul.mubr.bf16.vlgmr.msra.gmra.mrb[12].mxu0 %v19247_v5 }
 0x6fd   : > { %7646 = vmatpush1.bf16.msra.mxu0 %v15337_v29  ;;  %7677 = vmatprep.mubr.bf16.mxu0 %v19259_v54 }
 0x6fe   : > { %7783 = vmatpush1.bf16.msra.mxu1 %v15267_v52  ;;  %7647 = vmatprep.subr.bf16.mxu0 %v15346_v53  ;;  %v15315_v52 = vcombine.low %v4443_v45, %v4447_v17  ;;  %v15394_v53 = vcombine.high %v4522_v10, %v4526_v50  ;;  %v4491_v45 = vld [vmem:[#allocation13 + $0xcd8] sm:$0xff] }
 0x6ff   : > { %7784 = vmatprep.subr.bf16.mxu1 %v15276_v55  ;;  %v15324_v55 = vcombine.high %v4451_v35, %v4455_v38  ;;  %v4495_v17 = vld [vmem:[#allocation13 + $0xcf8] sm:$0xff] }
 0x701   : > { %7648 = vmatpush1.bf16.msra.mxu0 %v15345_v31  ;;  %v15393_v31 = vcombine.low %v4522_v10, %v4526_v50  ;;  %v4574_v10 = vld [vmem:[#allocation13 + $0xf70] sm:$0xff]  ;;  %v4503_v50 = vld [vmem:[#allocation13 + $0xd38] sm:$0xff] }
 0x702   : > { %7785 = vmatpush1.bf16.msra.mxu1 %v15275_v57  ;;  %7649 = vmatprep.subr.bf16.mxu0 %v15354_v59  ;;  %v15323_v57 = vcombine.low %v4451_v35, %v4455_v38  ;;  %v15402_v59 = vcombine.high %v4530_v36, %v4534_v27  ;;  %v15433_v35 = vcombine.low %v4562_v39, %v4566_v44 }
 0x703   : > { %7786 = vmatprep.subr.bf16.mxu1 %v15284_v60  ;;  %v15332_v60 = vcombine.high %v4459_v30, %v4463_v40  ;;  %v15363_v38 = vcombine.low %v4491_v45, %v4495_v17 }
 0x705   : > { %7650 = vmatpush1.bf16.msra.mxu0 %v15353_v0  ;;  %v15401_v0 = vcombine.low %v4530_v36, %v4534_v27  ;;  %v4511_v36 = vld [vmem:[#allocation13 + $0xd78] sm:$0xff] }
 0x706   : > { %7787 = vmatpush1.bf16.msra.mxu1 %v15283_v3  ;;  %7651 = vmatprep.subr.bf16.mxu0 %v15362_v46  ;;  %v15331_v3 = vcombine.low %v4459_v30, %v4463_v40  ;;  %v15410_v46 = vcombine.high %v4538_v61, %v4542_v2 }
 0x707   : > { %7788 = vmatprep.subr.bf16.mxu1 %v15292_v4  ;;  %v15340_v4 = vcombine.high %v4467_v62, %v4471_v43 }
 0x709   : > { %7652 = vmatpush1.bf16.msra.mxu0 %v15361_v18  ;;  %v15409_v18 = vcombine.low %v4538_v61, %v4542_v2  ;;  %v4515_v61 = vld [vmem:[#allocation13 + $0xd98] sm:$0xff] }
 0x70a   : > { %7789 = vmatpush1.bf16.msra.mxu1 %v15291_v19  ;;  %7653 = vmatprep.subr.bf16.mxu0 %v15370_v21  ;;  %v15339_v19 = vcombine.low %v4467_v62, %v4471_v43  ;;  %v15418_v21 = vcombine.high %v4546_v6, %v4550_v9  ;;  %v4519_v2 = vld [vmem:[#allocation13 + $0xdb8] sm:$0xff] }
 0x70b   : > { %7790 = vmatprep.subr.bf16.mxu1 %v15300_v12  ;;  %v15348_v12 = vcombine.high %v4475_v11, %v4479_v41 }
 0x70d   : > { %7654 = vmatpush1.bf16.msra.mxu0 %v15369_v26  ;;  %v15417_v26 = vcombine.low %v4546_v6, %v4550_v9  ;;  %v4523_v6 = vld [vmem:[#allocation13 + $0xdd8] sm:$0xff] }
 0x70e   : > { %7791 = vmatpush1.bf16.msra.mxu1 %v15299_v33  ;;  %7655 = vmatprep.subr.bf16.mxu0 %v15378_v37  ;;  %v15347_v33 = vcombine.low %v4475_v11, %v4479_v41  ;;  %v15426_v37 = vcombine.high %v4554_v22, %v4558_v23  ;;  %v4527_v9 = vld [vmem:[#allocation13 + $0xdf8] sm:$0xff] }
 0x70f   : > { %v19279_v48 = vpop.f32.mrb[8].mxu0  ;;  %7792 = vmatprep.subr.bf16.mxu1 %v15308_v13  ;;  %v15356_v13 = vcombine.high %v4483_v24, %v4487_v25 }
 0x710   : > { %v19281_v34 = vpop.f32.mrb[9].mxu0 }
 0x711   : > { %7656 = vmatpush1.bf16.msra.mxu0 %v15377_v28  ;;  %v7355_v42 = vpop.f32.mrb[10].mxu0  ;;  %v15425_v28 = vcombine.low %v4554_v22, %v4558_v23  ;;  %v4531_v23 = vld [vmem:[#allocation13 + $0xe18] sm:$0xff] }
 0x712   : > { %7793 = vmatpush1.bf16.msra.mxu1 %v15307_v47  ;;  %v7356_v29 = vpop.f32.mrb[11].mxu0  ;;  %7657 = vmatprep.subr.bf16.mxu0 %v15386_v7  ;;  %v15355_v47 = vcombine.low %v4483_v24, %v4487_v25  ;;  %v15434_v7 = vcombine.high %v4562_v39, %v4566_v44  ;;  %v4535_v24 = vld [vmem:[#allocation13 + $0xe38] sm:$0xff] }
 0x713   : > { %7794 = vmatprep.subr.bf16.mxu1 %v15316_v49  ;;  %v4570_v49 = vld [vmem:[#allocation13 + $0xf50] sm:$0xff]  ;;  %v17016_v25 = vld [vmem:[%s19067_s17] ss:$52 sps:$4 sm:$0xff]  }
 0x714   : > { %v15442_v42 = vcombine.high %v4570_v49, %v4574_v10  ;;  %v4578_v29 = vld [vmem:[#allocation13 + $0xf90] sm:$0xff]  ;;  %v15441_v27 = vcombine.low %v4570_v49, %v4574_v10  ;;  %v4539_v39 = vld [vmem:[#allocation13 + $0xe58] sm:$0xff] }
 0x715   : > { %7658 = vmatpush1.bf16.msra.mxu0 %v15385_v51  ;;  %v4543_v44 = vld [vmem:[#allocation13 + $0xe78] sm:$0xff] }
 0x716   : > { %7795 = vmatpush1.bf16.msra.mxu1 %v15315_v52  ;;  %7659 = vmatprep.subr.bf16.mxu0 %v15394_v53  ;;  %v4582_v52 = vld [vmem:[#allocation13 + $0xfb0] sm:$0xff]  ;;  %v19285_v53 = vld [vmem:[#allocation15] sm:$0xff]  ;;  %v17022_v49 = vld [vmem:[%s19067_s17 + $0xd0] ss:$52 sps:$4 sm:$0xff]   ;;  %v15411_v10 = vcombine.low %v4539_v39, %v4543_v44 }
 0x717   : > { %7796 = vmatprep.subr.bf16.mxu1 %v15324_v55  ;;  %v4507_v55 = vld [vmem:[#allocation13 + $0xd58] sm:$0xff]  ;;  %v15450_v40 = vcombine.high %v4578_v29, %v4582_v52  ;;  %v15449_v62 = vcombine.low %v4578_v29, %v4582_v52  ;;  %v17030_v29 = vld [vmem:[%s19067_s17 + $0x1a4] ss:$52 sps:$4 sm:$0xff]  }
 0x718   : > { %v15379_v43 = vcombine.low %v4507_v55, %v4511_v36 }
 0x719   : > { %7660 = vmatpush1.bf16.msra.mxu0 %v15393_v31  ;;  %v4601_v31 = vrot.slane %v19285_v53, %v19109_v1 }
 0x71a   : > { %7797 = vmatpush1.bf16.msra.mxu1 %v15323_v57  ;;  %7661 = vmatprep.subr.bf16.mxu0 %v15402_v59  ;;  %v15380_v57 = vcombine.high %v4507_v55, %v4511_v36  ;;  %v4586_v59 = vld [vmem:[#allocation13 + $0xfd0] sm:$0xff]  ;;  %v4563_v55 = vld [vmem:[#allocation13 + $0xf18] sm:$0xff] }
 0x71b   : > { %7798 = vmatprep.subr.bf16.mxu1 %v15332_v60  ;;  %v4590_v60 = vld [vmem:[#allocation13 + $0xff0] sm:$0xff]  ;;  %v4567_v36 = vld [vmem:[#allocation13 + $0xf38] sm:$0xff] }
 0x71c   : > { %v15457_v41 = vcombine.low %v4586_v59, %v4590_v60 }
 0x71d   : > { %7662 = vmatpush1.bf16.msra.mxu0 %v15401_v0  ;;  %v15458_v0 = vcombine.high %v4586_v59, %v4590_v60  ;;  %v4575_v59 = vld [vmem:[#allocation13 + $0xf78] sm:$0xff]  ;;  %v17031_v60 = vld [vmem:[%s19067_s17 + $0x208] ss:$52 sps:$4 sm:$0xff]  }
 0x71e   : > { %7799 = vmatpush1.bf16.msra.mxu1 %v15331_v3  ;;  %7663 = vmatprep.subr.bf16.mxu0 %v15410_v46  ;;  %v16397_v3 = vadd.f32 %v19281_v34, %v4601_v31  ;;  %v15388_v46 = vcombine.high %v4515_v61, %v4519_v2  ;;  %v15396_v34 = vcombine.high %v4523_v6, %v4527_v9 }
 0x71f   : > { %7809 = vmatprep.subr.bf16.mxu1 %v15340_v4  ;;  %v15436_v31 = vcombine.high %v4563_v55, %v4567_v36 }
 0x721   : > { %7664 = vmatpush1.bf16.msra.mxu0 %v15409_v18  ;;  %7801 = vmatmul.mubr.bf16.vlgmr.msra.gmra.mrb[24].mxu1 %v19247_v5  ;;  %v15364_v5 = vcombine.high %v4491_v45, %v4495_v17  ;;  %v17019_v45 = vld [vmem:[%s19067_s17 + $0x68] ss:$52 sps:$4 sm:$0xff]   ;;  %v15403_v17 = vcombine.low %v4531_v23, %v4535_v24 }
 0x722   : > { %7810 = vmatpush1.bf16.msra.mxu1 %v15339_v19  ;;  %7841 = vmatprep.mubr.bf16.mxu1 %v19259_v54  ;;  %v4499_v54 = vld [vmem:[#allocation13 + $0xd18] sm:$0xff]  ;;  %v15387_v19 = vcombine.low %v4515_v61, %v4519_v2  ;;  %v15435_v61 = vcombine.low %v4563_v55, %v4567_v36 }
 0x723   : > { %7665 = vmatprep.subr.bf16.mxu0 %v15418_v21  ;;  %7811 = vmatprep.subr.bf16.mxu1 %v15348_v12  ;;  %v15372_v51 = vcombine.high %v4499_v54, %v4503_v50  ;;  %v15371_v30 = vcombine.low %v4499_v54, %v4503_v50  ;;  %v17018_v21 = vld [vmem:[%s19067_s17 + $0x4] ss:$52 sps:$4 sm:$0xff]   ;;  %v7851_v12 = vmax.f32 %v16397_v3, 0.0  ;;  %v17027_v54 = vld [vmem:[%s19067_s17 + $0x13c] ss:$52 sps:$4 sm:$0xff]  }
 0x724   : > { %v17036_v2 = vld [vmem:[%s19067_s17 + $0x274] ss:$52 sps:$4 sm:$0xff]   ;;  %v17034_v3 = vld [vmem:[%s19067_s17 + $0x270] ss:$52 sps:$4 sm:$0xff]  }
 0x725   : > { %7666 = vmatpush1.bf16.msra.mxu0 %v15417_v26  ;;  %v15395_v26 = vcombine.low %v4523_v6, %v4527_v9  ;;  %v17039_v6 = vld [vmem:[%s19067_s17 + $0x2dc] ss:$52 sps:$4 sm:$0xff]  }
 0x726   : > { %7812 = vmatpush1.bf16.msra.mxu1 %v15347_v33  ;;  %7667 = vmatprep.subr.bf16.mxu0 %v15426_v37  ;;  %v17021_v33 = vld [vmem:[%s19067_s17 + $0x6c] ss:$52 sps:$4 sm:$0xff]   ;;  %v19297_v37 = vpack.c.bf16 %v7851_v12, %v7851_v12  ;;  %v17042_v12 = vld [vmem:[%s19067_s17 + $0x344] ss:$52 sps:$4 sm:$0xff]  }
 0x727   : > { %7813 = vmatprep.subr.bf16.mxu1 %v15356_v13  ;;  %v15404_v13 = vcombine.high %v4531_v23, %v4535_v24  ;;  %v17045_v24 = vld [vmem:[%s19067_s17 + $0x3ac] ss:$52 sps:$4 sm:$0xff]   ;;  %v17073_v55 = vld [vmem:[%s19067_s17 + $0x5b0] ss:$52 sps:$4 sm:$0xff]  }
 0x729   : > { %7668 = vmatpush1.bf16.msra.mxu0 %v15425_v28  ;;  %v17024_v28 = vld [vmem:[%s19067_s17 + $0xd4] ss:$52 sps:$4 sm:$0xff]  }
 0x72a   : > { %7814 = vmatpush1.bf16.msra.mxu1 %v15355_v47  ;;  %7669 = vmatprep.subr.bf16.mxu0 %v15434_v7  ;;  %v15412_v47 = vcombine.high %v4539_v39, %v4543_v44  ;;  %v4547_v7 = vld [vmem:[#allocation13 + $0xe98] sm:$0xff] }
 0x72b   : > { %7815 = vmatprep.subr.bf16.mxu1 %v15364_v5  ;;  %v4551_v5 = vld [vmem:[#allocation13 + $0xeb8] sm:$0xff] }
 0x72c   : > { %v15420_v50 = vcombine.high %v4547_v7, %v4551_v5  ;;  %v17054_v39 = vld [vmem:[%s19067_s17 + $0x74] ss:$52 sps:$4 sm:$0xff]   ;;  %v17049_v44 = vld [vmem:[%s19067_s17 + $0x410] ss:$52 sps:$4 sm:$0xff]  }
 0x72d   : > { %7670 = vmatpush1.bf16.msra.mxu0 %v15433_v35  ;;  %v4555_v35 = vld [vmem:[#allocation13 + $0xed8] sm:$0xff] }
 0x72e   : > { %7816 = vmatpush1.bf16.msra.mxu1 %v15363_v38  ;;  %7671 = vmatprep.subr.bf16.mxu0 %v15442_v42  ;;  %v4559_v38 = vld [vmem:[#allocation13 + $0xef8] sm:$0xff]  ;;  %v17025_v42 = vld [vmem:[%s19067_s17 + $0x138] ss:$52 sps:$4 sm:$0xff]  }
 0x72f   : > { %7817 = vmatprep.subr.bf16.mxu1 %v15372_v51  ;;  %v15419_v51 = vcombine.low %v4547_v7, %v4551_v5  ;;  %v15428_v52 = vcombine.high %v4555_v35, %v4559_v38  ;;  %v17063_v7 = vld [vmem:[%s19067_s17 + $0x4e4] ss:$52 sps:$4 sm:$0xff]  }
 0x730   : > { %v17066_v5 = vld [vmem:[%s19067_s17 + $0x144] ss:$52 sps:$4 sm:$0xff]  }
 0x731   : > { %7672 = vmatpush1.bf16.msra.mxu0 %v15441_v27  ;;  %v17028_v27 = vld [vmem:[%s19067_s17 + $0x1a0] ss:$52 sps:$4 sm:$0xff]  }
 0x732   : > { %7818 = vmatpush1.bf16.msra.mxu1 %v15371_v30  ;;  %7673 = vmatprep.subr.bf16.mxu0 %v15450_v40  ;;  %v15427_v30 = vcombine.low %v4555_v35, %v4559_v38  ;;  %v17033_v40 = vld [vmem:[%s19067_s17 + $0x20c] ss:$52 sps:$4 sm:$0xff]   ;;  %v17067_v35 = vld [vmem:[%s19067_s17 + $0x548] ss:$52 sps:$4 sm:$0xff]   ;;  %v4597_v38 = vrot.slane %v19285_v53, %v19106_v63 }
 0x733   : > { %7819 = vmatprep.subr.bf16.mxu1 %v15380_v57  ;;  %v4571_v57 = vld [vmem:[#allocation13 + $0xf58] sm:$0xff] }
 0x734   : > { %v19290_v4 = vpop.f32.mrb[20].mxu1  ;;  %v16396_v36 = vadd.f32 %v19279_v48, %v4597_v38  ;;  %v17087_v48 = vld [vmem:[%s19067_s17 + $0x684] ss:$52 sps:$4 sm:$0xff]   ;;  %v17136_v38 = vld [vmem:[%s19067_s17 + $0x620] ss:$52 sps:$4 sm:$0xff]  }
 0x735   : > { %v19292_v11 = vpop.f32.mrb[21].mxu1  ;;  %7674 = vmatpush1.bf16.msra.mxu0 %v15449_v62  ;;  %v15444_v62 = vcombine.high %v4571_v57, %v4575_v59 }
 0x736   : > { %v7519_v18 = vpop.f32.mrb[22].mxu1  ;;  %7820 = vmatpush1.bf16.msra.mxu1 %v15379_v43  ;;  %7675 = vmatprep.subr.bf16.mxu0 %v15458_v0  ;;  %v4579_v43 = vld [vmem:[#allocation13 + $0xf98] sm:$0xff] }
 0x737   : > { %v7520_v22 = vpop.f32.mrb[23].mxu1  ;;  %7821 = vmatprep.subr.bf16.mxu1 %v15388_v46  ;;  %v4583_v0 = vld [vmem:[#allocation13 + $0xfb8] sm:$0xff]  ;;  %v15443_v46 = vcombine.low %v4571_v57, %v4575_v59  ;;  %v17079_v57 = vld [vmem:[%s19067_s17 + $0x618] ss:$52 sps:$4 sm:$0xff]   ;;  %v7850_v59 = vmax.f32 %v16396_v36, 0.0 }
 0x738   : > { %v15452_v9 = vcombine.high %v4579_v43, %v4583_v0  ;;  %v4591_v18 = vld [vmem:[#allocation13 + $0xff8] sm:$0xff] }
 0x739   : > { %7676 = vmatpush1.bf16.msra.mxu0 %v15457_v41  ;;  %v4587_v41 = vld [vmem:[#allocation13 + $0xfd8] sm:$0xff] }
 0x73a   : > { %7822 = vmatpush1.bf16.msra.mxu1 %v15387_v19  ;;  %13055 = vmatprep.subr.bf16.mxu0 %v17018_v21  ;;  %v17037_v19 = vld [vmem:[%s19067_s17 + $0x2d8] ss:$52 sps:$4 sm:$0xff]   ;;  %v15451_v21 = vcombine.low %v4579_v43, %v4583_v0  ;;  %v15460_v22 = vcombine.high %v4587_v41, %v4591_v18  ;;  %v15459_v23 = vcombine.low %v4587_v41, %v4591_v18  ;;  %v17088_v43 = vld [vmem:[%s19067_s17 + $0x2e0] ss:$52 sps:$4 sm:$0xff]  }
 0x73b   : > { %7823 = vmatprep.subr.bf16.mxu1 %v15396_v34  ;;  %v17040_v34 = vld [vmem:[%s19067_s17 + $0x340] ss:$52 sps:$4 sm:$0xff]  }
 0x73c   : > { %7678 = vmatmul.mubr.bf16.vlgmr.msra.gmra.mrb[12].mxu0 %v19261_v58  ;;  %v17093_v0 = vld [vmem:[%s19067_s17 + $0x6ec] ss:$52 sps:$4 sm:$0xff]   ;;  %v17099_v41 = vld [vmem:[%s19067_s17 + $0x754] ss:$52 sps:$4 sm:$0xff]  }
 0x73d   : > { %13056 = vmatpush1.bf16.msra.mxu0 %v17016_v25  ;;  %13087 = vmatprep.mubr.bf16.mxu0 %v19297_v37  ;;  %v17048_v25 = vld [vmem:[%s19067_s17 + $0xc] ss:$52 sps:$4 sm:$0xff]   ;;  %v17102_v18 = vld [vmem:[%s19067_s17 + $0x3b4] ss:$52 sps:$4 sm:$0xff]  }
 0x73e   : > { %7824 = vmatpush1.bf16.msra.mxu1 %v15395_v26  ;;  %13057 = vmatprep.subr.bf16.mxu0 %v17021_v33  ;;  %v17043_v26 = vld [vmem:[%s19067_s17 + $0x3a8] ss:$52 sps:$4 sm:$0xff]  }
 0x73f   : > { %7825 = vmatprep.subr.bf16.mxu1 %v15404_v13  ;;  %v17046_v33 = vld [vmem:[%s19067_s17 + $0x8] ss:$52 sps:$4 sm:$0xff]  }
 0x740   : > { %v17051_v13 = vld [vmem:[%s19067_s17 + $0x414] ss:$52 sps:$4 sm:$0xff]  }
 0x741   : > { %13058 = vmatpush1.bf16.msra.mxu0 %v17019_v45  ;;  %v17052_v45 = vld [vmem:[%s19067_s17 + $0x70] ss:$52 sps:$4 sm:$0xff]   ;;  %v17150_v36 = vld [vmem:[%s19067_s17 + $0x6f4] ss:$52 sps:$4 sm:$0xff]  }
 0x742   : > { %7826 = vmatpush1.bf16.msra.mxu1 %v15403_v17  ;;  %13059 = vmatprep.subr.bf16.mxu0 %v17024_v28  ;;  %v17057_v17 = vld [vmem:[%s19067_s17 + $0x47c] ss:$52 sps:$4 sm:$0xff]  }
 0x743   : > { %7827 = vmatprep.subr.bf16.mxu1 %v15412_v47  ;;  %v17060_v28 = vld [vmem:[%s19067_s17 + $0xdc] ss:$52 sps:$4 sm:$0xff]   ;;  %v17055_v47 = vld [vmem:[%s19067_s17 + $0x478] ss:$52 sps:$4 sm:$0xff]  }
 0x745   : > { %13060 = vmatpush1.bf16.msra.mxu0 %v17022_v49  ;;  %v17061_v49 = vld [vmem:[%s19067_s17 + $0x4e0] ss:$52 sps:$4 sm:$0xff]  }
 0x746   : > { %7828 = vmatpush1.bf16.msra.mxu1 %v15411_v10  ;;  %13061 = vmatprep.subr.bf16.mxu0 %v17027_v54  ;;  %v17064_v10 = vld [vmem:[%s19067_s17 + $0x140] ss:$52 sps:$4 sm:$0xff]  }
 0x747   : > { %7829 = vmatprep.subr.bf16.mxu1 %v15420_v50  ;;  %v17069_v54 = vld [vmem:[%s19067_s17 + $0x54c] ss:$52 sps:$4 sm:$0xff]  }
 0x748   : > { %v17072_v50 = vld [vmem:[%s19067_s17 + $0x1ac] ss:$52 sps:$4 sm:$0xff]  }
 0x749   : > { %13062 = vmatpush1.bf16.msra.mxu0 %v17025_v42  ;;  %v17070_v42 = vld [vmem:[%s19067_s17 + $0x1a8] ss:$52 sps:$4 sm:$0xff]  }
 0x74a   : > { %7830 = vmatpush1.bf16.msra.mxu1 %v15419_v51  ;;  %13063 = vmatprep.subr.bf16.mxu0 %v17030_v29  ;;  %v17075_v51 = vld [vmem:[%s19067_s17 + $0x5b4] ss:$52 sps:$4 sm:$0xff]   ;;  %v4609_v29 = vrot.slane %v19285_v53, %v19157_v20 }
 0x74b   : > { %7831 = vmatprep.subr.bf16.mxu1 %v15428_v52  ;;  %v17078_v52 = vld [vmem:[%s19067_s17 + $0x214] ss:$52 sps:$4 sm:$0xff]  }
 0x74d   : > { %13064 = vmatpush1.bf16.msra.mxu0 %v17028_v27  ;;  %v17076_v27 = vld [vmem:[%s19067_s17 + $0x210] ss:$52 sps:$4 sm:$0xff]  }
 0x74e   : > { %7832 = vmatpush1.bf16.msra.mxu1 %v15427_v30  ;;  %13065 = vmatprep.subr.bf16.mxu0 %v17033_v40  ;;  %v17081_v30 = vld [vmem:[%s19067_s17 + $0x61c] ss:$52 sps:$4 sm:$0xff]   ;;  %v16399_v40 = vadd.f32 %v19292_v11, %v4609_v29  ;;  %v19355_v11 = vpack.c.bf16 %v7850_v59, %v7850_v59  ;;  %v17154_v59 = vld [vmem:[%s19067_s17 + $0x758] ss:$52 sps:$4 sm:$0xff]  }
 0x74f   : > { %7833 = vmatprep.subr.bf16.mxu1 %v15436_v31  ;;  %v17084_v31 = vld [vmem:[%s19067_s17 + $0x27c] ss:$52 sps:$4 sm:$0xff]  }
 0x750   : > { %v17139_v29 = vld [vmem:[%s19067_s17 + $0xa28] ss:$52 sps:$4 sm:$0xff]  }
 0x751   : > { %13066 = vmatpush1.bf16.msra.mxu0 %v17031_v60  ;;  %v17082_v60 = vld [vmem:[%s19067_s17 + $0x278] ss:$52 sps:$4 sm:$0xff]  }
 0x752   : > { %7834 = vmatpush1.bf16.msra.mxu1 %v15435_v61  ;;  %13067 = vmatprep.subr.bf16.mxu0 %v17036_v2  ;;  %v7853_v61 = vmax.f32 %v16399_v40, 0.0  ;;  %v17090_v2 = vld [vmem:[%s19067_s17 + $0x2e4] ss:$52 sps:$4 sm:$0xff]   ;;  %v17153_v40 = vld [vmem:[%s19067_s17 + $0xafc] ss:$52 sps:$4 sm:$0xff]  }
 0x753   : > { %7835 = vmatprep.subr.bf16.mxu1 %v15444_v62  ;;  %v17085_v62 = vld [vmem:[%s19067_s17 + $0x680] ss:$52 sps:$4 sm:$0xff]  }
 0x755   : > { %13068 = vmatpush1.bf16.msra.mxu0 %v17034_v3  ;;  %v19359_v3 = vpack.c.bf16 %v7853_v61, %v7853_v61  ;;  %v17157_v61 = vld [vmem:[%s19067_s17 + $0xb60] ss:$52 sps:$4 sm:$0xff]  }
 0x756   : > { %7836 = vmatpush1.bf16.msra.mxu1 %v15443_v46  ;;  %13069 = vmatprep.subr.bf16.mxu0 %v17039_v6  ;;  %v17096_v46 = vld [vmem:[%s19067_s17 + $0x34c] ss:$52 sps:$4 sm:$0xff]   ;;  %v17091_v6 = vld [vmem:[%s19067_s17 + $0x6e8] ss:$52 sps:$4 sm:$0xff]  }
 0x757   : > { %7837 = vmatprep.subr.bf16.mxu1 %v15452_v9  ;;  %v17094_v9 = vld [vmem:[%s19067_s17 + $0x348] ss:$52 sps:$4 sm:$0xff]  }
 0x759   : > { %13070 = vmatpush1.bf16.msra.mxu0 %v17037_v19  ;;  %v17097_v19 = vld [vmem:[%s19067_s17 + $0x750] ss:$52 sps:$4 sm:$0xff]  }
 0x75a   : > { %7838 = vmatpush1.bf16.msra.mxu1 %v15451_v21  ;;  %13071 = vmatprep.subr.bf16.mxu0 %v17042_v12  ;;  %v17100_v21 = vld [vmem:[%s19067_s17 + $0x3b0] ss:$52 sps:$4 sm:$0xff]  }
 0x75b   : > { %7839 = vmatprep.subr.bf16.mxu1 %v15460_v22  ;;  %v17105_v12 = vld [vmem:[%s19067_s17 + $0x7bc] ss:$52 sps:$4 sm:$0xff]  }
 0x75c   : > { %v17108_v22 = vld [vmem:[%s19067_s17 + $0x41c] ss:$52 sps:$4 sm:$0xff]  }
 0x75d   : > { %13072 = vmatpush1.bf16.msra.mxu0 %v17040_v34  ;;  %v17103_v34 = vld [vmem:[%s19067_s17 + $0x7b8] ss:$52 sps:$4 sm:$0xff]  }
 0x75e   : > { %7840 = vmatpush1.bf16.msra.mxu1 %v15459_v23  ;;  %13073 = vmatprep.subr.bf16.mxu0 %v17045_v24  ;;  %v17106_v23 = vld [vmem:[%s19067_s17 + $0x418] ss:$52 sps:$4 sm:$0xff]  }
 0x75f   : > { %13219 = vmatprep.subr.bf16.mxu1 %v17048_v25  ;;  %v17111_v24 = vld [vmem:[%s19067_s17 + $0x824] ss:$52 sps:$4 sm:$0xff]  }
 0x760   : > { %v17114_v25 = vld [vmem:[%s19067_s17 + $0x484] ss:$52 sps:$4 sm:$0xff]  }
 0x761   : > { %7842 = vmatmul.mubr.bf16.vlgmr.msra.gmra.mrb[24].mxu1 %v19261_v58  ;;  %13074 = vmatpush1.bf16.msra.mxu0 %v17043_v26  ;;  %v17058_v58 = vld [vmem:[%s19067_s17 + $0xd8] ss:$52 sps:$4 sm:$0xff]   ;;  %v17109_v26 = vld [vmem:[%s19067_s17 + $0x820] ss:$52 sps:$4 sm:$0xff]  }
 0x762   : > { %13220 = vmatpush1.bf16.msra.mxu1 %v17046_v33  ;;  %13251 = vmatprep.mubr.bf16.mxu1 %v19297_v37  ;;  %v17112_v33 = vld [vmem:[%s19067_s17 + $0x480] ss:$52 sps:$4 sm:$0xff]  }
 0x763   : > { %13075 = vmatprep.subr.bf16.mxu0 %v17051_v13  ;;  %13221 = vmatprep.subr.bf16.mxu1 %v17054_v39  ;;  %v17117_v13 = vld [vmem:[%s19067_s17 + $0x88c] ss:$52 sps:$4 sm:$0xff]  }
 0x764   : > { %v17120_v39 = vld [vmem:[%s19067_s17 + $0x4ec] ss:$52 sps:$4 sm:$0xff]  }
 0x765   : > { %13076 = vmatpush1.bf16.msra.mxu0 %v17049_v44  ;;  %v17115_v44 = vld [vmem:[%s19067_s17 + $0x888] ss:$52 sps:$4 sm:$0xff]  }
 0x766   : > { %13222 = vmatpush1.bf16.msra.mxu1 %v17052_v45  ;;  %13077 = vmatprep.subr.bf16.mxu0 %v17057_v17  ;;  %v17118_v45 = vld [vmem:[%s19067_s17 + $0x4e8] ss:$52 sps:$4 sm:$0xff]  }
 0x767   : > { %13223 = vmatprep.subr.bf16.mxu1 %v17060_v28  ;;  %v17123_v17 = vld [vmem:[%s19067_s17 + $0x8f4] ss:$52 sps:$4 sm:$0xff]  }
 0x768   : > { %v17126_v28 = vld [vmem:[%s19067_s17 + $0x554] ss:$52 sps:$4 sm:$0xff]  }
 0x769   : > { %13078 = vmatpush1.bf16.msra.mxu0 %v17055_v47  ;;  %v17121_v47 = vld [vmem:[%s19067_s17 + $0x8f0] ss:$52 sps:$4 sm:$0xff]  }
 0x76a   : > { %13224 = vmatpush1.bf16.msra.mxu1 %v17058_v58  ;;  %13079 = vmatprep.subr.bf16.mxu0 %v17063_v7  ;;  %v17124_v58 = vld [vmem:[%s19067_s17 + $0x550] ss:$52 sps:$4 sm:$0xff]  }
 0x76b   : > { %13225 = vmatprep.subr.bf16.mxu1 %v17066_v5  ;;  %v17129_v7 = vld [vmem:[%s19067_s17 + $0x95c] ss:$52 sps:$4 sm:$0xff]  }
 0x76c   : > { %v17132_v5 = vld [vmem:[%s19067_s17 + $0x5bc] ss:$52 sps:$4 sm:$0xff]  }
 0x76d   : > { %13080 = vmatpush1.bf16.msra.mxu0 %v17061_v49  ;;  %v17127_v49 = vld [vmem:[%s19067_s17 + $0x958] ss:$52 sps:$4 sm:$0xff]  }
 0x76e   : > { %13226 = vmatpush1.bf16.msra.mxu1 %v17064_v10  ;;  %13081 = vmatprep.subr.bf16.mxu0 %v17069_v54  ;;  %v17130_v10 = vld [vmem:[%s19067_s17 + $0x5b8] ss:$52 sps:$4 sm:$0xff]  }
 0x76f   : > { %13227 = vmatprep.subr.bf16.mxu1 %v17072_v50  ;;  %v17135_v54 = vld [vmem:[%s19067_s17 + $0x9c4] ss:$52 sps:$4 sm:$0xff]  }
 0x770   : > { %v17138_v50 = vld [vmem:[%s19067_s17 + $0x624] ss:$52 sps:$4 sm:$0xff]  }
 0x771   : > { %13082 = vmatpush1.bf16.msra.mxu0 %v17067_v35  ;;  %v17133_v35 = vld [vmem:[%s19067_s17 + $0x9c0] ss:$52 sps:$4 sm:$0xff]  }
 0x772   : > { %13228 = vmatpush1.bf16.msra.mxu1 %v17070_v42  ;;  %13083 = vmatprep.subr.bf16.mxu0 %v17075_v51  ;;  %v17141_v42 = vld [vmem:[%s19067_s17 + $0xa2c] ss:$52 sps:$4 sm:$0xff]  }
 0x773   : > { %13229 = vmatprep.subr.bf16.mxu1 %v17078_v52  ;;  %v17144_v51 = vld [vmem:[%s19067_s17 + $0x68c] ss:$52 sps:$4 sm:$0xff]   ;;  %v17142_v52 = vld [vmem:[%s19067_s17 + $0x688] ss:$52 sps:$4 sm:$0xff]  }
 0x775   : > { %13084 = vmatpush1.bf16.msra.mxu0 %v17073_v55  ;;  %v17147_v55 = vld [vmem:[%s19067_s17 + $0xa94] ss:$52 sps:$4 sm:$0xff]  }
 0x776   : > { %13230 = vmatpush1.bf16.msra.mxu1 %v17076_v27  ;;  %13085 = vmatprep.subr.bf16.mxu0 %v17081_v30  ;;  %v17145_v27 = vld [vmem:[%s19067_s17 + $0xa90] ss:$52 sps:$4 sm:$0xff]  }
 0x777   : > { %13231 = vmatprep.subr.bf16.mxu1 %v17084_v31  ;;  %v17148_v30 = vld [vmem:[%s19067_s17 + $0x6f0] ss:$52 sps:$4 sm:$0xff]  }
 0x778   : > { %v17156_v31 = vld [vmem:[%s19067_s17 + $0x75c] ss:$52 sps:$4 sm:$0xff]  }
 0x779   : > { %13086 = vmatpush1.bf16.msra.mxu0 %v17079_v57  ;;  %v17151_v57 = vld [vmem:[%s19067_s17 + $0xaf8] ss:$52 sps:$4 sm:$0xff]  }
 0x77a   : > { %13232 = vmatpush1.bf16.msra.mxu1 %v17082_v60  ;;  %13096 = vmatprep.subr.bf16.mxu0 %v17087_v48  ;;  %v17159_v60 = vld [vmem:[%s19067_s17 + $0xb64] ss:$52 sps:$4 sm:$0xff]  }
 0x77b   : > { %13233 = vmatprep.subr.bf16.mxu1 %v17090_v2  ;;  %v17162_v48 = vld [vmem:[%s19067_s17 + $0x7c4] ss:$52 sps:$4 sm:$0xff]   ;;  %v17160_v2 = vld [vmem:[%s19067_s17 + $0x7c0] ss:$52 sps:$4 sm:$0xff]  }
 0x77c   : > { %13088 = vmatmul.mubr.bf16.vlgmr.msra.gmra.mrb[16].mxu0 %v19355_v11 }
 0x77d   : > { %13097 = vmatpush1.bf16.msra.mxu0 %v17085_v62  ;;  %13128 = vmatprep.mubr.bf16.mxu0 %v19359_v3  ;;  %v17165_v62 = vld [vmem:[%s19067_s17 + $0xbcc] ss:$52 sps:$4 sm:$0xff]  }
 0x77e   : > { %13234 = vmatpush1.bf16.msra.mxu1 %v17088_v43  ;;  %13098 = vmatprep.subr.bf16.mxu0 %v17093_v0  ;;  %v17168_v43 = vld [vmem:[%s19067_s17 + $0x82c] ss:$52 sps:$4 sm:$0xff]   ;;  %v17163_v0 = vld [vmem:[%s19067_s17 + $0xbc8] ss:$52 sps:$4 sm:$0xff]  }
 0x77f   : > { %13235 = vmatprep.subr.bf16.mxu1 %v17096_v46  ;;  %v4605_v46 = vrot.slane %v19285_v53, %v19154_v15 }
 0x781   : > { %13099 = vmatpush1.bf16.msra.mxu0 %v17091_v6  ;;  %v17166_v6 = vld [vmem:[%s19067_s17 + $0x828] ss:$52 sps:$4 sm:$0xff]  }
 0x782   : > { %13236 = vmatpush1.bf16.msra.mxu1 %v17094_v9  ;;  %13100 = vmatprep.subr.bf16.mxu0 %v17099_v41  ;;  %v17171_v9 = vld [vmem:[%s19067_s17 + $0xc34] ss:$52 sps:$4 sm:$0xff]  }
 0x783   : > { %13237 = vmatprep.subr.bf16.mxu1 %v17102_v18  ;;  %v17174_v41 = vld [vmem:[%s19067_s17 + $0x894] ss:$52 sps:$4 sm:$0xff]   ;;  %v17169_v18 = vld [vmem:[%s19067_s17 + $0xc30] ss:$52 sps:$4 sm:$0xff]  }
 0x785   : > { %13101 = vmatpush1.bf16.msra.mxu0 %v17097_v19  ;;  %v16398_v19 = vadd.f32 %v19290_v4, %v4605_v46  ;;  %v17183_v4 = vld [vmem:[%s19067_s17 + $0x964] ss:$52 sps:$4 sm:$0xff]   ;;  %v17256_v46 = vld [vmem:[%s19067_s17 + $0x10a8] ss:$52 sps:$4 sm:$0xff]  }
 0x786   : > { %13238 = vmatpush1.bf16.msra.mxu1 %v17100_v21  ;;  %13102 = vmatprep.subr.bf16.mxu0 %v17105_v12  ;;  %v17172_v21 = vld [vmem:[%s19067_s17 + $0x890] ss:$52 sps:$4 sm:$0xff]  }
 0x787   : > { %13239 = vmatprep.subr.bf16.mxu1 %v17108_v22  ;;  %v17177_v12 = vld [vmem:[%s19067_s17 + $0xc9c] ss:$52 sps:$4 sm:$0xff]  }
 0x788   : > { %v17180_v22 = vld [vmem:[%s19067_s17 + $0x8fc] ss:$52 sps:$4 sm:$0xff]  }
 0x789   : > { %13103 = vmatpush1.bf16.msra.mxu0 %v17103_v34  ;;  %v17175_v34 = vld [vmem:[%s19067_s17 + $0xc98] ss:$52 sps:$4 sm:$0xff]  }
 0x78a   : > { %13240 = vmatpush1.bf16.msra.mxu1 %v17106_v23  ;;  %13104 = vmatprep.subr.bf16.mxu0 %v17111_v24  ;;  %v7852_v23 = vmax.f32 %v16398_v19, 0.0  ;;  %v17178_v24 = vld [vmem:[%s19067_s17 + $0x8f8] ss:$52 sps:$4 sm:$0xff]   ;;  %v17223_v19 = vld [vmem:[%s19067_s17 + $0xd70] ss:$52 sps:$4 sm:$0xff]  }
 0x78b   : > { %13241 = vmatprep.subr.bf16.mxu1 %v17114_v25  ;;  %v17204_v25 = vld [vmem:[%s19067_s17 + $0xd04] ss:$52 sps:$4 sm:$0xff]  }
 0x78d   : > { %13105 = vmatpush1.bf16.msra.mxu0 %v17109_v26  ;;  %v17202_v26 = vld [vmem:[%s19067_s17 + $0xd00] ss:$52 sps:$4 sm:$0xff]  }
 0x78e   : > { %13242 = vmatpush1.bf16.msra.mxu1 %v17112_v33  ;;  %13106 = vmatprep.subr.bf16.mxu0 %v17117_v13  ;;  %v19430_v33 = vpack.c.bf16 %v7852_v23, %v7852_v23  ;;  %v17181_v13 = vld [vmem:[%s19067_s17 + $0x960] ss:$52 sps:$4 sm:$0xff]   ;;  %v17276_v23 = vld [vmem:[%s19067_s17 + $0x11e4] ss:$52 sps:$4 sm:$0xff]  }
 0x78f   : > { %13243 = vmatprep.subr.bf16.mxu1 %v17120_v39  ;;  %v17210_v39 = vld [vmem:[%s19067_s17 + $0xd6c] ss:$52 sps:$4 sm:$0xff]  }
 0x791   : > { %13107 = vmatpush1.bf16.msra.mxu0 %v17115_v44  ;;  %v17186_v44 = vld [vmem:[%s19067_s17 + $0x9cc] ss:$52 sps:$4 sm:$0xff]  }
 0x792   : > { %13244 = vmatpush1.bf16.msra.mxu1 %v17118_v45  ;;  %13108 = vmatprep.subr.bf16.mxu0 %v17123_v17  ;;  %v17208_v45 = vld [vmem:[%s19067_s17 + $0xd68] ss:$52 sps:$4 sm:$0xff]  }
 0x793   : > { %13245 = vmatprep.subr.bf16.mxu1 %v17126_v28  ;;  %v17184_v17 = vld [vmem:[%s19067_s17 + $0x9c8] ss:$52 sps:$4 sm:$0xff]  }
 0x794   : > { %v17216_v28 = vld [vmem:[%s19067_s17 + $0xdd4] ss:$52 sps:$4 sm:$0xff]  }
 0x795   : > { %13109 = vmatpush1.bf16.msra.mxu0 %v17121_v47  ;;  %v17189_v47 = vld [vmem:[%s19067_s17 + $0xa34] ss:$52 sps:$4 sm:$0xff]  }
 0x796   : > { %13246 = vmatpush1.bf16.msra.mxu1 %v17124_v58  ;;  %13110 = vmatprep.subr.bf16.mxu0 %v17129_v7  ;;  %v17214_v58 = vld [vmem:[%s19067_s17 + $0xdd0] ss:$52 sps:$4 sm:$0xff]  }
 0x797   : > { %13247 = vmatprep.subr.bf16.mxu1 %v17132_v5  ;;  %v17187_v7 = vld [vmem:[%s19067_s17 + $0xa30] ss:$52 sps:$4 sm:$0xff]  }
 0x798   : > { %v17222_v5 = vld [vmem:[%s19067_s17 + $0xe3c] ss:$52 sps:$4 sm:$0xff]  }
 0x799   : > { %13111 = vmatpush1.bf16.msra.mxu0 %v17127_v49  ;;  %v17192_v49 = vld [vmem:[%s19067_s17 + $0xa9c] ss:$52 sps:$4 sm:$0xff]  }
 0x79a   : > { %13248 = vmatpush1.bf16.msra.mxu1 %v17130_v10  ;;  %13112 = vmatprep.subr.bf16.mxu0 %v17135_v54  ;;  %v17220_v10 = vld [vmem:[%s19067_s17 + $0xe38] ss:$52 sps:$4 sm:$0xff]  }
 0x79b   : > { %13249 = vmatprep.subr.bf16.mxu1 %v17138_v50  ;;  %v17190_v54 = vld [vmem:[%s19067_s17 + $0xa98] ss:$52 sps:$4 sm:$0xff]  }
 0x79c   : > { %v17228_v50 = vld [vmem:[%s19067_s17 + $0xea4] ss:$52 sps:$4 sm:$0xff]  }
 0x79d   : > { %13113 = vmatpush1.bf16.msra.mxu0 %v17133_v35  ;;  %v17195_v35 = vld [vmem:[%s19067_s17 + $0xb04] ss:$52 sps:$4 sm:$0xff]  }
 0x79e   : > { %13250 = vmatpush1.bf16.msra.mxu1 %v17136_v38  ;;  %13114 = vmatprep.subr.bf16.mxu0 %v17141_v42  ;;  %v17226_v38 = vld [vmem:[%s19067_s17 + $0xea0] ss:$52 sps:$4 sm:$0xff]  }
 0x79f   : > { %13260 = vmatprep.subr.bf16.mxu1 %v17144_v51  ;;  %v17193_v42 = vld [vmem:[%s19067_s17 + $0xb00] ss:$52 sps:$4 sm:$0xff]  }
 0x7a0   : > { %v17234_v51 = vld [vmem:[%s19067_s17 + $0xf0c] ss:$52 sps:$4 sm:$0xff]  }
 0x7a1   : > { %13115 = vmatpush1.bf16.msra.mxu0 %v17139_v29  ;;  %13252 = vmatmul.mubr.bf16.vlgmr.msra.gmra.mrb[28].mxu1 %v19355_v11  ;;  %v17198_v29 = vld [vmem:[%s19067_s17 + $0xb6c] ss:$52 sps:$4 sm:$0xff]  }
 0x7a2   : > { %13261 = vmatpush1.bf16.msra.mxu1 %v17142_v52  ;;  %13292 = vmatprep.mubr.bf16.mxu1 %v19359_v3  ;;  %v17232_v52 = vld [vmem:[%s19067_s17 + $0xf08] ss:$52 sps:$4 sm:$0xff]  }
 0x7a3   : > { %13116 = vmatprep.subr.bf16.mxu0 %v17147_v55  ;;  %13262 = vmatprep.subr.bf16.mxu1 %v17150_v36  ;;  %v17196_v55 = vld [vmem:[%s19067_s17 + $0xb68] ss:$52 sps:$4 sm:$0xff]  }
 0x7a4   : > { %v17240_v36 = vld [vmem:[%s19067_s17 + $0xf74] ss:$52 sps:$4 sm:$0xff]  }
 0x7a5   : > { %13117 = vmatpush1.bf16.msra.mxu0 %v17145_v27  ;;  %v17201_v27 = vld [vmem:[%s19067_s17 + $0xbd4] ss:$52 sps:$4 sm:$0xff]  }
 0x7a6   : > { %13263 = vmatpush1.bf16.msra.mxu1 %v17148_v30  ;;  %13118 = vmatprep.subr.bf16.mxu0 %v17153_v40  ;;  %v17238_v30 = vld [vmem:[%s19067_s17 + $0xf70] ss:$52 sps:$4 sm:$0xff]  }
 0x7a7   : > { %13264 = vmatprep.subr.bf16.mxu1 %v17156_v31  ;;  %v17199_v40 = vld [vmem:[%s19067_s17 + $0xbd0] ss:$52 sps:$4 sm:$0xff]  }
 0x7a8   : > { %v17246_v31 = vld [vmem:[%s19067_s17 + $0xfdc] ss:$52 sps:$4 sm:$0xff]  }
 0x7a9   : > { %13119 = vmatpush1.bf16.msra.mxu0 %v17151_v57  ;;  %v17207_v57 = vld [vmem:[%s19067_s17 + $0xc3c] ss:$52 sps:$4 sm:$0xff]  }
 0x7aa   : > { %13265 = vmatpush1.bf16.msra.mxu1 %v17154_v59  ;;  %13120 = vmatprep.subr.bf16.mxu0 %v17159_v60  ;;  %v17244_v59 = vld [vmem:[%s19067_s17 + $0xfd8] ss:$52 sps:$4 sm:$0xff]  }
 0x7ab   : > { %13266 = vmatprep.subr.bf16.mxu1 %v17162_v48  ;;  %v17205_v60 = vld [vmem:[%s19067_s17 + $0xc38] ss:$52 sps:$4 sm:$0xff]  }
 0x7ac   : > { %v17252_v48 = vld [vmem:[%s19067_s17 + $0x1044] ss:$52 sps:$4 sm:$0xff]  }
 0x7ad   : > { %13121 = vmatpush1.bf16.msra.mxu0 %v17157_v61  ;;  %v17213_v61 = vld [vmem:[%s19067_s17 + $0xca4] ss:$52 sps:$4 sm:$0xff]  }
 0x7ae   : > { %13267 = vmatpush1.bf16.msra.mxu1 %v17160_v2  ;;  %13122 = vmatprep.subr.bf16.mxu0 %v17165_v62  ;;  %v17250_v2 = vld [vmem:[%s19067_s17 + $0x1040] ss:$52 sps:$4 sm:$0xff]  }
 0x7af   : > { %13268 = vmatprep.subr.bf16.mxu1 %v17168_v43  ;;  %v17211_v62 = vld [vmem:[%s19067_s17 + $0xca0] ss:$52 sps:$4 sm:$0xff]  }
 0x7b0   : > { %v17258_v43 = vld [vmem:[%s19067_s17 + $0x10ac] ss:$52 sps:$4 sm:$0xff]  }
 0x7b1   : > { %13123 = vmatpush1.bf16.msra.mxu0 %v17163_v0  ;;  %v17219_v0 = vld [vmem:[%s19067_s17 + $0xd0c] ss:$52 sps:$4 sm:$0xff]  }
 0x7b2   : > { %13269 = vmatpush1.bf16.msra.mxu1 %v17166_v6  ;;  %13124 = vmatprep.subr.bf16.mxu0 %v17171_v9  ;;  %v17217_v6 = vld [vmem:[%s19067_s17 + $0xd08] ss:$52 sps:$4 sm:$0xff]  }
 0x7b3   : > { %13270 = vmatprep.subr.bf16.mxu1 %v17174_v41  ;;  %v17264_v9 = vld [vmem:[%s19067_s17 + $0x1114] ss:$52 sps:$4 sm:$0xff]  }
 0x7b4   : > { %v17225_v41 = vld [vmem:[%s19067_s17 + $0xd74] ss:$52 sps:$4 sm:$0xff]  }
 0x7b5   : > { %13125 = vmatpush1.bf16.msra.mxu0 %v17169_v18  ;;  %v17262_v18 = vld [vmem:[%s19067_s17 + $0x1110] ss:$52 sps:$4 sm:$0xff]  }
 0x7b6   : > { %13271 = vmatpush1.bf16.msra.mxu1 %v17172_v21  ;;  %13126 = vmatprep.subr.bf16.mxu0 %v17177_v12  ;;  %v17270_v21 = vld [vmem:[%s19067_s17 + $0x117c] ss:$52 sps:$4 sm:$0xff]  }
 0x7b7   : > { %13272 = vmatprep.subr.bf16.mxu1 %v17180_v22  ;;  %v17231_v12 = vld [vmem:[%s19067_s17 + $0xddc] ss:$52 sps:$4 sm:$0xff]   ;;  %v17268_v22 = vld [vmem:[%s19067_s17 + $0x1178] ss:$52 sps:$4 sm:$0xff]  }
 0x7b9   : > { %13127 = vmatpush1.bf16.msra.mxu0 %v17175_v34  ;;  %v17229_v34 = vld [vmem:[%s19067_s17 + $0xdd8] ss:$52 sps:$4 sm:$0xff]  }
 0x7ba   : > { %13273 = vmatpush1.bf16.msra.mxu1 %v17178_v24  ;;  %13137 = vmatprep.subr.bf16.mxu0 %v17204_v25  ;;  %v17237_v24 = vld [vmem:[%s19067_s17 + $0xe44] ss:$52 sps:$4 sm:$0xff]   ;;  %v17274_v25 = vld [vmem:[%s19067_s17 + $0x11e0] ss:$52 sps:$4 sm:$0xff]  }
 0x7bb   : > { %13274 = vmatprep.subr.bf16.mxu1 %v17183_v4  ;;  %v17235_v4 = vld [vmem:[%s19067_s17 + $0xe40] ss:$52 sps:$4 sm:$0xff]  }
 0x7bc   : > { %13129 = vmatmul.mubr.bf16.vlgmr.msra.gmra.mrb[16].mxu0 %v19430_v33 }
 0x7bd   : > { %13138 = vmatpush1.bf16.msra.mxu0 %v17202_v26  ;;  %v17282_v26 = vld [vmem:[%s19067_s17 + $0x124c] ss:$52 sps:$4 sm:$0xff]  }
 0x7be   : > { %13275 = vmatpush1.bf16.msra.mxu1 %v17181_v13  ;;  %13139 = vmatprep.subr.bf16.mxu0 %v17210_v39  ;;  %v17243_v13 = vld [vmem:[%s19067_s17 + $0xeac] ss:$52 sps:$4 sm:$0xff]   ;;  %v17280_v39 = vld [vmem:[%s19067_s17 + $0x1248] ss:$52 sps:$4 sm:$0xff]  }
 0x7bf   : > { %13276 = vmatprep.subr.bf16.mxu1 %v17186_v44  ;;  %v17241_v44 = vld [vmem:[%s19067_s17 + $0xea8] ss:$52 sps:$4 sm:$0xff]  }
 0x7c1   : > { %13140 = vmatpush1.bf16.msra.mxu0 %v17208_v45  ;;  %v17288_v45 = vld [vmem:[%s19067_s17 + $0x12b4] ss:$52 sps:$4 sm:$0xff]  }
 0x7c2   : > { %13277 = vmatpush1.bf16.msra.mxu1 %v17184_v17  ;;  %13141 = vmatprep.subr.bf16.mxu0 %v17216_v28  ;;  %v17249_v17 = vld [vmem:[%s19067_s17 + $0xf14] ss:$52 sps:$4 sm:$0xff]   ;;  %v17286_v28 = vld [vmem:[%s19067_s17 + $0x12b0] ss:$52 sps:$4 sm:$0xff]  }
 0x7c3   : > { %13278 = vmatprep.subr.bf16.mxu1 %v17189_v47  ;;  %v17247_v47 = vld [vmem:[%s19067_s17 + $0xf10] ss:$52 sps:$4 sm:$0xff]  }
 0x7c5   : > { %13142 = vmatpush1.bf16.msra.mxu0 %v17214_v58  ;;  %v17294_v58 = vld [vmem:[%s19067_s17 + $0x131c] ss:$52 sps:$4 sm:$0xff]  }
 0x7c6   : > { %13279 = vmatpush1.bf16.msra.mxu1 %v17187_v7  ;;  %13143 = vmatprep.subr.bf16.mxu0 %v17222_v5  ;;  %v17255_v7 = vld [vmem:[%s19067_s17 + $0xf7c] ss:$52 sps:$4 sm:$0xff]   ;;  %v17292_v5 = vld [vmem:[%s19067_s17 + $0x1318] ss:$52 sps:$4 sm:$0xff]  }
 0x7c7   : > { %13280 = vmatprep.subr.bf16.mxu1 %v17192_v49  ;;  %v17253_v49 = vld [vmem:[%s19067_s17 + $0xf78] ss:$52 sps:$4 sm:$0xff]  }
 0x7c9   : > { %13144 = vmatpush1.bf16.msra.mxu0 %v17220_v10  ;;  %v17300_v10 = vld [vmem:[%s19067_s17 + $0x1384] ss:$52 sps:$4 sm:$0xff]  }
 0x7ca   : > { %13281 = vmatpush1.bf16.msra.mxu1 %v17190_v54  ;;  %13145 = vmatprep.subr.bf16.mxu0 %v17228_v50  ;;  %v17261_v54 = vld [vmem:[%s19067_s17 + $0xfe4] ss:$52 sps:$4 sm:$0xff]   ;;  %v17259_v50 = vld [vmem:[%s19067_s17 + $0xfe0] ss:$52 sps:$4 sm:$0xff]  }
 0x7cb   : > { %13282 = vmatprep.subr.bf16.mxu1 %v17195_v35  ;;  %v17267_v35 = vld [vmem:[%s19067_s17 + $0x104c] ss:$52 sps:$4 sm:$0xff]  }
 0x7cd   : > { %13146 = vmatpush1.bf16.msra.mxu0 %v17226_v38  ;;  %v17265_v38 = vld [vmem:[%s19067_s17 + $0x1048] ss:$52 sps:$4 sm:$0xff]  }
 0x7ce   : > { %13283 = vmatpush1.bf16.msra.mxu1 %v17193_v42  ;;  %13147 = vmatprep.subr.bf16.mxu0 %v17234_v51  ;;  %v17273_v42 = vld [vmem:[%s19067_s17 + $0x10b4] ss:$52 sps:$4 sm:$0xff]   ;;  %v17271_v51 = vld [vmem:[%s19067_s17 + $0x10b0] ss:$52 sps:$4 sm:$0xff]  }
 0x7cf   : > { %13284 = vmatprep.subr.bf16.mxu1 %v17198_v29  ;;  %v17279_v29 = vld [vmem:[%s19067_s17 + $0x111c] ss:$52 sps:$4 sm:$0xff]  }
 0x7d1   : > { %13148 = vmatpush1.bf16.msra.mxu0 %v17232_v52  ;;  %v17277_v52 = vld [vmem:[%s19067_s17 + $0x1118] ss:$52 sps:$4 sm:$0xff]  }
 0x7d2   : > { %13285 = vmatpush1.bf16.msra.mxu1 %v17196_v55  ;;  %13149 = vmatprep.subr.bf16.mxu0 %v17240_v36  ;;  %v17285_v55 = vld [vmem:[%s19067_s17 + $0x1184] ss:$52 sps:$4 sm:$0xff]   ;;  %v17283_v36 = vld [vmem:[%s19067_s17 + $0x1180] ss:$52 sps:$4 sm:$0xff]  }
 0x7d3   : > { %13286 = vmatprep.subr.bf16.mxu1 %v17201_v27  ;;  %v17291_v27 = vld [vmem:[%s19067_s17 + $0x11ec] ss:$52 sps:$4 sm:$0xff]  }
 0x7d5   : > { %13150 = vmatpush1.bf16.msra.mxu0 %v17238_v30  ;;  %v4613_v30 = vrot.slane %v19285_v53, %v19242_v32 }
 0x7d6   : > { %13287 = vmatpush1.bf16.msra.mxu1 %v17199_v40  ;;  %13151 = vmatprep.subr.bf16.mxu0 %v17246_v31  ;;  %v4617_v40 = vrot.slane %v19285_v53, %v19217_v56  ;;  %v17289_v31 = vld [vmem:[%s19067_s17 + $0x11e8] ss:$52 sps:$4 sm:$0xff]  }
 0x7d7   : > { %13288 = vmatprep.subr.bf16.mxu1 %v17207_v57 }
 0x7d9   : > { %13152 = vmatpush1.bf16.msra.mxu0 %v17244_v59  ;;  %v17297_v59 = vld [vmem:[%s19067_s17 + $0x1254] ss:$52 sps:$4 sm:$0xff]  }
 0x7da   : > { %13289 = vmatpush1.bf16.msra.mxu1 %v17205_v60  ;;  %13153 = vmatprep.subr.bf16.mxu0 %v17252_v48 }
 0x7db   : > { %13290 = vmatprep.subr.bf16.mxu1 %v17213_v61 }
 0x7dd   : > { %13154 = vmatpush1.bf16.msra.mxu0 %v17250_v2 }
 0x7de   : > { %13291 = vmatpush1.bf16.msra.mxu1 %v17211_v62  ;;  %13155 = vmatprep.subr.bf16.mxu0 %v17258_v43 }
 0x7df   : > { %13301 = vmatprep.subr.bf16.mxu1 %v17219_v0  ;;  %v17295_v0 = vld [vmem:[%s19067_s17 + $0x1250] ss:$52 sps:$4 sm:$0xff]  }
 0x7e1   : > { %13293 = vmatmul.mubr.bf16.vlgmr.msra.gmra.mrb[28].mxu1 %v19430_v33  ;;  %13156 = vmatpush1.bf16.msra.mxu0 %v17256_v46  ;;  %v17303_v46 = vld [vmem:[%s19067_s17 + $0x12bc] ss:$52 sps:$4 sm:$0xff]  }
 0x7e2   : > { %13302 = vmatpush1.bf16.msra.mxu1 %v17217_v6  ;;  %13157 = vmatprep.subr.bf16.mxu0 %v17264_v9  ;;  %v17298_v9 = vld [vmem:[%s19067_s17 + $0x1380] ss:$52 sps:$4 sm:$0xff]  }
 0x7e3   : > { %13303 = vmatprep.subr.bf16.mxu1 %v17225_v41 }
 0x7e5   : > { %13158 = vmatpush1.bf16.msra.mxu0 %v17262_v18  ;;  %v17301_v18 = vld [vmem:[%s19067_s17 + $0x12b8] ss:$52 sps:$4 sm:$0xff]  }
 0x7e6   : > { %13304 = vmatpush1.bf16.msra.mxu1 %v17223_v19  ;;  %13159 = vmatprep.subr.bf16.mxu0 %v17270_v21  ;;  %v17306_v19 = vld [vmem:[%s19067_s17 + $0x13ec] ss:$52 sps:$4 sm:$0xff]   ;;  %v17309_v21 = vld [vmem:[%s19067_s17 + $0x1324] ss:$52 sps:$4 sm:$0xff]  }
 0x7e7   : > { %13305 = vmatprep.subr.bf16.mxu1 %v17231_v12  ;;  %v17304_v12 = vld [vmem:[%s19067_s17 + $0x13e8] ss:$52 sps:$4 sm:$0xff]  }
 0x7e9   : > { %13160 = vmatpush1.bf16.msra.mxu0 %v17268_v22  ;;  %v17307_v22 = vld [vmem:[%s19067_s17 + $0x1320] ss:$52 sps:$4 sm:$0xff]  }
 0x7ea   : > { %13306 = vmatpush1.bf16.msra.mxu1 %v17229_v34  ;;  %13161 = vmatprep.subr.bf16.mxu0 %v17276_v23  ;;  %v17312_v34 = vld [vmem:[%s19067_s17 + $0x1454] ss:$52 sps:$4 sm:$0xff]   ;;  %v17315_v23 = vld [vmem:[%s19067_s17 + $0x138c] ss:$52 sps:$4 sm:$0xff]  }
 0x7eb   : > { %13307 = vmatprep.subr.bf16.mxu1 %v17237_v24  ;;  %v17310_v24 = vld [vmem:[%s19067_s17 + $0x1450] ss:$52 sps:$4 sm:$0xff]  }
 0x7ed   : > { %13162 = vmatpush1.bf16.msra.mxu0 %v17274_v25  ;;  %v17313_v25 = vld [vmem:[%s19067_s17 + $0x1388] ss:$52 sps:$4 sm:$0xff]  }
 0x7ee   : > { %13308 = vmatpush1.bf16.msra.mxu1 %v17235_v4  ;;  %13163 = vmatprep.subr.bf16.mxu0 %v17282_v26  ;;  %v17318_v4 = vld [vmem:[%s19067_s17 + $0x14bc] ss:$52 sps:$4 sm:$0xff]   ;;  %v17321_v26 = vld [vmem:[%s19067_s17 + $0x13f4] ss:$52 sps:$4 sm:$0xff]  }
 0x7ef   : > { %13309 = vmatprep.subr.bf16.mxu1 %v17243_v13  ;;  %v17316_v13 = vld [vmem:[%s19067_s17 + $0x14b8] ss:$52 sps:$4 sm:$0xff]  }
 0x7f1   : > { %13164 = vmatpush1.bf16.msra.mxu0 %v17280_v39  ;;  %v17319_v39 = vld [vmem:[%s19067_s17 + $0x13f0] ss:$52 sps:$4 sm:$0xff]  }
 0x7f2   : > { %13310 = vmatpush1.bf16.msra.mxu1 %v17241_v44  ;;  %13165 = vmatprep.subr.bf16.mxu0 %v17288_v45  ;;  %v17324_v44 = vld [vmem:[%s19067_s17 + $0x1524] ss:$52 sps:$4 sm:$0xff]   ;;  %v17327_v45 = vld [vmem:[%s19067_s17 + $0x145c] ss:$52 sps:$4 sm:$0xff]  }
 0x7f3   : > { %13311 = vmatprep.subr.bf16.mxu1 %v17249_v17  ;;  %v17322_v17 = vld [vmem:[%s19067_s17 + $0x1520] ss:$52 sps:$4 sm:$0xff]  }
 0x7f5   : > { %13166 = vmatpush1.bf16.msra.mxu0 %v17286_v28  ;;  %v17325_v28 = vld [vmem:[%s19067_s17 + $0x1458] ss:$52 sps:$4 sm:$0xff]  }
 0x7f6   : > { %13312 = vmatpush1.bf16.msra.mxu1 %v17247_v47  ;;  %13167 = vmatprep.subr.bf16.mxu0 %v17294_v58  ;;  %v17330_v47 = vld [vmem:[%s19067_s17 + $0x158c] ss:$52 sps:$4 sm:$0xff]   ;;  %v17333_v58 = vld [vmem:[%s19067_s17 + $0x14c4] ss:$52 sps:$4 sm:$0xff]  }
 0x7f7   : > { %13313 = vmatprep.subr.bf16.mxu1 %v17255_v7  ;;  %v17328_v7 = vld [vmem:[%s19067_s17 + $0x1588] ss:$52 sps:$4 sm:$0xff]  }
 0x7f9   : > { %13168 = vmatpush1.bf16.msra.mxu0 %v17292_v5  ;;  %v17331_v5 = vld [vmem:[%s19067_s17 + $0x14c0] ss:$52 sps:$4 sm:$0xff]  }
 0x7fa   : > { %13314 = vmatpush1.bf16.msra.mxu1 %v17253_v49  ;;  %13178 = vmatprep.subr.bf16.mxu0 %v17300_v10  ;;  %v17336_v49 = vld [vmem:[%s19067_s17 + $0x15f4] ss:$52 sps:$4 sm:$0xff]   ;;  %v17339_v10 = vld [vmem:[%s19067_s17 + $0x152c] ss:$52 sps:$4 sm:$0xff]  }
 0x7fb   : > { %13315 = vmatprep.subr.bf16.mxu1 %v17261_v54  ;;  %v17334_v54 = vld [vmem:[%s19067_s17 + $0x15f0] ss:$52 sps:$4 sm:$0xff]  }
 0x7fe   : > { %13316 = vmatpush1.bf16.msra.mxu1 %v17259_v50  ;;  %v17337_v50 = vld [vmem:[%s19067_s17 + $0x1528] ss:$52 sps:$4 sm:$0xff]  }
 0x7ff   : > { %13317 = vmatprep.subr.bf16.mxu1 %v17267_v35  ;;  %v17342_v35 = vld [vmem:[%s19067_s17 + $0x165c] ss:$52 sps:$4 sm:$0xff]  }
 0x802   : > { %13318 = vmatpush1.bf16.msra.mxu1 %v17265_v38  ;;  %v17345_v38 = vld [vmem:[%s19067_s17 + $0x1594] ss:$52 sps:$4 sm:$0xff]  }
 0x803   : > { %13319 = vmatprep.subr.bf16.mxu1 %v17273_v42  ;;  %v17340_v42 = vld [vmem:[%s19067_s17 + $0x1658] ss:$52 sps:$4 sm:$0xff]  }
 0x806   : > { %13320 = vmatpush1.bf16.msra.mxu1 %v17271_v51  ;;  %v19552_v51 = vld [vmem:[#allocation15] sm:$0xff] }
 0x807   : > { %13321 = vmatprep.subr.bf16.mxu1 %v17279_v29  ;;  %v4625_v29 = vrot.slane %v19552_v51, %v19255_v14 }
 0x80a   : > { %13322 = vmatpush1.bf16.msra.mxu1 %v17277_v52  ;;  %v17343_v52 = vld [vmem:[%s19067_s17 + $0x1590] ss:$52 sps:$4 sm:$0xff]  }
 0x80b   : > { %13323 = vmatprep.subr.bf16.mxu1 %v17285_v55  ;;  %v17348_v55 = vld [vmem:[%s19067_s17 + $0x16c4] ss:$52 sps:$4 sm:$0xff]  }
 0x80e   : > { %13324 = vmatpush1.bf16.msra.mxu1 %v17283_v36  ;;  %v17351_v36 = vld [vmem:[%s19067_s17 + $0x15fc] ss:$52 sps:$4 sm:$0xff]  }
 0x80f   : > { %v7679_v57 = vpop.f32.mrb[12].mxu0  ;;  %13325 = vmatprep.subr.bf16.mxu1 %v17291_v27 }
 0x810   : > { %v16400_v60 = vadd.f32 %v7679_v57, %v4613_v30  ;;  %v7681_v48 = vpop.f32.mrb[13].mxu0 }
 0x811   : > { %v16401_v61 = vadd.f32 %v7681_v48, %v4617_v40  ;;  %v7683_v2 = vpop.f32.mrb[14].mxu0  ;;  %v17346_v40 = vld [vmem:[%s19067_s17 + $0x16c0] ss:$52 sps:$4 sm:$0xff]  }
 0x812   : > { %v7854_v62 = vmax.f32 %v16400_v60, 0.0  ;;  %v7684_v43 = vpop.f32.mrb[15].mxu0  ;;  %13326 = vmatpush1.bf16.msra.mxu1 %v17289_v31  ;;  %v17354_v60 = vld [vmem:[%s19067_s17 + $0x172c] ss:$52 sps:$4 sm:$0xff]  }
 0x813   : > { %v7855_v53 = vmax.f32 %v16401_v61, 0.0  ;;  %13327 = vmatprep.subr.bf16.mxu1 %v17297_v59  ;;  %v17349_v59 = vld [vmem:[%s19067_s17 + $0x15f8] ss:$52 sps:$4 sm:$0xff]  }
 0x814   : > { %v19518_v41 = vpack.c.bf16 %v7854_v62, %v7854_v62  ;;  %v17357_v61 = vld [vmem:[%s19067_s17 + $0x1664] ss:$52 sps:$4 sm:$0xff]   ;;  %v17352_v62 = vld [vmem:[%s19067_s17 + $0x1728] ss:$52 sps:$4 sm:$0xff]  }
 0x815   : > { %v19515_v6 = vpack.c.bf16 %v7855_v53, %v7855_v53  ;;  %v17360_v53 = vld [vmem:[%s19067_s17 + $0x1794] ss:$52 sps:$4 sm:$0xff]  }
 0x816   : > { %13328 = vmatpush1.bf16.msra.mxu1 %v17295_v0  ;;  %v17355_v0 = vld [vmem:[%s19067_s17 + $0x1660] ss:$52 sps:$4 sm:$0xff]  }
 0x817   : > { %13169 = vmatprep.mubr.bf16.mxu0 %v19515_v6  ;;  %13333 = vmatprep.mubr.bf16.mxu1 %v19515_v6 }
 0x818   : > { %13170 = vmatmul.mubr.bf16.vlgmr.msra.gmra.mrb[16].mxu0 %v19518_v41  ;;  %13329 = vmatprep.subr.bf16.mxu1 %v17303_v46  ;;  %v17363_v46 = vld [vmem:[%s19067_s17 + $0x16cc] ss:$52 sps:$4 sm:$0xff]  }
 0x819   : > { %13179 = vmatpush1.bf16.msra.mxu0 %v17298_v9  ;;  %v17358_v9 = vld [vmem:[%s19067_s17 + $0x1790] ss:$52 sps:$4 sm:$0xff]  }
 0x81a   : > { %13330 = vmatpush1.bf16.msra.mxu1 %v17301_v18  ;;  %13180 = vmatprep.subr.bf16.mxu0 %v17306_v19  ;;  %v17361_v18 = vld [vmem:[%s19067_s17 + $0x16c8] ss:$52 sps:$4 sm:$0xff]  }
 0x81b   : > { %13331 = vmatprep.subr.bf16.mxu1 %v17309_v21  ;;  %v17366_v19 = vld [vmem:[%s19067_s17 + $0x17fc] ss:$52 sps:$4 sm:$0xff]   ;;  %v17369_v21 = vld [vmem:[%s19067_s17 + $0x1734] ss:$52 sps:$4 sm:$0xff]  }
 0x81d   : > { %13181 = vmatpush1.bf16.msra.mxu0 %v17304_v12  ;;  %v17364_v12 = vld [vmem:[%s19067_s17 + $0x17f8] ss:$52 sps:$4 sm:$0xff]  }
 0x81e   : > { %13332 = vmatpush1.bf16.msra.mxu1 %v17307_v22  ;;  %13182 = vmatprep.subr.bf16.mxu0 %v17312_v34  ;;  %v17367_v22 = vld [vmem:[%s19067_s17 + $0x1730] ss:$52 sps:$4 sm:$0xff]  }
 0x81f   : > { %13342 = vmatprep.subr.bf16.mxu1 %v17315_v23  ;;  %v17372_v34 = vld [vmem:[%s19067_s17 + $0x1864] ss:$52 sps:$4 sm:$0xff]   ;;  %v17375_v23 = vld [vmem:[%s19067_s17 + $0x179c] ss:$52 sps:$4 sm:$0xff]  }
 0x821   : > { %13183 = vmatpush1.bf16.msra.mxu0 %v17310_v24  ;;  %13334 = vmatmul.mubr.bf16.vlgmr.msra.gmra.mrb[28].mxu1 %v19518_v41  ;;  %v17370_v24 = vld [vmem:[%s19067_s17 + $0x1860] ss:$52 sps:$4 sm:$0xff]  }
 0x822   : > { %13343 = vmatpush1.bf16.msra.mxu1 %v17313_v25  ;;  %13184 = vmatprep.subr.bf16.mxu0 %v17318_v4  ;;  %v17373_v25 = vld [vmem:[%s19067_s17 + $0x1798] ss:$52 sps:$4 sm:$0xff]  }
 0x823   : > { %13344 = vmatprep.subr.bf16.mxu1 %v17321_v26  ;;  %v17378_v4 = vld [vmem:[%s19067_s17 + $0x18cc] ss:$52 sps:$4 sm:$0xff]   ;;  %v17381_v26 = vld [vmem:[%s19067_s17 + $0x1804] ss:$52 sps:$4 sm:$0xff]  }
 0x825   : > { %13185 = vmatpush1.bf16.msra.mxu0 %v17316_v13  ;;  %v17376_v13 = vld [vmem:[%s19067_s17 + $0x18c8] ss:$52 sps:$4 sm:$0xff]  }
 0x826   : > { %13345 = vmatpush1.bf16.msra.mxu1 %v17319_v39  ;;  %13186 = vmatprep.subr.bf16.mxu0 %v17324_v44  ;;  %v4621_v39 = vrot.slane %v19552_v51, %v19252_v8  ;;  %v17379_v44 = vld [vmem:[%s19067_s17 + $0x1800] ss:$52 sps:$4 sm:$0xff]   ;;  %v17397_v51 = vld [vmem:[%s19067_s17 + $0x1938] ss:$52 sps:$4 sm:$0xff]  }
 0x827   : > { %13346 = vmatprep.subr.bf16.mxu1 %v17327_v45  ;;  %v17384_v45 = vld [vmem:[%s19067_s17 + $0x1934] ss:$52 sps:$4 sm:$0xff]  }
 0x829   : > { %13187 = vmatpush1.bf16.msra.mxu0 %v17322_v17  ;;  %v17387_v17 = vld [vmem:[%s19067_s17 + $0x186c] ss:$52 sps:$4 sm:$0xff]  }
 0x82a   : > { %13347 = vmatpush1.bf16.msra.mxu1 %v17325_v28  ;;  %13188 = vmatprep.subr.bf16.mxu0 %v17330_v47  ;;  %v17382_v28 = vld [vmem:[%s19067_s17 + $0x1930] ss:$52 sps:$4 sm:$0xff]  }
 0x82b   : > { %13348 = vmatprep.subr.bf16.mxu1 %v17333_v58  ;;  %v17385_v58 = vld [vmem:[%s19067_s17 + $0x1868] ss:$52 sps:$4 sm:$0xff]  }
 0x82d   : > { %13189 = vmatpush1.bf16.msra.mxu0 %v17328_v7  ;;  %v17390_v7 = vld [vmem:[%s19067_s17 + $0x199c] ss:$52 sps:$4 sm:$0xff]  }
 0x82e   : > { %13349 = vmatpush1.bf16.msra.mxu1 %v17331_v5  ;;  %13190 = vmatprep.subr.bf16.mxu0 %v17336_v49  ;;  %v17393_v5 = vld [vmem:[%s19067_s17 + $0x18d4] ss:$52 sps:$4 sm:$0xff]   ;;  %v17388_v49 = vld [vmem:[%s19067_s17 + $0x1998] ss:$52 sps:$4 sm:$0xff]  }
 0x82f   : > { %13350 = vmatprep.subr.bf16.mxu1 %v17339_v10 }
 0x831   : > { %13191 = vmatpush1.bf16.msra.mxu0 %v17334_v54  ;;  %v17391_v54 = vld [vmem:[%s19067_s17 + $0x18d0] ss:$52 sps:$4 sm:$0xff]  }
 0x832   : > { %13351 = vmatpush1.bf16.msra.mxu1 %v17337_v50  ;;  %13192 = vmatprep.subr.bf16.mxu0 %v17342_v35  ;;  %v17396_v50 = vld [vmem:[%s19067_s17 + $0x14] ss:$52 sps:$4 sm:$0xff]   ;;  %v17399_v35 = vld [vmem:[%s19067_s17 + $0x193c] ss:$52 sps:$4 sm:$0xff]  }
 0x833   : > { %13352 = vmatprep.subr.bf16.mxu1 %v17345_v38  ;;  %v17394_v38 = vld [vmem:[%s19067_s17 + $0x10] ss:$52 sps:$4 sm:$0xff]  }
 0x834   : > { %v7843_v27 = vpop.f32.mrb[24].mxu1 }
 0x835   : > { %13193 = vmatpush1.bf16.msra.mxu0 %v17340_v42  ;;  %v7845_v30 = vpop.f32.mrb[25].mxu1  ;;  %v16402_v47 = vadd.f32 %v7843_v27, %v4621_v39  ;;  %v17408_v27 = vld [vmem:[%s19067_s17 + $0xe4] ss:$52 sps:$4 sm:$0xff]   ;;  %v17445_v39 = vld [vmem:[%s19067_s17 + $0x288] ss:$52 sps:$4 sm:$0xff]  }
 0x836   : > { %v16403_v31 = vadd.f32 %v7845_v30, %v4625_v29  ;;  %v7847_v57 = vpop.f32.mrb[26].mxu1  ;;  %13353 = vmatpush1.bf16.msra.mxu1 %v17343_v52  ;;  %13194 = vmatprep.subr.bf16.mxu0 %v17348_v55  ;;  %v17402_v29 = vld [vmem:[%s19067_s17 + $0x7c] ss:$52 sps:$4 sm:$0xff]   ;;  %v17405_v52 = vld [vmem:[%s19067_s17 + $0x19a4] ss:$52 sps:$4 sm:$0xff]  }
 0x837   : > { %v7848_v48 = vpop.f32.mrb[27].mxu1  ;;  %13354 = vmatprep.subr.bf16.mxu1 %v17351_v36  ;;  %v7856_v10 = vmax.f32 %v16402_v47, 0.0  ;;  %v17400_v55 = vld [vmem:[%s19067_s17 + $0x78] ss:$52 sps:$4 sm:$0xff]   ;;  %v17403_v36 = vld [vmem:[%s19067_s17 + $0x19a0] ss:$52 sps:$4 sm:$0xff]  }
 0x838   : > { %v7857_v2 = vmax.f32 %v16403_v31, 0.0  ;;  %v17411_v30 = vld [vmem:[%s19067_s17 + $0x1c] ss:$52 sps:$4 sm:$0xff]   ;;  %v17409_v31 = vld [vmem:[%s19067_s17 + $0x18] ss:$52 sps:$4 sm:$0xff]  }
 0x839   : > { %13195 = vmatpush1.bf16.msra.mxu0 %v17346_v40  ;;  %v19598_v42 = vpack.c.bf16 %v7856_v10, %v7856_v10  ;;  %v17406_v40 = vld [vmem:[%s19067_s17 + $0xe0] ss:$52 sps:$4 sm:$0xff]   ;;  %v17456_v47 = vld [vmem:[%s19067_s17 + $0x424] ss:$52 sps:$4 sm:$0xff]  }
 0x83a   : > { %v19564_v43 = vpack.c.bf16 %v7857_v2, %v7857_v2  ;;  %13355 = vmatpush1.bf16.msra.mxu1 %v17349_v59  ;;  %13196 = vmatprep.subr.bf16.mxu0 %v17354_v60  ;;  %v17414_v57 = vld [vmem:[%s19067_s17 + $0x14c] ss:$52 sps:$4 sm:$0xff]   ;;  %v17417_v59 = vld [vmem:[%s19067_s17 + $0x84] ss:$52 sps:$4 sm:$0xff]   ;;  %v17412_v60 = vld [vmem:[%s19067_s17 + $0x148] ss:$52 sps:$4 sm:$0xff]  }
 0x83b   : > { %13356 = vmatprep.subr.bf16.mxu1 %v17357_v61  ;;  %v17415_v48 = vld [vmem:[%s19067_s17 + $0x80] ss:$52 sps:$4 sm:$0xff]   ;;  %v17465_v10 = vld [vmem:[%s19067_s17 + $0x3c4] ss:$52 sps:$4 sm:$0xff]  }
 0x83c   : > { %13210 = vmatprep.mubr.bf16.mxu0 %v19564_v43  ;;  %13374 = vmatprep.mubr.bf16.mxu1 %v19564_v43  ;;  %v17420_v61 = vld [vmem:[%s19067_s17 + $0x1b4] ss:$52 sps:$4 sm:$0xff]   ;;  %v17423_v2 = vld [vmem:[%s19067_s17 + $0xec] ss:$52 sps:$4 sm:$0xff]  }
 0x83d   : > { %13197 = vmatpush1.bf16.msra.mxu0 %v17352_v62  ;;  %v17418_v62 = vld [vmem:[%s19067_s17 + $0x1b0] ss:$52 sps:$4 sm:$0xff]  }
 0x83e   : > { %13357 = vmatpush1.bf16.msra.mxu1 %v17355_v0  ;;  %13198 = vmatprep.subr.bf16.mxu0 %v17360_v53  ;;  %v17421_v0 = vld [vmem:[%s19067_s17 + $0xe8] ss:$52 sps:$4 sm:$0xff]  }
 0x83f   : > { %13358 = vmatprep.subr.bf16.mxu1 %v17363_v46  ;;  %v17426_v53 = vld [vmem:[%s19067_s17 + $0x21c] ss:$52 sps:$4 sm:$0xff]   ;;  %v17429_v46 = vld [vmem:[%s19067_s17 + $0x154] ss:$52 sps:$4 sm:$0xff]  }
 0x841   : > { %13199 = vmatpush1.bf16.msra.mxu0 %v17358_v9  ;;  %v17424_v9 = vld [vmem:[%s19067_s17 + $0x218] ss:$52 sps:$4 sm:$0xff]  }
 0x842   : > { %13359 = vmatpush1.bf16.msra.mxu1 %v17361_v18  ;;  %13200 = vmatprep.subr.bf16.mxu0 %v17366_v19  ;;  %v17427_v18 = vld [vmem:[%s19067_s17 + $0x150] ss:$52 sps:$4 sm:$0xff]  }
 0x843   : > { %13360 = vmatprep.subr.bf16.mxu1 %v17369_v21  ;;  %v17432_v19 = vld [vmem:[%s19067_s17 + $0x284] ss:$52 sps:$4 sm:$0xff]   ;;  %v17435_v21 = vld [vmem:[%s19067_s17 + $0x1bc] ss:$52 sps:$4 sm:$0xff]  }
 0x845   : > { %13201 = vmatpush1.bf16.msra.mxu0 %v17364_v12  ;;  %v17430_v12 = vld [vmem:[%s19067_s17 + $0x280] ss:$52 sps:$4 sm:$0xff]  }
 0x846   : > { %13361 = vmatpush1.bf16.msra.mxu1 %v17367_v22  ;;  %13202 = vmatprep.subr.bf16.mxu0 %v17372_v34  ;;  %v17433_v22 = vld [vmem:[%s19067_s17 + $0x1b8] ss:$52 sps:$4 sm:$0xff]  }
 0x847   : > { %13362 = vmatprep.subr.bf16.mxu1 %v17375_v23  ;;  %v17438_v34 = vld [vmem:[%s19067_s17 + $0x2ec] ss:$52 sps:$4 sm:$0xff]   ;;  %v17441_v23 = vld [vmem:[%s19067_s17 + $0x224] ss:$52 sps:$4 sm:$0xff]  }
 0x849   : > { %13203 = vmatpush1.bf16.msra.mxu0 %v17370_v24  ;;  %v17436_v24 = vld [vmem:[%s19067_s17 + $0x2e8] ss:$52 sps:$4 sm:$0xff]  }
 0x84a   : > { %13363 = vmatpush1.bf16.msra.mxu1 %v17373_v25  ;;  %13204 = vmatprep.subr.bf16.mxu0 %v17378_v4  ;;  %v17439_v25 = vld [vmem:[%s19067_s17 + $0x220] ss:$52 sps:$4 sm:$0xff]  }
 0x84b   : > { %13364 = vmatprep.subr.bf16.mxu1 %v17381_v26  ;;  %v17444_v4 = vld [vmem:[%s19067_s17 + $0x354] ss:$52 sps:$4 sm:$0xff]   ;;  %v17447_v26 = vld [vmem:[%s19067_s17 + $0x28c] ss:$52 sps:$4 sm:$0xff]  }
 0x84d   : > { %13205 = vmatpush1.bf16.msra.mxu0 %v17376_v13  ;;  %v17442_v13 = vld [vmem:[%s19067_s17 + $0x350] ss:$52 sps:$4 sm:$0xff]  }
 0x84e   : > { %13365 = vmatpush1.bf16.msra.mxu1 %v17379_v44  ;;  %13206 = vmatprep.subr.bf16.mxu0 %v17384_v45  ;;  %v17450_v44 = vld [vmem:[%s19067_s17 + $0x3bc] ss:$52 sps:$4 sm:$0xff]   ;;  %v17453_v45 = vld [vmem:[%s19067_s17 + $0x2f4] ss:$52 sps:$4 sm:$0xff]  }
 0x84f   : > { %13366 = vmatprep.subr.bf16.mxu1 %v17387_v17  ;;  %v17448_v17 = vld [vmem:[%s19067_s17 + $0x3b8] ss:$52 sps:$4 sm:$0xff]  }
 0x851   : > { %13207 = vmatpush1.bf16.msra.mxu0 %v17382_v28  ;;  %v17451_v28 = vld [vmem:[%s19067_s17 + $0x2f0] ss:$52 sps:$4 sm:$0xff]  }
 0x852   : > { %13367 = vmatpush1.bf16.msra.mxu1 %v17385_v58  ;;  %13208 = vmatprep.subr.bf16.mxu0 %v17390_v7  ;;  %v17459_v58 = vld [vmem:[%s19067_s17 + $0x35c] ss:$52 sps:$4 sm:$0xff]   ;;  %v17454_v7 = vld [vmem:[%s19067_s17 + $0x420] ss:$52 sps:$4 sm:$0xff]  }
 0x853   : > { %13368 = vmatprep.subr.bf16.mxu1 %v17393_v5  ;;  %v17457_v5 = vld [vmem:[%s19067_s17 + $0x358] ss:$52 sps:$4 sm:$0xff]  }
 0x855   : > { %13209 = vmatpush1.bf16.msra.mxu0 %v17388_v49  ;;  %v17462_v49 = vld [vmem:[%s19067_s17 + $0x48c] ss:$52 sps:$4 sm:$0xff]  }
 0x856   : > { %13369 = vmatpush1.bf16.msra.mxu1 %v17391_v54  ;;  %13383 = vmatprep.subr.bf16.mxu0 %v17396_v50  ;;  %v17460_v54 = vld [vmem:[%s19067_s17 + $0x488] ss:$52 sps:$4 sm:$0xff]   ;;  %v17463_v50 = vld [vmem:[%s19067_s17 + $0x3c0] ss:$52 sps:$4 sm:$0xff]  }
 0x857   : > { %13370 = vmatprep.subr.bf16.mxu1 %v17399_v35  ;;  %v17468_v35 = vld [vmem:[%s19067_s17 + $0x4f4] ss:$52 sps:$4 sm:$0xff]  }
 0x858   : > { %13211 = vmatmul.mubr.bf16.vlgmr.msra.gmra.mrb[16].mxu0 %v19598_v42 }
 0x859   : > { %13384 = vmatpush1.bf16.msra.mxu0 %v17394_v38  ;;  %13415 = vmatprep.mubr.bf16.mxu0 %v19297_v37  ;;  %v17471_v38 = vld [vmem:[%s19067_s17 + $0x42c] ss:$52 sps:$4 sm:$0xff]  }
 0x85a   : > { %13371 = vmatpush1.bf16.msra.mxu1 %v17397_v51  ;;  %13385 = vmatprep.subr.bf16.mxu0 %v17402_v29  ;;  %v17466_v51 = vld [vmem:[%s19067_s17 + $0x4f0] ss:$52 sps:$4 sm:$0xff]   ;;  %v17469_v29 = vld [vmem:[%s19067_s17 + $0x428] ss:$52 sps:$4 sm:$0xff]  }
 0x85b   : > { %13372 = vmatprep.subr.bf16.mxu1 %v17405_v52  ;;  %v17474_v52 = vld [vmem:[%s19067_s17 + $0x55c] ss:$52 sps:$4 sm:$0xff]  }
 0x85d   : > { %13386 = vmatpush1.bf16.msra.mxu0 %v17400_v55  ;;  %v17477_v55 = vld [vmem:[%s19067_s17 + $0x494] ss:$52 sps:$4 sm:$0xff]  }
 0x85e   : > { %13373 = vmatpush1.bf16.msra.mxu1 %v17403_v36  ;;  %13387 = vmatprep.subr.bf16.mxu0 %v17408_v27  ;;  %v17472_v36 = vld [vmem:[%s19067_s17 + $0x558] ss:$52 sps:$4 sm:$0xff]   ;;  %v17475_v27 = vld [vmem:[%s19067_s17 + $0x490] ss:$52 sps:$4 sm:$0xff]  }
 0x85f   : > { %13547 = vmatprep.subr.bf16.mxu1 %v17411_v30  ;;  %v17480_v30 = vld [vmem:[%s19067_s17 + $0x5c4] ss:$52 sps:$4 sm:$0xff]  }
 0x861   : > { %13388 = vmatpush1.bf16.msra.mxu0 %v17406_v40  ;;  %13375 = vmatmul.mubr.bf16.vlgmr.msra.gmra.mrb[28].mxu1 %v19598_v42  ;;  %v17483_v40 = vld [vmem:[%s19067_s17 + $0x4fc] ss:$52 sps:$4 sm:$0xff]  }
 0x862   : > { %13548 = vmatpush1.bf16.msra.mxu1 %v17409_v31  ;;  %13579 = vmatprep.mubr.bf16.mxu1 %v19297_v37  ;;  %v17478_v31 = vld [vmem:[%s19067_s17 + $0x5c0] ss:$52 sps:$4 sm:$0xff]  }
 0x863   : > { %13389 = vmatprep.subr.bf16.mxu0 %v17414_v57  ;;  %13549 = vmatprep.subr.bf16.mxu1 %v17417_v59  ;;  %v17481_v57 = vld [vmem:[%s19067_s17 + $0x4f8] ss:$52 sps:$4 sm:$0xff]  }
 0x864   : > { %v17486_v59 = vld [vmem:[%s19067_s17 + $0x62c] ss:$52 sps:$4 sm:$0xff]  }
 0x865   : > { %13390 = vmatpush1.bf16.msra.mxu0 %v17412_v60  ;;  %v17489_v60 = vld [vmem:[%s19067_s17 + $0x564] ss:$52 sps:$4 sm:$0xff]  }
 0x866   : > { %13550 = vmatpush1.bf16.msra.mxu1 %v17415_v48  ;;  %13391 = vmatprep.subr.bf16.mxu0 %v17420_v61  ;;  %v17484_v48 = vld [vmem:[%s19067_s17 + $0x628] ss:$52 sps:$4 sm:$0xff]   ;;  %v17487_v61 = vld [vmem:[%s19067_s17 + $0x560] ss:$52 sps:$4 sm:$0xff]  }
 0x867   : > { %13551 = vmatprep.subr.bf16.mxu1 %v17423_v2  ;;  %v17492_v2 = vld [vmem:[%s19067_s17 + $0x694] ss:$52 sps:$4 sm:$0xff]  }
 0x869   : > { %13392 = vmatpush1.bf16.msra.mxu0 %v17418_v62  ;;  %v17495_v62 = vld [vmem:[%s19067_s17 + $0x5cc] ss:$52 sps:$4 sm:$0xff]  }
 0x86a   : > { %13552 = vmatpush1.bf16.msra.mxu1 %v17421_v0  ;;  %13393 = vmatprep.subr.bf16.mxu0 %v17426_v53  ;;  %v17490_v0 = vld [vmem:[%s19067_s17 + $0x690] ss:$52 sps:$4 sm:$0xff]   ;;  %v17493_v53 = vld [vmem:[%s19067_s17 + $0x5c8] ss:$52 sps:$4 sm:$0xff]  }
 0x86b   : > { %13553 = vmatprep.subr.bf16.mxu1 %v17429_v46  ;;  %v17498_v46 = vld [vmem:[%s19067_s17 + $0x6fc] ss:$52 sps:$4 sm:$0xff]  }
 0x86d   : > { %13394 = vmatpush1.bf16.msra.mxu0 %v17424_v9  ;;  %v17501_v9 = vld [vmem:[%s19067_s17 + $0x634] ss:$52 sps:$4 sm:$0xff]  }
 0x86e   : > { %13554 = vmatpush1.bf16.msra.mxu1 %v17427_v18  ;;  %13395 = vmatprep.subr.bf16.mxu0 %v17432_v19  ;;  %v17496_v18 = vld [vmem:[%s19067_s17 + $0x6f8] ss:$52 sps:$4 sm:$0xff]   ;;  %v17499_v19 = vld [vmem:[%s19067_s17 + $0x630] ss:$52 sps:$4 sm:$0xff]  }
 0x86f   : > { %13555 = vmatprep.subr.bf16.mxu1 %v17435_v21  ;;  %v17504_v21 = vld [vmem:[%s19067_s17 + $0x764] ss:$52 sps:$4 sm:$0xff]  }
 0x871   : > { %13396 = vmatpush1.bf16.msra.mxu0 %v17430_v12  ;;  %v17507_v12 = vld [vmem:[%s19067_s17 + $0x69c] ss:$52 sps:$4 sm:$0xff]  }
 0x872   : > { %13556 = vmatpush1.bf16.msra.mxu1 %v17433_v22  ;;  %13397 = vmatprep.subr.bf16.mxu0 %v17438_v34  ;;  %v17502_v22 = vld [vmem:[%s19067_s17 + $0x760] ss:$52 sps:$4 sm:$0xff]   ;;  %v17505_v34 = vld [vmem:[%s19067_s17 + $0x698] ss:$52 sps:$4 sm:$0xff]  }
 0x873   : > { %13557 = vmatprep.subr.bf16.mxu1 %v17441_v23  ;;  %v17510_v23 = vld [vmem:[%s19067_s17 + $0x7cc] ss:$52 sps:$4 sm:$0xff]  }
 0x875   : > { %13398 = vmatpush1.bf16.msra.mxu0 %v17436_v24  ;;  %v17513_v24 = vld [vmem:[%s19067_s17 + $0x704] ss:$52 sps:$4 sm:$0xff]  }
 0x876   : > { %13558 = vmatpush1.bf16.msra.mxu1 %v17439_v25  ;;  %13399 = vmatprep.subr.bf16.mxu0 %v17444_v4  ;;  %v17508_v25 = vld [vmem:[%s19067_s17 + $0x7c8] ss:$52 sps:$4 sm:$0xff]   ;;  %v17511_v4 = vld [vmem:[%s19067_s17 + $0x700] ss:$52 sps:$4 sm:$0xff]  }
 0x877   : > { %13559 = vmatprep.subr.bf16.mxu1 %v17447_v26  ;;  %v17516_v26 = vld [vmem:[%s19067_s17 + $0x834] ss:$52 sps:$4 sm:$0xff]  }
 0x879   : > { %13400 = vmatpush1.bf16.msra.mxu0 %v17442_v13  ;;  %v17519_v13 = vld [vmem:[%s19067_s17 + $0x76c] ss:$52 sps:$4 sm:$0xff]  }
 0x87a   : > { %13560 = vmatpush1.bf16.msra.mxu1 %v17445_v39  ;;  %13401 = vmatprep.subr.bf16.mxu0 %v17450_v44  ;;  %v17514_v39 = vld [vmem:[%s19067_s17 + $0x830] ss:$52 sps:$4 sm:$0xff]   ;;  %v17517_v44 = vld [vmem:[%s19067_s17 + $0x768] ss:$52 sps:$4 sm:$0xff]  }
 0x87b   : > { %13561 = vmatprep.subr.bf16.mxu1 %v17453_v45  ;;  %v17522_v45 = vld [vmem:[%s19067_s17 + $0x89c] ss:$52 sps:$4 sm:$0xff]  }
 0x87d   : > { %13402 = vmatpush1.bf16.msra.mxu0 %v17448_v17  ;;  %v17525_v17 = vld [vmem:[%s19067_s17 + $0x7d4] ss:$52 sps:$4 sm:$0xff]  }
 0x87e   : > { %13562 = vmatpush1.bf16.msra.mxu1 %v17451_v28  ;;  %13403 = vmatprep.subr.bf16.mxu0 %v17456_v47  ;;  %v17520_v28 = vld [vmem:[%s19067_s17 + $0x898] ss:$52 sps:$4 sm:$0xff]   ;;  %v17523_v47 = vld [vmem:[%s19067_s17 + $0x7d0] ss:$52 sps:$4 sm:$0xff]  }
 0x87f   : > { %13563 = vmatprep.subr.bf16.mxu1 %v17459_v58  ;;  %v17528_v58 = vld [vmem:[%s19067_s17 + $0x904] ss:$52 sps:$4 sm:$0xff]  }
 0x881   : > { %13404 = vmatpush1.bf16.msra.mxu0 %v17454_v7  ;;  %v17531_v7 = vld [vmem:[%s19067_s17 + $0x83c] ss:$52 sps:$4 sm:$0xff]  }
 0x882   : > { %13564 = vmatpush1.bf16.msra.mxu1 %v17457_v5  ;;  %13405 = vmatprep.subr.bf16.mxu0 %v17462_v49  ;;  %v17526_v5 = vld [vmem:[%s19067_s17 + $0x900] ss:$52 sps:$4 sm:$0xff]   ;;  %v17529_v49 = vld [vmem:[%s19067_s17 + $0x838] ss:$52 sps:$4 sm:$0xff]  }
 0x883   : > { %13565 = vmatprep.subr.bf16.mxu1 %v17465_v10  ;;  %v17534_v10 = vld [vmem:[%s19067_s17 + $0x96c] ss:$52 sps:$4 sm:$0xff]  }
 0x885   : > { %13406 = vmatpush1.bf16.msra.mxu0 %v17460_v54  ;;  %v17537_v54 = vld [vmem:[%s19067_s17 + $0x8a4] ss:$52 sps:$4 sm:$0xff]  }
 0x886   : > { %13566 = vmatpush1.bf16.msra.mxu1 %v17463_v50  ;;  %13407 = vmatprep.subr.bf16.mxu0 %v17468_v35  ;;  %v17532_v50 = vld [vmem:[%s19067_s17 + $0x968] ss:$52 sps:$4 sm:$0xff]   ;;  %v17535_v35 = vld [vmem:[%s19067_s17 + $0x8a0] ss:$52 sps:$4 sm:$0xff]  }
 0x887   : > { %13567 = vmatprep.subr.bf16.mxu1 %v17471_v38  ;;  %v17540_v38 = vld [vmem:[%s19067_s17 + $0x9d4] ss:$52 sps:$4 sm:$0xff]  }
 0x889   : > { %13408 = vmatpush1.bf16.msra.mxu0 %v17466_v51  ;;  %v17543_v51 = vld [vmem:[%s19067_s17 + $0x90c] ss:$52 sps:$4 sm:$0xff]  }
 0x88a   : > { %13568 = vmatpush1.bf16.msra.mxu1 %v17469_v29  ;;  %13409 = vmatprep.subr.bf16.mxu0 %v17474_v52  ;;  %v17538_v29 = vld [vmem:[%s19067_s17 + $0x9d0] ss:$52 sps:$4 sm:$0xff]   ;;  %v17541_v52 = vld [vmem:[%s19067_s17 + $0x908] ss:$52 sps:$4 sm:$0xff]  }
 0x88b   : > { %13569 = vmatprep.subr.bf16.mxu1 %v17477_v55  ;;  %v17546_v55 = vld [vmem:[%s19067_s17 + $0xa3c] ss:$52 sps:$4 sm:$0xff]  }
 0x88d   : > { %13410 = vmatpush1.bf16.msra.mxu0 %v17472_v36  ;;  %v17549_v36 = vld [vmem:[%s19067_s17 + $0x974] ss:$52 sps:$4 sm:$0xff]  }
 0x88e   : > { %13570 = vmatpush1.bf16.msra.mxu1 %v17475_v27  ;;  %13411 = vmatprep.subr.bf16.mxu0 %v17480_v30  ;;  %v17544_v27 = vld [vmem:[%s19067_s17 + $0xa38] ss:$52 sps:$4 sm:$0xff]   ;;  %v17547_v30 = vld [vmem:[%s19067_s17 + $0x970] ss:$52 sps:$4 sm:$0xff]  }
 0x88f   : > { %13571 = vmatprep.subr.bf16.mxu1 %v17483_v40  ;;  %v17552_v40 = vld [vmem:[%s19067_s17 + $0xaa4] ss:$52 sps:$4 sm:$0xff]  }
 0x891   : > { %13412 = vmatpush1.bf16.msra.mxu0 %v17478_v31  ;;  %v17555_v31 = vld [vmem:[%s19067_s17 + $0x9dc] ss:$52 sps:$4 sm:$0xff]  }
 0x892   : > { %13572 = vmatpush1.bf16.msra.mxu1 %v17481_v57  ;;  %13413 = vmatprep.subr.bf16.mxu0 %v17486_v59  ;;  %v17550_v57 = vld [vmem:[%s19067_s17 + $0xaa0] ss:$52 sps:$4 sm:$0xff]   ;;  %v17553_v59 = vld [vmem:[%s19067_s17 + $0x9d8] ss:$52 sps:$4 sm:$0xff]  }
 0x893   : > { %13573 = vmatprep.subr.bf16.mxu1 %v17489_v60  ;;  %v17558_v60 = vld [vmem:[%s19067_s17 + $0xb0c] ss:$52 sps:$4 sm:$0xff]  }
 0x895   : > { %13414 = vmatpush1.bf16.msra.mxu0 %v17484_v48  ;;  %v17561_v48 = vld [vmem:[%s19067_s17 + $0xa44] ss:$52 sps:$4 sm:$0xff]  }
 0x896   : > { %13574 = vmatpush1.bf16.msra.mxu1 %v17487_v61  ;;  %13424 = vmatprep.subr.bf16.mxu0 %v17492_v2  ;;  %v17556_v61 = vld [vmem:[%s19067_s17 + $0xb08] ss:$52 sps:$4 sm:$0xff]   ;;  %v17559_v2 = vld [vmem:[%s19067_s17 + $0xa40] ss:$52 sps:$4 sm:$0xff]  }
 0x897   : > { %13575 = vmatprep.subr.bf16.mxu1 %v17495_v62  ;;  %v17564_v62 = vld [vmem:[%s19067_s17 + $0xb74] ss:$52 sps:$4 sm:$0xff]  }
 0x898   : > { %13416 = vmatmul.mubr.bf16.vlgmr.msra.gmra.mrb[20].mxu0 %v19355_v11 }
 0x899   : > { %13425 = vmatpush1.bf16.msra.mxu0 %v17490_v0  ;;  %13456 = vmatprep.mubr.bf16.mxu0 %v19359_v3  ;;  %v17567_v0 = vld [vmem:[%s19067_s17 + $0xaac] ss:$52 sps:$4 sm:$0xff]  }
 0x89a   : > { %13576 = vmatpush1.bf16.msra.mxu1 %v17493_v53  ;;  %13426 = vmatprep.subr.bf16.mxu0 %v17498_v46  ;;  %v17562_v53 = vld [vmem:[%s19067_s17 + $0xb70] ss:$52 sps:$4 sm:$0xff]   ;;  %v17565_v46 = vld [vmem:[%s19067_s17 + $0xaa8] ss:$52 sps:$4 sm:$0xff]  }
 0x89b   : > { %13577 = vmatprep.subr.bf16.mxu1 %v17501_v9  ;;  %v17570_v9 = vld [vmem:[%s19067_s17 + $0xbdc] ss:$52 sps:$4 sm:$0xff]  }
 0x89d   : > { %13427 = vmatpush1.bf16.msra.mxu0 %v17496_v18  ;;  %v17573_v18 = vld [vmem:[%s19067_s17 + $0xb14] ss:$52 sps:$4 sm:$0xff]  }
 0x89e   : > { %13578 = vmatpush1.bf16.msra.mxu1 %v17499_v19  ;;  %13428 = vmatprep.subr.bf16.mxu0 %v17504_v21  ;;  %v17568_v19 = vld [vmem:[%s19067_s17 + $0xbd8] ss:$52 sps:$4 sm:$0xff]   ;;  %v17571_v21 = vld [vmem:[%s19067_s17 + $0xb10] ss:$52 sps:$4 sm:$0xff]  }
 0x89f   : > { %13588 = vmatprep.subr.bf16.mxu1 %v17507_v12  ;;  %v17576_v12 = vld [vmem:[%s19067_s17 + $0xc44] ss:$52 sps:$4 sm:$0xff]  }
 0x8a1   : > { %13429 = vmatpush1.bf16.msra.mxu0 %v17502_v22  ;;  %13580 = vmatmul.mubr.bf16.vlgmr.msra.gmra.mrb[32].mxu1 %v19355_v11  ;;  %v17579_v22 = vld [vmem:[%s19067_s17 + $0xb7c] ss:$52 sps:$4 sm:$0xff]  }
 0x8a2   : > { %13589 = vmatpush1.bf16.msra.mxu1 %v17505_v34  ;;  %13620 = vmatprep.mubr.bf16.mxu1 %v19359_v3  ;;  %v17574_v34 = vld [vmem:[%s19067_s17 + $0xc40] ss:$52 sps:$4 sm:$0xff]  }
 0x8a3   : > { %13430 = vmatprep.subr.bf16.mxu0 %v17510_v23  ;;  %13590 = vmatprep.subr.bf16.mxu1 %v17513_v24  ;;  %v17577_v23 = vld [vmem:[%s19067_s17 + $0xb78] ss:$52 sps:$4 sm:$0xff]  }
 0x8a4   : > { %v17582_v24 = vld [vmem:[%s19067_s17 + $0xcac] ss:$52 sps:$4 sm:$0xff]  }
 0x8a5   : > { %13431 = vmatpush1.bf16.msra.mxu0 %v17508_v25  ;;  %v17585_v25 = vld [vmem:[%s19067_s17 + $0xbe4] ss:$52 sps:$4 sm:$0xff]  }
 0x8a6   : > { %13591 = vmatpush1.bf16.msra.mxu1 %v17511_v4  ;;  %13432 = vmatprep.subr.bf16.mxu0 %v17516_v26  ;;  %v17580_v4 = vld [vmem:[%s19067_s17 + $0xca8] ss:$52 sps:$4 sm:$0xff]   ;;  %v17583_v26 = vld [vmem:[%s19067_s17 + $0xbe0] ss:$52 sps:$4 sm:$0xff]  }
 0x8a7   : > { %13592 = vmatprep.subr.bf16.mxu1 %v17519_v13  ;;  %v17588_v13 = vld [vmem:[%s19067_s17 + $0xd14] ss:$52 sps:$4 sm:$0xff]  }
 0x8a9   : > { %13433 = vmatpush1.bf16.msra.mxu0 %v17514_v39  ;;  %v17591_v39 = vld [vmem:[%s19067_s17 + $0xc4c] ss:$52 sps:$4 sm:$0xff]  }
 0x8aa   : > { %13593 = vmatpush1.bf16.msra.mxu1 %v17517_v44  ;;  %13434 = vmatprep.subr.bf16.mxu0 %v17522_v45  ;;  %v17586_v44 = vld [vmem:[%s19067_s17 + $0xd10] ss:$52 sps:$4 sm:$0xff]   ;;  %v17589_v45 = vld [vmem:[%s19067_s17 + $0xc48] ss:$52 sps:$4 sm:$0xff]  }
 0x8ab   : > { %13594 = vmatprep.subr.bf16.mxu1 %v17525_v17  ;;  %v17594_v17 = vld [vmem:[%s19067_s17 + $0xd7c] ss:$52 sps:$4 sm:$0xff]  }
 0x8ad   : > { %13435 = vmatpush1.bf16.msra.mxu0 %v17520_v28  ;;  %v17597_v28 = vld [vmem:[%s19067_s17 + $0xcb4] ss:$52 sps:$4 sm:$0xff]  }
 0x8ae   : > { %13595 = vmatpush1.bf16.msra.mxu1 %v17523_v47  ;;  %13436 = vmatprep.subr.bf16.mxu0 %v17528_v58  ;;  %v17592_v47 = vld [vmem:[%s19067_s17 + $0xd78] ss:$52 sps:$4 sm:$0xff]   ;;  %v17595_v58 = vld [vmem:[%s19067_s17 + $0xcb0] ss:$52 sps:$4 sm:$0xff]  }
 0x8af   : > { %13596 = vmatprep.subr.bf16.mxu1 %v17531_v7  ;;  %v17600_v7 = vld [vmem:[%s19067_s17 + $0xde4] ss:$52 sps:$4 sm:$0xff]  }
 0x8b1   : > { %13437 = vmatpush1.bf16.msra.mxu0 %v17526_v5  ;;  %v17603_v5 = vld [vmem:[%s19067_s17 + $0xd1c] ss:$52 sps:$4 sm:$0xff]  }
 0x8b2   : > { %13597 = vmatpush1.bf16.msra.mxu1 %v17529_v49  ;;  %13438 = vmatprep.subr.bf16.mxu0 %v17534_v10  ;;  %v17598_v49 = vld [vmem:[%s19067_s17 + $0xde0] ss:$52 sps:$4 sm:$0xff]   ;;  %v17601_v10 = vld [vmem:[%s19067_s17 + $0xd18] ss:$52 sps:$4 sm:$0xff]  }
 0x8b3   : > { %13598 = vmatprep.subr.bf16.mxu1 %v17537_v54  ;;  %v17606_v54 = vld [vmem:[%s19067_s17 + $0xe4c] ss:$52 sps:$4 sm:$0xff]  }
 0x8b5   : > { %13439 = vmatpush1.bf16.msra.mxu0 %v17532_v50  ;;  %v17609_v50 = vld [vmem:[%s19067_s17 + $0xd84] ss:$52 sps:$4 sm:$0xff]  }
 0x8b6   : > { %13599 = vmatpush1.bf16.msra.mxu1 %v17535_v35  ;;  %13440 = vmatprep.subr.bf16.mxu0 %v17540_v38  ;;  %v17604_v35 = vld [vmem:[%s19067_s17 + $0xe48] ss:$52 sps:$4 sm:$0xff]   ;;  %v17607_v38 = vld [vmem:[%s19067_s17 + $0xd80] ss:$52 sps:$4 sm:$0xff]  }
 0x8b7   : > { %13600 = vmatprep.subr.bf16.mxu1 %v17543_v51  ;;  %v17612_v51 = vld [vmem:[%s19067_s17 + $0xeb4] ss:$52 sps:$4 sm:$0xff]  }
 0x8b9   : > { %13441 = vmatpush1.bf16.msra.mxu0 %v17538_v29  ;;  %v17615_v29 = vld [vmem:[%s19067_s17 + $0xdec] ss:$52 sps:$4 sm:$0xff]  }
 0x8ba   : > { %13601 = vmatpush1.bf16.msra.mxu1 %v17541_v52  ;;  %13442 = vmatprep.subr.bf16.mxu0 %v17546_v55  ;;  %v17610_v52 = vld [vmem:[%s19067_s17 + $0xeb0] ss:$52 sps:$4 sm:$0xff]   ;;  %v17613_v55 = vld [vmem:[%s19067_s17 + $0xde8] ss:$52 sps:$4 sm:$0xff]  }
 0x8bb   : > { %13602 = vmatprep.subr.bf16.mxu1 %v17549_v36  ;;  %v17618_v36 = vld [vmem:[%s19067_s17 + $0xf1c] ss:$52 sps:$4 sm:$0xff]  }
 0x8bd   : > { %13443 = vmatpush1.bf16.msra.mxu0 %v17544_v27  ;;  %v17621_v27 = vld [vmem:[%s19067_s17 + $0xe54] ss:$52 sps:$4 sm:$0xff]  }
 0x8be   : > { %13603 = vmatpush1.bf16.msra.mxu1 %v17547_v30  ;;  %13444 = vmatprep.subr.bf16.mxu0 %v17552_v40  ;;  %v17616_v30 = vld [vmem:[%s19067_s17 + $0xf18] ss:$52 sps:$4 sm:$0xff]   ;;  %v17619_v40 = vld [vmem:[%s19067_s17 + $0xe50] ss:$52 sps:$4 sm:$0xff]  }
 0x8bf   : > { %13604 = vmatprep.subr.bf16.mxu1 %v17555_v31  ;;  %v17624_v31 = vld [vmem:[%s19067_s17 + $0xf84] ss:$52 sps:$4 sm:$0xff]  }
 0x8c1   : > { %13445 = vmatpush1.bf16.msra.mxu0 %v17550_v57  ;;  %v17627_v57 = vld [vmem:[%s19067_s17 + $0xebc] ss:$52 sps:$4 sm:$0xff]  }
 0x8c2   : > { %13605 = vmatpush1.bf16.msra.mxu1 %v17553_v59  ;;  %13446 = vmatprep.subr.bf16.mxu0 %v17558_v60  ;;  %v17622_v59 = vld [vmem:[%s19067_s17 + $0xf80] ss:$52 sps:$4 sm:$0xff]   ;;  %v17625_v60 = vld [vmem:[%s19067_s17 + $0xeb8] ss:$52 sps:$4 sm:$0xff]  }
 0x8c3   : > { %13606 = vmatprep.subr.bf16.mxu1 %v17561_v48  ;;  %v17630_v48 = vld [vmem:[%s19067_s17 + $0xfec] ss:$52 sps:$4 sm:$0xff]  }
 0x8c5   : > { %13447 = vmatpush1.bf16.msra.mxu0 %v17556_v61  ;;  %v17633_v61 = vld [vmem:[%s19067_s17 + $0xf24] ss:$52 sps:$4 sm:$0xff]  }
 0x8c6   : > { %13607 = vmatpush1.bf16.msra.mxu1 %v17559_v2  ;;  %13448 = vmatprep.subr.bf16.mxu0 %v17564_v62  ;;  %v17628_v2 = vld [vmem:[%s19067_s17 + $0xfe8] ss:$52 sps:$4 sm:$0xff]   ;;  %v17631_v62 = vld [vmem:[%s19067_s17 + $0xf20] ss:$52 sps:$4 sm:$0xff]  }
 0x8c7   : > { %13608 = vmatprep.subr.bf16.mxu1 %v17567_v0  ;;  %v17636_v0 = vld [vmem:[%s19067_s17 + $0x1054] ss:$52 sps:$4 sm:$0xff]  }
 0x8c9   : > { %13449 = vmatpush1.bf16.msra.mxu0 %v17562_v53  ;;  %v17639_v53 = vld [vmem:[%s19067_s17 + $0xf8c] ss:$52 sps:$4 sm:$0xff]  }
 0x8ca   : > { %13609 = vmatpush1.bf16.msra.mxu1 %v17565_v46  ;;  %13450 = vmatprep.subr.bf16.mxu0 %v17570_v9  ;;  %v17634_v46 = vld [vmem:[%s19067_s17 + $0x1050] ss:$52 sps:$4 sm:$0xff]   ;;  %v17637_v9 = vld [vmem:[%s19067_s17 + $0xf88] ss:$52 sps:$4 sm:$0xff]  }
 0x8cb   : > { %13610 = vmatprep.subr.bf16.mxu1 %v17573_v18  ;;  %v17642_v18 = vld [vmem:[%s19067_s17 + $0x10bc] ss:$52 sps:$4 sm:$0xff]  }
 0x8cd   : > { %13451 = vmatpush1.bf16.msra.mxu0 %v17568_v19  ;;  %v17645_v19 = vld [vmem:[%s19067_s17 + $0xff4] ss:$52 sps:$4 sm:$0xff]  }
 0x8ce   : > { %13611 = vmatpush1.bf16.msra.mxu1 %v17571_v21  ;;  %13452 = vmatprep.subr.bf16.mxu0 %v17576_v12  ;;  %v17640_v21 = vld [vmem:[%s19067_s17 + $0x10b8] ss:$52 sps:$4 sm:$0xff]   ;;  %v17643_v12 = vld [vmem:[%s19067_s17 + $0xff0] ss:$52 sps:$4 sm:$0xff]  }
 0x8cf   : > { %13612 = vmatprep.subr.bf16.mxu1 %v17579_v22  ;;  %v17648_v22 = vld [vmem:[%s19067_s17 + $0x1124] ss:$52 sps:$4 sm:$0xff]  }
 0x8d1   : > { %13453 = vmatpush1.bf16.msra.mxu0 %v17574_v34  ;;  %v17651_v34 = vld [vmem:[%s19067_s17 + $0x105c] ss:$52 sps:$4 sm:$0xff]  }
 0x8d2   : > { %13613 = vmatpush1.bf16.msra.mxu1 %v17577_v23  ;;  %13454 = vmatprep.subr.bf16.mxu0 %v17582_v24  ;;  %v17646_v23 = vld [vmem:[%s19067_s17 + $0x1120] ss:$52 sps:$4 sm:$0xff]   ;;  %v17649_v24 = vld [vmem:[%s19067_s17 + $0x1058] ss:$52 sps:$4 sm:$0xff]  }
 0x8d3   : > { %13614 = vmatprep.subr.bf16.mxu1 %v17585_v25  ;;  %v17654_v25 = vld [vmem:[%s19067_s17 + $0x118c] ss:$52 sps:$4 sm:$0xff]  }
 0x8d5   : > { %13455 = vmatpush1.bf16.msra.mxu0 %v17580_v4  ;;  %v17657_v4 = vld [vmem:[%s19067_s17 + $0x10c4] ss:$52 sps:$4 sm:$0xff]  }
 0x8d6   : > { %13615 = vmatpush1.bf16.msra.mxu1 %v17583_v26  ;;  %13465 = vmatprep.subr.bf16.mxu0 %v17588_v13  ;;  %v17652_v26 = vld [vmem:[%s19067_s17 + $0x1188] ss:$52 sps:$4 sm:$0xff]   ;;  %v17655_v13 = vld [vmem:[%s19067_s17 + $0x10c0] ss:$52 sps:$4 sm:$0xff]  }
 0x8d7   : > { %13616 = vmatprep.subr.bf16.mxu1 %v17591_v39  ;;  %v17660_v39 = vld [vmem:[%s19067_s17 + $0x11f4] ss:$52 sps:$4 sm:$0xff]  }
 0x8d8   : > { %13457 = vmatmul.mubr.bf16.vlgmr.msra.gmra.mrb[20].mxu0 %v19430_v33 }
 0x8d9   : > { %13466 = vmatpush1.bf16.msra.mxu0 %v17586_v44  ;;  %13497 = vmatprep.mubr.bf16.mxu0 %v19515_v6  ;;  %v17663_v44 = vld [vmem:[%s19067_s17 + $0x112c] ss:$52 sps:$4 sm:$0xff]  }
 0x8da   : > { %13617 = vmatpush1.bf16.msra.mxu1 %v17589_v45  ;;  %13467 = vmatprep.subr.bf16.mxu0 %v17594_v17  ;;  %v17658_v45 = vld [vmem:[%s19067_s17 + $0x11f0] ss:$52 sps:$4 sm:$0xff]   ;;  %v17661_v17 = vld [vmem:[%s19067_s17 + $0x1128] ss:$52 sps:$4 sm:$0xff]  }
 0x8db   : > { %13618 = vmatprep.subr.bf16.mxu1 %v17597_v28  ;;  %v17666_v28 = vld [vmem:[%s19067_s17 + $0x125c] ss:$52 sps:$4 sm:$0xff]  }
 0x8dd   : > { %13468 = vmatpush1.bf16.msra.mxu0 %v17592_v47  ;;  %v17669_v47 = vld [vmem:[%s19067_s17 + $0x1194] ss:$52 sps:$4 sm:$0xff]  }
 0x8de   : > { %13619 = vmatpush1.bf16.msra.mxu1 %v17595_v58  ;;  %13469 = vmatprep.subr.bf16.mxu0 %v17600_v7  ;;  %v17664_v58 = vld [vmem:[%s19067_s17 + $0x1258] ss:$52 sps:$4 sm:$0xff]   ;;  %v17667_v7 = vld [vmem:[%s19067_s17 + $0x1190] ss:$52 sps:$4 sm:$0xff]  }
 0x8df   : > { %13629 = vmatprep.subr.bf16.mxu1 %v17603_v5  ;;  %v17672_v5 = vld [vmem:[%s19067_s17 + $0x12c4] ss:$52 sps:$4 sm:$0xff]  }
 0x8e1   : > { %13470 = vmatpush1.bf16.msra.mxu0 %v17598_v49  ;;  %13621 = vmatmul.mubr.bf16.vlgmr.msra.gmra.mrb[32].mxu1 %v19430_v33  ;;  %v17675_v49 = vld [vmem:[%s19067_s17 + $0x11fc] ss:$52 sps:$4 sm:$0xff]  }
 0x8e2   : > { %13630 = vmatpush1.bf16.msra.mxu1 %v17601_v10  ;;  %13661 = vmatprep.mubr.bf16.mxu1 %v19515_v6  ;;  %v17670_v10 = vld [vmem:[%s19067_s17 + $0x12c0] ss:$52 sps:$4 sm:$0xff]  }
 0x8e3   : > { %13471 = vmatprep.subr.bf16.mxu0 %v17606_v54  ;;  %13631 = vmatprep.subr.bf16.mxu1 %v17609_v50  ;;  %v17673_v54 = vld [vmem:[%s19067_s17 + $0x11f8] ss:$52 sps:$4 sm:$0xff]  }
 0x8e4   : > { %v17678_v50 = vld [vmem:[%s19067_s17 + $0x132c] ss:$52 sps:$4 sm:$0xff]  }
 0x8e5   : > { %13472 = vmatpush1.bf16.msra.mxu0 %v17604_v35  ;;  %v17681_v35 = vld [vmem:[%s19067_s17 + $0x1264] ss:$52 sps:$4 sm:$0xff]  }
 0x8e6   : > { %13632 = vmatpush1.bf16.msra.mxu1 %v17607_v38  ;;  %13473 = vmatprep.subr.bf16.mxu0 %v17612_v51  ;;  %v17676_v38 = vld [vmem:[%s19067_s17 + $0x1328] ss:$52 sps:$4 sm:$0xff]   ;;  %v17679_v51 = vld [vmem:[%s19067_s17 + $0x1260] ss:$52 sps:$4 sm:$0xff]  }
 0x8e7   : > { %13633 = vmatprep.subr.bf16.mxu1 %v17615_v29  ;;  %v17684_v29 = vld [vmem:[%s19067_s17 + $0x1394] ss:$52 sps:$4 sm:$0xff]  }
 0x8e9   : > { %13474 = vmatpush1.bf16.msra.mxu0 %v17610_v52  ;;  %v17687_v52 = vld [vmem:[%s19067_s17 + $0x12cc] ss:$52 sps:$4 sm:$0xff]  }
 0x8ea   : > { %13634 = vmatpush1.bf16.msra.mxu1 %v17613_v55  ;;  %13475 = vmatprep.subr.bf16.mxu0 %v17618_v36  ;;  %v17682_v55 = vld [vmem:[%s19067_s17 + $0x1390] ss:$52 sps:$4 sm:$0xff]   ;;  %v17685_v36 = vld [vmem:[%s19067_s17 + $0x12c8] ss:$52 sps:$4 sm:$0xff]  }
 0x8eb   : > { %13635 = vmatprep.subr.bf16.mxu1 %v17621_v27  ;;  %v17690_v27 = vld [vmem:[%s19067_s17 + $0x13fc] ss:$52 sps:$4 sm:$0xff]  }
 0x8ed   : > { %13476 = vmatpush1.bf16.msra.mxu0 %v17616_v30  ;;  %v17693_v30 = vld [vmem:[%s19067_s17 + $0x1334] ss:$52 sps:$4 sm:$0xff]  }
 0x8ee   : > { %13636 = vmatpush1.bf16.msra.mxu1 %v17619_v40  ;;  %13477 = vmatprep.subr.bf16.mxu0 %v17624_v31  ;;  %v17688_v40 = vld [vmem:[%s19067_s17 + $0x13f8] ss:$52 sps:$4 sm:$0xff]   ;;  %v17691_v31 = vld [vmem:[%s19067_s17 + $0x1330] ss:$52 sps:$4 sm:$0xff]  }
 0x8ef   : > { %13637 = vmatprep.subr.bf16.mxu1 %v17627_v57  ;;  %v17696_v57 = vld [vmem:[%s19067_s17 + $0x1464] ss:$52 sps:$4 sm:$0xff]  }
 0x8f1   : > { %13478 = vmatpush1.bf16.msra.mxu0 %v17622_v59  ;;  %v17699_v59 = vld [vmem:[%s19067_s17 + $0x139c] ss:$52 sps:$4 sm:$0xff]  }
 0x8f2   : > { %13638 = vmatpush1.bf16.msra.mxu1 %v17625_v60  ;;  %13479 = vmatprep.subr.bf16.mxu0 %v17630_v48  ;;  %v17694_v60 = vld [vmem:[%s19067_s17 + $0x1460] ss:$52 sps:$4 sm:$0xff]   ;;  %v17697_v48 = vld [vmem:[%s19067_s17 + $0x1398] ss:$52 sps:$4 sm:$0xff]  }
 0x8f3   : > { %13639 = vmatprep.subr.bf16.mxu1 %v17633_v61  ;;  %v17702_v61 = vld [vmem:[%s19067_s17 + $0x14cc] ss:$52 sps:$4 sm:$0xff]  }
 0x8f5   : > { %13480 = vmatpush1.bf16.msra.mxu0 %v17628_v2  ;;  %v17705_v2 = vld [vmem:[%s19067_s17 + $0x1404] ss:$52 sps:$4 sm:$0xff]  }
 0x8f6   : > { %13640 = vmatpush1.bf16.msra.mxu1 %v17631_v62  ;;  %13481 = vmatprep.subr.bf16.mxu0 %v17636_v0  ;;  %v17700_v62 = vld [vmem:[%s19067_s17 + $0x14c8] ss:$52 sps:$4 sm:$0xff]   ;;  %v17703_v0 = vld [vmem:[%s19067_s17 + $0x1400] ss:$52 sps:$4 sm:$0xff]  }
 0x8f7   : > { %13641 = vmatprep.subr.bf16.mxu1 %v17639_v53  ;;  %v17708_v53 = vld [vmem:[%s19067_s17 + $0x1534] ss:$52 sps:$4 sm:$0xff]  }
 0x8f9   : > { %13482 = vmatpush1.bf16.msra.mxu0 %v17634_v46  ;;  %v17711_v46 = vld [vmem:[%s19067_s17 + $0x146c] ss:$52 sps:$4 sm:$0xff]  }
 0x8fa   : > { %13642 = vmatpush1.bf16.msra.mxu1 %v17637_v9  ;;  %13483 = vmatprep.subr.bf16.mxu0 %v17642_v18  ;;  %v17706_v9 = vld [vmem:[%s19067_s17 + $0x1530] ss:$52 sps:$4 sm:$0xff]  }
 0x8fb   : > { %13643 = vmatprep.subr.bf16.mxu1 %v17645_v19  ;;  %v8762_v18 = vld [vmem:[%s19826_s5] sm:$0xff]  ;;  %v17709_v19 = vld [vmem:[%s19067_s17 + $0x1468] ss:$52 sps:$4 sm:$0xff]  }
 0x8fd   : > { %13484 = vmatpush1.bf16.msra.mxu0 %v17640_v21  ;;  %v17714_v21 = vld [vmem:[%s19067_s17 + $0x159c] ss:$52 sps:$4 sm:$0xff]  }
 0x8fe   : > { %13644 = vmatpush1.bf16.msra.mxu1 %v17643_v12  ;;  %13485 = vmatprep.subr.bf16.mxu0 %v17648_v22  ;;  %v17717_v12 = vld [vmem:[%s19067_s17 + $0x14d4] ss:$52 sps:$4 sm:$0xff]   ;;  %v8769_v22 = vrot.slane %v8762_v18, %v19106_v63 }
 0x8ff   : > { %13645 = vmatprep.subr.bf16.mxu1 %v17651_v34  ;;  %v8773_v34 = vrot.slane %v8762_v18, %v19109_v1 }
 0x901   : > { %13486 = vmatpush1.bf16.msra.mxu0 %v17646_v23  ;;  %v17712_v23 = vld [vmem:[%s19067_s17 + $0x1598] ss:$52 sps:$4 sm:$0xff]  }
 0x902   : > { %13646 = vmatpush1.bf16.msra.mxu1 %v17649_v24  ;;  %13487 = vmatprep.subr.bf16.mxu0 %v17654_v25  ;;  %v17715_v24 = vld [vmem:[%s19067_s17 + $0x14d0] ss:$52 sps:$4 sm:$0xff]  }
 0x903   : > { %13647 = vmatprep.subr.bf16.mxu1 %v17657_v4  ;;  %v17720_v25 = vld [vmem:[%s19067_s17 + $0x1604] ss:$52 sps:$4 sm:$0xff]  }
 0x905   : > { %13488 = vmatpush1.bf16.msra.mxu0 %v17652_v26  ;;  %v17723_v26 = vld [vmem:[%s19067_s17 + $0x153c] ss:$52 sps:$4 sm:$0xff]  }
 0x906   : > { %13648 = vmatpush1.bf16.msra.mxu1 %v17655_v13  ;;  %13489 = vmatprep.subr.bf16.mxu0 %v17660_v39 }
 0x907   : > { %13649 = vmatprep.subr.bf16.mxu1 %v17663_v44 }
 0x909   : > { %13490 = vmatpush1.bf16.msra.mxu0 %v17658_v45 }
 0x90a   : > { %13650 = vmatpush1.bf16.msra.mxu1 %v17661_v17  ;;  %13491 = vmatprep.subr.bf16.mxu0 %v17666_v28  ;;  %v17718_v17 = vld [vmem:[%s19067_s17 + $0x1600] ss:$52 sps:$4 sm:$0xff]  }
 0x90b   : > { %13651 = vmatprep.subr.bf16.mxu1 %v17669_v47  ;;  %v17721_v47 = vld [vmem:[%s19067_s17 + $0x1538] ss:$52 sps:$4 sm:$0xff]  }
 0x90d   : > { %13492 = vmatpush1.bf16.msra.mxu0 %v17664_v58  ;;  %v17726_v58 = vld [vmem:[%s19067_s17 + $0x166c] ss:$52 sps:$4 sm:$0xff]  }
 0x90e   : > { %13652 = vmatpush1.bf16.msra.mxu1 %v17667_v7  ;;  %13493 = vmatprep.subr.bf16.mxu0 %v17672_v5  ;;  %v17729_v7 = vld [vmem:[%s19067_s17 + $0x15a4] ss:$52 sps:$4 sm:$0xff]   ;;  %v17724_v5 = vld [vmem:[%s19067_s17 + $0x1668] ss:$52 sps:$4 sm:$0xff]  }
 0x90f   : > { %13653 = vmatprep.subr.bf16.mxu1 %v17675_v49  ;;  %v8777_v49 = vrot.slane %v8762_v18, %v19154_v15 }
 0x911   : > { %13494 = vmatpush1.bf16.msra.mxu0 %v17670_v10  ;;  %v8781_v10 = vrot.slane %v8762_v18, %v19157_v20 }
 0x912   : > { %13654 = vmatpush1.bf16.msra.mxu1 %v17673_v54  ;;  %13495 = vmatprep.subr.bf16.mxu0 %v17678_v50  ;;  %v17727_v54 = vld [vmem:[%s19067_s17 + $0x15a0] ss:$52 sps:$4 sm:$0xff]  }
 0x913   : > { %13655 = vmatprep.subr.bf16.mxu1 %v17681_v35  ;;  %v17732_v50 = vld [vmem:[%s19067_s17 + $0x16d4] ss:$52 sps:$4 sm:$0xff]   ;;  %v17735_v35 = vld [vmem:[%s19067_s17 + $0x160c] ss:$52 sps:$4 sm:$0xff]  }
 0x915   : > { %13496 = vmatpush1.bf16.msra.mxu0 %v17676_v38 }
 0x916   : > { %13656 = vmatpush1.bf16.msra.mxu1 %v17679_v51  ;;  %13506 = vmatprep.subr.bf16.mxu0 %v17684_v29 }
 0x917   : > { %13657 = vmatprep.subr.bf16.mxu1 %v17687_v52  ;;  %v17730_v52 = vld [vmem:[%s19067_s17 + $0x16d0] ss:$52 sps:$4 sm:$0xff]  }
 0x918   : > { %13498 = vmatmul.mubr.bf16.vlgmr.msra.gmra.mrb[20].mxu0 %v19518_v41 }
 0x919   : > { %13507 = vmatpush1.bf16.msra.mxu0 %v17682_v55  ;;  %13538 = vmatprep.mubr.bf16.mxu0 %v19564_v43 }
 0x91a   : > { %13658 = vmatpush1.bf16.msra.mxu1 %v17685_v36  ;;  %13508 = vmatprep.subr.bf16.mxu0 %v17690_v27  ;;  %v17733_v27 = vld [vmem:[%s19067_s17 + $0x1608] ss:$52 sps:$4 sm:$0xff]  }
 0x91b   : > { %13659 = vmatprep.subr.bf16.mxu1 %v17693_v30  ;;  %v17738_v30 = vld [vmem:[%s19067_s17 + $0x173c] ss:$52 sps:$4 sm:$0xff]  }
 0x91d   : > { %13509 = vmatpush1.bf16.msra.mxu0 %v17688_v40 }
 0x91e   : > { %13660 = vmatpush1.bf16.msra.mxu1 %v17691_v31  ;;  %13510 = vmatprep.subr.bf16.mxu0 %v17696_v57  ;;  %v17741_v31 = vld [vmem:[%s19067_s17 + $0x1674] ss:$52 sps:$4 sm:$0xff]  }
 0x91f   : > { %13670 = vmatprep.subr.bf16.mxu1 %v17699_v59 }
 0x921   : > { %13511 = vmatpush1.bf16.msra.mxu0 %v17694_v60  ;;  %13662 = vmatmul.mubr.bf16.vlgmr.msra.gmra.mrb[32].mxu1 %v19518_v41  ;;  %v17736_v60 = vld [vmem:[%s19067_s17 + $0x1738] ss:$52 sps:$4 sm:$0xff]  }
 0x922   : > { %13671 = vmatpush1.bf16.msra.mxu1 %v17697_v48  ;;  %13702 = vmatprep.mubr.bf16.mxu1 %v19564_v43 }
 0x923   : > { %13512 = vmatprep.subr.bf16.mxu0 %v17702_v61  ;;  %13672 = vmatprep.subr.bf16.mxu1 %v17705_v2  ;;  %v17739_v61 = vld [vmem:[%s19067_s17 + $0x1670] ss:$52 sps:$4 sm:$0xff]  }
 0x924   : > { %v17744_v2 = vld [vmem:[%s19067_s17 + $0x17a4] ss:$52 sps:$4 sm:$0xff]  }
 0x925   : > { %13513 = vmatpush1.bf16.msra.mxu0 %v17700_v62  ;;  %v17747_v62 = vld [vmem:[%s19067_s17 + $0x16dc] ss:$52 sps:$4 sm:$0xff]  }
 0x926   : > { %13673 = vmatpush1.bf16.msra.mxu1 %v17703_v0  ;;  %13514 = vmatprep.subr.bf16.mxu0 %v17708_v53  ;;  %v17742_v0 = vld [vmem:[%s19067_s17 + $0x17a0] ss:$52 sps:$4 sm:$0xff]   ;;  %v17745_v53 = vld [vmem:[%s19067_s17 + $0x16d8] ss:$52 sps:$4 sm:$0xff]  }
 0x927   : > { %13674 = vmatprep.subr.bf16.mxu1 %v17711_v46  ;;  %v17750_v46 = vld [vmem:[%s19067_s17 + $0x180c] ss:$52 sps:$4 sm:$0xff]  }
 0x929   : > { %13515 = vmatpush1.bf16.msra.mxu0 %v17706_v9  ;;  %v17753_v9 = vld [vmem:[%s19067_s17 + $0x1744] ss:$52 sps:$4 sm:$0xff]  }
 0x92a   : > { %13675 = vmatpush1.bf16.msra.mxu1 %v17709_v19  ;;  %13516 = vmatprep.subr.bf16.mxu0 %v17714_v21  ;;  %v17748_v19 = vld [vmem:[%s19067_s17 + $0x1808] ss:$52 sps:$4 sm:$0xff]  }
 0x92b   : > { %v13212_v4 = vpop.f32.mrb[16].mxu0  ;;  %13676 = vmatprep.subr.bf16.mxu1 %v17717_v12  ;;  %v17751_v12 = vld [vmem:[%s19067_s17 + $0x1740] ss:$52 sps:$4 sm:$0xff]  }
 0x92c   : > { %v16404_v13 = vadd.f32 %v13212_v4, %v8769_v22  ;;  %v13214_v39 = vpop.f32.mrb[17].mxu0  ;;  %v17756_v22 = vld [vmem:[%s19067_s17 + $0x1874] ss:$52 sps:$4 sm:$0xff]   ;;  %v17754_v4 = vld [vmem:[%s19067_s17 + $0x1870] ss:$52 sps:$4 sm:$0xff]  }
 0x92d   : > { %v16405_v44 = vadd.f32 %v13214_v39, %v8773_v34  ;;  %v13216_v45 = vpop.f32.mrb[18].mxu0  ;;  %13517 = vmatpush1.bf16.msra.mxu0 %v17712_v23  ;;  %v17759_v23 = vld [vmem:[%s19067_s17 + $0x17ac] ss:$52 sps:$4 sm:$0xff]  }
 0x92e   : > { %18232 = vtanh.f32 %v16404_v13  ;;  %v13217_v28 = vpop.f32.mrb[19].mxu0  ;;  %13677 = vmatpush1.bf16.msra.mxu1 %v17715_v24  ;;  %13518 = vmatprep.subr.bf16.mxu0 %v17720_v25  ;;  %v17762_v13 = vld [vmem:[%s19067_s17 + $0x18dc] ss:$52 sps:$4 sm:$0xff]   ;;  %v17760_v45 = vld [vmem:[%s19067_s17 + $0x18d8] ss:$52 sps:$4 sm:$0xff]  }
 0x92f   : > { %18234 = vtanh.f32 %v16405_v44  ;;  %13678 = vmatprep.subr.bf16.mxu1 %v17723_v26  ;;  %v17757_v26 = vld [vmem:[%s19067_s17 + $0x17a8] ss:$52 sps:$4 sm:$0xff]   ;;  %v17768_v28 = vld [vmem:[%s19067_s17 + $0x1944] ss:$52 sps:$4 sm:$0xff]  }
 0x930   : > { %v17765_v44 = vld [vmem:[%s19067_s17 + $0x1814] ss:$52 sps:$4 sm:$0xff]  }
 0x931   : > { %13519 = vmatpush1.bf16.msra.mxu0 %v17718_v17  ;;  %v17763_v17 = vld [vmem:[%s19067_s17 + $0x1810] ss:$52 sps:$4 sm:$0xff]  }
 0x932   : > { %13679 = vmatpush1.bf16.msra.mxu1 %v17721_v47  ;;  %13520 = vmatprep.subr.bf16.mxu0 %v17726_v58  ;;  %v17771_v47 = vld [vmem:[%s19067_s17 + $0x187c] ss:$52 sps:$4 sm:$0xff]   ;;  %v17766_v58 = vld [vmem:[%s19067_s17 + $0x1940] ss:$52 sps:$4 sm:$0xff]  }
 0x933   : > { %13680 = vmatprep.subr.bf16.mxu1 %v17729_v7  ;;  %v17769_v7 = vld [vmem:[%s19067_s17 + $0x1878] ss:$52 sps:$4 sm:$0xff]  }
 0x934   : > { %v13376_v38 = vpop.f32.mrb[28].mxu1 }
 0x935   : > { %v16406_v51 = vadd.f32 %v13376_v38, %v8777_v49  ;;  %13521 = vmatpush1.bf16.msra.mxu0 %v17724_v5  ;;  %v13378_v29 = vpop.f32.mrb[29].mxu1  ;;  %v17774_v5 = vld [vmem:[%s19067_s17 + $0x19ac] ss:$52 sps:$4 sm:$0xff]   ;;  %v17777_v49 = vld [vmem:[%s19067_s17 + $0x18e4] ss:$52 sps:$4 sm:$0xff]  }
 0x936   : > { %v16407_v55 = vadd.f32 %v13378_v29, %v8781_v10  ;;  %v13380_v36 = vpop.f32.mrb[30].mxu1  ;;  %13681 = vmatpush1.bf16.msra.mxu1 %v17727_v54  ;;  %13522 = vmatprep.subr.bf16.mxu0 %v17732_v50  ;;  %v17772_v10 = vld [vmem:[%s19067_s17 + $0x19a8] ss:$52 sps:$4 sm:$0xff]   ;;  %v17775_v54 = vld [vmem:[%s19067_s17 + $0x18e0] ss:$52 sps:$4 sm:$0xff]  }
 0x937   : > { %18236 = vtanh.f32 %v16406_v51  ;;  %v13381_v40 = vpop.f32.mrb[31].mxu1  ;;  %13682 = vmatprep.subr.bf16.mxu1 %v17735_v35  ;;  %v17780_v50 = vld [vmem:[%s19067_s17 + $0x24] ss:$52 sps:$4 sm:$0xff]   ;;  %v17783_v35 = vld [vmem:[%s19067_s17 + $0x194c] ss:$52 sps:$4 sm:$0xff]  }
 0x938   : > { %v18233_v57 = vpop.eup %18232  ;;  %18238 = vtanh.f32 %v16407_v55  ;;  %v17778_v38 = vld [vmem:[%s19067_s17 + $0x20] ss:$52 sps:$4 sm:$0xff]   ;;  %v17781_v51 = vld [vmem:[%s19067_s17 + $0x1948] ss:$52 sps:$4 sm:$0xff]   ;;  %v17787_v36 = vld [vmem:[%s19067_s17 + $0x19b0] ss:$52 sps:$4 sm:$0xff]  }
 0x939   : > { %v18235_v59 = vpop.eup %18234  ;;  %13523 = vmatpush1.bf16.msra.mxu0 %v17730_v52  ;;  %v17786_v29 = vld [vmem:[%s19067_s17 + $0x8c] ss:$52 sps:$4 sm:$0xff]   ;;  %v17789_v52 = vld [vmem:[%s19067_s17 + $0x19b4] ss:$52 sps:$4 sm:$0xff]   ;;  %v17790_v40 = vld [vmem:[%s19067_s17 + $0xf0] ss:$52 sps:$4 sm:$0xff]  }
 0x93a   : > { %v14225_v48 = vcombine.low %v18233_v57, %v18235_v59  ;;  %13683 = vmatpush1.bf16.msra.mxu1 %v17733_v27  ;;  %13524 = vmatprep.subr.bf16.mxu0 %v17738_v30  ;;  %v17784_v55 = vld [vmem:[%s19067_s17 + $0x88] ss:$52 sps:$4 sm:$0xff]   ;;  %v17795_v30 = vld [vmem:[%s19067_s17 + $0x2c] ss:$52 sps:$4 sm:$0xff]  }
 0x93b   : > { %13684 = vmatprep.subr.bf16.mxu1 %v17741_v31  ;;  %v17792_v27 = vld [vmem:[%s19067_s17 + $0xf4] ss:$52 sps:$4 sm:$0xff]   ;;  %v17798_v57 = vld [vmem:[%s19067_s17 + $0x15c] ss:$52 sps:$4 sm:$0xff]  }
 0x93c   : > { %v14233_v24 = vrot.slane %v14225_v48, %v19076_v16  ;;  %v17793_v31 = vld [vmem:[%s19067_s17 + $0x28] ss:$52 sps:$4 sm:$0xff]   ;;  %v17799_v48 = vld [vmem:[%s19067_s17 + $0x90] ss:$52 sps:$4 sm:$0xff]  }
 0x93d   : > { %13525 = vmatpush1.bf16.msra.mxu0 %v17736_v60  ;;  %v17801_v59 = vld [vmem:[%s19067_s17 + $0x94] ss:$52 sps:$4 sm:$0xff]   ;;  %v17796_v60 = vld [vmem:[%s19067_s17 + $0x158] ss:$52 sps:$4 sm:$0xff]  }
 0x93e   : > { %13685 = vmatpush1.bf16.msra.mxu1 %v17739_v61  ;;  %13526 = vmatprep.subr.bf16.mxu0 %v17744_v2  ;;  %v17804_v61 = vld [vmem:[%s19067_s17 + $0x1c4] ss:$52 sps:$4 sm:$0xff]   ;;  %v17807_v2 = vld [vmem:[%s19067_s17 + $0xfc] ss:$52 sps:$4 sm:$0xff]  }
 0x93f   : > { %13686 = vmatprep.subr.bf16.mxu1 %v17747_v62  ;;  %v17802_v62 = vld [vmem:[%s19067_s17 + $0x1c0] ss:$52 sps:$4 sm:$0xff]  }
 0x941   : > { %v18237_v18 = vpop.eup %18236  ;;  %13527 = vmatpush1.bf16.msra.mxu0 %v17742_v0  ;;  %v17805_v0 = vld [vmem:[%s19067_s17 + $0xf8] ss:$52 sps:$4 sm:$0xff]  }
 0x942   : > { %v18239_v21 = vpop.eup %18238  ;;  %13687 = vmatpush1.bf16.msra.mxu1 %v17745_v53  ;;  %13528 = vmatprep.subr.bf16.mxu0 %v17750_v46  ;;  %v17810_v53 = vld [vmem:[%s19067_s17 + $0x22c] ss:$52 sps:$4 sm:$0xff]   ;;  %v17813_v46 = vld [vmem:[%s19067_s17 + $0x164] ss:$52 sps:$4 sm:$0xff]  }
 0x943   : > { %v14226_v34 = vcombine.low %v18237_v18, %v18239_v21  ;;  %13688 = vmatprep.subr.bf16.mxu1 %v17753_v9  ;;  %v17808_v9 = vld [vmem:[%s19067_s17 + $0x228] ss:$52 sps:$4 sm:$0xff]   ;;  %v17811_v18 = vld [vmem:[%s19067_s17 + $0x160] ss:$52 sps:$4 sm:$0xff]  }
 0x944   : > { %v17819_v21 = vld [vmem:[%s19067_s17 + $0x1cc] ss:$52 sps:$4 sm:$0xff]  }
 0x945   : > { %v14240_v25 = vrot.slane %v14226_v34, %v19076_v16  ;;  %13529 = vmatpush1.bf16.msra.mxu0 %v17748_v19  ;;  %v17816_v19 = vld [vmem:[%s19067_s17 + $0x294] ss:$52 sps:$4 sm:$0xff]   ;;  %v17822_v34 = vld [vmem:[%s19067_s17 + $0x2fc] ss:$52 sps:$4 sm:$0xff]  }
 0x946   : > { %13689 = vmatpush1.bf16.msra.mxu1 %v17751_v12  ;;  %13530 = vmatprep.subr.bf16.mxu0 %v17756_v22  ;;  %v17814_v12 = vld [vmem:[%s19067_s17 + $0x290] ss:$52 sps:$4 sm:$0xff]   ;;  %v17817_v22 = vld [vmem:[%s19067_s17 + $0x1c8] ss:$52 sps:$4 sm:$0xff]  }
 0x947   : > { %v14241_v39 = vcombine.low %v14233_v24, %v14240_v25  ;;  %13690 = vmatprep.subr.bf16.mxu1 %v17759_v23  ;;  %v17825_v23 = vld [vmem:[%s19067_s17 + $0x234] ss:$52 sps:$4 sm:$0xff]   ;;  %v17820_v24 = vld [vmem:[%s19067_s17 + $0x2f8] ss:$52 sps:$4 sm:$0xff]   ;;  %v17823_v25 = vld [vmem:[%s19067_s17 + $0x230] ss:$52 sps:$4 sm:$0xff]  }
 0x949   : > { %14287 = vst [vmem:[%s19871_s10] sm:$0xff] %v14241_v39  ;;  %13531 = vmatpush1.bf16.msra.mxu0 %v17754_v4  ;;  %v17828_v4 = vld [vmem:[%s19067_s17 + $0x364] ss:$52 sps:$4 sm:$0xff]  }
 0x94a   : > { %13691 = vmatpush1.bf16.msra.mxu1 %v17757_v26  ;;  %13532 = vmatprep.subr.bf16.mxu0 %v17762_v13  ;;  %v17831_v26 = vld [vmem:[%s19067_s17 + $0x29c] ss:$52 sps:$4 sm:$0xff]   ;;  %v17826_v13 = vld [vmem:[%s19067_s17 + $0x360] ss:$52 sps:$4 sm:$0xff]   ;;  %v17829_v39 = vld [vmem:[%s19067_s17 + $0x298] ss:$52 sps:$4 sm:$0xff]  }
 0x94b   : > { %13692 = vmatprep.subr.bf16.mxu1 %v17765_v44  ;;  %v17834_v44 = vld [vmem:[%s19067_s17 + $0x3cc] ss:$52 sps:$4 sm:$0xff]  }
 0x94d   : > { %13533 = vmatpush1.bf16.msra.mxu0 %v17760_v45  ;;  %v17837_v45 = vld [vmem:[%s19067_s17 + $0x304] ss:$52 sps:$4 sm:$0xff]  }
 0x94e   : > { %13693 = vmatpush1.bf16.msra.mxu1 %v17763_v17  ;;  %13534 = vmatprep.subr.bf16.mxu0 %v17768_v28  ;;  %v17832_v17 = vld [vmem:[%s19067_s17 + $0x3c8] ss:$52 sps:$4 sm:$0xff]   ;;  %v17835_v28 = vld [vmem:[%s19067_s17 + $0x300] ss:$52 sps:$4 sm:$0xff]  }
 0x94f   : > { %13694 = vmatprep.subr.bf16.mxu1 %v17771_v47  ;;  %v17840_v47 = vld [vmem:[%s19067_s17 + $0x434] ss:$52 sps:$4 sm:$0xff]  }
 0x951   : > { %13535 = vmatpush1.bf16.msra.mxu0 %v17766_v58  ;;  %v17843_v58 = vld [vmem:[%s19067_s17 + $0x36c] ss:$52 sps:$4 sm:$0xff]  }
 0x952   : > { %13695 = vmatpush1.bf16.msra.mxu1 %v17769_v7  ;;  %13536 = vmatprep.subr.bf16.mxu0 %v17774_v5  ;;  %v17838_v7 = vld [vmem:[%s19067_s17 + $0x430] ss:$52 sps:$4 sm:$0xff]   ;;  %v17841_v5 = vld [vmem:[%s19067_s17 + $0x368] ss:$52 sps:$4 sm:$0xff]  }
 0x953   : > { %13696 = vmatprep.subr.bf16.mxu1 %v17777_v49  ;;  %v17846_v49 = vld [vmem:[%s19067_s17 + $0x49c] ss:$52 sps:$4 sm:$0xff]  }
 0x955   : > { %13537 = vmatpush1.bf16.msra.mxu0 %v17772_v10  ;;  %v17849_v10 = vld [vmem:[%s19067_s17 + $0x3d4] ss:$52 sps:$4 sm:$0xff]  }
 0x956   : > { %13697 = vmatpush1.bf16.msra.mxu1 %v17775_v54  ;;  %13711 = vmatprep.subr.bf16.mxu0 %v17780_v50  ;;  %v17844_v54 = vld [vmem:[%s19067_s17 + $0x498] ss:$52 sps:$4 sm:$0xff]   ;;  %v17847_v50 = vld [vmem:[%s19067_s17 + $0x3d0] ss:$52 sps:$4 sm:$0xff]  }
 0x957   : > { %13698 = vmatprep.subr.bf16.mxu1 %v17783_v35  ;;  %v17852_v35 = vld [vmem:[%s19067_s17 + $0x504] ss:$52 sps:$4 sm:$0xff]  }
 0x958   : > { %13539 = vmatmul.mubr.bf16.vlgmr.msra.gmra.mrb[20].mxu0 %v19598_v42 }
 0x959   : > { %13712 = vmatpush1.bf16.msra.mxu0 %v17778_v38  ;;  %13743 = vmatprep.mubr.bf16.mxu0 %v19297_v37  ;;  %v17855_v38 = vld [vmem:[%s19067_s17 + $0x43c] ss:$52 sps:$4 sm:$0xff]  }
 0x95a   : > { %13699 = vmatpush1.bf16.msra.mxu1 %v17781_v51  ;;  %13713 = vmatprep.subr.bf16.mxu0 %v17786_v29  ;;  %v17850_v51 = vld [vmem:[%s19067_s17 + $0x500] ss:$52 sps:$4 sm:$0xff]   ;;  %v17853_v29 = vld [vmem:[%s19067_s17 + $0x438] ss:$52 sps:$4 sm:$0xff]  }
 0x95b   : > { %13700 = vmatprep.subr.bf16.mxu1 %v17789_v52  ;;  %v17858_v52 = vld [vmem:[%s19067_s17 + $0x56c] ss:$52 sps:$4 sm:$0xff]  }
 0x95d   : > { %13714 = vmatpush1.bf16.msra.mxu0 %v17784_v55  ;;  %v17861_v55 = vld [vmem:[%s19067_s17 + $0x4a4] ss:$52 sps:$4 sm:$0xff]  }
 0x95e   : > { %13701 = vmatpush1.bf16.msra.mxu1 %v17787_v36  ;;  %13715 = vmatprep.subr.bf16.mxu0 %v17792_v27  ;;  %v17856_v36 = vld [vmem:[%s19067_s17 + $0x568] ss:$52 sps:$4 sm:$0xff]   ;;  %v17859_v27 = vld [vmem:[%s19067_s17 + $0x4a0] ss:$52 sps:$4 sm:$0xff]  }
 0x95f   : > { %13875 = vmatprep.subr.bf16.mxu1 %v17795_v30  ;;  %v17864_v30 = vld [vmem:[%s19067_s17 + $0x5d4] ss:$52 sps:$4 sm:$0xff]  }
 0x961   : > { %13716 = vmatpush1.bf16.msra.mxu0 %v17790_v40  ;;  %13703 = vmatmul.mubr.bf16.vlgmr.msra.gmra.mrb[32].mxu1 %v19598_v42  ;;  %v17867_v40 = vld [vmem:[%s19067_s17 + $0x50c] ss:$52 sps:$4 sm:$0xff]  }
 0x962   : > { %13876 = vmatpush1.bf16.msra.mxu1 %v17793_v31  ;;  %13907 = vmatprep.mubr.bf16.mxu1 %v19297_v37  ;;  %v17862_v31 = vld [vmem:[%s19067_s17 + $0x5d0] ss:$52 sps:$4 sm:$0xff]  }
 0x963   : > { %13717 = vmatprep.subr.bf16.mxu0 %v17798_v57  ;;  %13877 = vmatprep.subr.bf16.mxu1 %v17801_v59  ;;  %v17865_v57 = vld [vmem:[%s19067_s17 + $0x508] ss:$52 sps:$4 sm:$0xff]  }
 0x964   : > { %v17870_v59 = vld [vmem:[%s19067_s17 + $0x63c] ss:$52 sps:$4 sm:$0xff]  }
 0x965   : > { %13718 = vmatpush1.bf16.msra.mxu0 %v17796_v60  ;;  %v17873_v60 = vld [vmem:[%s19067_s17 + $0x574] ss:$52 sps:$4 sm:$0xff]  }
 0x966   : > { %13878 = vmatpush1.bf16.msra.mxu1 %v17799_v48  ;;  %13719 = vmatprep.subr.bf16.mxu0 %v17804_v61  ;;  %v17868_v48 = vld [vmem:[%s19067_s17 + $0x638] ss:$52 sps:$4 sm:$0xff]   ;;  %v17871_v61 = vld [vmem:[%s19067_s17 + $0x570] ss:$52 sps:$4 sm:$0xff]  }
 0x967   : > { %13879 = vmatprep.subr.bf16.mxu1 %v17807_v2  ;;  %v17876_v2 = vld [vmem:[%s19067_s17 + $0x6a4] ss:$52 sps:$4 sm:$0xff]  }
 0x969   : > { %13720 = vmatpush1.bf16.msra.mxu0 %v17802_v62  ;;  %v17879_v62 = vld [vmem:[%s19067_s17 + $0x5dc] ss:$52 sps:$4 sm:$0xff]  }
 0x96a   : > { %13880 = vmatpush1.bf16.msra.mxu1 %v17805_v0  ;;  %13721 = vmatprep.subr.bf16.mxu0 %v17810_v53  ;;  %v17874_v0 = vld [vmem:[%s19067_s17 + $0x6a0] ss:$52 sps:$4 sm:$0xff]   ;;  %v17877_v53 = vld [vmem:[%s19067_s17 + $0x5d8] ss:$52 sps:$4 sm:$0xff]  }
 0x96b   : > { %13881 = vmatprep.subr.bf16.mxu1 %v17813_v46  ;;  %v17882_v46 = vld [vmem:[%s19067_s17 + $0x70c] ss:$52 sps:$4 sm:$0xff]  }
 0x96d   : > { %13722 = vmatpush1.bf16.msra.mxu0 %v17808_v9  ;;  %v17885_v9 = vld [vmem:[%s19067_s17 + $0x644] ss:$52 sps:$4 sm:$0xff]  }
 0x96e   : > { %13882 = vmatpush1.bf16.msra.mxu1 %v17811_v18  ;;  %13723 = vmatprep.subr.bf16.mxu0 %v17816_v19  ;;  %v17880_v18 = vld [vmem:[%s19067_s17 + $0x708] ss:$52 sps:$4 sm:$0xff]   ;;  %v17883_v19 = vld [vmem:[%s19067_s17 + $0x640] ss:$52 sps:$4 sm:$0xff]  }
 0x96f   : > { %13883 = vmatprep.subr.bf16.mxu1 %v17819_v21  ;;  %v17888_v21 = vld [vmem:[%s19067_s17 + $0x774] ss:$52 sps:$4 sm:$0xff]  }
 0x971   : > { %13724 = vmatpush1.bf16.msra.mxu0 %v17814_v12  ;;  %v17891_v12 = vld [vmem:[%s19067_s17 + $0x6ac] ss:$52 sps:$4 sm:$0xff]  }
 0x972   : > { %13884 = vmatpush1.bf16.msra.mxu1 %v17817_v22  ;;  %13725 = vmatprep.subr.bf16.mxu0 %v17822_v34  ;;  %v17886_v22 = vld [vmem:[%s19067_s17 + $0x770] ss:$52 sps:$4 sm:$0xff]   ;;  %v17889_v34 = vld [vmem:[%s19067_s17 + $0x6a8] ss:$52 sps:$4 sm:$0xff]  }
 0x973   : > { %13885 = vmatprep.subr.bf16.mxu1 %v17825_v23  ;;  %v17894_v23 = vld [vmem:[%s19067_s17 + $0x7dc] ss:$52 sps:$4 sm:$0xff]  }
 0x975   : > { %13726 = vmatpush1.bf16.msra.mxu0 %v17820_v24  ;;  %v17897_v24 = vld [vmem:[%s19067_s17 + $0x714] ss:$52 sps:$4 sm:$0xff]  }
 0x976   : > { %13886 = vmatpush1.bf16.msra.mxu1 %v17823_v25  ;;  %13727 = vmatprep.subr.bf16.mxu0 %v17828_v4  ;;  %v17892_v25 = vld [vmem:[%s19067_s17 + $0x7d8] ss:$52 sps:$4 sm:$0xff]   ;;  %v17895_v4 = vld [vmem:[%s19067_s17 + $0x710] ss:$52 sps:$4 sm:$0xff]  }
 0x977   : > { %13887 = vmatprep.subr.bf16.mxu1 %v17831_v26  ;;  %v17900_v26 = vld [vmem:[%s19067_s17 + $0x844] ss:$52 sps:$4 sm:$0xff]  }
 0x979   : > { %13728 = vmatpush1.bf16.msra.mxu0 %v17826_v13  ;;  %v17903_v13 = vld [vmem:[%s19067_s17 + $0x77c] ss:$52 sps:$4 sm:$0xff]  }
 0x97a   : > { %13888 = vmatpush1.bf16.msra.mxu1 %v17829_v39  ;;  %13729 = vmatprep.subr.bf16.mxu0 %v17834_v44  ;;  %v17898_v39 = vld [vmem:[%s19067_s17 + $0x840] ss:$52 sps:$4 sm:$0xff]   ;;  %v17901_v44 = vld [vmem:[%s19067_s17 + $0x778] ss:$52 sps:$4 sm:$0xff]  }
 0x97b   : > { %13889 = vmatprep.subr.bf16.mxu1 %v17837_v45  ;;  %v17906_v45 = vld [vmem:[%s19067_s17 + $0x8ac] ss:$52 sps:$4 sm:$0xff]  }
 0x97d   : > { %13730 = vmatpush1.bf16.msra.mxu0 %v17832_v17  ;;  %v17909_v17 = vld [vmem:[%s19067_s17 + $0x7e4] ss:$52 sps:$4 sm:$0xff]  }
 0x97e   : > { %13890 = vmatpush1.bf16.msra.mxu1 %v17835_v28  ;;  %13731 = vmatprep.subr.bf16.mxu0 %v17840_v47  ;;  %v17904_v28 = vld [vmem:[%s19067_s17 + $0x8a8] ss:$52 sps:$4 sm:$0xff]   ;;  %v17907_v47 = vld [vmem:[%s19067_s17 + $0x7e0] ss:$52 sps:$4 sm:$0xff]  }
 0x97f   : > { %13891 = vmatprep.subr.bf16.mxu1 %v17843_v58  ;;  %v17912_v58 = vld [vmem:[%s19067_s17 + $0x914] ss:$52 sps:$4 sm:$0xff]  }
 0x981   : > { %13732 = vmatpush1.bf16.msra.mxu0 %v17838_v7  ;;  %v17915_v7 = vld [vmem:[%s19067_s17 + $0x84c] ss:$52 sps:$4 sm:$0xff]  }
 0x982   : > { %13892 = vmatpush1.bf16.msra.mxu1 %v17841_v5  ;;  %13733 = vmatprep.subr.bf16.mxu0 %v17846_v49  ;;  %v17910_v5 = vld [vmem:[%s19067_s17 + $0x910] ss:$52 sps:$4 sm:$0xff]   ;;  %v17913_v49 = vld [vmem:[%s19067_s17 + $0x848] ss:$52 sps:$4 sm:$0xff]  }
 0x983   : > { %13893 = vmatprep.subr.bf16.mxu1 %v17849_v10  ;;  %v17918_v10 = vld [vmem:[%s19067_s17 + $0x97c] ss:$52 sps:$4 sm:$0xff]  }
 0x985   : > { %13734 = vmatpush1.bf16.msra.mxu0 %v17844_v54  ;;  %v17921_v54 = vld [vmem:[%s19067_s17 + $0x8b4] ss:$52 sps:$4 sm:$0xff]  }
 0x986   : > { %13894 = vmatpush1.bf16.msra.mxu1 %v17847_v50  ;;  %13735 = vmatprep.subr.bf16.mxu0 %v17852_v35  ;;  %v17916_v50 = vld [vmem:[%s19067_s17 + $0x978] ss:$52 sps:$4 sm:$0xff]   ;;  %v17919_v35 = vld [vmem:[%s19067_s17 + $0x8b0] ss:$52 sps:$4 sm:$0xff]  }
 0x987   : > { %13895 = vmatprep.subr.bf16.mxu1 %v17855_v38  ;;  %v17924_v38 = vld [vmem:[%s19067_s17 + $0x9e4] ss:$52 sps:$4 sm:$0xff]  }
 0x989   : > { %13736 = vmatpush1.bf16.msra.mxu0 %v17850_v51  ;;  %v17927_v51 = vld [vmem:[%s19067_s17 + $0x91c] ss:$52 sps:$4 sm:$0xff]  }
 0x98a   : > { %13896 = vmatpush1.bf16.msra.mxu1 %v17853_v29  ;;  %13737 = vmatprep.subr.bf16.mxu0 %v17858_v52  ;;  %v17922_v29 = vld [vmem:[%s19067_s17 + $0x9e0] ss:$52 sps:$4 sm:$0xff]   ;;  %v17925_v52 = vld [vmem:[%s19067_s17 + $0x918] ss:$52 sps:$4 sm:$0xff]  }
 0x98b   : > { %13897 = vmatprep.subr.bf16.mxu1 %v17861_v55  ;;  %v17930_v55 = vld [vmem:[%s19067_s17 + $0xa4c] ss:$52 sps:$4 sm:$0xff]  }
 0x98d   : > { %13738 = vmatpush1.bf16.msra.mxu0 %v17856_v36  ;;  %v17933_v36 = vld [vmem:[%s19067_s17 + $0x984] ss:$52 sps:$4 sm:$0xff]  }
 0x98e   : > { %13898 = vmatpush1.bf16.msra.mxu1 %v17859_v27  ;;  %13739 = vmatprep.subr.bf16.mxu0 %v17864_v30  ;;  %v17928_v27 = vld [vmem:[%s19067_s17 + $0xa48] ss:$52 sps:$4 sm:$0xff]   ;;  %v17931_v30 = vld [vmem:[%s19067_s17 + $0x980] ss:$52 sps:$4 sm:$0xff]  }
 0x98f   : > { %13899 = vmatprep.subr.bf16.mxu1 %v17867_v40  ;;  %v17936_v40 = vld [vmem:[%s19067_s17 + $0xab4] ss:$52 sps:$4 sm:$0xff]  }
 0x991   : > { %13740 = vmatpush1.bf16.msra.mxu0 %v17862_v31  ;;  %v17939_v31 = vld [vmem:[%s19067_s17 + $0x9ec] ss:$52 sps:$4 sm:$0xff]  }
 0x992   : > { %13900 = vmatpush1.bf16.msra.mxu1 %v17865_v57  ;;  %13741 = vmatprep.subr.bf16.mxu0 %v17870_v59  ;;  %v17934_v57 = vld [vmem:[%s19067_s17 + $0xab0] ss:$52 sps:$4 sm:$0xff]   ;;  %v17937_v59 = vld [vmem:[%s19067_s17 + $0x9e8] ss:$52 sps:$4 sm:$0xff]  }
 0x993   : > { %13901 = vmatprep.subr.bf16.mxu1 %v17873_v60  ;;  %v17942_v60 = vld [vmem:[%s19067_s17 + $0xb1c] ss:$52 sps:$4 sm:$0xff]  }
 0x995   : > { %13742 = vmatpush1.bf16.msra.mxu0 %v17868_v48  ;;  %v17945_v48 = vld [vmem:[%s19067_s17 + $0xa54] ss:$52 sps:$4 sm:$0xff]  }
 0x996   : > { %13902 = vmatpush1.bf16.msra.mxu1 %v17871_v61  ;;  %13752 = vmatprep.subr.bf16.mxu0 %v17876_v2  ;;  %v17940_v61 = vld [vmem:[%s19067_s17 + $0xb18] ss:$52 sps:$4 sm:$0xff]   ;;  %v17943_v2 = vld [vmem:[%s19067_s17 + $0xa50] ss:$52 sps:$4 sm:$0xff]  }
 0x997   : > { %13903 = vmatprep.subr.bf16.mxu1 %v17879_v62  ;;  %v17948_v62 = vld [vmem:[%s19067_s17 + $0xb84] ss:$52 sps:$4 sm:$0xff]  }
 0x998   : > { %13744 = vmatmul.mubr.bf16.vlgmr.msra.gmra.mrb[24].mxu0 %v19355_v11 }
 0x999   : > { %13753 = vmatpush1.bf16.msra.mxu0 %v17874_v0  ;;  %13784 = vmatprep.mubr.bf16.mxu0 %v19359_v3  ;;  %v17951_v0 = vld [vmem:[%s19067_s17 + $0xabc] ss:$52 sps:$4 sm:$0xff]  }
 0x99a   : > { %13904 = vmatpush1.bf16.msra.mxu1 %v17877_v53  ;;  %13754 = vmatprep.subr.bf16.mxu0 %v17882_v46  ;;  %v17946_v53 = vld [vmem:[%s19067_s17 + $0xb80] ss:$52 sps:$4 sm:$0xff]   ;;  %v17949_v46 = vld [vmem:[%s19067_s17 + $0xab8] ss:$52 sps:$4 sm:$0xff]  }
 0x99b   : > { %13905 = vmatprep.subr.bf16.mxu1 %v17885_v9  ;;  %v17954_v9 = vld [vmem:[%s19067_s17 + $0xbec] ss:$52 sps:$4 sm:$0xff]  }
 0x99d   : > { %13755 = vmatpush1.bf16.msra.mxu0 %v17880_v18  ;;  %v17957_v18 = vld [vmem:[%s19067_s17 + $0xb24] ss:$52 sps:$4 sm:$0xff]  }
 0x99e   : > { %13906 = vmatpush1.bf16.msra.mxu1 %v17883_v19  ;;  %13756 = vmatprep.subr.bf16.mxu0 %v17888_v21  ;;  %v17952_v19 = vld [vmem:[%s19067_s17 + $0xbe8] ss:$52 sps:$4 sm:$0xff]   ;;  %v17955_v21 = vld [vmem:[%s19067_s17 + $0xb20] ss:$52 sps:$4 sm:$0xff]  }
 0x99f   : > { %13916 = vmatprep.subr.bf16.mxu1 %v17891_v12  ;;  %v17960_v12 = vld [vmem:[%s19067_s17 + $0xc54] ss:$52 sps:$4 sm:$0xff]  }
 0x9a1   : > { %13757 = vmatpush1.bf16.msra.mxu0 %v17886_v22  ;;  %13908 = vmatmul.mubr.bf16.vlgmr.msra.gmra.mrb[36].mxu1 %v19355_v11  ;;  %v17963_v22 = vld [vmem:[%s19067_s17 + $0xb8c] ss:$52 sps:$4 sm:$0xff]  }
 0x9a2   : > { %13917 = vmatpush1.bf16.msra.mxu1 %v17889_v34  ;;  %13948 = vmatprep.mubr.bf16.mxu1 %v19359_v3  ;;  %v17958_v34 = vld [vmem:[%s19067_s17 + $0xc50] ss:$52 sps:$4 sm:$0xff]  }
 0x9a3   : > { %13758 = vmatprep.subr.bf16.mxu0 %v17894_v23  ;;  %13918 = vmatprep.subr.bf16.mxu1 %v17897_v24  ;;  %v17961_v23 = vld [vmem:[%s19067_s17 + $0xb88] ss:$52 sps:$4 sm:$0xff]  }
 0x9a4   : > { %v17966_v24 = vld [vmem:[%s19067_s17 + $0xcbc] ss:$52 sps:$4 sm:$0xff]  }
 0x9a5   : > { %13759 = vmatpush1.bf16.msra.mxu0 %v17892_v25  ;;  %v17969_v25 = vld [vmem:[%s19067_s17 + $0xbf4] ss:$52 sps:$4 sm:$0xff]  }
 0x9a6   : > { %13919 = vmatpush1.bf16.msra.mxu1 %v17895_v4  ;;  %13760 = vmatprep.subr.bf16.mxu0 %v17900_v26  ;;  %v17964_v4 = vld [vmem:[%s19067_s17 + $0xcb8] ss:$52 sps:$4 sm:$0xff]   ;;  %v17967_v26 = vld [vmem:[%s19067_s17 + $0xbf0] ss:$52 sps:$4 sm:$0xff]  }
 0x9a7   : > { %13920 = vmatprep.subr.bf16.mxu1 %v17903_v13  ;;  %v17972_v13 = vld [vmem:[%s19067_s17 + $0xd24] ss:$52 sps:$4 sm:$0xff]  }
 0x9a9   : > { %13761 = vmatpush1.bf16.msra.mxu0 %v17898_v39  ;;  %v17975_v39 = vld [vmem:[%s19067_s17 + $0xc5c] ss:$52 sps:$4 sm:$0xff]  }
 0x9aa   : > { %13921 = vmatpush1.bf16.msra.mxu1 %v17901_v44  ;;  %13762 = vmatprep.subr.bf16.mxu0 %v17906_v45  ;;  %v17970_v44 = vld [vmem:[%s19067_s17 + $0xd20] ss:$52 sps:$4 sm:$0xff]   ;;  %v17973_v45 = vld [vmem:[%s19067_s17 + $0xc58] ss:$52 sps:$4 sm:$0xff]  }
 0x9ab   : > { %13922 = vmatprep.subr.bf16.mxu1 %v17909_v17  ;;  %v17978_v17 = vld [vmem:[%s19067_s17 + $0xd8c] ss:$52 sps:$4 sm:$0xff]  }
 0x9ad   : > { %13763 = vmatpush1.bf16.msra.mxu0 %v17904_v28  ;;  %v17981_v28 = vld [vmem:[%s19067_s17 + $0xcc4] ss:$52 sps:$4 sm:$0xff]  }
 0x9ae   : > { %13923 = vmatpush1.bf16.msra.mxu1 %v17907_v47  ;;  %13764 = vmatprep.subr.bf16.mxu0 %v17912_v58  ;;  %v17976_v47 = vld [vmem:[%s19067_s17 + $0xd88] ss:$52 sps:$4 sm:$0xff]   ;;  %v17979_v58 = vld [vmem:[%s19067_s17 + $0xcc0] ss:$52 sps:$4 sm:$0xff]  }
 0x9af   : > { %13924 = vmatprep.subr.bf16.mxu1 %v17915_v7  ;;  %v17984_v7 = vld [vmem:[%s19067_s17 + $0xdf4] ss:$52 sps:$4 sm:$0xff]  }
 0x9b1   : > { %13765 = vmatpush1.bf16.msra.mxu0 %v17910_v5  ;;  %v17987_v5 = vld [vmem:[%s19067_s17 + $0xd2c] ss:$52 sps:$4 sm:$0xff]  }
 0x9b2   : > { %13925 = vmatpush1.bf16.msra.mxu1 %v17913_v49  ;;  %13766 = vmatprep.subr.bf16.mxu0 %v17918_v10  ;;  %v17982_v49 = vld [vmem:[%s19067_s17 + $0xdf0] ss:$52 sps:$4 sm:$0xff]   ;;  %v17985_v10 = vld [vmem:[%s19067_s17 + $0xd28] ss:$52 sps:$4 sm:$0xff]  }
 0x9b3   : > { %13926 = vmatprep.subr.bf16.mxu1 %v17921_v54  ;;  %v17990_v54 = vld [vmem:[%s19067_s17 + $0xe5c] ss:$52 sps:$4 sm:$0xff]  }
 0x9b5   : > { %13767 = vmatpush1.bf16.msra.mxu0 %v17916_v50  ;;  %v17993_v50 = vld [vmem:[%s19067_s17 + $0xd94] ss:$52 sps:$4 sm:$0xff]  }
 0x9b6   : > { %13927 = vmatpush1.bf16.msra.mxu1 %v17919_v35  ;;  %13768 = vmatprep.subr.bf16.mxu0 %v17924_v38  ;;  %v17988_v35 = vld [vmem:[%s19067_s17 + $0xe58] ss:$52 sps:$4 sm:$0xff]   ;;  %v17991_v38 = vld [vmem:[%s19067_s17 + $0xd90] ss:$52 sps:$4 sm:$0xff]  }
 0x9b7   : > { %13928 = vmatprep.subr.bf16.mxu1 %v17927_v51  ;;  %v17996_v51 = vld [vmem:[%s19067_s17 + $0xec4] ss:$52 sps:$4 sm:$0xff]  }
 0x9b9   : > { %13769 = vmatpush1.bf16.msra.mxu0 %v17922_v29  ;;  %v17999_v29 = vld [vmem:[%s19067_s17 + $0xdfc] ss:$52 sps:$4 sm:$0xff]  }
 0x9ba   : > { %13929 = vmatpush1.bf16.msra.mxu1 %v17925_v52  ;;  %13770 = vmatprep.subr.bf16.mxu0 %v17930_v55  ;;  %v17994_v52 = vld [vmem:[%s19067_s17 + $0xec0] ss:$52 sps:$4 sm:$0xff]   ;;  %v17997_v55 = vld [vmem:[%s19067_s17 + $0xdf8] ss:$52 sps:$4 sm:$0xff]  }
 0x9bb   : > { %13930 = vmatprep.subr.bf16.mxu1 %v17933_v36  ;;  %v18002_v36 = vld [vmem:[%s19067_s17 + $0xf2c] ss:$52 sps:$4 sm:$0xff]  }
 0x9bd   : > { %13771 = vmatpush1.bf16.msra.mxu0 %v17928_v27  ;;  %v18005_v27 = vld [vmem:[%s19067_s17 + $0xe64] ss:$52 sps:$4 sm:$0xff]  }
 0x9be   : > { %13931 = vmatpush1.bf16.msra.mxu1 %v17931_v30  ;;  %13772 = vmatprep.subr.bf16.mxu0 %v17936_v40  ;;  %v18000_v30 = vld [vmem:[%s19067_s17 + $0xf28] ss:$52 sps:$4 sm:$0xff]   ;;  %v18003_v40 = vld [vmem:[%s19067_s17 + $0xe60] ss:$52 sps:$4 sm:$0xff]  }
 0x9bf   : > { %13932 = vmatprep.subr.bf16.mxu1 %v17939_v31  ;;  %v18008_v31 = vld [vmem:[%s19067_s17 + $0xf94] ss:$52 sps:$4 sm:$0xff]  }
 0x9c1   : > { %13773 = vmatpush1.bf16.msra.mxu0 %v17934_v57  ;;  %v18011_v57 = vld [vmem:[%s19067_s17 + $0xecc] ss:$52 sps:$4 sm:$0xff]  }
 0x9c2   : > { %13933 = vmatpush1.bf16.msra.mxu1 %v17937_v59  ;;  %13774 = vmatprep.subr.bf16.mxu0 %v17942_v60  ;;  %v18006_v59 = vld [vmem:[%s19067_s17 + $0xf90] ss:$52 sps:$4 sm:$0xff]   ;;  %v18009_v60 = vld [vmem:[%s19067_s17 + $0xec8] ss:$52 sps:$4 sm:$0xff]  }
 0x9c3   : > { %13934 = vmatprep.subr.bf16.mxu1 %v17945_v48  ;;  %v18014_v48 = vld [vmem:[%s19067_s17 + $0xffc] ss:$52 sps:$4 sm:$0xff]  }
 0x9c5   : > { %13775 = vmatpush1.bf16.msra.mxu0 %v17940_v61  ;;  %v18017_v61 = vld [vmem:[%s19067_s17 + $0xf34] ss:$52 sps:$4 sm:$0xff]  }
 0x9c6   : > { %13935 = vmatpush1.bf16.msra.mxu1 %v17943_v2  ;;  %13776 = vmatprep.subr.bf16.mxu0 %v17948_v62  ;;  %v18012_v2 = vld [vmem:[%s19067_s17 + $0xff8] ss:$52 sps:$4 sm:$0xff]   ;;  %v18015_v62 = vld [vmem:[%s19067_s17 + $0xf30] ss:$52 sps:$4 sm:$0xff]  }
 0x9c7   : > { %13936 = vmatprep.subr.bf16.mxu1 %v17951_v0  ;;  %v18020_v0 = vld [vmem:[%s19067_s17 + $0x1064] ss:$52 sps:$4 sm:$0xff]  }
 0x9c9   : > { %13777 = vmatpush1.bf16.msra.mxu0 %v17946_v53  ;;  %v18023_v53 = vld [vmem:[%s19067_s17 + $0xf9c] ss:$52 sps:$4 sm:$0xff]  }
 0x9ca   : > { %13937 = vmatpush1.bf16.msra.mxu1 %v17949_v46  ;;  %13778 = vmatprep.subr.bf16.mxu0 %v17954_v9  ;;  %v18018_v46 = vld [vmem:[%s19067_s17 + $0x1060] ss:$52 sps:$4 sm:$0xff]   ;;  %v18021_v9 = vld [vmem:[%s19067_s17 + $0xf98] ss:$52 sps:$4 sm:$0xff]  }
 0x9cb   : > { %13938 = vmatprep.subr.bf16.mxu1 %v17957_v18  ;;  %v18026_v18 = vld [vmem:[%s19067_s17 + $0x10cc] ss:$52 sps:$4 sm:$0xff]  }
 0x9cd   : > { %13779 = vmatpush1.bf16.msra.mxu0 %v17952_v19  ;;  %v18029_v19 = vld [vmem:[%s19067_s17 + $0x1004] ss:$52 sps:$4 sm:$0xff]  }
 0x9ce   : > { %13939 = vmatpush1.bf16.msra.mxu1 %v17955_v21  ;;  %13780 = vmatprep.subr.bf16.mxu0 %v17960_v12  ;;  %v18024_v21 = vld [vmem:[%s19067_s17 + $0x10c8] ss:$52 sps:$4 sm:$0xff]   ;;  %v18027_v12 = vld [vmem:[%s19067_s17 + $0x1000] ss:$52 sps:$4 sm:$0xff]  }
 0x9cf   : > { %13940 = vmatprep.subr.bf16.mxu1 %v17963_v22  ;;  %v18032_v22 = vld [vmem:[%s19067_s17 + $0x1134] ss:$52 sps:$4 sm:$0xff]  }
 0x9d1   : > { %13781 = vmatpush1.bf16.msra.mxu0 %v17958_v34  ;;  %v18035_v34 = vld [vmem:[%s19067_s17 + $0x106c] ss:$52 sps:$4 sm:$0xff]  }
 0x9d2   : > { %13941 = vmatpush1.bf16.msra.mxu1 %v17961_v23  ;;  %13782 = vmatprep.subr.bf16.mxu0 %v17966_v24  ;;  %v18030_v23 = vld [vmem:[%s19067_s17 + $0x1130] ss:$52 sps:$4 sm:$0xff]   ;;  %v18033_v24 = vld [vmem:[%s19067_s17 + $0x1068] ss:$52 sps:$4 sm:$0xff]  }
 0x9d3   : > { %13942 = vmatprep.subr.bf16.mxu1 %v17969_v25  ;;  %v18038_v25 = vld [vmem:[%s19067_s17 + $0x119c] ss:$52 sps:$4 sm:$0xff]  }
 0x9d5   : > { %13783 = vmatpush1.bf16.msra.mxu0 %v17964_v4  ;;  %v18041_v4 = vld [vmem:[%s19067_s17 + $0x10d4] ss:$52 sps:$4 sm:$0xff]  }
 0x9d6   : > { %13943 = vmatpush1.bf16.msra.mxu1 %v17967_v26  ;;  %13793 = vmatprep.subr.bf16.mxu0 %v17972_v13  ;;  %v18036_v26 = vld [vmem:[%s19067_s17 + $0x1198] ss:$52 sps:$4 sm:$0xff]   ;;  %v18039_v13 = vld [vmem:[%s19067_s17 + $0x10d0] ss:$52 sps:$4 sm:$0xff]  }
 0x9d7   : > { %13944 = vmatprep.subr.bf16.mxu1 %v17975_v39  ;;  %v18044_v39 = vld [vmem:[%s19067_s17 + $0x1204] ss:$52 sps:$4 sm:$0xff]  }
 0x9d8   : > { %13785 = vmatmul.mubr.bf16.vlgmr.msra.gmra.mrb[24].mxu0 %v19430_v33 }
 0x9d9   : > { %13794 = vmatpush1.bf16.msra.mxu0 %v17970_v44  ;;  %13825 = vmatprep.mubr.bf16.mxu0 %v19515_v6  ;;  %v18047_v44 = vld [vmem:[%s19067_s17 + $0x113c] ss:$52 sps:$4 sm:$0xff]  }
 0x9da   : > { %13945 = vmatpush1.bf16.msra.mxu1 %v17973_v45  ;;  %13795 = vmatprep.subr.bf16.mxu0 %v17978_v17  ;;  %v18042_v45 = vld [vmem:[%s19067_s17 + $0x1200] ss:$52 sps:$4 sm:$0xff]   ;;  %v18045_v17 = vld [vmem:[%s19067_s17 + $0x1138] ss:$52 sps:$4 sm:$0xff]  }
 0x9db   : > { %13946 = vmatprep.subr.bf16.mxu1 %v17981_v28  ;;  %v18050_v28 = vld [vmem:[%s19067_s17 + $0x126c] ss:$52 sps:$4 sm:$0xff]  }
 0x9dd   : > { %13796 = vmatpush1.bf16.msra.mxu0 %v17976_v47  ;;  %v18053_v47 = vld [vmem:[%s19067_s17 + $0x11a4] ss:$52 sps:$4 sm:$0xff]  }
 0x9de   : > { %13947 = vmatpush1.bf16.msra.mxu1 %v17979_v58  ;;  %13797 = vmatprep.subr.bf16.mxu0 %v17984_v7  ;;  %v18048_v58 = vld [vmem:[%s19067_s17 + $0x1268] ss:$52 sps:$4 sm:$0xff]   ;;  %v18051_v7 = vld [vmem:[%s19067_s17 + $0x11a0] ss:$52 sps:$4 sm:$0xff]  }
 0x9df   : > { %13957 = vmatprep.subr.bf16.mxu1 %v17987_v5  ;;  %v18056_v5 = vld [vmem:[%s19067_s17 + $0x12d4] ss:$52 sps:$4 sm:$0xff]  }
 0x9e1   : > { %13798 = vmatpush1.bf16.msra.mxu0 %v17982_v49  ;;  %13949 = vmatmul.mubr.bf16.vlgmr.msra.gmra.mrb[36].mxu1 %v19430_v33  ;;  %v18059_v49 = vld [vmem:[%s19067_s17 + $0x120c] ss:$52 sps:$4 sm:$0xff]  }
 0x9e2   : > { %13958 = vmatpush1.bf16.msra.mxu1 %v17985_v10  ;;  %13989 = vmatprep.mubr.bf16.mxu1 %v19515_v6  ;;  %v18054_v10 = vld [vmem:[%s19067_s17 + $0x12d0] ss:$52 sps:$4 sm:$0xff]  }
 0x9e3   : > { %13799 = vmatprep.subr.bf16.mxu0 %v17990_v54  ;;  %13959 = vmatprep.subr.bf16.mxu1 %v17993_v50  ;;  %v18057_v54 = vld [vmem:[%s19067_s17 + $0x1208] ss:$52 sps:$4 sm:$0xff]  }
 0x9e4   : > { %v18062_v50 = vld [vmem:[%s19067_s17 + $0x133c] ss:$52 sps:$4 sm:$0xff]  }
 0x9e5   : > { %13800 = vmatpush1.bf16.msra.mxu0 %v17988_v35  ;;  %v18065_v35 = vld [vmem:[%s19067_s17 + $0x1274] ss:$52 sps:$4 sm:$0xff]  }
 0x9e6   : > { %13960 = vmatpush1.bf16.msra.mxu1 %v17991_v38  ;;  %13801 = vmatprep.subr.bf16.mxu0 %v17996_v51  ;;  %v18060_v38 = vld [vmem:[%s19067_s17 + $0x1338] ss:$52 sps:$4 sm:$0xff]   ;;  %v18063_v51 = vld [vmem:[%s19067_s17 + $0x1270] ss:$52 sps:$4 sm:$0xff]  }
 0x9e7   : > { %13961 = vmatprep.subr.bf16.mxu1 %v17999_v29  ;;  %v18068_v29 = vld [vmem:[%s19067_s17 + $0x13a4] ss:$52 sps:$4 sm:$0xff]  }
 0x9e9   : > { %13802 = vmatpush1.bf16.msra.mxu0 %v17994_v52  ;;  %v18071_v52 = vld [vmem:[%s19067_s17 + $0x12dc] ss:$52 sps:$4 sm:$0xff]  }
 0x9ea   : > { %13962 = vmatpush1.bf16.msra.mxu1 %v17997_v55  ;;  %13803 = vmatprep.subr.bf16.mxu0 %v18002_v36  ;;  %v18066_v55 = vld [vmem:[%s19067_s17 + $0x13a0] ss:$52 sps:$4 sm:$0xff]   ;;  %v18069_v36 = vld [vmem:[%s19067_s17 + $0x12d8] ss:$52 sps:$4 sm:$0xff]  }
 0x9eb   : > { %13963 = vmatprep.subr.bf16.mxu1 %v18005_v27  ;;  %v18074_v27 = vld [vmem:[%s19067_s17 + $0x140c] ss:$52 sps:$4 sm:$0xff]  }
 0x9ed   : > { %13804 = vmatpush1.bf16.msra.mxu0 %v18000_v30  ;;  %v18077_v30 = vld [vmem:[%s19067_s17 + $0x1344] ss:$52 sps:$4 sm:$0xff]  }
 0x9ee   : > { %13964 = vmatpush1.bf16.msra.mxu1 %v18003_v40  ;;  %13805 = vmatprep.subr.bf16.mxu0 %v18008_v31  ;;  %v18072_v40 = vld [vmem:[%s19067_s17 + $0x1408] ss:$52 sps:$4 sm:$0xff]   ;;  %v18075_v31 = vld [vmem:[%s19067_s17 + $0x1340] ss:$52 sps:$4 sm:$0xff]  }
 0x9ef   : > { %13965 = vmatprep.subr.bf16.mxu1 %v18011_v57  ;;  %v18080_v57 = vld [vmem:[%s19067_s17 + $0x1474] ss:$52 sps:$4 sm:$0xff]  }
 0x9f1   : > { %13806 = vmatpush1.bf16.msra.mxu0 %v18006_v59  ;;  %v18083_v59 = vld [vmem:[%s19067_s17 + $0x13ac] ss:$52 sps:$4 sm:$0xff]  }
 0x9f2   : > { %13966 = vmatpush1.bf16.msra.mxu1 %v18009_v60  ;;  %13807 = vmatprep.subr.bf16.mxu0 %v18014_v48  ;;  %v18078_v60 = vld [vmem:[%s19067_s17 + $0x1470] ss:$52 sps:$4 sm:$0xff]   ;;  %v18081_v48 = vld [vmem:[%s19067_s17 + $0x13a8] ss:$52 sps:$4 sm:$0xff]  }
 0x9f3   : > { %13967 = vmatprep.subr.bf16.mxu1 %v18017_v61  ;;  %v18086_v61 = vld [vmem:[%s19067_s17 + $0x14dc] ss:$52 sps:$4 sm:$0xff]  }
 0x9f5   : > { %13808 = vmatpush1.bf16.msra.mxu0 %v18012_v2  ;;  %v18089_v2 = vld [vmem:[%s19067_s17 + $0x1414] ss:$52 sps:$4 sm:$0xff]  }
 0x9f6   : > { %13968 = vmatpush1.bf16.msra.mxu1 %v18015_v62  ;;  %13809 = vmatprep.subr.bf16.mxu0 %v18020_v0  ;;  %v18084_v62 = vld [vmem:[%s19067_s17 + $0x14d8] ss:$52 sps:$4 sm:$0xff]   ;;  %v18087_v0 = vld [vmem:[%s19067_s17 + $0x1410] ss:$52 sps:$4 sm:$0xff]  }
 0x9f7   : > { %13969 = vmatprep.subr.bf16.mxu1 %v18023_v53  ;;  %v18092_v53 = vld [vmem:[%s19067_s17 + $0x1544] ss:$52 sps:$4 sm:$0xff]  }
 0x9f9   : > { %13810 = vmatpush1.bf16.msra.mxu0 %v18018_v46  ;;  %v18095_v46 = vld [vmem:[%s19067_s17 + $0x147c] ss:$52 sps:$4 sm:$0xff]  }
 0x9fa   : > { %13970 = vmatpush1.bf16.msra.mxu1 %v18021_v9  ;;  %13811 = vmatprep.subr.bf16.mxu0 %v18026_v18  ;;  %v18090_v9 = vld [vmem:[%s19067_s17 + $0x1540] ss:$52 sps:$4 sm:$0xff]   ;;  %v18093_v18 = vld [vmem:[%s19067_s17 + $0x1478] ss:$52 sps:$4 sm:$0xff]  }
 0x9fb   : > { %13971 = vmatprep.subr.bf16.mxu1 %v18029_v19  ;;  %v18098_v19 = vld [vmem:[%s19067_s17 + $0x15ac] ss:$52 sps:$4 sm:$0xff]  }
 0x9fd   : > { %13812 = vmatpush1.bf16.msra.mxu0 %v18024_v21  ;;  %v18101_v21 = vld [vmem:[%s19067_s17 + $0x14e4] ss:$52 sps:$4 sm:$0xff]  }
 0x9fe   : > { %13972 = vmatpush1.bf16.msra.mxu1 %v18027_v12  ;;  %13813 = vmatprep.subr.bf16.mxu0 %v18032_v22  ;;  %v18260_v12 = vld [vmem:[%s19826_s5] sm:$0xff] }
 0x9ff   : > { %13973 = vmatprep.subr.bf16.mxu1 %v18035_v34  ;;  %v8785_v22 = vrot.slane %v18260_v12, %v19242_v32  ;;  %v8789_v34 = vrot.slane %v18260_v12, %v19217_v56 }
 0xa01   : > { %13814 = vmatpush1.bf16.msra.mxu0 %v18030_v23  ;;  %v18096_v23 = vld [vmem:[%s19067_s17 + $0x15a8] ss:$52 sps:$4 sm:$0xff]  }
 0xa02   : > { %13974 = vmatpush1.bf16.msra.mxu1 %v18033_v24  ;;  %13815 = vmatprep.subr.bf16.mxu0 %v18038_v25  ;;  %v18099_v24 = vld [vmem:[%s19067_s17 + $0x14e0] ss:$52 sps:$4 sm:$0xff]  }
 0xa03   : > { %13975 = vmatprep.subr.bf16.mxu1 %v18041_v4  ;;  %v18104_v25 = vld [vmem:[%s19067_s17 + $0x1614] ss:$52 sps:$4 sm:$0xff]  }
 0xa05   : > { %13816 = vmatpush1.bf16.msra.mxu0 %v18036_v26  ;;  %v18107_v26 = vld [vmem:[%s19067_s17 + $0x154c] ss:$52 sps:$4 sm:$0xff]  }
 0xa06   : > { %13976 = vmatpush1.bf16.msra.mxu1 %v18039_v13  ;;  %13817 = vmatprep.subr.bf16.mxu0 %v18044_v39 }
 0xa07   : > { %13977 = vmatprep.subr.bf16.mxu1 %v18047_v44 }
 0xa09   : > { %13818 = vmatpush1.bf16.msra.mxu0 %v18042_v45 }
 0xa0a   : > { %13978 = vmatpush1.bf16.msra.mxu1 %v18045_v17  ;;  %13819 = vmatprep.subr.bf16.mxu0 %v18050_v28  ;;  %v18102_v17 = vld [vmem:[%s19067_s17 + $0x1610] ss:$52 sps:$4 sm:$0xff]   ;;  %v18105_v28 = vld [vmem:[%s19067_s17 + $0x1548] ss:$52 sps:$4 sm:$0xff]  }
 0xa0b   : > { %13979 = vmatprep.subr.bf16.mxu1 %v18053_v47  ;;  %v18110_v47 = vld [vmem:[%s19067_s17 + $0x167c] ss:$52 sps:$4 sm:$0xff]  }
 0xa0d   : > { %13820 = vmatpush1.bf16.msra.mxu0 %v18048_v58  ;;  %v18113_v58 = vld [vmem:[%s19067_s17 + $0x15b4] ss:$52 sps:$4 sm:$0xff]  }
 0xa0e   : > { %13980 = vmatpush1.bf16.msra.mxu1 %v18051_v7  ;;  %13821 = vmatprep.subr.bf16.mxu0 %v18056_v5  ;;  %v18108_v7 = vld [vmem:[%s19067_s17 + $0x1678] ss:$52 sps:$4 sm:$0xff]   ;;  %v8793_v5 = vrot.slane %v18260_v12, %v19252_v8 }
 0xa0f   : > { %13981 = vmatprep.subr.bf16.mxu1 %v18059_v49  ;;  %v8797_v49 = vrot.slane %v18260_v12, %v19255_v14  ;;  %v18117_v8 = vld [vmem:[%s19067_s17 + $0x1618] ss:$52 sps:$4 sm:$0xff]   ;;  %v18143_v12 = vld [vmem:[%s19067_s17 + $0x17bc] ss:$52 sps:$4 sm:$0xff]  }
 0xa11   : > { %13822 = vmatpush1.bf16.msra.mxu0 %v18054_v10  ;;  %v18111_v10 = vld [vmem:[%s19067_s17 + $0x15b0] ss:$52 sps:$4 sm:$0xff]  }
 0xa12   : > { %13982 = vmatpush1.bf16.msra.mxu1 %v18057_v54  ;;  %13823 = vmatprep.subr.bf16.mxu0 %v18062_v50  ;;  %v18116_v54 = vld [vmem:[%s19067_s17 + $0x16e4] ss:$52 sps:$4 sm:$0xff]   ;;  %v18119_v50 = vld [vmem:[%s19067_s17 + $0x161c] ss:$52 sps:$4 sm:$0xff]  }
 0xa13   : > { %13983 = vmatprep.subr.bf16.mxu1 %v18065_v35 }
 0xa15   : > { %13824 = vmatpush1.bf16.msra.mxu0 %v18060_v38 }
 0xa16   : > { %13984 = vmatpush1.bf16.msra.mxu1 %v18063_v51  ;;  %13834 = vmatprep.subr.bf16.mxu0 %v18068_v29  ;;  %v18114_v29 = vld [vmem:[%s19067_s17 + $0x16e0] ss:$52 sps:$4 sm:$0xff]  }
 0xa17   : > { %13985 = vmatprep.subr.bf16.mxu1 %v18071_v52 }
 0xa18   : > { %13826 = vmatmul.mubr.bf16.vlgmr.msra.gmra.mrb[24].mxu0 %v19518_v41 }
 0xa19   : > { %13835 = vmatpush1.bf16.msra.mxu0 %v18066_v55  ;;  %13866 = vmatprep.mubr.bf16.mxu0 %v19564_v43 }
 0xa1a   : > { %13986 = vmatpush1.bf16.msra.mxu1 %v18069_v36  ;;  %13836 = vmatprep.subr.bf16.mxu0 %v18074_v27  ;;  %v18122_v36 = vld [vmem:[%s19067_s17 + $0x174c] ss:$52 sps:$4 sm:$0xff]   ;;  %v18125_v27 = vld [vmem:[%s19067_s17 + $0x1684] ss:$52 sps:$4 sm:$0xff]  }
 0xa1b   : > { %13987 = vmatprep.subr.bf16.mxu1 %v18077_v30 }
 0xa1d   : > { %13837 = vmatpush1.bf16.msra.mxu0 %v18072_v40 }
 0xa1e   : > { %13988 = vmatpush1.bf16.msra.mxu1 %v18075_v31  ;;  %13838 = vmatprep.subr.bf16.mxu0 %v18080_v57  ;;  %v18120_v31 = vld [vmem:[%s19067_s17 + $0x1748] ss:$52 sps:$4 sm:$0xff]  }
 0xa1f   : > { %13998 = vmatprep.subr.bf16.mxu1 %v18083_v59  ;;  %v18123_v59 = vld [vmem:[%s19067_s17 + $0x1680] ss:$52 sps:$4 sm:$0xff]  }
 0xa21   : > { %13839 = vmatpush1.bf16.msra.mxu0 %v18078_v60  ;;  %13990 = vmatmul.mubr.bf16.vlgmr.msra.gmra.mrb[36].mxu1 %v19518_v41  ;;  %v18128_v60 = vld [vmem:[%s19067_s17 + $0x17b4] ss:$52 sps:$4 sm:$0xff]  }
 0xa22   : > { %13999 = vmatpush1.bf16.msra.mxu1 %v18081_v48  ;;  %14030 = vmatprep.mubr.bf16.mxu1 %v19564_v43  ;;  %v18131_v48 = vld [vmem:[%s19067_s17 + $0x16ec] ss:$52 sps:$4 sm:$0xff]  }
 0xa23   : > { %13840 = vmatprep.subr.bf16.mxu0 %v18086_v61  ;;  %14000 = vmatprep.subr.bf16.mxu1 %v18089_v2  ;;  %v18126_v61 = vld [vmem:[%s19067_s17 + $0x17b0] ss:$52 sps:$4 sm:$0xff]   ;;  %v18129_v2 = vld [vmem:[%s19067_s17 + $0x16e8] ss:$52 sps:$4 sm:$0xff]  }
 0xa25   : > { %13841 = vmatpush1.bf16.msra.mxu0 %v18084_v62  ;;  %v18134_v62 = vld [vmem:[%s19067_s17 + $0x181c] ss:$52 sps:$4 sm:$0xff]  }
 0xa26   : > { %14001 = vmatpush1.bf16.msra.mxu1 %v18087_v0  ;;  %13842 = vmatprep.subr.bf16.mxu0 %v18092_v53  ;;  %v18137_v0 = vld [vmem:[%s19067_s17 + $0x1754] ss:$52 sps:$4 sm:$0xff]  }
 0xa27   : > { %14002 = vmatprep.subr.bf16.mxu1 %v18095_v46  ;;  %v18132_v46 = vld [vmem:[%s19067_s17 + $0x1818] ss:$52 sps:$4 sm:$0xff]  }
 0xa29   : > { %13843 = vmatpush1.bf16.msra.mxu0 %v18090_v9 }
 0xa2a   : > { %14003 = vmatpush1.bf16.msra.mxu1 %v18093_v18  ;;  %13844 = vmatprep.subr.bf16.mxu0 %v18098_v19  ;;  %v18135_v18 = vld [vmem:[%s19067_s17 + $0x1750] ss:$52 sps:$4 sm:$0xff]  }
 0xa2b   : > { %v13540_v4 = vpop.f32.mrb[20].mxu0  ;;  %14004 = vmatprep.subr.bf16.mxu1 %v18101_v21  ;;  %v18140_v19 = vld [vmem:[%s19067_s17 + $0x1884] ss:$52 sps:$4 sm:$0xff]  }
 0xa2c   : > { %v16408_v13 = vadd.f32 %v13540_v4, %v8785_v22  ;;  %v13542_v39 = vpop.f32.mrb[21].mxu0 }
 0xa2d   : > { %v16409_v44 = vadd.f32 %v13542_v39, %v8789_v34  ;;  %v13544_v45 = vpop.f32.mrb[22].mxu0  ;;  %13845 = vmatpush1.bf16.msra.mxu0 %v18096_v23  ;;  %v18138_v23 = vld [vmem:[%s19067_s17 + $0x1880] ss:$52 sps:$4 sm:$0xff]  }
 0xa2e   : > { %18240 = vtanh.f32 %v16408_v13  ;;  %v13545_v56 = vpop.f32.mrb[23].mxu0  ;;  %14005 = vmatpush1.bf16.msra.mxu1 %v18099_v24  ;;  %13846 = vmatprep.subr.bf16.mxu0 %v18104_v25  ;;  %v18141_v24 = vld [vmem:[%s19067_s17 + $0x17b8] ss:$52 sps:$4 sm:$0xff]   ;;  %v18144_v13 = vld [vmem:[%s19067_s17 + $0x18e8] ss:$52 sps:$4 sm:$0xff]  }
 0xa2f   : > { %18242 = vtanh.f32 %v16409_v44  ;;  %14006 = vmatprep.subr.bf16.mxu1 %v18107_v26  ;;  %v18146_v25 = vld [vmem:[%s19067_s17 + $0x18ec] ss:$52 sps:$4 sm:$0xff]   ;;  %v18149_v26 = vld [vmem:[%s19067_s17 + $0x1824] ss:$52 sps:$4 sm:$0xff]   ;;  %v18152_v44 = vld [vmem:[%s19067_s17 + $0x1954] ss:$52 sps:$4 sm:$0xff]  }
 0xa30   : > { %v18147_v39 = vld [vmem:[%s19067_s17 + $0x1820] ss:$52 sps:$4 sm:$0xff]   ;;  %v18153_v56 = vld [vmem:[%s19067_s17 + $0x1888] ss:$52 sps:$4 sm:$0xff]  }
 0xa31   : > { %13847 = vmatpush1.bf16.msra.mxu0 %v18102_v17  ;;  %v18155_v45 = vld [vmem:[%s19067_s17 + $0x188c] ss:$52 sps:$4 sm:$0xff]   ;;  %v18150_v17 = vld [vmem:[%s19067_s17 + $0x1950] ss:$52 sps:$4 sm:$0xff]  }
 0xa32   : > { %14007 = vmatpush1.bf16.msra.mxu1 %v18105_v28  ;;  %13848 = vmatprep.subr.bf16.mxu0 %v18110_v47  ;;  %v18158_v28 = vld [vmem:[%s19067_s17 + $0x19bc] ss:$52 sps:$4 sm:$0xff]   ;;  %v18161_v47 = vld [vmem:[%s19067_s17 + $0x18f4] ss:$52 sps:$4 sm:$0xff]  }
 0xa33   : > { %14008 = vmatprep.subr.bf16.mxu1 %v18113_v58  ;;  %v18156_v58 = vld [vmem:[%s19067_s17 + $0x19b8] ss:$52 sps:$4 sm:$0xff]  }
 0xa34   : > { %v13704_v35 = vpop.f32.mrb[32].mxu1 }
 0xa35   : > { %v16410_v38 = vadd.f32 %v13704_v35, %v8793_v5  ;;  %13849 = vmatpush1.bf16.msra.mxu0 %v18108_v7  ;;  %v13706_v51 = vpop.f32.mrb[33].mxu1  ;;  %v18159_v7 = vld [vmem:[%s19067_s17 + $0x18f0] ss:$52 sps:$4 sm:$0xff]  }
 0xa36   : > { %v16411_v52 = vadd.f32 %v13706_v51, %v8797_v49  ;;  %v13708_v55 = vpop.f32.mrb[34].mxu1  ;;  %14009 = vmatpush1.bf16.msra.mxu1 %v18111_v10  ;;  %13850 = vmatprep.subr.bf16.mxu0 %v18116_v54  ;;  %v18162_v5 = vld [vmem:[%s19067_s17 + $0x370] ss:$52 sps:$4 sm:$0xff]   ;;  %v18164_v54 = vld [vmem:[%s19067_s17 + $0x1958] ss:$52 sps:$4 sm:$0xff]  }
 0xa37   : > { %18244 = vtanh.f32 %v16410_v38  ;;  %v13709_v14 = vpop.f32.mrb[35].mxu1  ;;  %14010 = vmatprep.subr.bf16.mxu1 %v18119_v50  ;;  %v18166_v49 = vld [vmem:[%s19067_s17 + $0x195c] ss:$52 sps:$4 sm:$0xff]   ;;  %v18167_v50 = vld [vmem:[%s19067_s17 + $0x3d8] ss:$52 sps:$4 sm:$0xff]  }
 0xa38   : > { %v18241_v30 = vpop.eup %18240  ;;  %18246 = vtanh.f32 %v16411_v52  ;;  %v18163_v10 = vld [vmem:[%s19067_s17 + $0x30] ss:$52 sps:$4 sm:$0xff]   ;;  %v18168_v38 = vld [vmem:[%s19067_s17 + $0x98] ss:$52 sps:$4 sm:$0xff]   ;;  %v18169_v51 = vld [vmem:[%s19067_s17 + $0x19c0] ss:$52 sps:$4 sm:$0xff]  }
 0xa39   : > { %v18243_v40 = vpop.eup %18242  ;;  %13851 = vmatpush1.bf16.msra.mxu0 %v18114_v29  ;;  %v18171_v35 = vld [vmem:[%s19067_s17 + $0x19c4] ss:$52 sps:$4 sm:$0xff]   ;;  %v18172_v29 = vld [vmem:[%s19067_s17 + $0x440] ss:$52 sps:$4 sm:$0xff]   ;;  %v18174_v55 = vld [vmem:[%s19067_s17 + $0x4a8] ss:$52 sps:$4 sm:$0xff]  }
 0xa3a   : > { %v14242_v57 = vcombine.low %v18241_v30, %v18243_v40  ;;  %14011 = vmatpush1.bf16.msra.mxu1 %v18117_v8  ;;  %13852 = vmatprep.subr.bf16.mxu0 %v18122_v36  ;;  %v18173_v52 = vld [vmem:[%s19067_s17 + $0x100] ss:$52 sps:$4 sm:$0xff]   ;;  %v18176_v8 = vld [vmem:[%s19067_s17 + $0x510] ss:$52 sps:$4 sm:$0xff]   ;;  %v18178_v14 = vld [vmem:[%s19067_s17 + $0x578] ss:$52 sps:$4 sm:$0xff]  }
 0xa3b   : > { %14012 = vmatprep.subr.bf16.mxu1 %v18125_v27  ;;  %v18177_v36 = vld [vmem:[%s19067_s17 + $0x1d0] ss:$52 sps:$4 sm:$0xff]   ;;  %v18179_v27 = vld [vmem:[%s19067_s17 + $0x238] ss:$52 sps:$4 sm:$0xff]   ;;  %v18180_v30 = vld [vmem:[%s19067_s17 + $0x5e0] ss:$52 sps:$4 sm:$0xff]  }
 0xa3c   : > { %v14250_v22 = vrot.slane %v14242_v57, %v19076_v16  ;;  %v18181_v40 = vld [vmem:[%s19067_s17 + $0x2a0] ss:$52 sps:$4 sm:$0xff]   ;;  %v18183_v57 = vld [vmem:[%s19067_s17 + $0x308] ss:$52 sps:$4 sm:$0xff]  }
 0xa3d   : > { %13853 = vmatpush1.bf16.msra.mxu0 %v18120_v31  ;;  %v18182_v31 = vld [vmem:[%s19067_s17 + $0x648] ss:$52 sps:$4 sm:$0xff]  }
 0xa3e   : > { %14013 = vmatpush1.bf16.msra.mxu1 %v18123_v59  ;;  %13854 = vmatprep.subr.bf16.mxu0 %v18128_v60  ;;  %v18184_v59 = vld [vmem:[%s19067_s17 + $0x9f0] ss:$52 sps:$4 sm:$0xff]  }
 0xa3f   : > { %14014 = vmatprep.subr.bf16.mxu1 %v18131_v48  ;;  %v18185_v60 = vld [vmem:[%s19067_s17 + $0x6b0] ss:$52 sps:$4 sm:$0xff]   ;;  %v18186_v48 = vld [vmem:[%s19067_s17 + $0xa58] ss:$52 sps:$4 sm:$0xff]  }
 0xa41   : > { %v18245_v53 = vpop.eup %18244  ;;  %13855 = vmatpush1.bf16.msra.mxu0 %v18126_v61  ;;  %v18187_v61 = vld [vmem:[%s19067_s17 + $0x718] ss:$52 sps:$4 sm:$0xff]  }
 0xa42   : > { %v18247_v9 = vpop.eup %18246  ;;  %14015 = vmatpush1.bf16.msra.mxu1 %v18129_v2  ;;  %13856 = vmatprep.subr.bf16.mxu0 %v18134_v62  ;;  %v18188_v2 = vld [vmem:[%s19067_s17 + $0xac0] ss:$52 sps:$4 sm:$0xff]  }
 0xa43   : > { %v14243_v21 = vcombine.low %v18245_v53, %v18247_v9  ;;  %14016 = vmatprep.subr.bf16.mxu1 %v18137_v0  ;;  %v18189_v62 = vld [vmem:[%s19067_s17 + $0x780] ss:$52 sps:$4 sm:$0xff]   ;;  %v18190_v0 = vld [vmem:[%s19067_s17 + $0xb28] ss:$52 sps:$4 sm:$0xff]   ;;  %v18195_v9 = vld [vmem:[%s19067_s17 + $0x8b8] ss:$52 sps:$4 sm:$0xff]  }
 0xa44   : > { %v18191_v53 = vld [vmem:[%s19067_s17 + $0x7e8] ss:$52 sps:$4 sm:$0xff]  }
 0xa45   : > { %v14257_v34 = vrot.slane %v14243_v21, %v19076_v16  ;;  %13857 = vmatpush1.bf16.msra.mxu0 %v18132_v46  ;;  %v18193_v46 = vld [vmem:[%s19067_s17 + $0x850] ss:$52 sps:$4 sm:$0xff]   ;;  %v18198_v21 = vld [vmem:[%s19067_s17 + $0xcc8] ss:$52 sps:$4 sm:$0xff]  }
 0xa46   : > { %14017 = vmatpush1.bf16.msra.mxu1 %v18135_v18  ;;  %13858 = vmatprep.subr.bf16.mxu0 %v18140_v19  ;;  %v18196_v18 = vld [vmem:[%s19067_s17 + $0xc60] ss:$52 sps:$4 sm:$0xff]  }
 0xa47   : > { %v14258_v4 = vcombine.low %v14250_v22, %v14257_v34  ;;  %14018 = vmatprep.subr.bf16.mxu1 %v18143_v12  ;;  %v18197_v19 = vld [vmem:[%s19067_s17 + $0x920] ss:$52 sps:$4 sm:$0xff]   ;;  %v18199_v12 = vld [vmem:[%s19067_s17 + $0x988] ss:$52 sps:$4 sm:$0xff]   ;;  %v18200_v22 = vld [vmem:[%s19067_s17 + $0x1070] ss:$52 sps:$4 sm:$0xff]  }
 0xa48   : > { %v18201_v34 = vld [vmem:[%s19067_s17 + $0xd30] ss:$52 sps:$4 sm:$0xff]  }
 0xa49   : > { %14288 = vst [vmem:[%s19871_s10 + $0x8] sm:$0xff] %v14258_v4  ;;  %13859 = vmatpush1.bf16.msra.mxu0 %v18138_v23  ;;  %v18202_v23 = vld [vmem:[%s19067_s17 + $0x10d8] ss:$52 sps:$4 sm:$0xff]   ;;  %v18205_v4 = vld [vmem:[%s19067_s17 + $0xe00] ss:$52 sps:$4 sm:$0xff]  }
 0xa4a   : > { %14019 = vmatpush1.bf16.msra.mxu1 %v18141_v24  ;;  %13860 = vmatprep.subr.bf16.mxu0 %v18146_v25  ;;  %v18203_v24 = vld [vmem:[%s19067_s17 + $0xd98] ss:$52 sps:$4 sm:$0xff]   ;;  %v18204_v25 = vld [vmem:[%s19067_s17 + $0x1140] ss:$52 sps:$4 sm:$0xff]  }
 0xa4b   : > { %14020 = vmatprep.subr.bf16.mxu1 %v18149_v26  ;;  %v18206_v26 = vld [vmem:[%s19067_s17 + $0x11a8] ss:$52 sps:$4 sm:$0xff]  }
 0xa4d   : > { %13861 = vmatpush1.bf16.msra.mxu0 %v18144_v13  ;;  %v18207_v13 = vld [vmem:[%s19067_s17 + $0xe68] ss:$52 sps:$4 sm:$0xff]  }
 0xa4e   : > { %14021 = vmatpush1.bf16.msra.mxu1 %v18147_v39  ;;  %13862 = vmatprep.subr.bf16.mxu0 %v18152_v44  ;;  %v18209_v39 = vld [vmem:[%s19067_s17 + $0xed0] ss:$52 sps:$4 sm:$0xff]   ;;  %v18211_v44 = vld [vmem:[%s19067_s17 + $0xf38] ss:$52 sps:$4 sm:$0xff]  }
 0xa4f   : > { %14022 = vmatprep.subr.bf16.mxu1 %v18155_v45  ;;  %v18212_v45 = vld [vmem:[%s19067_s17 + $0x12e0] ss:$52 sps:$4 sm:$0xff]  }
 0xa51   : > { %13863 = vmatpush1.bf16.msra.mxu0 %v18150_v17  ;;  %v18213_v17 = vld [vmem:[%s19067_s17 + $0xfa0] ss:$52 sps:$4 sm:$0xff]  }
 0xa52   : > { %14023 = vmatpush1.bf16.msra.mxu1 %v18153_v56  ;;  %13864 = vmatprep.subr.bf16.mxu0 %v18158_v28  ;;  %v18214_v56 = vld [vmem:[%s19067_s17 + $0x1348] ss:$52 sps:$4 sm:$0xff]  }
 0xa53   : > { %14024 = vmatprep.subr.bf16.mxu1 %v18161_v47  ;;  %v18215_v28 = vld [vmem:[%s19067_s17 + $0x1008] ss:$52 sps:$4 sm:$0xff]   ;;  %v18216_v47 = vld [vmem:[%s19067_s17 + $0x16f0] ss:$52 sps:$4 sm:$0xff]  }
 0xa55   : > { %13865 = vmatpush1.bf16.msra.mxu0 %v18156_v58  ;;  %v18217_v58 = vld [vmem:[%s19067_s17 + $0x13b0] ss:$52 sps:$4 sm:$0xff]  }
 0xa56   : > { %14025 = vmatpush1.bf16.msra.mxu1 %v18159_v7  ;;  %16298 = vmatprep.subr.bf16.mxu0 %v18162_v5  ;;  %v18218_v7 = vld [vmem:[%s19067_s17 + $0x1758] ss:$52 sps:$4 sm:$0xff]  }
 0xa57   : > { %14026 = vmatprep.subr.bf16.mxu1 %v18166_v49  ;;  %v18219_v5 = vld [vmem:[%s19067_s17 + $0x1418] ss:$52 sps:$4 sm:$0xff]   ;;  %v18220_v49 = vld [vmem:[%s19067_s17 + $0x17c0] ss:$52 sps:$4 sm:$0xff]  }
 0xa58   : > { %13867 = vmatmul.mubr.bf16.vlgmr.msra.gmra.mrb[24].mxu0 %v19598_v42 }
 0xa59   : > { %16299 = vmatpush3.bf16.msra.mxu0 %v18163_v10  ;;  %14071 = vmatprep.mubr.bf16.mxu0 %v19297_v37  ;;  %v18175_v37 = vld [vmem:[%s19067_s17 + $0x168] ss:$52 sps:$4 sm:$0xff]   ;;  %v18221_v10 = vld [vmem:[%s19067_s17 + $0x1480] ss:$52 sps:$4 sm:$0xff]  }
 0xa5a   : > { %14027 = vmatpush1.bf16.msra.mxu1 %v18164_v54  ;;  %16300 = vmatprep.subr.bf16.mxu0 %v18167_v50  ;;  %v18222_v54 = vld [vmem:[%s19067_s17 + $0x1828] ss:$52 sps:$4 sm:$0xff]  }
 0xa5b   : > { %14028 = vmatprep.subr.bf16.mxu1 %v18171_v35  ;;  %v18223_v50 = vld [vmem:[%s19067_s17 + $0x14e8] ss:$52 sps:$4 sm:$0xff]   ;;  %v18225_v35 = vld [vmem:[%s19067_s17 + $0x1550] ss:$52 sps:$4 sm:$0xff]  }
 0xa5d   : > { %16301 = vmatpush3.bf16.msra.mxu0 %v18168_v38  ;;  %v18227_v38 = vld [vmem:[%s19067_s17 + $0x15b8] ss:$52 sps:$4 sm:$0xff]  }
 0xa5e   : > { %14029 = vmatpush1.bf16.msra.mxu1 %v18169_v51  ;;  %16302 = vmatprep.subr.bf16.mxu0 %v18172_v29  ;;  %v18228_v51 = vld [vmem:[%s19067_s17 + $0x1960] ss:$52 sps:$4 sm:$0xff]  }
 0xa5f   : > { %v18229_v29 = vld [vmem:[%s19067_s17 + $0x1620] ss:$52 sps:$4 sm:$0xff]  }
 0xa61   : > { %16303 = vmatpush3.bf16.msra.mxu0 %v18173_v52  ;;  %14031 = vmatmul.mubr.bf16.vlgmr.msra.gmra.mrb[36].mxu1 %v19598_v42  ;;  %v18230_v52 = vld [vmem:[%s19067_s17 + $0x19c8] ss:$52 sps:$4 sm:$0xff]  }
 0xa62   : > { %16304 = vmatprep.subr.bf16.mxu0 %v18174_v55  ;;  %v18231_v55 = vld [vmem:[%s19067_s17 + $0x1688] ss:$52 sps:$4 sm:$0xff]  }
 0xa65   : > { %16305 = vmatpush3.bf16.msra.mxu0 %v18175_v37  ;;  %v8763_v37 = vld [vmem:[%s19826_s5 + $0x8] sm:$0x1f] }
 0xa66   : > { %16306 = vmatprep.subr.bf16.mxu0 %v18176_v8  ;;  %v8801_v8 = vrot.slane %v8763_v37, %v19106_v63 }
 0xa69   : > { %16307 = vmatpush3.bf16.msra.mxu0 %v18177_v36  ;;  %v8805_v36 = vrot.slane %v8763_v37, %v19109_v1 }
 0xa6a   : > { %16308 = vmatprep.subr.bf16.mxu0 %v18178_v14 }
 0xa6d   : > { %16309 = vmatpush3.bf16.msra.mxu0 %v18179_v27 }
 0xa6e   : > { %16310 = vmatprep.subr.bf16.mxu0 %v18180_v30 }
 0xa71   : > { %16311 = vmatpush3.bf16.msra.mxu0 %v18181_v40 }
 0xa72   : > { %16312 = vmatprep.subr.bf16.mxu0 %v18182_v31 }
 0xa75   : > { %16313 = vmatpush3.bf16.msra.mxu0 %v18183_v57 }
 0xa76   : > { %16320 = vmatprep.subr.bf16.mxu0 %v18184_v59  ;;  %v8809_v59 = vrot.slane %v8763_v37, %v19154_v15 }
 0xa78   : > { %14072 = vmatmul.mubr.bf16.vlgmr.msra.gmra.mrb[28].mxu0 %v19355_v11  ;;  %v18192_v11 = vld [vmem:[%s19067_s17 + $0xb90] ss:$52 sps:$4 sm:$0xff]  }
 0xa79   : > { %16321 = vmatpush3.bf16.msra.mxu0 %v18185_v60  ;;  %14111 = vmatprep.mubr.bf16.mxu0 %v19359_v3  ;;  %v18194_v3 = vld [vmem:[%s19067_s17 + $0xbf8] ss:$52 sps:$4 sm:$0xff]   ;;  %v8813_v60 = vrot.slane %v8763_v37, %v19157_v20 }
 0xa7a   : > { %16322 = vmatprep.subr.bf16.mxu0 %v18186_v48 }
 0xa7d   : > { %16323 = vmatpush3.bf16.msra.mxu0 %v18187_v61 }
 0xa7e   : > { %16324 = vmatprep.subr.bf16.mxu0 %v18188_v2 }
 0xa81   : > { %16325 = vmatpush3.bf16.msra.mxu0 %v18189_v62 }
 0xa82   : > { %16326 = vmatprep.subr.bf16.mxu0 %v18190_v0 }
 0xa85   : > { %16327 = vmatpush3.bf16.msra.mxu0 %v18191_v53 }
 0xa86   : > { %16328 = vmatprep.subr.bf16.mxu0 %v18192_v11 }
 0xa89   : > { %16329 = vmatpush3.bf16.msra.mxu0 %v18193_v46 }
 0xa8a   : > { %16330 = vmatprep.subr.bf16.mxu0 %v18194_v3 }
 0xa8d   : > { %16331 = vmatpush3.bf16.msra.mxu0 %v18195_v9 }
 0xa8e   : > { %16332 = vmatprep.subr.bf16.mxu0 %v18196_v18 }
 0xa91   : > { %16333 = vmatpush3.bf16.msra.mxu0 %v18197_v19 }
 0xa92   : > { %16334 = vmatprep.subr.bf16.mxu0 %v18198_v21 }
 0xa95   : > { %16335 = vmatpush3.bf16.msra.mxu0 %v18199_v12 }
 0xa96   : > { %16342 = vmatprep.subr.bf16.mxu0 %v18200_v22 }
 0xa98   : > { %14112 = vmatmul.mubr.bf16.vlgmr.msra.gmra.mrb[32].mxu0 %v19430_v33  ;;  %v18208_v33 = vld [vmem:[%s19067_s17 + $0x1210] ss:$52 sps:$4 sm:$0xff]  }
 0xa99   : > { %16343 = vmatpush3.bf16.msra.mxu0 %v18201_v34  ;;  %14151 = vmatprep.mubr.bf16.mxu0 %v19515_v6  ;;  %v18210_v6 = vld [vmem:[%s19067_s17 + $0x1278] ss:$52 sps:$4 sm:$0xff]   ;;  %v8817_v34 = vrot.slane %v8763_v37, %v19242_v32 }
 0xa9a   : > { %16344 = vmatprep.subr.bf16.mxu0 %v18202_v23 }
 0xa9d   : > { %16345 = vmatpush3.bf16.msra.mxu0 %v18203_v24 }
 0xa9e   : > { %16346 = vmatprep.subr.bf16.mxu0 %v18204_v25 }
 0xaa1   : > { %16347 = vmatpush3.bf16.msra.mxu0 %v18205_v4 }
 0xaa2   : > { %16348 = vmatprep.subr.bf16.mxu0 %v18206_v26 }
 0xaa5   : > { %16349 = vmatpush3.bf16.msra.mxu0 %v18207_v13 }
 0xaa6   : > { %16350 = vmatprep.subr.bf16.mxu0 %v18208_v33 }
 0xaa9   : > { %16351 = vmatpush3.bf16.msra.mxu0 %v18209_v39 }
 0xaaa   : > { %16352 = vmatprep.subr.bf16.mxu0 %v18210_v6 }
 0xaad   : > { %16353 = vmatpush3.bf16.msra.mxu0 %v18211_v44 }
 0xaae   : > { %16354 = vmatprep.subr.bf16.mxu0 %v18212_v45 }
 0xab1   : > { %16355 = vmatpush3.bf16.msra.mxu0 %v18213_v17 }
 0xab2   : > { %16356 = vmatprep.subr.bf16.mxu0 %v18214_v56 }
 0xab5   : > { %16357 = vmatpush3.bf16.msra.mxu0 %v18215_v28 }
 0xab6   : > { %16364 = vmatprep.subr.bf16.mxu0 %v18216_v47 }
 0xab8   : > { %14152 = vmatmul.mubr.bf16.vlgmr.msra.gmra.mrb[36].mxu0 %v19518_v41  ;;  %v18224_v41 = vld [vmem:[%s19067_s17 + $0x1890] ss:$52 sps:$4 sm:$0xff]  }
 0xab9   : > { %16365 = vmatpush3.bf16.msra.mxu0 %v18217_v58  ;;  %14191 = vmatprep.mubr.bf16.mxu0 %v19564_v43  ;;  %v18226_v43 = vld [vmem:[%s19067_s17 + $0x18f8] ss:$52 sps:$4 sm:$0xff]  }
 0xaba   : > { %16366 = vmatprep.subr.bf16.mxu0 %v18218_v7 }
 0xabd   : > { %16367 = vmatpush3.bf16.msra.mxu0 %v18219_v5 }
 0xabe   : > { %16368 = vmatprep.subr.bf16.mxu0 %v18220_v49 }
 0xac1   : > { %16369 = vmatpush3.bf16.msra.mxu0 %v18221_v10 }
 0xac2   : > { %16370 = vmatprep.subr.bf16.mxu0 %v18222_v54 }
 0xac5   : > { %16371 = vmatpush3.bf16.msra.mxu0 %v18223_v50 }
 0xac6   : > { %16372 = vmatprep.subr.bf16.mxu0 %v18224_v41 }
 0xac9   : > { %16373 = vmatpush3.bf16.msra.mxu0 %v18225_v35 }
 0xaca   : > { %16374 = vmatprep.subr.bf16.mxu0 %v18226_v43 }
 0xacd   : > { %16375 = vmatpush3.bf16.msra.mxu0 %v18227_v38 }
 0xace   : > { %16376 = vmatprep.subr.bf16.mxu0 %v18228_v51 }
 0xad1   : > { %16377 = vmatpush3.bf16.msra.mxu0 %v18229_v29 }
 0xad2   : > { %16378 = vmatprep.subr.bf16.mxu0 %v18230_v52 }
 0xad5   : > { %16379 = vmatpush3.bf16.msra.mxu0 %v18231_v55 }
 0xad8   : > { %14192 = vmatmul.mubr.bf16.vlgmr.msra.gmra.mrb[40].mxu0 %v19598_v42 }
 0xb2b   : > { %v13868_v14 = vpop.f32.mrb[24].mxu0 }
 0xb2c   : > { %v16412_v27 = vadd.f32 %v13868_v14, %v8801_v8  ;;  %v13870_v30 = vpop.f32.mrb[25].mxu0 }
 0xb2d   : > { %v16413_v40 = vadd.f32 %v13870_v30, %v8805_v36  ;;  %v13872_v31 = vpop.f32.mrb[26].mxu0 }
 0xb2e   : > { %18248 = vtanh.f32 %v16412_v27  ;;  %v13873_v57 = vpop.f32.mrb[27].mxu0 }
 0xb2f   : > { %18250 = vtanh.f32 %v16413_v40 }
 0xb34   : > { %v14032_v48 = vpop.f32.mrb[36].mxu1 }
 0xb35   : > { %v16414_v61 = vadd.f32 %v14032_v48, %v8809_v59  ;;  %v14034_v42 = vpop.f32.mrb[37].mxu1 }
 0xb36   : > { %v16415_v2 = vadd.f32 %v14034_v42, %v8813_v60  ;;  %v14036_v63 = vpop.f32.mrb[38].mxu1 }
 0xb37   : > { %18252 = vtanh.f32 %v16414_v61  ;;  %v14037_v1 = vpop.f32.mrb[39].mxu1 }
 0xb38   : > { %v18249_v62 = vpop.eup %18248  ;;  %18254 = vtanh.f32 %v16415_v2 }
 0xb39   : > { %v18251_v0 = vpop.eup %18250 }
 0xb3a   : > { %v14259_v53 = vcombine.low %v18249_v62, %v18251_v0 }
 0xb3c   : > { %v14267_v9 = vrot.slane %v14259_v53, %v19076_v16 }
 0xb41   : > { %v18253_v11 = vpop.eup %18252 }
 0xb42   : > { %v18255_v46 = vpop.eup %18254 }
 0xb43   : > { %v14260_v3 = vcombine.low %v18253_v11, %v18255_v46 }
 0xb45   : > { %v14274_v15 = vrot.slane %v14260_v3, %v19076_v16 }
 0xb47   : > { %v14275_v20 = vcombine.low %v14267_v9, %v14274_v15 }
 0xb49   : > { %14289 = vst [vmem:[%s19871_s10 + $0x10] sm:$0xff] %v14275_v20 }
 0xb4b   : > { %v16314_v18 = vpop.f32.mrb[28].mxu0 }
 0xb4c   : > { %v16315_v19 = vpop.f32.mrb[29].mxu0 }
 0xb4d   : > { %v16316_v21 = vadd.f32 %v16315_v19, %v16314_v18  ;;  %v16317_v12 = vpop.f32.mrb[30].mxu0 }
 0xb4e   : > { %v16318_v22 = vpop.f32.mrb[31].mxu0 }
 0xb4f   : > { %v14074_v25 = vadd.f32 %v16316_v21, %v8817_v34 }
 0xb6b   : > { %v16336_v23 = vpop.f32.mrb[32].mxu0 }
 0xb6c   : > { %v16337_v24 = vpop.f32.mrb[33].mxu0 }
 0xb6d   : > { %v16338_v4 = vadd.f32 %v16337_v24, %v16336_v23  ;;  %v16339_v26 = vpop.f32.mrb[34].mxu0 }
 0xb6e   : > { %v16340_v13 = vpop.f32.mrb[35].mxu0 }
 0xb6f   : > { %v14114_v33 = vadd.f32 %v16338_v4, %v14074_v25 }
 0xb8b   : > { %v16358_v39 = vpop.f32.mrb[36].mxu0 }
 0xb8c   : > { %v16359_v6 = vpop.f32.mrb[37].mxu0 }
 0xb8d   : > { %v16360_v16 = vadd.f32 %v16359_v6, %v16358_v39  ;;  %v16361_v44 = vpop.f32.mrb[38].mxu0 }
 0xb8e   : > { %v16362_v45 = vpop.f32.mrb[39].mxu0 }
 0xb8f   : > { %v14154_v17 = vadd.f32 %v16360_v16, %v14114_v33 }
 0xbab   : > { %v16380_v56 = vpop.f32.mrb[40].mxu0 }
 0xbac   : > { %v16381_v28 = vpop.f32.mrb[41].mxu0 }
 0xbad   : > { %v16382_v47 = vadd.f32 %v16381_v28, %v16380_v56  ;;  %v16383_v58 = vpop.f32.mrb[42].mxu0 }
 0xbae   : > { %v16384_v7 = vpop.f32.mrb[43].mxu0 }
 0xbaf   : > { %v14194_v32 = vadd.f32 %v16382_v47, %v14154_v17 }
 0xbb1   : > { %18256 = vtanh.f32 %v14194_v32 }
 0xbbb   : > { %v18257_v5 = vpop.eup %18256 }
 0xbbc   : > { %16293 = vst.sshfl [vmem:[%s19871_s10 + $0x18] sm:$0x3 pattern:$0x76325410] %v18257_v5 }
 0xbbd PF: > { %p26_p5 = scmp.ge.s32.totalorder %s18845_s30, 18   ;;  %s20331_s17 = smov %s18619_s18 }
 0xbbe   : > { %s20332_s18 = smov %s18623_s19  ;;  %s20333_s19 = smov %s18857_s15 }
 0xbbf   : > { %s20334_s20 = smov %s18845_s30  ;;  %28 = sbr.rel (!%p26_p5) target bundleno = 16 (0x10), region = 152 }
 0xbc6   :  { %14313 = vsyncpa [#allocation3], 1 }
 0xbc7   :  { %14315 = vsyncpa [#allocation3 + $0x1], 1 }
 0xbc8   :  { %14316 = vsyncpa [#allocation5], 1 }
 0xbc9   :  { %14317 = vsyncpa [#allocation8], 1 }
 0xbca   :  { %14318 = vsyncpa [#allocation11], 1 }
 0xbcb   :  { %14319 = vsyncpa [#allocation14], 1 }
 0xbcc   :  { %14320 = vsyncpa [#allocation17], 1 }
 0xbcd   :  { %14322 = vsyncpa [#allocation17 + $0x1], 1 }

</bundles_post_ra>
